<compile_context>
chip_gen: v7x
topology: tpu7x:2x2x1
jax: 0.10.0
libtpu: 0.0.40
codegen_flags: <defaults>
</compile_context>

<pallas_src>
import functools

import jax
import jax.numpy as jnp
from jax.experimental import pallas as pl
from jax.experimental.pallas import tpu as pltpu

EXPANSION = 4
LANE = 128
BN_EPS = 1e-5

_COMPILER_PARAMS = pltpu.CompilerParams(
    dimension_semantics=("parallel",),      # shard the 1-D grid across TCs (v7x)
    vmem_limit_bytes=48 * 1024 * 1024,      # headroom below v7x's 64 MiB VMEM
)


# -----------------------------------------------------------------------------
# Small helpers
# -----------------------------------------------------------------------------
def _round_up(x, m):
    return ((x + m - 1) // m) * m


def _choose_tile_m(m, target=1024):
    """Largest divisor of m that is a multiple of 8 and <= target (else m)."""
    best = None
    t = 8
    while t <= min(m, target):
        if m % t == 0:
            best = t
        t += 8
    return best if best is not None else m


def _pad2(a, rows, cols):
    r, c = a.shape
    return jnp.pad(a, ((0, rows - r), (0, cols - c)))


def _pad_vec(v, n):
    return jnp.pad(v, (0, n - v.shape[0]))


def _bn_scale_shift(stats, count, gamma, beta, eps=BN_EPS):
    """stats: (num_tiles, 2, C) partial [sum, sumsq]. Returns (1,C) scale/shift."""
    tot = jnp.sum(stats, axis=0)                      # (2, C)
    mean = tot[0] / count
    var = jnp.maximum(tot[1] / count - mean * mean, 0.0)
    inv = jax.lax.rsqrt(var + eps)
    scale = gamma * inv
    shift = beta - mean * scale
    return (scale[None, :].astype(jnp.float32),
            shift[None, :].astype(jnp.float32))


# -----------------------------------------------------------------------------
# Kernel 1: 1x1 conv (matmul) + per-tile BN partial statistics
# -----------------------------------------------------------------------------
def _mm_stats_kernel(x_ref, w_ref, y_ref, st_ref):
    y = jnp.dot(x_ref[...], w_ref[...], preferred_element_type=jnp.float32)
    y_ref[...] = y
    st_ref[0] = jnp.concatenate(
        [jnp.sum(y, axis=0, keepdims=True),
         jnp.sum(y * y, axis=0, keepdims=True)], axis=0)


def conv1x1_stats(x2d, w):
    """x2d: (M, K) bf16, w: (K, C) bf16 -> (y (M,C) f32, stats (nt,2,C) f32)."""
    m, k = x2d.shape
    c = w.shape[1]
    tm = _choose_tile_m(m)
    nt = m // tm
    return pl.pallas_call(
        _mm_stats_kernel,
        grid=(nt,),
        in_specs=[pl.BlockSpec((tm, k), lambda i: (i, 0)),
                  pl.BlockSpec((k, c), lambda i: (0, 0))],
        out_specs=(pl.BlockSpec((tm, c), lambda i: (i, 0)),
                   pl.BlockSpec((1, 2, c), lambda i: (i, 0, 0))),
        out_shape=(jax.ShapeDtypeStruct((m, c), jnp.float32),
                   jax.ShapeDtypeStruct((nt, 2, c), jnp.float32)),
        compiler_params=_COMPILER_PARAMS,
    )(x2d, w)


# -----------------------------------------------------------------------------
# Kernel 2: BN (precomputed scale/shift) + ReLU + bf16 cast
# -----------------------------------------------------------------------------
def _bn_relu_kernel(y_ref, sc_ref, sh_ref, o_ref):
    o_ref[...] = jnp.maximum(
        y_ref[...] * sc_ref[...] + sh_ref[...], 0.0).astype(o_ref.dtype)


def bn_relu(y, scale, shift, out_dtype=jnp.bfloat16):
    m, c = y.shape
    tm = _choose_tile_m(m)
    return pl.pallas_call(
        _bn_relu_kernel,
        grid=(m // tm,),
        in_specs=[pl.BlockSpec((tm, c), lambda i: (i, 0)),
                  pl.BlockSpec((1, c), lambda i: (0, 0)),
                  pl.BlockSpec((1, c), lambda i: (0, 0))],
        out_specs=pl.BlockSpec((tm, c), lambda i: (i, 0)),
        out_shape=jax.ShapeDtypeStruct((m, c), out_dtype),
        compiler_params=_COMPILER_PARAMS,
    )(y, scale, shift)


# -----------------------------------------------------------------------------
# Kernel 3: 3x3 conv as 9 in-kernel tap matmuls (no im2col) + BN partial stats
# -----------------------------------------------------------------------------
def _conv3x3_stats_kernel(xp_ref, w_ref, y_ref, st_ref, acc_ref, *, ho, wo, stride):
    cin = xp_ref.shape[-1]
    cout = w_ref.shape[-1]
    acc_ref[...] = jnp.zeros_like(acc_ref)
    for dy in range(3):
        for dx in range(3):
            if stride == 1:
                win = xp_ref[0, dy:dy + ho, dx:dx + wo, :]
            else:
                # TODO(synk): stride>1 path uses reshape-based subsampling of the
                # halo block; only stride=1 is exercised in __main__.
                rows = xp_ref[0, dy:dy + ho * stride, :, :]
                rows = rows.reshape(ho, stride, rows.shape[1], cin)[:, 0]
                cols = rows[:, dx:dx + wo * stride, :]
                win = cols.reshape(ho, wo, stride, cin)[:, :, 0]
            acc_ref[...] += jnp.dot(win.reshape(ho * wo, cin), w_ref[dy, dx],
                                    preferred_element_type=jnp.float32)
    acc = acc_ref[...]
    y_ref[0] = acc.reshape(ho, wo, cout)
    st_ref[0] = jnp.concatenate(
        [jnp.sum(acc, axis=0, keepdims=True),
         jnp.sum(acc * acc, axis=0, keepdims=True)], axis=0)


def conv3x3_stats(xp, w2, ho, wo, stride):
    """xp: (N, Hp, Wp, Cin) bf16 spatially padded; w2: (3,3,Cin,Cout) bf16."""
    n, hp, wp, cin = xp.shape
    cout = w2.shape[-1]
    kern = functools.partial(_conv3x3_stats_kernel, ho=ho, wo=wo, stride=stride)
    return pl.pallas_call(
        kern,
        grid=(n,),
        in_specs=[pl.BlockSpec((1, hp, wp, cin), lambda i: (i, 0, 0, 0)),
                  pl.BlockSpec((3, 3, cin, cout), lambda i: (0, 0, 0, 0))],
        out_specs=(pl.BlockSpec((1, ho, wo, cout), lambda i: (i, 0, 0, 0)),
                   pl.BlockSpec((1, 2, cout), lambda i: (i, 0, 0))),
        out_shape=(jax.ShapeDtypeStruct((n, ho, wo, cout), jnp.float32),
                   jax.ShapeDtypeStruct((n, 2, cout), jnp.float32)),
        scratch_shapes=[pltpu.VMEM((ho * wo, cout), jnp.float32)],
        compiler_params=_COMPILER_PARAMS,
    )(xp, w2)


# -----------------------------------------------------------------------------
# Kernel 4: fused bn2+ReLU -> conv3 (1x1) [+ downsample 1x1 conv] + stats
# -----------------------------------------------------------------------------
def _stage3_kernel(*refs, has_down):
    if has_down:
        (y2_ref, sc2_ref, sh2_ref, w3_ref, xs_ref, wd_ref,
         y3_ref, yd_ref, st3_ref, std_ref) = refs
    else:
        y2_ref, sc2_ref, sh2_ref, w3_ref, y3_ref, st3_ref = refs

    a = jnp.maximum(y2_ref[...] * sc2_ref[...] + sh2_ref[...], 0.0)
    a = a.astype(jnp.bfloat16)
    y3 = jnp.dot(a, w3_ref[...], preferred_element_type=jnp.float32)
    y3_ref[...] = y3
    st3_ref[0] = jnp.concatenate(
        [jnp.sum(y3, axis=0, keepdims=True),
         jnp.sum(y3 * y3, axis=0, keepdims=True)], axis=0)

    if has_down:
        yd = jnp.dot(xs_ref[...], wd_ref[...], preferred_element_type=jnp.float32)
        yd_ref[...] = yd
        std_ref[0] = jnp.concatenate(
            [jnp.sum(yd, axis=0, keepdims=True),
             jnp.sum(yd * yd, axis=0, keepdims=True)], axis=0)


def stage3_stats(y2, scale2, shift2, w3, xs=None, wd=None):
    m, c2 = y2.shape
    c3 = w3.shape[1]
    tm = _choose_tile_m(m)
    nt = m // tm
    has_down = xs is not None
    kern = functools.partial(_stage3_kernel, has_down=has_down)

    in_specs = [pl.BlockSpec((tm, c2), lambda i: (i, 0)),
                pl.BlockSpec((1, c2), lambda i: (0, 0)),
                pl.BlockSpec((1, c2), lambda i: (0, 0)),
                pl.BlockSpec((c2, c3), lambda i: (0, 0))]
    inputs = [y2, scale2, shift2, w3]
    if has_down:
        c0 = xs.shape[1]
        in_specs += [pl.BlockSpec((tm, c0), lambda i: (i, 0)),
                     pl.BlockSpec((c0, c3), lambda i: (0, 0))]
        inputs += [xs, wd]
        out_specs = (pl.BlockSpec((tm, c3), lambda i: (i, 0)),
                     pl.BlockSpec((tm, c3), lambda i: (i, 0)),
                     pl.BlockSpec((1, 2, c3), lambda i: (i, 0, 0)),
                     pl.BlockSpec((1, 2, c3), lambda i: (i, 0, 0)))
        out_shape = (jax.ShapeDtypeStruct((m, c3), jnp.float32),
                     jax.ShapeDtypeStruct((m, c3), jnp.float32),
                     jax.ShapeDtypeStruct((nt, 2, c3), jnp.float32),
                     jax.ShapeDtypeStruct((nt, 2, c3), jnp.float32))
    else:
        out_specs = (pl.BlockSpec((tm, c3), lambda i: (i, 0)),
                     pl.BlockSpec((1, 2, c3), lambda i: (i, 0, 0)))
        out_shape = (jax.ShapeDtypeStruct((m, c3), jnp.float32),
                     jax.ShapeDtypeStruct((nt, 2, c3), jnp.float32))

    res = pl.pallas_call(
        kern, grid=(nt,),
        in_specs=in_specs, out_specs=out_specs, out_shape=out_shape,
        compiler_params=_COMPILER_PARAMS,
    )(*inputs)
    if has_down:
        y3, yd, st3, std = res
        return y3, st3, yd, std
    y3, st3 = res
    return y3, st3, None, None


# -----------------------------------------------------------------------------
# Kernel 5: final bn3 [+ bn_downsample] + residual add + ReLU
# -----------------------------------------------------------------------------
def _final_kernel(*refs, affine_res):
    if affine_res:
        y3_ref, sc3_ref, sh3_ref, yd_ref, scd_ref, shd_ref, o_ref = refs
        res = yd_ref[...] * scd_ref[...] + shd_ref[...]
    else:
        y3_ref, sc3_ref, sh3_ref, r_ref, o_ref = refs
        res = r_ref[...].astype(jnp.float32)
    out = y3_ref[...] * sc3_ref[...] + sh3_ref[...] + res
    o_ref[...] = jnp.maximum(out, 0.0).astype(o_ref.dtype)


def final_bn_add_relu(y3, scale3, shift3, residual, scaled=None, shiftd=None,
                      out_dtype=jnp.float32):
    m, c3 = y3.shape
    tm = _choose_tile_m(m)
    affine_res = scaled is not None
    kern = functools.partial(_final_kernel, affine_res=affine_res)
    in_specs = [pl.BlockSpec((tm, c3), lambda i: (i, 0)),
                pl.BlockSpec((1, c3), lambda i: (0, 0)),
                pl.BlockSpec((1, c3), lambda i: (0, 0)),
                pl.BlockSpec((tm, c3), lambda i: (i, 0))]
    inputs = [y3, scale3, shift3, residual]
    if affine_res:
        in_specs += [pl.BlockSpec((1, c3), lambda i: (0, 0)),
                     pl.BlockSpec((1, c3), lambda i: (0, 0))]
        inputs += [scaled, shiftd]
    return pl.pallas_call(
        kern, grid=(m // tm,),
        in_specs=in_specs,
        out_specs=pl.BlockSpec((tm, c3), lambda i: (i, 0)),
        out_shape=jax.ShapeDtypeStruct((m, c3), out_dtype),
        compiler_params=_COMPILER_PARAMS,
    )(*inputs)


# -----------------------------------------------------------------------------
# Parameters (matching a freshly-constructed PyTorch Bottleneck, training mode)
# -----------------------------------------------------------------------------
def init_params(key, in_planes, planes):
    ks = jax.random.split(key, 4)

    def conv_init(k, fan_in, shape):
        return (jax.random.normal(k, shape, jnp.float32) / jnp.sqrt(fan_in))

    return {
        "w1": conv_init(ks[0], in_planes, (in_planes, planes)),
        "g1": jnp.ones((planes,), jnp.float32),
        "b1": jnp.zeros((planes,), jnp.float32),
        "w2": conv_init(ks[1], 9 * planes, (3, 3, planes, planes)),   # HWIO
        "g2": jnp.ones((planes,), jnp.float32),
        "b2": jnp.zeros((planes,), jnp.float32),
        "w3": conv_init(ks[2], planes, (planes, EXPANSION * planes)),
        "g3": jnp.ones((EXPANSION * planes,), jnp.float32),
        "b3": jnp.zeros((EXPANSION * planes,), jnp.float32),
        "wd": conv_init(ks[3], in_planes, (in_planes, EXPANSION * planes)),
        "gd": jnp.ones((EXPANSION * planes,), jnp.float32),
        "bd": jnp.zeros((EXPANSION * planes,), jnp.float32),
    }


# -----------------------------------------------------------------------------
# Bottleneck forward (expansion = 4)
# -----------------------------------------------------------------------------
def bottleneck_forward(x_nchw, params, in_planes, planes, stride=1):
    n, _, h, w = x_nchw.shape
    out_planes = EXPANSION * planes
    ho = (h + 2 - 3) // stride + 1
    wo = (w + 2 - 3) // stride + 1

    c0p = _round_up(in_planes, LANE)
    c1p = _round_up(planes, LANE)
    c3p = _round_up(out_planes, LANE)

    # ---- layout glue (plain JAX): NCHW -> NHWC, channel pad, bf16 cast ------
    x_nhwc = jnp.transpose(x_nchw, (0, 2, 3, 1)).astype(jnp.float32)
    x_padc = jnp.pad(x_nhwc, ((0, 0), (0, 0), (0, 0), (0, c0p - in_planes)))
    x_bf = x_padc.astype(jnp.bfloat16)
    x_flat_bf = x_bf.reshape(n * h * w, c0p)

    w1 = _pad2(params["w1"], c0p, c1p).astype(jnp.bfloat16)
    w2 = jnp.pad(params["w2"],
                 ((0, 0), (0, 0), (0, c1p - planes), (0, c1p - planes))
                 ).astype(jnp.bfloat16)
    w3 = _pad2(params["w3"], c1p, c3p).astype(jnp.bfloat16)
    g1, b1 = _pad_vec(params["g1"], c1p), _pad_vec(params["b1"], c1p)
    g2, b2 = _pad_vec(params["g2"], c1p), _pad_vec(params["b2"], c1p)
    g3, b3 = _pad_vec(params["g3"], c3p), _pad_vec(params["b3"], c3p)

    m0 = n * h * w
    m = n * ho * wo

    # ---- stage 1: conv1 (1x1) + BN1 stats, then bn1+relu -> bf16 ------------
    y1, st1 = conv1x1_stats(x_flat_bf, w1)
    sc1, sh1 = _bn_scale_shift(st1, m0, g1, b1)
    out1 = bn_relu(y1, sc1, sh1)                              # (m0, c1p) bf16

    # ---- stage 2: conv2 (3x3, stride, pad=1) + BN2 stats ---------------------
    hp = max(h + 2, ho * stride + 2)
    wp = max(w + 2, wo * stride + 2)
    out1_img = out1.reshape(n, h, w, c1p)
    out1_pad = jnp.pad(out1_img,
                       ((0, 0), (1, hp - h - 1), (1, wp - w - 1), (0, 0)))
    y2, st2 = conv3x3_stats(out1_pad, w2, ho, wo, stride)
    sc2, sh2 = _bn_scale_shift(st2, m, g2, b2)
    y2_flat = y2.reshape(m, c1p)

    # ---- stage 3: fused bn2+relu -> conv3 (1x1) [+ downsample conv] ----------
    need_down = (stride != 1) or (in_planes != out_planes)
    if need_down:
        wd = _pad2(params["wd"], c0p, c3p).astype(jnp.bfloat16)
        gd, bd = _pad_vec(params["gd"], c3p), _pad_vec(params["bd"], c3p)
        xs = x_bf[:, ::stride, ::stride, :].reshape(m, c0p)
        y3, st3, yd, std = stage3_stats(y2_flat, sc2, sh2, w3, xs, wd)
        sc3, sh3 = _bn_scale_shift(st3, m, g3, b3)
        scd, shd = _bn_scale_shift(std, m, gd, bd)
        out = final_bn_add_relu(y3, sc3, sh3, yd, scd, shd)
    else:
        y3, st3, _, _ = stage3_stats(y2_flat, sc2, sh2, w3)
        sc3, sh3 = _bn_scale_shift(st3, m, g3, b3)
        res = jnp.pad(x_nhwc, ((0, 0), (0, 0), (0, 0), (0, c3p - in_planes))
                      ).reshape(m, c3p)                       # exact f32 identity
        out = final_bn_add_relu(y3, sc3, sh3, res)

    out = out.reshape(n, ho, wo, c3p)[..., :out_planes]
    return jnp.transpose(out, (0, 3, 1, 2))                   # back to NCHW


# -----------------------------------------------------------------------------
# Pure-JAX reference (mirrors the PyTorch forward in training mode; matmul
# inputs cast to bf16 with f32 accumulation, exactly like the kernels)
# -----------------------------------------------------------------------------
def _ref_bn(y, gamma, beta, eps=BN_EPS):
    mean = jnp.mean(y, axis=(0, 1, 2), keepdims=True)
    var = jnp.mean(jnp.square(y - mean), axis=(0, 1, 2), keepdims=True)
    return (y - mean) * jax.lax.rsqrt(var + eps) * gamma + beta


def _ref_conv(x, w_hwio, stride, pad):
    return jax.lax.conv_general_dilated(
        x.astype(jnp.bfloat16), w_hwio.astype(jnp.bfloat16),
        (stride, stride), [(pad, pad), (pad, pad)],
        dimension_numbers=("NHWC", "HWIO", "NHWC"),
        preferred_element_type=jnp.float32)


def ref_forward(x_nchw, params, in_planes, planes, stride=1):
    x = jnp.transpose(x_nchw, (0, 2, 3, 1)).astype(jnp.float32)
    out = jax.nn.relu(_ref_bn(_ref_conv(x, params["w1"][None, None], 1, 0),
                              params["g1"], params["b1"]))
    out = jax.nn.relu(_ref_bn(_ref_conv(out, params["w2"], stride, 1),
                              params["g2"], params["b2"]))
    out = _ref_bn(_ref_conv(out, params["w3"][None, None], 1, 0),
                  params["g3"], params["b3"])
    if (stride != 1) or (in_planes != EXPANSION * planes):
        sc = _ref_bn(_ref_conv(x, params["wd"][None, None], stride, 0),
                     params["gd"], params["bd"])
    else:
        sc = x
    return jnp.transpose(jax.nn.relu(out + sc), (0, 3, 1, 2))


# -----------------------------------------------------------------------------
if __name__ == "__main__":
    key = jax.random.PRNGKey(0)
    kx1, kp1, kx2, kp2 = jax.random.split(key, 4)

    # Case 1: projection shortcut (in_planes != expansion*planes), stride=1
    N, IN_PLANES, PLANES, H, W, STRIDE = 2, 4, 8, 16, 16, 1
    x = jax.random.normal(kx1, (N, IN_PLANES, H, W), jnp.float32)
    params = init_params(kp1, IN_PLANES, PLANES)
    fwd = jax.jit(functools.partial(bottleneck_forward,
                                    in_planes=IN_PLANES, planes=PLANES,
                                    stride=STRIDE))
    out = jax.block_until_ready(fwd(x, params))
    ref = jax.block_until_ready(ref_forward(x, params, IN_PLANES, PLANES, STRIDE))
    assert out.shape == (N, EXPANSION * PLANES, H, W), out.shape
    err1 = float(jnp.max(jnp.abs(out - ref)))
    assert jnp.allclose(out, ref, rtol=1e-2, atol=1e-2), err1

    # Case 2: identity shortcut (in_planes == expansion*planes), stride=1
    IN2, PL2 = 32, 8
    x2 = jax.random.normal(kx2, (N, IN2, H, W), jnp.float32)
    params2 = init_params(kp2, IN2, PL2)
    fwd2 = jax.jit(functools.partial(bottleneck_forward,
                                     in_planes=IN2, planes=PL2, stride=1))
    out2 = jax.block_until_ready(fwd2(x2, params2))
    ref2 = jax.block_until_ready(ref_forward(x2, params2, IN2, PL2, 1))
    assert out2.shape == (N, EXPANSION * PL2, H, W), out2.shape
    err2 = float(jnp.max(jnp.abs(out2 - ref2)))
    assert jnp.allclose(out2, ref2, rtol=1e-2, atol=1e-2), err2

    print("KERNEL_OK")
</pallas_src>

<mosaic_0001>
module attributes {stable_mosaic.version = 11 : i64} {
  func.func @_mm_stats_kernel(%arg0: i32, %arg1: memref<512x128xbf16, #tpu.memory_space<vmem>>, %arg2: memref<128x128xbf16, #tpu.memory_space<vmem>>, %arg3: memref<512x128xf32, #tpu.memory_space<vmem>>, %arg4: memref<1x2x128xf32, #tpu.memory_space<vmem>>) attributes {dimension_semantics = [#tpu.dimension_semantics<parallel>], iteration_bounds = array<i64: 1>, scalar_prefetch = 0 : i64, scratch_operands = 0 : i64, tpu.core_type = #tpu.core_type<tc>, window_params = [{transform_indices = @transform_0, window_bounds = array<i64: 512, 128>}, {pipeline_mode = #tpu.pipeline_mode<synchronous>, transform_indices = @transform_1, window_bounds = array<i64: 128, 128>}, {transform_indices = @transform_2, window_bounds = array<i64: 512, 128>}, {transform_indices = @transform_3, window_bounds = array<i64: 1, 2, 128>}]} {
    %c0 = arith.constant 0 : index
    %c0_0 = arith.constant 0 : index
    %0 = vector.load %arg1[%c0, %c0_0] : memref<512x128xbf16, #tpu.memory_space<vmem>>, vector<512x128xbf16>
    %c0_1 = arith.constant 0 : index
    %c0_2 = arith.constant 0 : index
    %1 = vector.load %arg2[%c0_1, %c0_2] : memref<128x128xbf16, #tpu.memory_space<vmem>>, vector<128x128xbf16>
    %cst = arith.constant dense<0.000000e+00> : vector<512x128xf32>
    %2 = tpu.matmul %0, %1, %cst {dimension_numbers = #tpu.dot_dimension_numbers<[1], [0], [0], [1], [0, 0, 1, 1], [], []>} : vector<512x128xbf16>, vector<128x128xbf16>, vector<512x128xf32> -> vector<512x128xf32>
    %c0_3 = arith.constant 0 : index
    %c0_4 = arith.constant 0 : index
    %3 = vector.load %arg3[%c0_3, %c0_4] : memref<512x128xf32, #tpu.memory_space<vmem>>, vector<512x128xf32>
    tpu.vector_store %arg3[%c0_3, %c0_4], %2 {strides = array<i32>} : memref<512x128xf32, #tpu.memory_space<vmem>>, vector<512x128xf32>,
    %cst_5 = arith.constant dense<0.000000e+00> : vector<128xf32>
    %4 = vector.multi_reduction <add>, %2, %cst_5 [0] : vector<512x128xf32> to vector<128xf32>
    %5 = vector.shape_cast %4 : vector<128xf32> to vector<1x128xf32>
    %6 = arith.mulf %2, %2 : vector<512x128xf32>
    %cst_6 = arith.constant dense<0.000000e+00> : vector<128xf32>
    %7 = vector.multi_reduction <add>, %6, %cst_6 [0] : vector<512x128xf32> to vector<128xf32>
    %8 = vector.shape_cast %7 : vector<128xf32> to vector<1x128xf32>
    %9 = tpu.concatenate %5, %8 in 0 : vector<1x128xf32>, vector<1x128xf32> -> vector<2x128xf32>
    %c0_7 = arith.constant 0 : index
    %c0_8 = arith.constant 0 : index
    %c0_9 = arith.constant 0 : index
    %10 = vector.load %arg4[%c0_7, %c0_8, %c0_9] : memref<1x2x128xf32, #tpu.memory_space<vmem>>, vector<1x2x128xf32>
    %11 = vector.shape_cast %10 : vector<1x2x128xf32> to vector<2x128xf32>
    %12 = vector.shape_cast %9 : vector<2x128xf32> to vector<1x2x128xf32>
    tpu.vector_store %arg4[%c0_7, %c0_8, %c0_9], %12 {strides = array<i32>} : memref<1x2x128xf32, #tpu.memory_space<vmem>>, vector<1x2x128xf32>,
    return
  }
  func.func @transform_0(%arg0: i32) -> (i32, i32) {
    %c0_i32 = arith.constant 0 : i32
    %c0_i32_0 = arith.constant 0 : i32
    return %arg0, %c0_i32 : i32, i32
  }
  func.func @transform_1(%arg0: i32) -> (i32, i32) {
    %c0_i32 = arith.constant 0 : i32
    %c0_i32_0 = arith.constant 0 : i32
    %c0_i32_1 = arith.constant 0 : i32
    return %c0_i32, %c0_i32_0 : i32, i32
  }
  func.func @transform_2(%arg0: i32) -> (i32, i32) {
    %c0_i32 = arith.constant 0 : i32
    %c0_i32_0 = arith.constant 0 : i32
    return %arg0, %c0_i32 : i32, i32
  }
  func.func @transform_3(%arg0: i32) -> (i32, i32, i32) {
    %c0_i32 = arith.constant 0 : i32
    %c0_i32_0 = arith.constant 0 : i32
    %c0_i32_1 = arith.constant 0 : i32
    return %arg0, %c0_i32, %c0_i32_0 : i32, i32, i32
  }
}

module attributes {stable_mosaic.version = 11 : i64} {
  func.func @_bn_relu_kernel(%arg0: i32, %arg1: memref<512x128xf32, #tpu.memory_space<vmem>>, %arg2: memref<1x128xf32, #tpu.memory_space<vmem>>, %arg3: memref<1x128xf32, #tpu.memory_space<vmem>>, %arg4: memref<512x128xbf16, #tpu.memory_space<vmem>>) attributes {dimension_semantics = [#tpu.dimension_semantics<parallel>], iteration_bounds = array<i64: 1>, scalar_prefetch = 0 : i64, scratch_operands = 0 : i64, tpu.core_type = #tpu.core_type<tc>, window_params = [{transform_indices = @transform_0, window_bounds = array<i64: 512, 128>}, {pipeline_mode = #tpu.pipeline_mode<synchronous>, transform_indices = @transform_1, window_bounds = array<i64: 1, 128>}, {pipeline_mode = #tpu.pipeline_mode<synchronous>, transform_indices = @transform_2, window_bounds = array<i64: 1, 128>}, {transform_indices = @transform_3, window_bounds = array<i64: 512, 128>}]} {
    %c0 = arith.constant 0 : index
    %c0_0 = arith.constant 0 : index
    %0 = vector.load %arg1[%c0, %c0_0] : memref<512x128xf32, #tpu.memory_space<vmem>>, vector<512x128xf32>
    %c0_1 = arith.constant 0 : index
    %c0_2 = arith.constant 0 : index
    %1 = vector.load %arg2[%c0_1, %c0_2] : memref<1x128xf32, #tpu.memory_space<vmem>>, vector<1x128xf32>
    %2 = vector.broadcast %1 : vector<1x128xf32> to vector<512x128xf32>
    %3 = arith.mulf %0, %2 : vector<512x128xf32>
    %c0_3 = arith.constant 0 : index
    %c0_4 = arith.constant 0 : index
    %4 = vector.load %arg3[%c0_3, %c0_4] : memref<1x128xf32, #tpu.memory_space<vmem>>, vector<1x128xf32>
    %5 = vector.broadcast %4 : vector<1x128xf32> to vector<512x128xf32>
    %6 = arith.addf %3, %5 : vector<512x128xf32>
    %cst = arith.constant 0.000000e+00 : f32
    %7 = vector.broadcast %cst : f32 to vector<512x128xf32>
    %8 = arith.maximumf %6, %7 : vector<512x128xf32>
    %9 = arith.truncf %8 : vector<512x128xf32> to vector<512x128xbf16>
    %c0_5 = arith.constant 0 : index
    %c0_6 = arith.constant 0 : index
    %10 = vector.load %arg4[%c0_5, %c0_6] : memref<512x128xbf16, #tpu.memory_space<vmem>>, vector<512x128xbf16>
    tpu.vector_store %arg4[%c0_5, %c0_6], %9 {strides = array<i32>} : memref<512x128xbf16, #tpu.memory_space<vmem>>, vector<512x128xbf16>,
    return
  }
  func.func @transform_0(%arg0: i32) -> (i32, i32) {
    %c0_i32 = arith.constant 0 : i32
    %c0_i32_0 = arith.constant 0 : i32
    return %arg0, %c0_i32 : i32, i32
  }
  func.func @transform_1(%arg0: i32) -> (i32, i32) {
    %c0_i32 = arith.constant 0 : i32
    %c0_i32_0 = arith.constant 0 : i32
    %c0_i32_1 = arith.constant 0 : i32
    return %c0_i32, %c0_i32_0 : i32, i32
  }
  func.func @transform_2(%arg0: i32) -> (i32, i32) {
    %c0_i32 = arith.constant 0 : i32
    %c0_i32_0 = arith.constant 0 : i32
    %c0_i32_1 = arith.constant 0 : i32
    return %c0_i32, %c0_i32_0 : i32, i32
  }
  func.func @transform_3(%arg0: i32) -> (i32, i32) {
    %c0_i32 = arith.constant 0 : i32
    %c0_i32_0 = arith.constant 0 : i32
    return %arg0, %c0_i32 : i32, i32
  }
}

module attributes {stable_mosaic.version = 11 : i64} {
  func.func @_conv3x3_stats_kernel(%arg0: i32, %arg1: memref<1x18x18x128xbf16, #tpu.memory_space<vmem>>, %arg2: memref<3x3x128x128xbf16, #tpu.memory_space<vmem>>, %arg3: memref<1x16x16x128xf32, #tpu.memory_space<vmem>>, %arg4: memref<1x2x128xf32, #tpu.memory_space<vmem>>, %arg5: memref<256x128xf32, #tpu.memory_space<vmem>>) attributes {dimension_semantics = [#tpu.dimension_semantics<parallel>], iteration_bounds = array<i64: 2>, scalar_prefetch = 0 : i64, scratch_operands = 1 : i64, tpu.core_type = #tpu.core_type<tc>, window_params = [{transform_indices = @transform_0, window_bounds = array<i64: 1, 18, 18, 128>}, {pipeline_mode = #tpu.pipeline_mode<synchronous>, transform_indices = @transform_1, window_bounds = array<i64: 3, 3, 128, 128>}, {transform_indices = @transform_2, window_bounds = array<i64: 1, 16, 16, 128>}, {transform_indices = @transform_3, window_bounds = array<i64: 1, 2, 128>}]} {
    %cst = arith.constant 0.000000e+00 : f32
    %0 = vector.broadcast %cst : f32 to vector<256x128xf32>
    %c0 = arith.constant 0 : index
    %c0_0 = arith.constant 0 : index
    %1 = vector.load %arg5[%c0, %c0_0] : memref<256x128xf32, #tpu.memory_space<vmem>>, vector<256x128xf32>
    tpu.vector_store %arg5[%c0, %c0_0], %0 {strides = array<i32>} : memref<256x128xf32, #tpu.memory_space<vmem>>, vector<256x128xf32>,
    %c0_1 = arith.constant 0 : index
    %c0_2 = arith.constant 0 : index
    %c0_3 = arith.constant 0 : index
    %c0_4 = arith.constant 0 : index
    %2 = vector.load %arg1[%c0_1, %c0_2, %c0_3, %c0_4] : memref<1x18x18x128xbf16, #tpu.memory_space<vmem>>, vector<1x16x16x128xbf16>
    %3 = vector.shape_cast %2 : vector<1x16x16x128xbf16> to vector<16x16x128xbf16>
    %c0_5 = arith.constant 0 : index
    %c0_6 = arith.constant 0 : index
    %4 = vector.load %arg5[%c0_5, %c0_6] : memref<256x128xf32, #tpu.memory_space<vmem>>, vector<256x128xf32>
    %5 = vector.shape_cast %3 : vector<16x16x128xbf16> to vector<256x128xbf16>
    %c0_7 = arith.constant 0 : index
    %c0_8 = arith.constant 0 : index
    %c0_9 = arith.constant 0 : index
    %c0_10 = arith.constant 0 : index
    %6 = vector.load %arg2[%c0_7, %c0_8, %c0_9, %c0_10] : memref<3x3x128x128xbf16, #tpu.memory_space<vmem>>, vector<1x1x128x128xbf16>
    %7 = vector.shape_cast %6 : vector<1x1x128x128xbf16> to vector<128x128xbf16>
    %cst_11 = arith.constant dense<0.000000e+00> : vector<256x128xf32>
    %8 = tpu.matmul %5, %7, %cst_11 {dimension_numbers = #tpu.dot_dimension_numbers<[1], [0], [0], [1], [0, 0, 1, 1], [], []>} : vector<256x128xbf16>, vector<128x128xbf16>, vector<256x128xf32> -> vector<256x128xf32>
    %9 = arith.addf %4, %8 : vector<256x128xf32>
    %c0_12 = arith.constant 0 : index
    %c0_13 = arith.constant 0 : index
    %10 = vector.load %arg5[%c0_12, %c0_13] : memref<256x128xf32, #tpu.memory_space<vmem>>, vector<256x128xf32>
    tpu.vector_store %arg5[%c0_12, %c0_13], %9 {strides = array<i32>} : memref<256x128xf32, #tpu.memory_space<vmem>>, vector<256x128xf32>,
    %c0_14 = arith.constant 0 : index
    %c0_15 = arith.constant 0 : index
    %c1 = arith.constant 1 : index
    %c0_16 = arith.constant 0 : index
    %11 = vector.load %arg1[%c0_14, %c0_15, %c1, %c0_16] : memref<1x18x18x128xbf16, #tpu.memory_space<vmem>>, vector<1x16x16x128xbf16>
    %12 = vector.shape_cast %11 : vector<1x16x16x128xbf16> to vector<16x16x128xbf16>
    %c0_17 = arith.constant 0 : index
    %c0_18 = arith.constant 0 : index
    %13 = vector.load %arg5[%c0_17, %c0_18] : memref<256x128xf32, #tpu.memory_space<vmem>>, vector<256x128xf32>
    %14 = vector.shape_cast %12 : vector<16x16x128xbf16> to vector<256x128xbf16>
    %c0_19 = arith.constant 0 : index
    %c1_20 = arith.constant 1 : index
    %c0_21 = arith.constant 0 : index
    %c0_22 = arith.constant 0 : index
    %15 = vector.load %arg2[%c0_19, %c1_20, %c0_21, %c0_22] : memref<3x3x128x128xbf16, #tpu.memory_space<vmem>>, vector<1x1x128x128xbf16>
    %16 = vector.shape_cast %15 : vector<1x1x128x128xbf16> to vector<128x128xbf16>
    %cst_23 = arith.constant dense<0.000000e+00> : vector<256x128xf32>
    %17 = tpu.matmul %14, %16, %cst_23 {dimension_numbers = #tpu.dot_dimension_numbers<[1], [0], [0], [1], [0, 0, 1, 1], [], []>} : vector<256x128xbf16>, vector<128x128xbf16>, vector<256x128xf32> -> vector<256x128xf32>
    %18 = arith.addf %13, %17 : vector<256x128xf32>
    %c0_24 = arith.constant 0 : index
    %c0_25 = arith.constant 0 : index
    %19 = vector.load %arg5[%c0_24, %c0_25] : memref<256x128xf32, #tpu.memory_space<vmem>>, vector<256x128xf32>
    tpu.vector_store %arg5[%c0_24, %c0_25], %18 {strides = array<i32>} : memref<256x128xf32, #tpu.memory_space<vmem>>, vector<256x128xf32>,
    %c0_26 = arith.constant 0 : index
    %c0_27 = arith.constant 0 : index
    %c2 = arith.constant 2 : index
    %c0_28 = arith.constant 0 : index
    %20 = vector.load %arg1[%c0_26, %c0_27, %c2, %c0_28] : memref<1x18x18x128xbf16, #tpu.memory_space<vmem>>, vector<1x16x16x128xbf16>
    %21 = vector.shape_cast %20 : vector<1x16x16x128xbf16> to vector<16x16x128xbf16>
    %c0_29 = arith.constant 0 : index
    %c0_30 = arith.constant 0 : index
    %22 = vector.load %arg5[%c0_29, %c0_30] : memref<256x128xf32, #tpu.memory_space<vmem>>, vector<256x128xf32>
    %23 = vector.shape_cast %21 : vector<16x16x128xbf16> to vector<256x128xbf16>
    %c0_31 = arith.constant 0 : index
    %c2_32 = arith.constant 2 : index
    %c0_33 = arith.constant 0 : index
    %c0_34 = arith.constant 0 : index
    %24 = vector.load %arg2[%c0_31, %c2_32, %c0_33, %c0_34] : memref<3x3x128x128xbf16, #tpu.memory_space<vmem>>, vector<1x1x128x128xbf16>
    %25 = vector.shape_cast %24 : vector<1x1x128x128xbf16> to vector<128x128xbf16>
    %cst_35 = arith.constant dense<0.000000e+00> : vector<256x128xf32>
    %26 = tpu.matmul %23, %25, %cst_35 {dimension_numbers = #tpu.dot_dimension_numbers<[1], [0], [0], [1], [0, 0, 1, 1], [], []>} : vector<256x128xbf16>, vector<128x128xbf16>, vector<256x128xf32> -> vector<256x128xf32>
    %27 = arith.addf %22, %26 : vector<256x128xf32>
    %c0_36 = arith.constant 0 : index
    %c0_37 = arith.constant 0 : index
    %28 = vector.load %arg5[%c0_36, %c0_37] : memref<256x128xf32, #tpu.memory_space<vmem>>, vector<256x128xf32>
    tpu.vector_store %arg5[%c0_36, %c0_37], %27 {strides = array<i32>} : memref<256x128xf32, #tpu.memory_space<vmem>>, vector<256x128xf32>,
    %c0_38 = arith.constant 0 : index
    %c1_39 = arith.constant 1 : index
    %c0_40 = arith.constant 0 : index
    %c0_41 = arith.constant 0 : index
    %29 = vector.load %arg1[%c0_38, %c1_39, %c0_40, %c0_41] : memref<1x18x18x128xbf16, #tpu.memory_space<vmem>>, vector<1x16x16x128xbf16>
    %30 = vector.shape_cast %29 : vector<1x16x16x128xbf16> to vector<16x16x128xbf16>
    %c0_42 = arith.constant 0 : index
    %c0_43 = arith.constant 0 : index
    %31 = vector.load %arg5[%c0_42, %c0_43] : memref<256x128xf32, #tpu.memory_space<vmem>>, vector<256x128xf32>
    %32 = vector.shape_cast %30 : vector<16x16x128xbf16> to vector<256x128xbf16>
    %c1_44 = arith.constant 1 : index
    %c0_45 = arith.constant 0 : index
    %c0_46 = arith.constant 0 : index
    %c0_47 = arith.constant 0 : index
    %33 = vector.load %arg2[%c1_44, %c0_45, %c0_46, %c0_47] : memref<3x3x128x128xbf16, #tpu.memory_space<vmem>>, vector<1x1x128x128xbf16>
    %34 = vector.shape_cast %33 : vector<1x1x128x128xbf16> to vector<128x128xbf16>
    %cst_48 = arith.constant dense<0.000000e+00> : vector<256x128xf32>
    %35 = tpu.matmul %32, %34, %cst_48 {dimension_numbers = #tpu.dot_dimension_numbers<[1], [0], [0], [1], [0, 0, 1, 1], [], []>} : vector<256x128xbf16>, vector<128x128xbf16>, vector<256x128xf32> -> vector<256x128xf32>
    %36 = arith.addf %31, %35 : vector<256x128xf32>
    %c0_49 = arith.constant 0 : index
    %c0_50 = arith.constant 0 : index
    %37 = vector.load %arg5[%c0_49, %c0_50] : memref<256x128xf32, #tpu.memory_space<vmem>>, vector<256x128xf32>
    tpu.vector_store %arg5[%c0_49, %c0_50], %36 {strides = array<i32>} : memref<256x128xf32, #tpu.memory_space<vmem>>, vector<256x128xf32>,
    %c0_51 = arith.constant 0 : index
    %c1_52 = arith.constant 1 : index
    %c1_53 = arith.constant 1 : index
    %c0_54 = arith.constant 0 : index
    %38 = vector.load %arg1[%c0_51, %c1_52, %c1_53, %c0_54] : memref<1x18x18x128xbf16, #tpu.memory_space<vmem>>, vector<1x16x16x128xbf16>
    %39 = vector.shape_cast %38 : vector<1x16x16x128xbf16> to vector<16x16x128xbf16>
    %c0_55 = arith.constant 0 : index
    %c0_56 = arith.constant 0 : index
    %40 = vector.load %arg5[%c0_55, %c0_56] : memref<256x128xf32, #tpu.memory_space<vmem>>, vector<256x128xf32>
    %41 = vector.shape_cast %39 : vector<16x16x128xbf16> to vector<256x128xbf16>
    %c1_57 = arith.constant 1 : index
    %c1_58 = arith.constant 1 : index
    %c0_59 = arith.constant 0 : index
    %c0_60 = arith.constant 0 : index
    %42 = vector.load %arg2[%c1_57, %c1_58, %c0_59, %c0_60] : memref<3x3x128x128xbf16, #tpu.memory_space<vmem>>, vector<1x1x128x128xbf16>
    %43 = vector.shape_cast %42 : vector<1x1x128x128xbf16> to vector<128x128xbf16>
    %cst_61 = arith.constant dense<0.000000e+00> : vector<256x128xf32>
    %44 = tpu.matmul %41, %43, %cst_61 {dimension_numbers = #tpu.dot_dimension_numbers<[1], [0], [0], [1], [0, 0, 1, 1], [], []>} : vector<256x128xbf16>, vector<128x128xbf16>, vector<256x128xf32> -> vector<256x128xf32>
    %45 = arith.addf %40, %44 : vector<256x128xf32>
    %c0_62 = arith.constant 0 : index
    %c0_63 = arith.constant 0 : index
    %46 = vector.load %arg5[%c0_62, %c0_63] : memref<256x128xf32, #tpu.memory_space<vmem>>, vector<256x128xf32>
    tpu.vector_store %arg5[%c0_62, %c0_63], %45 {strides = array<i32>} : memref<256x128xf32, #tpu.memory_space<vmem>>, vector<256x128xf32>,
    %c0_64 = arith.constant 0 : index
    %c1_65 = arith.constant 1 : index
    %c2_66 = arith.constant 2 : index
    %c0_67 = arith.constant 0 : index
    %47 = vector.load %arg1[%c0_64, %c1_65, %c2_66, %c0_67] : memref<1x18x18x128xbf16, #tpu.memory_space<vmem>>, vector<1x16x16x128xbf16>
    %48 = vector.shape_cast %47 : vector<1x16x16x128xbf16> to vector<16x16x128xbf16>
    %c0_68 = arith.constant 0 : index
    %c0_69 = arith.constant 0 : index
    %49 = vector.load %arg5[%c0_68, %c0_69] : memref<256x128xf32, #tpu.memory_space<vmem>>, vector<256x128xf32>
    %50 = vector.shape_cast %48 : vector<16x16x128xbf16> to vector<256x128xbf16>
    %c1_70 = arith.constant 1 : index
    %c2_71 = arith.constant 2 : index
    %c0_72 = arith.constant 0 : index
    %c0_73 = arith.constant 0 : index
    %51 = vector.load %arg2[%c1_70, %c2_71, %c0_72, %c0_73] : memref<3x3x128x128xbf16, #tpu.memory_space<vmem>>, vector<1x1x128x128xbf16>
    %52 = vector.shape_cast %51 : vector<1x1x128x128xbf16> to vector<128x128xbf16>
    %cst_74 = arith.constant dense<0.000000e+00> : vector<256x128xf32>
    %53 = tpu.matmul %50, %52, %cst_74 {dimension_numbers = #tpu.dot_dimension_numbers<[1], [0], [0], [1], [0, 0, 1, 1], [], []>} : vector<256x128xbf16>, vector<128x128xbf16>, vector<256x128xf32> -> vector<256x128xf32>
    %54 = arith.addf %49, %53 : vector<256x128xf32>
    %c0_75 = arith.constant 0 : index
    %c0_76 = arith.constant 0 : index
    %55 = vector.load %arg5[%c0_75, %c0_76] : memref<256x128xf32, #tpu.memory_space<vmem>>, vector<256x128xf32>
    tpu.vector_store %arg5[%c0_75, %c0_76], %54 {strides = array<i32>} : memref<256x128xf32, #tpu.memory_space<vmem>>, vector<256x128xf32>,
    %c0_77 = arith.constant 0 : index
    %c2_78 = arith.constant 2 : index
    %c0_79 = arith.constant 0 : index
    %c0_80 = arith.constant 0 : index
    %56 = vector.load %arg1[%c0_77, %c2_78, %c0_79, %c0_80] : memref<1x18x18x128xbf16, #tpu.memory_space<vmem>>, vector<1x16x16x128xbf16>
    %57 = vector.shape_cast %56 : vector<1x16x16x128xbf16> to vector<16x16x128xbf16>
    %c0_81 = arith.constant 0 : index
    %c0_82 = arith.constant 0 : index
    %58 = vector.load %arg5[%c0_81, %c0_82] : memref<256x128xf32, #tpu.memory_space<vmem>>, vector<256x128xf32>
    %59 = vector.shape_cast %57 : vector<16x16x128xbf16> to vector<256x128xbf16>
    %c2_83 = arith.constant 2 : index
    %c0_84 = arith.constant 0 : index
    %c0_85 = arith.constant 0 : index
    %c0_86 = arith.constant 0 : index
    %60 = vector.load %arg2[%c2_83, %c0_84, %c0_85, %c0_86] : memref<3x3x128x128xbf16, #tpu.memory_space<vmem>>, vector<1x1x128x128xbf16>
    %61 = vector.shape_cast %60 : vector<1x1x128x128xbf16> to vector<128x128xbf16>
    %cst_87 = arith.constant dense<0.000000e+00> : vector<256x128xf32>
    %62 = tpu.matmul %59, %61, %cst_87 {dimension_numbers = #tpu.dot_dimension_numbers<[1], [0], [0], [1], [0, 0, 1, 1], [], []>} : vector<256x128xbf16>, vector<128x128xbf16>, vector<256x128xf32> -> vector<256x128xf32>
    %63 = arith.addf %58, %62 : vector<256x128xf32>
    %c0_88 = arith.constant 0 : index
    %c0_89 = arith.constant 0 : index
    %64 = vector.load %arg5[%c0_88, %c0_89] : memref<256x128xf32, #tpu.memory_space<vmem>>, vector<256x128xf32>
    tpu.vector_store %arg5[%c0_88, %c0_89], %63 {strides = array<i32>} : memref<256x128xf32, #tpu.memory_space<vmem>>, vector<256x128xf32>,
    %c0_90 = arith.constant 0 : index
    %c2_91 = arith.constant 2 : index
    %c1_92 = arith.constant 1 : index
    %c0_93 = arith.constant 0 : index
    %65 = vector.load %arg1[%c0_90, %c2_91, %c1_92, %c0_93] : memref<1x18x18x128xbf16, #tpu.memory_space<vmem>>, vector<1x16x16x128xbf16>
    %66 = vector.shape_cast %65 : vector<1x16x16x128xbf16> to vector<16x16x128xbf16>
    %c0_94 = arith.constant 0 : index
    %c0_95 = arith.constant 0 : index
    %67 = vector.load %arg5[%c0_94, %c0_95] : memref<256x128xf32, #tpu.memory_space<vmem>>, vector<256x128xf32>
    %68 = vector.shape_cast %66 : vector<16x16x128xbf16> to vector<256x128xbf16>
    %c2_96 = arith.constant 2 : index
    %c1_97 = arith.constant 1 : index
    %c0_98 = arith.constant 0 : index
    %c0_99 = arith.constant 0 : index
    %69 = vector.load %arg2[%c2_96, %c1_97, %c0_98, %c0_99] : memref<3x3x128x128xbf16, #tpu.memory_space<vmem>>, vector<1x1x128x128xbf16>
    %70 = vector.shape_cast %69 : vector<1x1x128x128xbf16> to vector<128x128xbf16>
    %cst_100 = arith.constant dense<0.000000e+00> : vector<256x128xf32>
    %71 = tpu.matmul %68, %70, %cst_100 {dimension_numbers = #tpu.dot_dimension_numbers<[1], [0], [0], [1], [0, 0, 1, 1], [], []>} : vector<256x128xbf16>, vector<128x128xbf16>, vector<256x128xf32> -> vector<256x128xf32>
    %72 = arith.addf %67, %71 : vector<256x128xf32>
    %c0_101 = arith.constant 0 : index
    %c0_102 = arith.constant 0 : index
    %73 = vector.load %arg5[%c0_101, %c0_102] : memref<256x128xf32, #tpu.memory_space<vmem>>, vector<256x128xf32>
    tpu.vector_store %arg5[%c0_101, %c0_102], %72 {strides = array<i32>} : memref<256x128xf32, #tpu.memory_space<vmem>>, vector<256x128xf32>,
    %c0_103 = arith.constant 0 : index
    %c2_104 = arith.constant 2 : index
    %c2_105 = arith.constant 2 : index
    %c0_106 = arith.constant 0 : index
    %74 = vector.load %arg1[%c0_103, %c2_104, %c2_105, %c0_106] : memref<1x18x18x128xbf16, #tpu.memory_space<vmem>>, vector<1x16x16x128xbf16>
    %75 = vector.shape_cast %74 : vector<1x16x16x128xbf16> to vector<16x16x128xbf16>
    %c0_107 = arith.constant 0 : index
    %c0_108 = arith.constant 0 : index
    %76 = vector.load %arg5[%c0_107, %c0_108] : memref<256x128xf32, #tpu.memory_space<vmem>>, vector<256x128xf32>
    %77 = vector.shape_cast %75 : vector<16x16x128xbf16> to vector<256x128xbf16>
    %c2_109 = arith.constant 2 : index
    %c2_110 = arith.constant 2 : index
    %c0_111 = arith.constant 0 : index
    %c0_112 = arith.constant 0 : index
    %78 = vector.load %arg2[%c2_109, %c2_110, %c0_111, %c0_112] : memref<3x3x128x128xbf16, #tpu.memory_space<vmem>>, vector<1x1x128x128xbf16>
    %79 = vector.shape_cast %78 : vector<1x1x128x128xbf16> to vector<128x128xbf16>
    %cst_113 = arith.constant dense<0.000000e+00> : vector<256x128xf32>
    %80 = tpu.matmul %77, %79, %cst_113 {dimension_numbers = #tpu.dot_dimension_numbers<[1], [0], [0], [1], [0, 0, 1, 1], [], []>} : vector<256x128xbf16>, vector<128x128xbf16>, vector<256x128xf32> -> vector<256x128xf32>
    %81 = arith.addf %76, %80 : vector<256x128xf32>
    %c0_114 = arith.constant 0 : index
    %c0_115 = arith.constant 0 : index
    %82 = vector.load %arg5[%c0_114, %c0_115] : memref<256x128xf32, #tpu.memory_space<vmem>>, vector<256x128xf32>
    tpu.vector_store %arg5[%c0_114, %c0_115], %81 {strides = array<i32>} : memref<256x128xf32, #tpu.memory_space<vmem>>, vector<256x128xf32>,
    %c0_116 = arith.constant 0 : index
    %c0_117 = arith.constant 0 : index
    %83 = vector.load %arg5[%c0_116, %c0_117] : memref<256x128xf32, #tpu.memory_space<vmem>>, vector<256x128xf32>
    %84 = vector.shape_cast %83 : vector<256x128xf32> to vector<16x16x128xf32>
    %c0_118 = arith.constant 0 : index
    %c0_119 = arith.constant 0 : index
    %c0_120 = arith.constant 0 : index
    %c0_121 = arith.constant 0 : index
    %85 = vector.load %arg3[%c0_118, %c0_119, %c0_120, %c0_121] : memref<1x16x16x128xf32, #tpu.memory_space<vmem>>, vector<1x16x16x128xf32>
    %86 = vector.shape_cast %85 : vector<1x16x16x128xf32> to vector<16x16x128xf32>
    %87 = vector.shape_cast %84 : vector<16x16x128xf32> to vector<1x16x16x128xf32>
    tpu.vector_store %arg3[%c0_118, %c0_119, %c0_120, %c0_121], %87 {strides = array<i32>} : memref<1x16x16x128xf32, #tpu.memory_space<vmem>>, vector<1x16x16x128xf32>,
    %cst_122 = arith.constant dense<0.000000e+00> : vector<128xf32>
    %88 = vector.multi_reduction <add>, %83, %cst_122 [0] : vector<256x128xf32> to vector<128xf32>
    %89 = vector.shape_cast %88 : vector<128xf32> to vector<1x128xf32>
    %90 = arith.mulf %83, %83 : vector<256x128xf32>
    %cst_123 = arith.constant dense<0.000000e+00> : vector<128xf32>
    %91 = vector.multi_reduction <add>, %90, %cst_123 [0] : vector<256x128xf32> to vector<128xf32>
    %92 = vector.shape_cast %91 : vector<128xf32> to vector<1x128xf32>
    %93 = tpu.concatenate %89, %92 in 0 : vector<1x128xf32>, vector<1x128xf32> -> vector<2x128xf32>
    %c0_124 = arith.constant 0 : index
    %c0_125 = arith.constant 0 : index
    %c0_126 = arith.constant 0 : index
    %94 = vector.load %arg4[%c0_124, %c0_125, %c0_126] : memref<1x2x128xf32, #tpu.memory_space<vmem>>, vector<1x2x128xf32>
    %95 = vector.shape_cast %94 : vector<1x2x128xf32> to vector<2x128xf32>
    %96 = vector.shape_cast %93 : vector<2x128xf32> to vector<1x2x128xf32>
    tpu.vector_store %arg4[%c0_124, %c0_125, %c0_126], %96 {strides = array<i32>} : memref<1x2x128xf32, #tpu.memory_space<vmem>>, vector<1x2x128xf32>,
    return
  }
  func.func @transform_0(%arg0: i32) -> (i32, i32, i32, i32) {
    %c0_i32 = arith.constant 0 : i32
    %c0_i32_0 = arith.constant 0 : i32
    %c0_i32_1 = arith.constant 0 : i32
    %c0_i32_2 = arith.constant 0 : i32
    return %arg0, %c0_i32, %c0_i32_0, %c0_i32_1 : i32, i32, i32, i32
  }
  func.func @transform_1(%arg0: i32) -> (i32, i32, i32, i32) {
    %c0_i32 = arith.constant 0 : i32
    %c0_i32_0 = arith.constant 0 : i32
    %c0_i32_1 = arith.constant 0 : i32
    %c0_i32_2 = arith.constant 0 : i32
    %c0_i32_3 = arith.constant 0 : i32
    return %c0_i32, %c0_i32_0, %c0_i32_1, %c0_i32_2 : i32, i32, i32, i32
  }
  func.func @transform_2(%arg0: i32) -> (i32, i32, i32, i32) {
    %c0_i32 = arith.constant 0 : i32
    %c0_i32_0 = arith.constant 0 : i32
    %c0_i32_1 = arith.constant 0 : i32
    %c0_i32_2 = arith.constant 0 : i32
    return %arg0, %c0_i32, %c0_i32_0, %c0_i32_1 : i32, i32, i32, i32
  }
  func.func @transform_3(%arg0: i32) -> (i32, i32, i32) {
    %c0_i32 = arith.constant 0 : i32
    %c0_i32_0 = arith.constant 0 : i32
    %c0_i32_1 = arith.constant 0 : i32
    return %arg0, %c0_i32, %c0_i32_0 : i32, i32, i32
  }
}

module attributes {stable_mosaic.version = 11 : i64} {
  func.func @_stage3_kernel(%arg0: i32, %arg1: memref<512x128xf32, #tpu.memory_space<vmem>>, %arg2: memref<1x128xf32, #tpu.memory_space<vmem>>, %arg3: memref<1x128xf32, #tpu.memory_space<vmem>>, %arg4: memref<128x128xbf16, #tpu.memory_space<vmem>>, %arg5: memref<512x128xbf16, #tpu.memory_space<vmem>>, %arg6: memref<128x128xbf16, #tpu.memory_space<vmem>>, %arg7: memref<512x128xf32, #tpu.memory_space<vmem>>, %arg8: memref<512x128xf32, #tpu.memory_space<vmem>>, %arg9: memref<1x2x128xf32, #tpu.memory_space<vmem>>, %arg10: memref<1x2x128xf32, #tpu.memory_space<vmem>>) attributes {dimension_semantics = [#tpu.dimension_semantics<parallel>], iteration_bounds = array<i64: 1>, scalar_prefetch = 0 : i64, scratch_operands = 0 : i64, tpu.core_type = #tpu.core_type<tc>, window_params = [{transform_indices = @transform_0, window_bounds = array<i64: 512, 128>}, {pipeline_mode = #tpu.pipeline_mode<synchronous>, transform_indices = @transform_1, window_bounds = array<i64: 1, 128>}, {pipeline_mode = #tpu.pipeline_mode<synchronous>, transform_indices = @transform_2, window_bounds = array<i64: 1, 128>}, {pipeline_mode = #tpu.pipeline_mode<synchronous>, transform_indices = @transform_3, window_bounds = array<i64: 128, 128>}, {transform_indices = @transform_4, window_bounds = array<i64: 512, 128>}, {pipeline_mode = #tpu.pipeline_mode<synchronous>, transform_indices = @transform_5, window_bounds = array<i64: 128, 128>}, {transform_indices = @transform_6, window_bounds = array<i64: 512, 128>}, {transform_indices = @transform_7, window_bounds = array<i64: 512, 128>}, {transform_indices = @transform_8, window_bounds = array<i64: 1, 2, 128>}, {transform_indices = @transform_9, window_bounds = array<i64: 1, 2, 128>}]} {
    %c0 = arith.constant 0 : index
    %c0_0 = arith.constant 0 : index
    %0 = vector.load %arg1[%c0, %c0_0] : memref<512x128xf32, #tpu.memory_space<vmem>>, vector<512x128xf32>
    %c0_1 = arith.constant 0 : index
    %c0_2 = arith.constant 0 : index
    %1 = vector.load %arg2[%c0_1, %c0_2] : memref<1x128xf32, #tpu.memory_space<vmem>>, vector<1x128xf32>
    %2 = vector.broadcast %1 : vector<1x128xf32> to vector<512x128xf32>
    %3 = arith.mulf %0, %2 : vector<512x128xf32>
    %c0_3 = arith.constant 0 : index
    %c0_4 = arith.constant 0 : index
    %4 = vector.load %arg3[%c0_3, %c0_4] : memref<1x128xf32, #tpu.memory_space<vmem>>, vector<1x128xf32>
    %5 = vector.broadcast %4 : vector<1x128xf32> to vector<512x128xf32>
    %6 = arith.addf %3, %5 : vector<512x128xf32>
    %cst = arith.constant 0.000000e+00 : f32
    %7 = vector.broadcast %cst : f32 to vector<512x128xf32>
    %8 = arith.maximumf %6, %7 : vector<512x128xf32>
    %9 = arith.truncf %8 : vector<512x128xf32> to vector<512x128xbf16>
    %c0_5 = arith.constant 0 : index
    %c0_6 = arith.constant 0 : index
    %10 = vector.load %arg4[%c0_5, %c0_6] : memref<128x128xbf16, #tpu.memory_space<vmem>>, vector<128x128xbf16>
    %cst_7 = arith.constant dense<0.000000e+00> : vector<512x128xf32>
    %11 = tpu.matmul %9, %10, %cst_7 {dimension_numbers = #tpu.dot_dimension_numbers<[1], [0], [0], [1], [0, 0, 1, 1], [], []>} : vector<512x128xbf16>, vector<128x128xbf16>, vector<512x128xf32> -> vector<512x128xf32>
    %c0_8 = arith.constant 0 : index
    %c0_9 = arith.constant 0 : index
    %12 = vector.load %arg7[%c0_8, %c0_9] : memref<512x128xf32, #tpu.memory_space<vmem>>, vector<512x128xf32>
    tpu.vector_store %arg7[%c0_8, %c0_9], %11 {strides = array<i32>} : memref<512x128xf32, #tpu.memory_space<vmem>>, vector<512x128xf32>,
    %cst_10 = arith.constant dense<0.000000e+00> : vector<128xf32>
    %13 = vector.multi_reduction <add>, %11, %cst_10 [0] : vector<512x128xf32> to vector<128xf32>
    %14 = vector.shape_cast %13 : vector<128xf32> to vector<1x128xf32>
    %15 = arith.mulf %11, %11 : vector<512x128xf32>
    %cst_11 = arith.constant dense<0.000000e+00> : vector<128xf32>
    %16 = vector.multi_reduction <add>, %15, %cst_11 [0] : vector<512x128xf32> to vector<128xf32>
    %17 = vector.shape_cast %16 : vector<128xf32> to vector<1x128xf32>
    %18 = tpu.concatenate %14, %17 in 0 : vector<1x128xf32>, vector<1x128xf32> -> vector<2x128xf32>
    %c0_12 = arith.constant 0 : index
    %c0_13 = arith.constant 0 : index
    %c0_14 = arith.constant 0 : index
    %19 = vector.load %arg9[%c0_12, %c0_13, %c0_14] : memref<1x2x128xf32, #tpu.memory_space<vmem>>, vector<1x2x128xf32>
    %20 = vector.shape_cast %19 : vector<1x2x128xf32> to vector<2x128xf32>
    %21 = vector.shape_cast %18 : vector<2x128xf32> to vector<1x2x128xf32>
    tpu.vector_store %arg9[%c0_12, %c0_13, %c0_14], %21 {strides = array<i32>} : memref<1x2x128xf32, #tpu.memory_space<vmem>>, vector<1x2x128xf32>,
    %c0_15 = arith.constant 0 : index
    %c0_16 = arith.constant 0 : index
    %22 = vector.load %arg5[%c0_15, %c0_16] : memref<512x128xbf16, #tpu.memory_space<vmem>>, vector<512x128xbf16>
    %c0_17 = arith.constant 0 : index
    %c0_18 = arith.constant 0 : index
    %23 = vector.load %arg6[%c0_17, %c0_18] : memref<128x128xbf16, #tpu.memory_space<vmem>>, vector<128x128xbf16>
    %cst_19 = arith.constant dense<0.000000e+00> : vector<512x128xf32>
    %24 = tpu.matmul %22, %23, %cst_19 {dimension_numbers = #tpu.dot_dimension_numbers<[1], [0], [0], [1], [0, 0, 1, 1], [], []>} : vector<512x128xbf16>, vector<128x128xbf16>, vector<512x128xf32> -> vector<512x128xf32>
    %c0_20 = arith.constant 0 : index
    %c0_21 = arith.constant 0 : index
    %25 = vector.load %arg8[%c0_20, %c0_21] : memref<512x128xf32, #tpu.memory_space<vmem>>, vector<512x128xf32>
    tpu.vector_store %arg8[%c0_20, %c0_21], %24 {strides = array<i32>} : memref<512x128xf32, #tpu.memory_space<vmem>>, vector<512x128xf32>,
    %cst_22 = arith.constant dense<0.000000e+00> : vector<128xf32>
    %26 = vector.multi_reduction <add>, %24, %cst_22 [0] : vector<512x128xf32> to vector<128xf32>
    %27 = vector.shape_cast %26 : vector<128xf32> to vector<1x128xf32>
    %28 = arith.mulf %24, %24 : vector<512x128xf32>
    %cst_23 = arith.constant dense<0.000000e+00> : vector<128xf32>
    %29 = vector.multi_reduction <add>, %28, %cst_23 [0] : vector<512x128xf32> to vector<128xf32>
    %30 = vector.shape_cast %29 : vector<128xf32> to vector<1x128xf32>
    %31 = tpu.concatenate %27, %30 in 0 : vector<1x128xf32>, vector<1x128xf32> -> vector<2x128xf32>
    %c0_24 = arith.constant 0 : index
    %c0_25 = arith.constant 0 : index
    %c0_26 = arith.constant 0 : index
    %32 = vector.load %arg10[%c0_24, %c0_25, %c0_26] : memref<1x2x128xf32, #tpu.memory_space<vmem>>, vector<1x2x128xf32>
    %33 = vector.shape_cast %32 : vector<1x2x128xf32> to vector<2x128xf32>
    %34 = vector.shape_cast %31 : vector<2x128xf32> to vector<1x2x128xf32>
    tpu.vector_store %arg10[%c0_24, %c0_25, %c0_26], %34 {strides = array<i32>} : memref<1x2x128xf32, #tpu.memory_space<vmem>>, vector<1x2x128xf32>,
    return
  }
  func.func @transform_0(%arg0: i32) -> (i32, i32) {
    %c0_i32 = arith.constant 0 : i32
    %c0_i32_0 = arith.constant 0 : i32
    return %arg0, %c0_i32 : i32, i32
  }
  func.func @transform_1(%arg0: i32) -> (i32, i32) {
    %c0_i32 = arith.constant 0 : i32
    %c0_i32_0 = arith.constant 0 : i32
    %c0_i32_1 = arith.constant 0 : i32
    return %c0_i32, %c0_i32_0 : i32, i32
  }
  func.func @transform_2(%arg0: i32) -> (i32, i32) {
    %c0_i32 = arith.constant 0 : i32
    %c0_i32_0 = arith.constant 0 : i32
    %c0_i32_1 = arith.constant 0 : i32
    return %c0_i32, %c0_i32_0 : i32, i32
  }
  func.func @transform_3(%arg0: i32) -> (i32, i32) {
    %c0_i32 = arith.constant 0 : i32
    %c0_i32_0 = arith.constant 0 : i32
    %c0_i32_1 = arith.constant 0 : i32
    return %c0_i32, %c0_i32_0 : i32, i32
  }
  func.func @transform_4(%arg0: i32) -> (i32, i32) {
    %c0_i32 = arith.constant 0 : i32
    %c0_i32_0 = arith.constant 0 : i32
    return %arg0, %c0_i32 : i32, i32
  }
  func.func @transform_5(%arg0: i32) -> (i32, i32) {
    %c0_i32 = arith.constant 0 : i32
    %c0_i32_0 = arith.constant 0 : i32
    %c0_i32_1 = arith.constant 0 : i32
    return %c0_i32, %c0_i32_0 : i32, i32
  }
  func.func @transform_6(%arg0: i32) -> (i32, i32) {
    %c0_i32 = arith.constant 0 : i32
    %c0_i32_0 = arith.constant 0 : i32
    return %arg0, %c0_i32 : i32, i32
  }
  func.func @transform_7(%arg0: i32) -> (i32, i32) {
    %c0_i32 = arith.constant 0 : i32
    %c0_i32_0 = arith.constant 0 : i32
    return %arg0, %c0_i32 : i32, i32
  }
  func.func @transform_8(%arg0: i32) -> (i32, i32, i32) {
    %c0_i32 = arith.constant 0 : i32
    %c0_i32_0 = arith.constant 0 : i32
    %c0_i32_1 = arith.constant 0 : i32
    return %arg0, %c0_i32, %c0_i32_0 : i32, i32, i32
  }
  func.func @transform_9(%arg0: i32) -> (i32, i32, i32) {
    %c0_i32 = arith.constant 0 : i32
    %c0_i32_0 = arith.constant 0 : i32
    %c0_i32_1 = arith.constant 0 : i32
    return %arg0, %c0_i32, %c0_i32_0 : i32, i32, i32
  }
}

module attributes {stable_mosaic.version = 11 : i64} {
  func.func @_final_kernel(%arg0: i32, %arg1: memref<512x128xf32, #tpu.memory_space<vmem>>, %arg2: memref<1x128xf32, #tpu.memory_space<vmem>>, %arg3: memref<1x128xf32, #tpu.memory_space<vmem>>, %arg4: memref<512x128xf32, #tpu.memory_space<vmem>>, %arg5: memref<1x128xf32, #tpu.memory_space<vmem>>, %arg6: memref<1x128xf32, #tpu.memory_space<vmem>>, %arg7: memref<512x128xf32, #tpu.memory_space<vmem>>) attributes {dimension_semantics = [#tpu.dimension_semantics<parallel>], iteration_bounds = array<i64: 1>, scalar_prefetch = 0 : i64, scratch_operands = 0 : i64, tpu.core_type = #tpu.core_type<tc>, window_params = [{transform_indices = @transform_0, window_bounds = array<i64: 512, 128>}, {pipeline_mode = #tpu.pipeline_mode<synchronous>, transform_indices = @transform_1, window_bounds = array<i64: 1, 128>}, {pipeline_mode = #tpu.pipeline_mode<synchronous>, transform_indices = @transform_2, window_bounds = array<i64: 1, 128>}, {transform_indices = @transform_3, window_bounds = array<i64: 512, 128>}, {pipeline_mode = #tpu.pipeline_mode<synchronous>, transform_indices = @transform_4, window_bounds = array<i64: 1, 128>}, {pipeline_mode = #tpu.pipeline_mode<synchronous>, transform_indices = @transform_5, window_bounds = array<i64: 1, 128>}, {transform_indices = @transform_6, window_bounds = array<i64: 512, 128>}]} {
    %c0 = arith.constant 0 : index
    %c0_0 = arith.constant 0 : index
    %0 = vector.load %arg4[%c0, %c0_0] : memref<512x128xf32, #tpu.memory_space<vmem>>, vector<512x128xf32>
    %c0_1 = arith.constant 0 : index
    %c0_2 = arith.constant 0 : index
    %1 = vector.load %arg5[%c0_1, %c0_2] : memref<1x128xf32, #tpu.memory_space<vmem>>, vector<1x128xf32>
    %2 = vector.broadcast %1 : vector<1x128xf32> to vector<512x128xf32>
    %3 = arith.mulf %0, %2 : vector<512x128xf32>
    %c0_3 = arith.constant 0 : index
    %c0_4 = arith.constant 0 : index
    %4 = vector.load %arg6[%c0_3, %c0_4] : memref<1x128xf32, #tpu.memory_space<vmem>>, vector<1x128xf32>
    %5 = vector.broadcast %4 : vector<1x128xf32> to vector<512x128xf32>
    %6 = arith.addf %3, %5 : vector<512x128xf32>
    %c0_5 = arith.constant 0 : index
    %c0_6 = arith.constant 0 : index
    %7 = vector.load %arg1[%c0_5, %c0_6] : memref<512x128xf32, #tpu.memory_space<vmem>>, vector<512x128xf32>
    %c0_7 = arith.constant 0 : index
    %c0_8 = arith.constant 0 : index
    %8 = vector.load %arg2[%c0_7, %c0_8] : memref<1x128xf32, #tpu.memory_space<vmem>>, vector<1x128xf32>
    %9 = vector.broadcast %8 : vector<1x128xf32> to vector<512x128xf32>
    %10 = arith.mulf %7, %9 : vector<512x128xf32>
    %c0_9 = arith.constant 0 : index
    %c0_10 = arith.constant 0 : index
    %11 = vector.load %arg3[%c0_9, %c0_10] : memref<1x128xf32, #tpu.memory_space<vmem>>, vector<1x128xf32>
    %12 = vector.broadcast %11 : vector<1x128xf32> to vector<512x128xf32>
    %13 = arith.addf %10, %12 : vector<512x128xf32>
    %14 = arith.addf %13, %6 : vector<512x128xf32>
    %cst = arith.constant 0.000000e+00 : f32
    %15 = vector.broadcast %cst : f32 to vector<512x128xf32>
    %16 = arith.maximumf %14, %15 : vector<512x128xf32>
    %c0_11 = arith.constant 0 : index
    %c0_12 = arith.constant 0 : index
    %17 = vector.load %arg7[%c0_11, %c0_12] : memref<512x128xf32, #tpu.memory_space<vmem>>, vector<512x128xf32>
    tpu.vector_store %arg7[%c0_11, %c0_12], %16 {strides = array<i32>} : memref<512x128xf32, #tpu.memory_space<vmem>>, vector<512x128xf32>,
    return
  }
  func.func @transform_0(%arg0: i32) -> (i32, i32) {
    %c0_i32 = arith.constant 0 : i32
    %c0_i32_0 = arith.constant 0 : i32
    return %arg0, %c0_i32 : i32, i32
  }
  func.func @transform_1(%arg0: i32) -> (i32, i32) {
    %c0_i32 = arith.constant 0 : i32
    %c0_i32_0 = arith.constant 0 : i32
    %c0_i32_1 = arith.constant 0 : i32
    return %c0_i32, %c0_i32_0 : i32, i32
  }
  func.func @transform_2(%arg0: i32) -> (i32, i32) {
    %c0_i32 = arith.constant 0 : i32
    %c0_i32_0 = arith.constant 0 : i32
    %c0_i32_1 = arith.constant 0 : i32
    return %c0_i32, %c0_i32_0 : i32, i32
  }
  func.func @transform_3(%arg0: i32) -> (i32, i32) {
    %c0_i32 = arith.constant 0 : i32
    %c0_i32_0 = arith.constant 0 : i32
    return %arg0, %c0_i32 : i32, i32
  }
  func.func @transform_4(%arg0: i32) -> (i32, i32) {
    %c0_i32 = arith.constant 0 : i32
    %c0_i32_0 = arith.constant 0 : i32
    %c0_i32_1 = arith.constant 0 : i32
    return %c0_i32, %c0_i32_0 : i32, i32
  }
  func.func @transform_5(%arg0: i32) -> (i32, i32) {
    %c0_i32 = arith.constant 0 : i32
    %c0_i32_0 = arith.constant 0 : i32
    %c0_i32_1 = arith.constant 0 : i32
    return %c0_i32, %c0_i32_0 : i32, i32
  }
  func.func @transform_6(%arg0: i32) -> (i32, i32) {
    %c0_i32 = arith.constant 0 : i32
    %c0_i32_0 = arith.constant 0 : i32
    return %arg0, %c0_i32 : i32, i32
  }
}

</mosaic_0001>

<bundles_post_ra>
// kernel: bottleneck_forward.5
= control target key start
LH: loop header
LB: loop body
LE: loop exit
PB: predicated region body
PF: predicated region fallthrough
CT: control target
= control target key end

     0   :  { %vm889_vm0 = vcmask 1040384   ;;  %s1643_s1 = inlined_call_operand.vmem [shape: bf16[128,128], index: 1, kind: input, shape index: {}]   ;;  %s1644_s0 = inlined_call_operand.vmem [shape: bf16[512,128], index: 0, kind: input, shape index: {}]   ;;  %s1645_s2 = inlined_call_operand.vmem [shape: f32[512,128], index: 2, kind: output, shape index: {0}]   ;;  %s1646_s3 = inlined_call_operand.vmem [shape: f32[1,2,128], index: 3, kind: output, shape index: {1}]  }
   0x1   :  { %v1076_v0 = vld [vmem:[%s1643_s1] sm:$0xff]   ;;  %v1077_v1 = vld [vmem:[%s1643_s1 + $0x8] sm:$0xff]   ;;  %v1078_v2 = vld [vmem:[%s1643_s1 + $0x10] sm:$0xff]  }
   0x2   :  { %980 = vmatprep.subr.bf16.mxu0 %v1076_v0  ;;  %1060 = vmatprep.subr.bf16.mxu1 %v1076_v0  ;;  %v1079_v3 = vld [vmem:[%s1643_s1 + $0x18] sm:$0xff]   ;;  %v1084_v4 = vld [vmem:[%s1644_s0] sm:$0xff]   ;;  %v1081_v6 = vld [vmem:[%s1643_s1 + $0x28] sm:$0xff]  }
   0x3   :  { %981 = vmatpush3.bf16.msra.mxu0 %v1076_v0  ;;  %1068 = vmatpush3.bf16.msra.mxu1 %v1076_v0  ;;  %v1080_v5 = vld [vmem:[%s1643_s1 + $0x20] sm:$0xff]   ;;  %v1082_v7 = vld [vmem:[%s1643_s1 + $0x30] sm:$0xff]   ;;  %v1083_v8 = vld [vmem:[%s1643_s1 + $0x38] sm:$0xff]  }
   0x4   :  { %982 = vmatprep.subr.bf16.mxu0 %v1077_v1  ;;  %1061 = vmatprep.subr.bf16.mxu1 %v1077_v1  ;;  %v1100_v9 = vld [vmem:[%s1644_s0 + $0x80] sm:$0xff]   ;;  %v1085_v10 = vld [vmem:[%s1644_s0 + $0x8] sm:$0xff]   ;;  %v1086_v11 = vld [vmem:[%s1644_s0 + $0x10] sm:$0xff]  }
   0x5   :  { %996 = vmatprep.mubr.bf16.mxu0 %v1084_v4  ;;  %1028 = vmatprep.mubr.bf16.mxu1 %v1100_v9  ;;  %v1101_v12 = vld [vmem:[%s1644_s0 + $0x88] sm:$0xff]   ;;  %v1102_v13 = vld [vmem:[%s1644_s0 + $0x90] sm:$0xff]   ;;  %v1087_v14 = vld [vmem:[%s1644_s0 + $0x18] sm:$0xff]  }
   0x6   :  { %v1088_v15 = vld [vmem:[%s1644_s0 + $0x20] sm:$0xff]   ;;  %v1103_v16 = vld [vmem:[%s1644_s0 + $0x98] sm:$0xff]   ;;  %v1089_v18 = vld [vmem:[%s1644_s0 + $0x28] sm:$0xff]  }
   0x7   :  { %983 = vmatpush3.bf16.msra.mxu0 %v1077_v1  ;;  %1069 = vmatpush3.bf16.msra.mxu1 %v1077_v1  ;;  %v1104_v17 = vld [vmem:[%s1644_s0 + $0xa0] sm:$0xff]   ;;  %v1105_v19 = vld [vmem:[%s1644_s0 + $0xa8] sm:$0xff]   ;;  %v1090_v20 = vld [vmem:[%s1644_s0 + $0x30] sm:$0xff]  }
   0x8   :  { %984 = vmatprep.subr.bf16.mxu0 %v1078_v2  ;;  %1062 = vmatprep.subr.bf16.mxu1 %v1078_v2  ;;  %v1106_v21 = vld [vmem:[%s1644_s0 + $0xb0] sm:$0xff]   ;;  %v1091_v22 = vld [vmem:[%s1644_s0 + $0x38] sm:$0xff]   ;;  %v1092_v24 = vld [vmem:[%s1644_s0 + $0x40] sm:$0xff]  }
   0x9   :  { %v1107_v23 = vld [vmem:[%s1644_s0 + $0xb8] sm:$0xff]   ;;  %v1108_v25 = vld [vmem:[%s1644_s0 + $0xc0] sm:$0xff]   ;;  %v1093_v26 = vld [vmem:[%s1644_s0 + $0x48] sm:$0xff]  }
   0xa   :  { %v1109_v27 = vld [vmem:[%s1644_s0 + $0xc8] sm:$0xff]   ;;  %v1094_v28 = vld [vmem:[%s1644_s0 + $0x50] sm:$0xff]   ;;  %v1095_v30 = vld [vmem:[%s1644_s0 + $0x58] sm:$0xff]  }
   0xb   :  { %985 = vmatpush3.bf16.msra.mxu0 %v1078_v2  ;;  %1070 = vmatpush3.bf16.msra.mxu1 %v1078_v2  ;;  %v1110_v29 = vld [vmem:[%s1644_s0 + $0xd0] sm:$0xff]   ;;  %v1111_v31 = vld [vmem:[%s1644_s0 + $0xd8] sm:$0xff]   ;;  %v1096_v32 = vld [vmem:[%s1644_s0 + $0x60] sm:$0xff]  }
   0xc   :  { %986 = vmatprep.subr.bf16.mxu0 %v1079_v3  ;;  %1063 = vmatprep.subr.bf16.mxu1 %v1079_v3  ;;  %v1112_v33 = vld [vmem:[%s1644_s0 + $0xe0] sm:$0xff]   ;;  %v1097_v34 = vld [vmem:[%s1644_s0 + $0x68] sm:$0xff]   ;;  %v1098_v36 = vld [vmem:[%s1644_s0 + $0x70] sm:$0xff]  }
   0xd   :  { %v1113_v35 = vld [vmem:[%s1644_s0 + $0xe8] sm:$0xff]   ;;  %v1114_v37 = vld [vmem:[%s1644_s0 + $0xf0] sm:$0xff]   ;;  %v1099_v38 = vld [vmem:[%s1644_s0 + $0x78] sm:$0xff]  }
   0xe   :  { %v1115_v39 = vld [vmem:[%s1644_s0 + $0xf8] sm:$0xff]  }
   0xf   :  { %987 = vmatpush3.bf16.msra.mxu0 %v1079_v3  ;;  %1071 = vmatpush3.bf16.msra.mxu1 %v1079_v3 }
  0x10   :  { %988 = vmatprep.subr.bf16.mxu0 %v1080_v5  ;;  %1064 = vmatprep.subr.bf16.mxu1 %v1080_v5 }
  0x13   :  { %989 = vmatpush3.bf16.msra.mxu0 %v1080_v5  ;;  %1072 = vmatpush3.bf16.msra.mxu1 %v1080_v5 }
  0x14   :  { %990 = vmatprep.subr.bf16.mxu0 %v1081_v6  ;;  %1065 = vmatprep.subr.bf16.mxu1 %v1081_v6 }
  0x17   :  { %991 = vmatpush3.bf16.msra.mxu0 %v1081_v6  ;;  %1073 = vmatpush3.bf16.msra.mxu1 %v1081_v6 }
  0x18   :  { %992 = vmatprep.subr.bf16.mxu0 %v1082_v7  ;;  %1066 = vmatprep.subr.bf16.mxu1 %v1082_v7 }
  0x1b   :  { %993 = vmatpush3.bf16.msra.mxu0 %v1082_v7  ;;  %1074 = vmatpush3.bf16.msra.mxu1 %v1082_v7 }
  0x1c   :  { %994 = vmatprep.subr.bf16.mxu0 %v1083_v8  ;;  %1067 = vmatprep.subr.bf16.mxu1 %v1083_v8 }
  0x1f   :  { %995 = vmatpush3.bf16.msra.mxu0 %v1083_v8  ;;  %1075 = vmatpush3.bf16.msra.mxu1 %v1083_v8 }
  0x22   :  { %997 = vmatmul.mubr.bf16.vlgmr.msra.gmra.mrb[0].mxu0 %v1085_v10  ;;  %1029 = vmatmul.mubr.bf16.vlgmr.msra.gmra.mrb[0].mxu1 %v1101_v12 }
  0x23   :  { %1000 = vmatprep.mubr.bf16.mxu0 %v1086_v11  ;;  %1032 = vmatprep.mubr.bf16.mxu1 %v1102_v13 }
  0x2a   :  { %1001 = vmatmul.mubr.bf16.gmra.mrb[4].mxu0 %v1087_v14  ;;  %1033 = vmatmul.mubr.bf16.gmra.mrb[4].mxu1 %v1103_v16 }
  0x2b   :  { %1004 = vmatprep.mubr.bf16.mxu0 %v1088_v15  ;;  %1036 = vmatprep.mubr.bf16.mxu1 %v1104_v17 }
  0x32   :  { %1005 = vmatmul.mubr.bf16.gmra.mrb[8].mxu0 %v1089_v18  ;;  %1037 = vmatmul.mubr.bf16.gmra.mrb[8].mxu1 %v1105_v19 }
  0x33   :  { %1008 = vmatprep.mubr.bf16.mxu0 %v1090_v20  ;;  %1040 = vmatprep.mubr.bf16.mxu1 %v1106_v21 }
  0x3a   :  { %1009 = vmatmul.mubr.bf16.gmra.mrb[12].mxu0 %v1091_v22  ;;  %1041 = vmatmul.mubr.bf16.gmra.mrb[12].mxu1 %v1107_v23 }
  0x3b   :  { %1012 = vmatprep.mubr.bf16.mxu0 %v1092_v24  ;;  %1044 = vmatprep.mubr.bf16.mxu1 %v1108_v25 }
  0x42   :  { %1013 = vmatmul.mubr.bf16.gmra.mrb[16].mxu0 %v1093_v26  ;;  %1045 = vmatmul.mubr.bf16.gmra.mrb[16].mxu1 %v1109_v27 }
  0x43   :  { %1016 = vmatprep.mubr.bf16.mxu0 %v1094_v28  ;;  %1048 = vmatprep.mubr.bf16.mxu1 %v1110_v29 }
  0x4a   :  { %1017 = vmatmul.mubr.bf16.gmra.mrb[20].mxu0 %v1095_v30  ;;  %1049 = vmatmul.mubr.bf16.gmra.mrb[20].mxu1 %v1111_v31 }
  0x4b   :  { %1020 = vmatprep.mubr.bf16.mxu0 %v1096_v32  ;;  %1052 = vmatprep.mubr.bf16.mxu1 %v1112_v33 }
  0x52   :  { %1021 = vmatmul.mubr.bf16.gmra.mrb[24].mxu0 %v1097_v34  ;;  %1053 = vmatmul.mubr.bf16.gmra.mrb[24].mxu1 %v1113_v35 }
  0x53   :  { %1024 = vmatprep.mubr.bf16.mxu0 %v1098_v36  ;;  %1056 = vmatprep.mubr.bf16.mxu1 %v1114_v37 }
  0x5a   :  { %1025 = vmatmul.mubr.bf16.gmra.mrb[28].mxu0 %v1099_v38  ;;  %1057 = vmatmul.mubr.bf16.gmra.mrb[28].mxu1 %v1115_v39 }
  0xf5   :  { %v998_v40 = vpop.f32.mrb[0].mxu0  ;;  %v1256_v41 = vpop.f32.mrb[0].mxu1 }
  0xf6   :  { %625 = vst [vmem:[%s1645_s2 + $0x10] sm:$0xff] %v998_v40  ;;  %v368_v42 = vpop.f32.mrb[1].mxu0  ;;  %657 = vst [vmem:[%s1645_s2 + $0x110] sm:$0xff] %v1256_v41  ;;  %v1265_v43 = vpop.f32.mrb[1].mxu1  ;;  %v758_v51 = vmul.f32 %v998_v40, %v998_v40 }
  0xf7   :  { %623 = vst [vmem:[%s1645_s2] sm:$0xff] %v368_v42  ;;  %v999_v44 = vpop.f32.mrb[2].mxu0  ;;  %655 = vst [vmem:[%s1645_s2 + $0x100] sm:$0xff] %v1265_v43  ;;  %v1274_v45 = vpop.f32.mrb[2].mxu1  ;;  %v756_v48 = vmul.f32 %v368_v42, %v368_v42 }
  0xf8   :  { %626 = vst [vmem:[%s1645_s2 + $0x18] sm:$0xff] %v999_v44  ;;  %v371_v46 = vpop.f32.mrb[3].mxu0  ;;  %658 = vst [vmem:[%s1645_s2 + $0x118] sm:$0xff] %v1274_v45  ;;  %v1283_v47 = vpop.f32.mrb[3].mxu1  ;;  %v759_v54 = vmul.f32 %v999_v44, %v999_v44 }
  0xf9   :  { %624 = vst [vmem:[%s1645_s2 + $0x8] sm:$0xff] %v371_v46  ;;  %v687_v49 = vadd.f32 %v371_v46, %v368_v42  ;;  %v757_v50 = vmul.f32 %v371_v46, %v371_v46  ;;  %656 = vst [vmem:[%s1645_s2 + $0x108] sm:$0xff] %v1283_v47 }
  0xfb   :  { %v688_v52 = vadd.f32 %v998_v40, %v687_v49  ;;  %v820_v53 = vadd.f32 %v757_v50, %v756_v48 }
  0xfd   :  { %v821_v55 = vadd.f32 %v820_v53, %v758_v51  ;;  %v1002_v56 = vpop.f32.mrb[4].mxu0  ;;  %v689_v57 = vadd.f32 %v999_v44, %v688_v52  ;;  %v1292_v58 = vpop.f32.mrb[4].mxu1 }
  0xfe   :  { %629 = vst [vmem:[%s1645_s2 + $0x30] sm:$0xff] %v1002_v56  ;;  %v384_v59 = vpop.f32.mrb[5].mxu0  ;;  %661 = vst [vmem:[%s1645_s2 + $0x130] sm:$0xff] %v1292_v58  ;;  %v1301_v60 = vpop.f32.mrb[5].mxu1  ;;  %v762_v7 = vmul.f32 %v1002_v56, %v1002_v56 }
  0xff   :  { %627 = vst [vmem:[%s1645_s2 + $0x20] sm:$0xff] %v384_v59  ;;  %v690_v61 = vadd.f32 %v689_v57, %v384_v59  ;;  %v760_v62 = vmul.f32 %v384_v59, %v384_v59  ;;  %v822_v63 = vadd.f32 %v821_v55, %v759_v54  ;;  %v1003_v0 = vpop.f32.mrb[6].mxu0  ;;  %659 = vst [vmem:[%s1645_s2 + $0x120] sm:$0xff] %v1301_v60  ;;  %v1310_v1 = vpop.f32.mrb[6].mxu1 }
 0x100   :  { %630 = vst [vmem:[%s1645_s2 + $0x38] sm:$0xff] %v1003_v0  ;;  %v387_v2 = vpop.f32.mrb[7].mxu0  ;;  %662 = vst [vmem:[%s1645_s2 + $0x138] sm:$0xff] %v1310_v1  ;;  %v1319_v3 = vpop.f32.mrb[7].mxu1  ;;  %v763_v10 = vmul.f32 %v1003_v0, %v1003_v0 }
 0x101   :  { %v823_v4 = vadd.f32 %v822_v63, %v760_v62  ;;  %628 = vst [vmem:[%s1645_s2 + $0x28] sm:$0xff] %v387_v2  ;;  %v691_v5 = vadd.f32 %v690_v61, %v387_v2  ;;  %v761_v6 = vmul.f32 %v387_v2, %v387_v2  ;;  %660 = vst [vmem:[%s1645_s2 + $0x128] sm:$0xff] %v1319_v3 }
 0x103   :  { %v692_v8 = vadd.f32 %v1002_v56, %v691_v5  ;;  %v824_v9 = vadd.f32 %v823_v4, %v761_v6 }
 0x105   :  { %v825_v11 = vadd.f32 %v824_v9, %v762_v7  ;;  %v1006_v12 = vpop.f32.mrb[8].mxu0  ;;  %v693_v13 = vadd.f32 %v1003_v0, %v692_v8  ;;  %v1328_v14 = vpop.f32.mrb[8].mxu1 }
 0x106   :  { %633 = vst [vmem:[%s1645_s2 + $0x50] sm:$0xff] %v1006_v12  ;;  %v400_v15 = vpop.f32.mrb[9].mxu0  ;;  %665 = vst [vmem:[%s1645_s2 + $0x150] sm:$0xff] %v1328_v14  ;;  %v1337_v16 = vpop.f32.mrb[9].mxu1  ;;  %v766_v27 = vmul.f32 %v1006_v12, %v1006_v12 }
 0x107   :  { %631 = vst [vmem:[%s1645_s2 + $0x40] sm:$0xff] %v400_v15  ;;  %v694_v17 = vadd.f32 %v693_v13, %v400_v15  ;;  %v764_v18 = vmul.f32 %v400_v15, %v400_v15  ;;  %v826_v19 = vadd.f32 %v825_v11, %v763_v10  ;;  %v1007_v20 = vpop.f32.mrb[10].mxu0  ;;  %663 = vst [vmem:[%s1645_s2 + $0x140] sm:$0xff] %v1337_v16  ;;  %v1346_v21 = vpop.f32.mrb[10].mxu1 }
 0x108   :  { %634 = vst [vmem:[%s1645_s2 + $0x58] sm:$0xff] %v1007_v20  ;;  %v403_v22 = vpop.f32.mrb[11].mxu0  ;;  %666 = vst [vmem:[%s1645_s2 + $0x158] sm:$0xff] %v1346_v21  ;;  %v1355_v23 = vpop.f32.mrb[11].mxu1  ;;  %v767_v30 = vmul.f32 %v1007_v20, %v1007_v20 }
 0x109   :  { %v827_v24 = vadd.f32 %v826_v19, %v764_v18  ;;  %632 = vst [vmem:[%s1645_s2 + $0x48] sm:$0xff] %v403_v22  ;;  %v695_v25 = vadd.f32 %v694_v17, %v403_v22  ;;  %v765_v26 = vmul.f32 %v403_v22, %v403_v22  ;;  %664 = vst [vmem:[%s1645_s2 + $0x148] sm:$0xff] %v1355_v23 }
 0x10b   :  { %v696_v28 = vadd.f32 %v1006_v12, %v695_v25  ;;  %v828_v29 = vadd.f32 %v827_v24, %v765_v26 }
 0x10d   :  { %v829_v31 = vadd.f32 %v828_v29, %v766_v27  ;;  %v1010_v32 = vpop.f32.mrb[12].mxu0  ;;  %v697_v33 = vadd.f32 %v1007_v20, %v696_v28  ;;  %v1364_v34 = vpop.f32.mrb[12].mxu1 }
 0x10e   :  { %637 = vst [vmem:[%s1645_s2 + $0x70] sm:$0xff] %v1010_v32  ;;  %v416_v35 = vpop.f32.mrb[13].mxu0  ;;  %669 = vst [vmem:[%s1645_s2 + $0x170] sm:$0xff] %v1364_v34  ;;  %v1373_v36 = vpop.f32.mrb[13].mxu1  ;;  %v770_v51 = vmul.f32 %v1010_v32, %v1010_v32 }
 0x10f   :  { %635 = vst [vmem:[%s1645_s2 + $0x60] sm:$0xff] %v416_v35  ;;  %v698_v37 = vadd.f32 %v697_v33, %v416_v35  ;;  %v768_v38 = vmul.f32 %v416_v35, %v416_v35  ;;  %v830_v39 = vadd.f32 %v829_v31, %v767_v30  ;;  %v1011_v40 = vpop.f32.mrb[14].mxu0  ;;  %667 = vst [vmem:[%s1645_s2 + $0x160] sm:$0xff] %v1373_v36  ;;  %v1382_v42 = vpop.f32.mrb[14].mxu1 }
 0x110   :  { %638 = vst [vmem:[%s1645_s2 + $0x78] sm:$0xff] %v1011_v40  ;;  %v419_v44 = vpop.f32.mrb[15].mxu0  ;;  %670 = vst [vmem:[%s1645_s2 + $0x178] sm:$0xff] %v1382_v42  ;;  %v1391_v46 = vpop.f32.mrb[15].mxu1  ;;  %v771_v54 = vmul.f32 %v1011_v40, %v1011_v40 }
 0x111   :  { %v831_v48 = vadd.f32 %v830_v39, %v768_v38  ;;  %636 = vst [vmem:[%s1645_s2 + $0x68] sm:$0xff] %v419_v44  ;;  %v699_v49 = vadd.f32 %v698_v37, %v419_v44  ;;  %v769_v50 = vmul.f32 %v419_v44, %v419_v44  ;;  %668 = vst [vmem:[%s1645_s2 + $0x168] sm:$0xff] %v1391_v46 }
 0x113   :  { %v700_v52 = vadd.f32 %v1010_v32, %v699_v49  ;;  %v832_v53 = vadd.f32 %v831_v48, %v769_v50 }
 0x115   :  { %v833_v55 = vadd.f32 %v832_v53, %v770_v51  ;;  %v1014_v56 = vpop.f32.mrb[16].mxu0  ;;  %v701_v57 = vadd.f32 %v1011_v40, %v700_v52  ;;  %v1400_v59 = vpop.f32.mrb[16].mxu1 }
 0x116   :  { %641 = vst [vmem:[%s1645_s2 + $0x90] sm:$0xff] %v1014_v56  ;;  %v432_v61 = vpop.f32.mrb[17].mxu0  ;;  %673 = vst [vmem:[%s1645_s2 + $0x190] sm:$0xff] %v1400_v59  ;;  %v1409_v62 = vpop.f32.mrb[17].mxu1  ;;  %v774_v11 = vmul.f32 %v1014_v56, %v1014_v56 }
 0x117   :  { %639 = vst [vmem:[%s1645_s2 + $0x80] sm:$0xff] %v432_v61  ;;  %v702_v63 = vadd.f32 %v701_v57, %v432_v61  ;;  %v772_v0 = vmul.f32 %v432_v61, %v432_v61  ;;  %v834_v2 = vadd.f32 %v833_v55, %v771_v54  ;;  %v1015_v4 = vpop.f32.mrb[18].mxu0  ;;  %671 = vst [vmem:[%s1645_s2 + $0x180] sm:$0xff] %v1409_v62  ;;  %v1418_v5 = vpop.f32.mrb[18].mxu1 }
 0x118   :  { %642 = vst [vmem:[%s1645_s2 + $0x98] sm:$0xff] %v1015_v4  ;;  %v435_v6 = vpop.f32.mrb[19].mxu0  ;;  %674 = vst [vmem:[%s1645_s2 + $0x198] sm:$0xff] %v1418_v5  ;;  %v1427_v7 = vpop.f32.mrb[19].mxu1  ;;  %v775_v15 = vmul.f32 %v1015_v4, %v1015_v4 }
 0x119   :  { %v835_v8 = vadd.f32 %v834_v2, %v772_v0  ;;  %640 = vst [vmem:[%s1645_s2 + $0x88] sm:$0xff] %v435_v6  ;;  %v703_v9 = vadd.f32 %v702_v63, %v435_v6  ;;  %v773_v10 = vmul.f32 %v435_v6, %v435_v6  ;;  %672 = vst [vmem:[%s1645_s2 + $0x188] sm:$0xff] %v1427_v7 }
 0x11b   :  { %v704_v12 = vadd.f32 %v1014_v56, %v703_v9  ;;  %v836_v13 = vadd.f32 %v835_v8, %v773_v10 }
 0x11d   :  { %v837_v17 = vadd.f32 %v836_v13, %v774_v11  ;;  %v1018_v18 = vpop.f32.mrb[20].mxu0  ;;  %v705_v19 = vadd.f32 %v1015_v4, %v704_v12  ;;  %v1436_v20 = vpop.f32.mrb[20].mxu1 }
 0x11e   :  { %645 = vst [vmem:[%s1645_s2 + $0xb0] sm:$0xff] %v1018_v18  ;;  %v448_v22 = vpop.f32.mrb[21].mxu0  ;;  %677 = vst [vmem:[%s1645_s2 + $0x1b0] sm:$0xff] %v1436_v20  ;;  %v1445_v24 = vpop.f32.mrb[21].mxu1  ;;  %v778_v37 = vmul.f32 %v1018_v18, %v1018_v18 }
 0x11f   :  { %643 = vst [vmem:[%s1645_s2 + $0xa0] sm:$0xff] %v448_v22  ;;  %v706_v25 = vadd.f32 %v705_v19, %v448_v22  ;;  %v776_v26 = vmul.f32 %v448_v22, %v448_v22  ;;  %v838_v27 = vadd.f32 %v837_v17, %v775_v15  ;;  %v1019_v28 = vpop.f32.mrb[22].mxu0  ;;  %675 = vst [vmem:[%s1645_s2 + $0x1a0] sm:$0xff] %v1445_v24  ;;  %v1454_v29 = vpop.f32.mrb[22].mxu1 }
 0x120   :  { %646 = vst [vmem:[%s1645_s2 + $0xb8] sm:$0xff] %v1019_v28  ;;  %v451_v30 = vpop.f32.mrb[23].mxu0  ;;  %678 = vst [vmem:[%s1645_s2 + $0x1b8] sm:$0xff] %v1454_v29  ;;  %v1463_v31 = vpop.f32.mrb[23].mxu1  ;;  %v779_v40 = vmul.f32 %v1019_v28, %v1019_v28 }
 0x121   :  { %v839_v32 = vadd.f32 %v838_v27, %v776_v26  ;;  %644 = vst [vmem:[%s1645_s2 + $0xa8] sm:$0xff] %v451_v30  ;;  %v707_v33 = vadd.f32 %v706_v25, %v451_v30  ;;  %v777_v35 = vmul.f32 %v451_v30, %v451_v30  ;;  %676 = vst [vmem:[%s1645_s2 + $0x1a8] sm:$0xff] %v1463_v31 }
 0x123   :  { %v708_v38 = vadd.f32 %v1018_v18, %v707_v33  ;;  %v840_v39 = vadd.f32 %v839_v32, %v777_v35 }
 0x125   :  { %v841_v44 = vadd.f32 %v840_v39, %v778_v37  ;;  %v1022_v48 = vpop.f32.mrb[24].mxu0  ;;  %v709_v49 = vadd.f32 %v1019_v28, %v708_v38  ;;  %v1472_v50 = vpop.f32.mrb[24].mxu1 }
 0x126   :  { %649 = vst [vmem:[%s1645_s2 + $0xd0] sm:$0xff] %v1022_v48  ;;  %v464_v51 = vpop.f32.mrb[25].mxu0  ;;  %681 = vst [vmem:[%s1645_s2 + $0x1d0] sm:$0xff] %v1472_v50  ;;  %v1481_v52 = vpop.f32.mrb[25].mxu1  ;;  %v782_v6 = vmul.f32 %v1022_v48, %v1022_v48 }
 0x127   :  { %647 = vst [vmem:[%s1645_s2 + $0xc0] sm:$0xff] %v464_v51  ;;  %v710_v53 = vadd.f32 %v709_v49, %v464_v51  ;;  %v780_v54 = vmul.f32 %v464_v51, %v464_v51  ;;  %v842_v55 = vadd.f32 %v841_v44, %v779_v40  ;;  %v1023_v56 = vpop.f32.mrb[26].mxu0  ;;  %679 = vst [vmem:[%s1645_s2 + $0x1c0] sm:$0xff] %v1481_v52  ;;  %v1490_v57 = vpop.f32.mrb[26].mxu1 }
 0x128   :  { %650 = vst [vmem:[%s1645_s2 + $0xd8] sm:$0xff] %v1023_v56  ;;  %v467_v61 = vpop.f32.mrb[27].mxu0  ;;  %682 = vst [vmem:[%s1645_s2 + $0x1d8] sm:$0xff] %v1490_v57  ;;  %v1499_v63 = vpop.f32.mrb[27].mxu1  ;;  %v783_v10 = vmul.f32 %v1023_v56, %v1023_v56  ;;  %v788_v49 = vmul.f32 %v1265_v43, %v1265_v43 }
 0x129   :  { %v843_v0 = vadd.f32 %v842_v55, %v780_v54  ;;  %648 = vst [vmem:[%s1645_s2 + $0xc8] sm:$0xff] %v467_v61  ;;  %v711_v2 = vadd.f32 %v710_v53, %v467_v61  ;;  %v781_v4 = vmul.f32 %v467_v61, %v467_v61  ;;  %680 = vst [vmem:[%s1645_s2 + $0x1c8] sm:$0xff] %v1499_v63 }
 0x12a   :  { %v790_v61 = vmul.f32 %v1256_v41, %v1256_v41 }
 0x12b   :  { %v712_v8 = vadd.f32 %v1022_v48, %v711_v2  ;;  %v844_v9 = vadd.f32 %v843_v0, %v781_v4  ;;  %v791_v4 = vmul.f32 %v1274_v45, %v1274_v45 }
 0x12d   :  { %v845_v11 = vadd.f32 %v844_v9, %v782_v6  ;;  %v1026_v12 = vpop.f32.mrb[28].mxu0  ;;  %v713_v13 = vadd.f32 %v1023_v56, %v712_v8  ;;  %v1508_v15 = vpop.f32.mrb[28].mxu1  ;;  %v789_v56 = vmul.f32 %v1283_v47, %v1283_v47 }
 0x12e   :  { %653 = vst [vmem:[%s1645_s2 + $0xf0] sm:$0xff] %v1026_v12  ;;  %v480_v17 = vpop.f32.mrb[29].mxu0  ;;  %685 = vst [vmem:[%s1645_s2 + $0x1f0] sm:$0xff] %v1508_v15  ;;  %v1517_v18 = vpop.f32.mrb[29].mxu1  ;;  %v786_v37 = vmul.f32 %v1026_v12, %v1026_v12 }
 0x12f   :  { %651 = vst [vmem:[%s1645_s2 + $0xe0] sm:$0xff] %v480_v17  ;;  %v714_v19 = vadd.f32 %v713_v13, %v480_v17  ;;  %v784_v22 = vmul.f32 %v480_v17, %v480_v17  ;;  %v846_v25 = vadd.f32 %v845_v11, %v783_v10  ;;  %v1027_v26 = vpop.f32.mrb[30].mxu0  ;;  %683 = vst [vmem:[%s1645_s2 + $0x1e0] sm:$0xff] %v1517_v18  ;;  %v1526_v27 = vpop.f32.mrb[30].mxu1 }
 0x130   :  { %654 = vst [vmem:[%s1645_s2 + $0xf8] sm:$0xff] %v1027_v26  ;;  %v483_v28 = vpop.f32.mrb[31].mxu0  ;;  %686 = vst [vmem:[%s1645_s2 + $0x1f8] sm:$0xff] %v1526_v27  ;;  %v1535_v30 = vpop.f32.mrb[31].mxu1  ;;  %v787_v40 = vmul.f32 %v1027_v26, %v1027_v26 }
 0x131   :  { %v847_v32 = vadd.f32 %v846_v25, %v784_v22  ;;  %652 = vst [vmem:[%s1645_s2 + $0xe8] sm:$0xff] %v483_v28  ;;  %v715_v33 = vadd.f32 %v714_v19, %v483_v28  ;;  %v785_v35 = vmul.f32 %v483_v28, %v483_v28  ;;  %684 = vst [vmem:[%s1645_s2 + $0x1e8] sm:$0xff] %v1535_v30 }
 0x133   :  { %v716_v38 = vadd.f32 %v1026_v12, %v715_v33  ;;  %v848_v39 = vadd.f32 %v847_v32, %v785_v35  ;;  %v793_v12 = vmul.f32 %v1319_v3, %v1319_v3  ;;  %v797_v32 = vmul.f32 %v1355_v23, %v1355_v23 }
 0x135   :  { %v849_v44 = vadd.f32 %v848_v39, %v786_v37  ;;  %v717_v48 = vadd.f32 %v1027_v26, %v716_v38 }
 0x137   :  { %v718_v51 = vadd.f32 %v717_v48, %v1265_v43  ;;  %v850_v53 = vadd.f32 %v849_v44, %v787_v40  ;;  %v792_v43 = vmul.f32 %v1301_v60, %v1301_v60  ;;  %v801_v48 = vmul.f32 %v1391_v46, %v1391_v46 }
 0x139   :  { %v851_v54 = vadd.f32 %v850_v53, %v788_v49  ;;  %v719_v55 = vadd.f32 %v718_v51, %v1283_v47 }
 0x13b   :  { %v720_v0 = vadd.f32 %v1256_v41, %v719_v55  ;;  %v852_v2 = vadd.f32 %v851_v54, %v789_v56  ;;  %v794_v41 = vmul.f32 %v1292_v58, %v1292_v58 }
 0x13d   :  { %v853_v6 = vadd.f32 %v852_v2, %v790_v61  ;;  %v721_v8 = vadd.f32 %v1274_v45, %v720_v0  ;;  %v795_v45 = vmul.f32 %v1310_v1, %v1310_v1  ;;  %v805_v0 = vmul.f32 %v1427_v7, %v1427_v7 }
 0x13f   :  { %v722_v9 = vadd.f32 %v721_v8, %v1301_v60  ;;  %v854_v10 = vadd.f32 %v853_v6, %v791_v4  ;;  %v796_v60 = vmul.f32 %v1337_v16, %v1337_v16 }
 0x141   :  { %v855_v11 = vadd.f32 %v854_v10, %v792_v43  ;;  %v723_v47 = vadd.f32 %v722_v9, %v1319_v3 }
 0x143   :  { %v724_v13 = vadd.f32 %v1292_v58, %v723_v47  ;;  %v856_v17 = vadd.f32 %v855_v11, %v793_v12  ;;  %v798_v58 = vmul.f32 %v1328_v14, %v1328_v14  ;;  %v809_v11 = vmul.f32 %v1463_v31, %v1463_v31 }
 0x145   :  { %v857_v19 = vadd.f32 %v856_v17, %v794_v41  ;;  %v725_v22 = vadd.f32 %v1310_v1, %v724_v13  ;;  %v799_v1 = vmul.f32 %v1346_v21, %v1346_v21 }
 0x147   :  { %v726_v25 = vadd.f32 %v725_v22, %v1337_v16  ;;  %v858_v26 = vadd.f32 %v857_v19, %v795_v45  ;;  %v800_v16 = vmul.f32 %v1373_v36, %v1373_v36  ;;  %v813_v22 = vmul.f32 %v1499_v63, %v1499_v63 }
 0x149   :  { %v859_v28 = vadd.f32 %v858_v26, %v796_v60  ;;  %v727_v3 = vadd.f32 %v726_v25, %v1355_v23 }
 0x14b   :  { %v728_v33 = vadd.f32 %v1328_v14, %v727_v3  ;;  %v860_v35 = vadd.f32 %v859_v28, %v797_v32  ;;  %v802_v14 = vmul.f32 %v1364_v34, %v1364_v34 }
 0x14d   :  { %v861_v37 = vadd.f32 %v860_v35, %v798_v58  ;;  %v729_v38 = vadd.f32 %v1346_v21, %v728_v33  ;;  %v803_v21 = vmul.f32 %v1382_v42, %v1382_v42  ;;  %v817_v33 = vmul.f32 %v1535_v30, %v1535_v30 }
 0x14f   :  { %v730_v39 = vadd.f32 %v729_v38, %v1373_v36  ;;  %v862_v40 = vadd.f32 %v861_v37, %v799_v1  ;;  %v804_v36 = vmul.f32 %v1409_v62, %v1409_v62 }
 0x151   :  { %v863_v44 = vadd.f32 %v862_v40, %v800_v16  ;;  %v731_v23 = vadd.f32 %v730_v39, %v1391_v46 }
 0x153   :  { %v732_v49 = vadd.f32 %v1364_v34, %v731_v23  ;;  %v864_v51 = vadd.f32 %v863_v44, %v801_v48  ;;  %v806_v34 = vmul.f32 %v1400_v59, %v1400_v59 }
 0x155   :  { %v865_v53 = vadd.f32 %v864_v51, %v802_v14  ;;  %v733_v54 = vadd.f32 %v1382_v42, %v732_v49  ;;  %v807_v42 = vmul.f32 %v1418_v5, %v1418_v5 }
 0x157   :  { %v734_v55 = vadd.f32 %v733_v54, %v1409_v62  ;;  %v866_v56 = vadd.f32 %v865_v53, %v803_v21  ;;  %v808_v62 = vmul.f32 %v1445_v24, %v1445_v24 }
 0x159   :  { %v867_v61 = vadd.f32 %v866_v56, %v804_v36  ;;  %v735_v46 = vadd.f32 %v734_v55, %v1427_v7 }
 0x15b   :  { %v736_v2 = vadd.f32 %v1400_v59, %v735_v46  ;;  %v868_v4 = vadd.f32 %v867_v61, %v805_v0  ;;  %v810_v59 = vmul.f32 %v1436_v20, %v1436_v20 }
 0x15d   :  { %v869_v6 = vadd.f32 %v868_v4, %v806_v34  ;;  %v737_v8 = vadd.f32 %v1418_v5, %v736_v2  ;;  %v811_v5 = vmul.f32 %v1454_v29, %v1454_v29 }
 0x15f   :  { %v738_v43 = vadd.f32 %v737_v8, %v1445_v24  ;;  %v870_v9 = vadd.f32 %v869_v6, %v807_v42  ;;  %v812_v24 = vmul.f32 %v1481_v52, %v1481_v52 }
 0x161   :  { %v871_v10 = vadd.f32 %v870_v9, %v808_v62  ;;  %v739_v7 = vadd.f32 %v738_v43, %v1463_v31 }
 0x163   :  { %v740_v47 = vadd.f32 %v1436_v20, %v739_v7  ;;  %v872_v12 = vadd.f32 %v871_v10, %v809_v11  ;;  %v814_v20 = vmul.f32 %v1472_v50, %v1472_v50 }
 0x165   :  { %v873_v41 = vadd.f32 %v872_v12, %v810_v59  ;;  %v741_v13 = vadd.f32 %v1454_v29, %v740_v47  ;;  %v815_v29 = vmul.f32 %v1490_v57, %v1490_v57 }
 0x167   :  { %v742_v17 = vadd.f32 %v741_v13, %v1481_v52  ;;  %v874_v45 = vadd.f32 %v873_v41, %v811_v5  ;;  %v816_v52 = vmul.f32 %v1517_v18, %v1517_v18 }
 0x169   :  { %v875_v19 = vadd.f32 %v874_v45, %v812_v24  ;;  %v743_v31 = vadd.f32 %v742_v17, %v1499_v63 }
 0x16b   :  { %v744_v60 = vadd.f32 %v1472_v50, %v743_v31  ;;  %v876_v25 = vadd.f32 %v875_v19, %v813_v22  ;;  %v818_v50 = vmul.f32 %v1508_v15, %v1508_v15 }
 0x16d   :  { %v877_v26 = vadd.f32 %v876_v25, %v814_v20  ;;  %v745_v28 = vadd.f32 %v1490_v57, %v744_v60  ;;  %v819_v57 = vmul.f32 %v1526_v27, %v1526_v27 }
 0x16f   :  { %v746_v3 = vadd.f32 %v745_v28, %v1517_v18  ;;  %v878_v32 = vadd.f32 %v877_v26, %v815_v29 }
 0x171   :  { %v879_v58 = vadd.f32 %v878_v32, %v816_v52  ;;  %v747_v63 = vadd.f32 %v746_v3, %v1535_v30 }
 0x173   :  { %v748_v35 = vadd.f32 %v1508_v15, %v747_v63  ;;  %v880_v1 = vadd.f32 %v879_v58, %v817_v33 }
 0x175   :  { %v749_v37 = vadd.f32 %v1526_v27, %v748_v35  ;;  %v881_v38 = vadd.f32 %v880_v1, %v818_v50 }
 0x177   :  { %v750_v18 = vrot.slane %v749_v37, 4  ;;  %v882_v16 = vadd.f32 %v881_v38, %v819_v57 }
 0x179   :  { %v751_v39 = vadd.f32 %v750_v18, %v749_v37  ;;  %v883_v40 = vrot.slane %v882_v16, 4 }
 0x17b   :  { %v752_v44 = vrot.slane %v751_v39, 2  ;;  %v884_v23 = vadd.f32 %v883_v40, %v882_v16 }
 0x17d   :  { %v753_v48 = vadd.f32 %v752_v44, %v751_v39  ;;  %v885_v30 = vrot.slane %v884_v23, 2 }
 0x17f   :  { %v754_v14 = vrot.slane %v753_v48, 1  ;;  %v886_v49 = vadd.f32 %v885_v30, %v884_v23 }
 0x181   :  { %v887_v51 = vrot.slane %v886_v49, 1  ;;  %v755_v15 = vadd.f32 %v754_v14, %v753_v48 }
 0x183   :  { %v888_v21 = vadd.f32 %v887_v51, %v886_v49 }
 0x185   :  { %v890_v53 = vsel %vm889_vm0, %v755_v15, %v888_v21 }
 0x186   :  { %891 = vst [vmem:[%s1646_s3] sm:$0x3] %v890_v53 }

// kernel: bottleneck_forward.6
= control target key start
LH: loop header
LB: loop body
LE: loop exit
PB: predicated region body
PF: predicated region fallthrough
CT: control target
= control target key end

     0   :  { %s1375_s0 = inlined_call_operand.vmem [shape: f32[512,128], index: 0, kind: input, shape index: {}]   ;;  %s1376_s1 = inlined_call_operand.vmem [shape: f32[1,128], index: 1, kind: input, shape index: {}]   ;;  %s1377_s2 = inlined_call_operand.vmem [shape: f32[1,128], index: 2, kind: input, shape index: {}]   ;;  %s1378_s3 = inlined_call_operand.vmem [shape: bf16[512,128], index: 3, kind: output, shape index: {}]  }
   0x1   :  { %v14_v0 = vld [vmem:[%s1375_s0] sm:$0xff]  ;;  %v15_v1 = vld [vmem:[%s1375_s0 + $0x8] sm:$0xff]  ;;  %v16_v6 = vld [vmem:[%s1375_s0 + $0x10] sm:$0xff] }
   0x2   :  { %v958_v2 = vld [vmem:[%s1376_s1] ss:$0 sm:$0xff]  ;;  %v17_v7 = vld [vmem:[%s1375_s0 + $0x18] sm:$0xff]  ;;  %v19_v11 = vld [vmem:[%s1375_s0 + $0x28] sm:$0xff] }
   0x3   :  { %v85_v3 = vmul.f32 %v958_v2, %v14_v0  ;;  %v86_v4 = vmul.f32 %v958_v2, %v15_v1  ;;  %v965_v5 = vld [vmem:[%s1377_s2] ss:$0 sm:$0xff]  ;;  %v87_v8 = vmul.f32 %v958_v2, %v16_v6  ;;  %v88_v9 = vmul.f32 %v958_v2, %v17_v7  ;;  %v20_v12 = vld [vmem:[%s1375_s0 + $0x30] sm:$0xff]  ;;  %v21_v17 = vld [vmem:[%s1375_s0 + $0x38] sm:$0xff] }
   0x4   :  { %v18_v10 = vld [vmem:[%s1375_s0 + $0x20] sm:$0xff]  ;;  %v90_v16 = vmul.f32 %v958_v2, %v19_v11  ;;  %v91_v20 = vmul.f32 %v958_v2, %v20_v12  ;;  %v92_v21 = vmul.f32 %v958_v2, %v21_v17  ;;  %v23_v27 = vld [vmem:[%s1375_s0 + $0x48] sm:$0xff]  ;;  %v24_v32 = vld [vmem:[%s1375_s0 + $0x50] sm:$0xff] }
   0x5   :  { %v156_v13 = vadd.f32 %v965_v5, %v85_v3  ;;  %v157_v14 = vadd.f32 %v965_v5, %v86_v4  ;;  %v89_v15 = vmul.f32 %v958_v2, %v18_v10  ;;  %v158_v18 = vadd.f32 %v965_v5, %v87_v8  ;;  %v22_v22 = vld [vmem:[%s1375_s0 + $0x40] sm:$0xff]  ;;  %v25_v33 = vld [vmem:[%s1375_s0 + $0x58] sm:$0xff]  ;;  %v27_v39 = vld [vmem:[%s1375_s0 + $0x68] sm:$0xff] }
   0x6   :  { %v159_v19 = vadd.f32 %v965_v5, %v88_v9  ;;  %v161_v26 = vadd.f32 %v965_v5, %v90_v16  ;;  %v162_v30 = vadd.f32 %v965_v5, %v91_v20  ;;  %v163_v31 = vadd.f32 %v965_v5, %v92_v21  ;;  %v26_v38 = vld [vmem:[%s1375_s0 + $0x60] sm:$0xff]  ;;  %v28_v44 = vld [vmem:[%s1375_s0 + $0x70] sm:$0xff]  ;;  %v29_v49 = vld [vmem:[%s1375_s0 + $0x78] sm:$0xff] }
   0x7   :  { %v220_v23 = vmax.f32 %v156_v13, 0.0  ;;  %v221_v24 = vmax.f32 %v157_v14, 0.0  ;;  %v160_v25 = vadd.f32 %v965_v5, %v89_v15  ;;  %v222_v28 = vmax.f32 %v158_v18, 0.0  ;;  %v30_v54 = vld [vmem:[%s1375_s0 + $0x80] sm:$0xff]  ;;  %v31_v63 = vld [vmem:[%s1375_s0 + $0x88] sm:$0xff]  ;;  %v32_v6 = vld [vmem:[%s1375_s0 + $0x90] sm:$0xff] }
   0x8   :  { %v223_v29 = vmax.f32 %v159_v19, 0.0  ;;  %v225_v36 = vmax.f32 %v161_v26, 0.0  ;;  %v93_v37 = vmul.f32 %v958_v2, %v22_v22  ;;  %v226_v41 = vmax.f32 %v162_v30, 0.0  ;;  %v33_v7 = vld [vmem:[%s1375_s0 + $0x98] sm:$0xff]  ;;  %v34_v12 = vld [vmem:[%s1375_s0 + $0xa0] sm:$0xff]  ;;  %v35_v13 = vld [vmem:[%s1375_s0 + $0xa8] sm:$0xff] }
   0x9   :  { %v741_v34 = vpack.c.bf16 %v221_v24, %v220_v23  ;;  %v224_v35 = vmax.f32 %v160_v25, 0.0  ;;  %v227_v42 = vmax.f32 %v163_v31, 0.0  ;;  %v94_v43 = vmul.f32 %v958_v2, %v23_v27  ;;  %v36_v18 = vld [vmem:[%s1375_s0 + $0xb0] sm:$0xff]  ;;  %v37_v23 = vld [vmem:[%s1375_s0 + $0xb8] sm:$0xff] }
   0xa   :  { %v746_v40 = vpack.c.bf16 %v223_v29, %v222_v28  ;;  %v164_v46 = vadd.f32 %v965_v5, %v93_v37  ;;  %v95_v47 = vmul.f32 %v958_v2, %v24_v32  ;;  %v96_v48 = vmul.f32 %v958_v2, %v25_v33  ;;  %v38_v28 = vld [vmem:[%s1375_s0 + $0xc0] sm:$0xff]  ;;  %v39_v37 = vld [vmem:[%s1375_s0 + $0xc8] sm:$0xff] }
   0xb   :  { %742 = vst [vmem:[%s1378_s3] sm:$0xff] %v741_v34   ;;  %v751_v45 = vpack.c.bf16 %v225_v36, %v224_v35  ;;  %v756_v50 = vpack.c.bf16 %v227_v42, %v226_v41  ;;  %v165_v51 = vadd.f32 %v965_v5, %v94_v43  ;;  %v97_v52 = vmul.f32 %v958_v2, %v26_v38  ;;  %v40_v42 = vld [vmem:[%s1375_s0 + $0xd0] sm:$0xff]  ;;  %v41_v43 = vld [vmem:[%s1375_s0 + $0xd8] sm:$0xff] }
   0xc   :  { %898 = vst [vmem:[%s1378_s3 + $0x8] sm:$0xff] %v746_v40   ;;  %v98_v53 = vmul.f32 %v958_v2, %v27_v39  ;;  %v228_v55 = vmax.f32 %v164_v46, 0.0  ;;  %v166_v56 = vadd.f32 %v965_v5, %v95_v47  ;;  %v167_v57 = vadd.f32 %v965_v5, %v96_v48  ;;  %v42_v48 = vld [vmem:[%s1375_s0 + $0xe0] sm:$0xff] }
   0xd   :  { %899 = vst [vmem:[%s1378_s3 + $0x10] sm:$0xff] %v751_v45   ;;  %v99_v58 = vmul.f32 %v958_v2, %v28_v44  ;;  %900 = vst [vmem:[%s1378_s3 + $0x18] sm:$0xff] %v756_v50   ;;  %v229_v59 = vmax.f32 %v165_v51, 0.0  ;;  %v168_v60 = vadd.f32 %v965_v5, %v97_v52  ;;  %v100_v62 = vmul.f32 %v958_v2, %v29_v49  ;;  %v43_v49 = vld [vmem:[%s1375_s0 + $0xe8] sm:$0xff] }
   0xe   :  { %v169_v61 = vadd.f32 %v965_v5, %v98_v53  ;;  %v230_v0 = vmax.f32 %v166_v56, 0.0  ;;  %v231_v1 = vmax.f32 %v167_v57, 0.0  ;;  %v101_v4 = vmul.f32 %v958_v2, %v30_v54  ;;  %v44_v54 = vld [vmem:[%s1375_s0 + $0xf0] sm:$0xff] }
   0xf   :  { %v170_v3 = vadd.f32 %v965_v5, %v99_v58  ;;  %v761_v8 = vpack.c.bf16 %v229_v59, %v228_v55  ;;  %v232_v9 = vmax.f32 %v168_v60, 0.0  ;;  %v171_v11 = vadd.f32 %v965_v5, %v100_v62  ;;  %v45_v59 = vld [vmem:[%s1375_s0 + $0xf8] sm:$0xff] }
  0x10   :  { %v233_v10 = vmax.f32 %v169_v61, 0.0  ;;  %v766_v14 = vpack.c.bf16 %v231_v1, %v230_v0  ;;  %v102_v16 = vmul.f32 %v958_v2, %v31_v63  ;;  %v172_v17 = vadd.f32 %v965_v5, %v101_v4  ;;  %v46_v0 = vld [vmem:[%s1375_s0 + $0x100] sm:$0xff] }
  0x11   :  { %v234_v15 = vmax.f32 %v170_v3, 0.0  ;;  %901 = vst [vmem:[%s1378_s3 + $0x20] sm:$0xff] %v761_v8   ;;  %v235_v20 = vmax.f32 %v171_v11, 0.0  ;;  %v103_v21 = vmul.f32 %v958_v2, %v32_v6  ;;  %v104_v22 = vmul.f32 %v958_v2, %v33_v7  ;;  %v47_v11 = vld [vmem:[%s1375_s0 + $0x108] sm:$0xff] }
  0x12   :  { %v771_v19 = vpack.c.bf16 %v233_v10, %v232_v9  ;;  %902 = vst [vmem:[%s1378_s3 + $0x28] sm:$0xff] %v766_v14   ;;  %v173_v24 = vadd.f32 %v965_v5, %v102_v16  ;;  %v236_v25 = vmax.f32 %v172_v17, 0.0  ;;  %v105_v26 = vmul.f32 %v958_v2, %v34_v12  ;;  %v48_v16 = vld [vmem:[%s1375_s0 + $0x110] sm:$0xff]  ;;  %v49_v17 = vld [vmem:[%s1375_s0 + $0x118] sm:$0xff] }
  0x13   :  { %v106_v27 = vmul.f32 %v958_v2, %v35_v13  ;;  %v776_v29 = vpack.c.bf16 %v235_v20, %v234_v15  ;;  %v174_v30 = vadd.f32 %v965_v5, %v103_v21  ;;  %v175_v31 = vadd.f32 %v965_v5, %v104_v22  ;;  %v50_v22 = vld [vmem:[%s1375_s0 + $0x120] sm:$0xff] }
  0x14   :  { %903 = vst [vmem:[%s1378_s3 + $0x30] sm:$0xff] %v771_v19   ;;  %v107_v32 = vmul.f32 %v958_v2, %v36_v18  ;;  %v237_v33 = vmax.f32 %v173_v24, 0.0  ;;  %v176_v34 = vadd.f32 %v965_v5, %v105_v26  ;;  %v108_v36 = vmul.f32 %v958_v2, %v37_v23  ;;  %v51_v23 = vld [vmem:[%s1375_s0 + $0x128] sm:$0xff] }
  0x15   :  { %v177_v35 = vadd.f32 %v965_v5, %v106_v27  ;;  %904 = vst [vmem:[%s1378_s3 + $0x38] sm:$0xff] %v776_v29   ;;  %v238_v38 = vmax.f32 %v174_v30, 0.0  ;;  %v239_v39 = vmax.f32 %v175_v31, 0.0  ;;  %v109_v41 = vmul.f32 %v958_v2, %v38_v28  ;;  %v52_v28 = vld [vmem:[%s1375_s0 + $0x130] sm:$0xff] }
  0x16   :  { %v178_v40 = vadd.f32 %v965_v5, %v107_v32  ;;  %v781_v44 = vpack.c.bf16 %v237_v33, %v236_v25  ;;  %v240_v45 = vmax.f32 %v176_v34, 0.0  ;;  %v179_v47 = vadd.f32 %v965_v5, %v108_v36  ;;  %v53_v33 = vld [vmem:[%s1375_s0 + $0x138] sm:$0xff] }
  0x17   :  { %v241_v46 = vmax.f32 %v177_v35, 0.0  ;;  %v786_v50 = vpack.c.bf16 %v239_v39, %v238_v38  ;;  %v110_v52 = vmul.f32 %v958_v2, %v39_v37  ;;  %v180_v53 = vadd.f32 %v965_v5, %v109_v41  ;;  %v54_v38 = vld [vmem:[%s1375_s0 + $0x140] sm:$0xff] }
  0x18   :  { %v242_v51 = vmax.f32 %v178_v40, 0.0  ;;  %905 = vst [vmem:[%s1378_s3 + $0x40] sm:$0xff] %v781_v44   ;;  %v243_v56 = vmax.f32 %v179_v47, 0.0  ;;  %v111_v57 = vmul.f32 %v958_v2, %v40_v42  ;;  %v112_v58 = vmul.f32 %v958_v2, %v41_v43  ;;  %v55_v47 = vld [vmem:[%s1375_s0 + $0x148] sm:$0xff] }
  0x19   :  { %v791_v55 = vpack.c.bf16 %v241_v46, %v240_v45  ;;  %906 = vst [vmem:[%s1378_s3 + $0x48] sm:$0xff] %v786_v50   ;;  %v181_v60 = vadd.f32 %v965_v5, %v110_v52  ;;  %v244_v61 = vmax.f32 %v180_v53, 0.0  ;;  %v113_v62 = vmul.f32 %v958_v2, %v42_v48  ;;  %v56_v52 = vld [vmem:[%s1375_s0 + $0x150] sm:$0xff]  ;;  %v57_v53 = vld [vmem:[%s1375_s0 + $0x158] sm:$0xff] }
  0x1a   :  { %v114_v63 = vmul.f32 %v958_v2, %v43_v49  ;;  %v796_v1 = vpack.c.bf16 %v243_v56, %v242_v51  ;;  %v182_v3 = vadd.f32 %v965_v5, %v111_v57  ;;  %v183_v4 = vadd.f32 %v965_v5, %v112_v58  ;;  %v58_v58 = vld [vmem:[%s1375_s0 + $0x160] sm:$0xff] }
  0x1b   :  { %907 = vst [vmem:[%s1378_s3 + $0x50] sm:$0xff] %v791_v55   ;;  %v115_v6 = vmul.f32 %v958_v2, %v44_v54  ;;  %v245_v7 = vmax.f32 %v181_v60, 0.0  ;;  %v184_v8 = vadd.f32 %v965_v5, %v113_v62  ;;  %v116_v10 = vmul.f32 %v958_v2, %v45_v59  ;;  %v59_v59 = vld [vmem:[%s1375_s0 + $0x168] sm:$0xff] }
  0x1c   :  { %v185_v9 = vadd.f32 %v965_v5, %v114_v63  ;;  %908 = vst [vmem:[%s1378_s3 + $0x58] sm:$0xff] %v796_v1   ;;  %v246_v12 = vmax.f32 %v182_v3, 0.0  ;;  %v247_v13 = vmax.f32 %v183_v4, 0.0  ;;  %v117_v15 = vmul.f32 %v958_v2, %v46_v0  ;;  %v60_v0 = vld [vmem:[%s1375_s0 + $0x170] sm:$0xff] }
  0x1d   :  { %v186_v14 = vadd.f32 %v965_v5, %v115_v6  ;;  %v801_v18 = vpack.c.bf16 %v245_v7, %v244_v61  ;;  %v248_v19 = vmax.f32 %v184_v8, 0.0  ;;  %v187_v21 = vadd.f32 %v965_v5, %v116_v10  ;;  %v61_v7 = vld [vmem:[%s1375_s0 + $0x178] sm:$0xff] }
  0x1e   :  { %v249_v20 = vmax.f32 %v185_v9, 0.0  ;;  %v806_v24 = vpack.c.bf16 %v247_v13, %v246_v12  ;;  %v118_v26 = vmul.f32 %v958_v2, %v47_v11  ;;  %v188_v27 = vadd.f32 %v965_v5, %v117_v15  ;;  %v62_v12 = vld [vmem:[%s1375_s0 + $0x180] sm:$0xff] }
  0x1f   :  { %v250_v25 = vmax.f32 %v186_v14, 0.0  ;;  %909 = vst [vmem:[%s1378_s3 + $0x60] sm:$0xff] %v801_v18   ;;  %v251_v30 = vmax.f32 %v187_v21, 0.0  ;;  %v119_v31 = vmul.f32 %v958_v2, %v48_v16  ;;  %v120_v32 = vmul.f32 %v958_v2, %v49_v17  ;;  %v63_v21 = vld [vmem:[%s1375_s0 + $0x188] sm:$0xff] }
  0x20   :  { %v811_v29 = vpack.c.bf16 %v249_v20, %v248_v19  ;;  %910 = vst [vmem:[%s1378_s3 + $0x68] sm:$0xff] %v806_v24   ;;  %v189_v34 = vadd.f32 %v965_v5, %v118_v26  ;;  %v252_v35 = vmax.f32 %v188_v27, 0.0  ;;  %v121_v36 = vmul.f32 %v958_v2, %v50_v22  ;;  %v64_v26 = vld [vmem:[%s1375_s0 + $0x190] sm:$0xff]  ;;  %v65_v27 = vld [vmem:[%s1375_s0 + $0x198] sm:$0xff] }
  0x21   :  { %v122_v37 = vmul.f32 %v958_v2, %v51_v23  ;;  %v816_v39 = vpack.c.bf16 %v251_v30, %v250_v25  ;;  %v190_v40 = vadd.f32 %v965_v5, %v119_v31  ;;  %v191_v41 = vadd.f32 %v965_v5, %v120_v32  ;;  %v66_v32 = vld [vmem:[%s1375_s0 + $0x1a0] sm:$0xff] }
  0x22   :  { %911 = vst [vmem:[%s1378_s3 + $0x70] sm:$0xff] %v811_v29   ;;  %v123_v42 = vmul.f32 %v958_v2, %v52_v28  ;;  %v253_v43 = vmax.f32 %v189_v34, 0.0  ;;  %v192_v44 = vadd.f32 %v965_v5, %v121_v36  ;;  %v124_v46 = vmul.f32 %v958_v2, %v53_v33  ;;  %v67_v33 = vld [vmem:[%s1375_s0 + $0x1a8] sm:$0xff] }
  0x23   :  { %v193_v45 = vadd.f32 %v965_v5, %v122_v37  ;;  %912 = vst [vmem:[%s1378_s3 + $0x78] sm:$0xff] %v816_v39   ;;  %v254_v48 = vmax.f32 %v190_v40, 0.0  ;;  %v255_v49 = vmax.f32 %v191_v41, 0.0  ;;  %v125_v51 = vmul.f32 %v958_v2, %v54_v38  ;;  %v68_v38 = vld [vmem:[%s1375_s0 + $0x1b0] sm:$0xff] }
  0x24   :  { %v194_v50 = vadd.f32 %v965_v5, %v123_v42  ;;  %v821_v54 = vpack.c.bf16 %v253_v43, %v252_v35  ;;  %v256_v55 = vmax.f32 %v192_v44, 0.0  ;;  %v195_v57 = vadd.f32 %v965_v5, %v124_v46  ;;  %v69_v43 = vld [vmem:[%s1375_s0 + $0x1b8] sm:$0xff] }
  0x25   :  { %v257_v56 = vmax.f32 %v193_v45, 0.0  ;;  %v826_v60 = vpack.c.bf16 %v255_v49, %v254_v48  ;;  %v126_v62 = vmul.f32 %v958_v2, %v55_v47  ;;  %v196_v63 = vadd.f32 %v965_v5, %v125_v51  ;;  %v70_v48 = vld [vmem:[%s1375_s0 + $0x1c0] sm:$0xff] }
  0x26   :  { %v258_v61 = vmax.f32 %v194_v50, 0.0  ;;  %913 = vst [vmem:[%s1378_s3 + $0x80] sm:$0xff] %v821_v54   ;;  %v259_v3 = vmax.f32 %v195_v57, 0.0  ;;  %v127_v4 = vmul.f32 %v958_v2, %v56_v52  ;;  %v128_v6 = vmul.f32 %v958_v2, %v57_v53  ;;  %v71_v57 = vld [vmem:[%s1375_s0 + $0x1c8] sm:$0xff] }
  0x27   :  { %v831_v1 = vpack.c.bf16 %v257_v56, %v256_v55  ;;  %914 = vst [vmem:[%s1378_s3 + $0x88] sm:$0xff] %v826_v60   ;;  %v197_v8 = vadd.f32 %v965_v5, %v126_v62  ;;  %v260_v9 = vmax.f32 %v196_v63, 0.0  ;;  %v129_v10 = vmul.f32 %v958_v2, %v58_v58  ;;  %v72_v62 = vld [vmem:[%s1375_s0 + $0x1d0] sm:$0xff]  ;;  %v73_v63 = vld [vmem:[%s1375_s0 + $0x1d8] sm:$0xff] }
  0x28   :  { %v130_v11 = vmul.f32 %v958_v2, %v59_v59  ;;  %v836_v13 = vpack.c.bf16 %v259_v3, %v258_v61  ;;  %v198_v14 = vadd.f32 %v965_v5, %v127_v4  ;;  %v199_v15 = vadd.f32 %v965_v5, %v128_v6  ;;  %v74_v6 = vld [vmem:[%s1375_s0 + $0x1e0] sm:$0xff] }
  0x29   :  { %915 = vst [vmem:[%s1378_s3 + $0x90] sm:$0xff] %v831_v1   ;;  %v131_v16 = vmul.f32 %v958_v2, %v60_v0  ;;  %v261_v17 = vmax.f32 %v197_v8, 0.0  ;;  %v200_v18 = vadd.f32 %v965_v5, %v129_v10  ;;  %v132_v20 = vmul.f32 %v958_v2, %v61_v7  ;;  %v75_v7 = vld [vmem:[%s1375_s0 + $0x1e8] sm:$0xff] }
  0x2a   :  { %v201_v19 = vadd.f32 %v965_v5, %v130_v11  ;;  %916 = vst [vmem:[%s1378_s3 + $0x98] sm:$0xff] %v836_v13   ;;  %v262_v22 = vmax.f32 %v198_v14, 0.0  ;;  %v263_v23 = vmax.f32 %v199_v15, 0.0  ;;  %v133_v25 = vmul.f32 %v958_v2, %v62_v12  ;;  %v76_v12 = vld [vmem:[%s1375_s0 + $0x1f0] sm:$0xff] }
  0x2b   :  { %v202_v24 = vadd.f32 %v965_v5, %v131_v16  ;;  %v841_v28 = vpack.c.bf16 %v261_v17, %v260_v9  ;;  %v264_v29 = vmax.f32 %v200_v18, 0.0  ;;  %v203_v31 = vadd.f32 %v965_v5, %v132_v20  ;;  %v77_v17 = vld [vmem:[%s1375_s0 + $0x1f8] sm:$0xff] }
  0x2c   :  { %v265_v30 = vmax.f32 %v201_v19, 0.0  ;;  %v846_v34 = vpack.c.bf16 %v263_v23, %v262_v22  ;;  %v134_v36 = vmul.f32 %v958_v2, %v63_v21  ;;  %v204_v37 = vadd.f32 %v965_v5, %v133_v25 }
  0x2d   :  { %v266_v35 = vmax.f32 %v202_v24, 0.0  ;;  %917 = vst [vmem:[%s1378_s3 + $0xa0] sm:$0xff] %v841_v28   ;;  %v267_v40 = vmax.f32 %v203_v31, 0.0  ;;  %v135_v41 = vmul.f32 %v958_v2, %v64_v26  ;;  %v136_v42 = vmul.f32 %v958_v2, %v65_v27 }
  0x2e   :  { %v851_v39 = vpack.c.bf16 %v265_v30, %v264_v29  ;;  %918 = vst [vmem:[%s1378_s3 + $0xa8] sm:$0xff] %v846_v34   ;;  %v205_v44 = vadd.f32 %v965_v5, %v134_v36  ;;  %v268_v45 = vmax.f32 %v204_v37, 0.0  ;;  %v137_v46 = vmul.f32 %v958_v2, %v66_v32 }
  0x2f   :  { %v138_v47 = vmul.f32 %v958_v2, %v67_v33  ;;  %v856_v49 = vpack.c.bf16 %v267_v40, %v266_v35  ;;  %v206_v50 = vadd.f32 %v965_v5, %v135_v41  ;;  %v207_v51 = vadd.f32 %v965_v5, %v136_v42 }
  0x30   :  { %919 = vst [vmem:[%s1378_s3 + $0xb0] sm:$0xff] %v851_v39   ;;  %v139_v52 = vmul.f32 %v958_v2, %v68_v38  ;;  %v269_v53 = vmax.f32 %v205_v44, 0.0  ;;  %v208_v54 = vadd.f32 %v965_v5, %v137_v46  ;;  %v140_v56 = vmul.f32 %v958_v2, %v69_v43 }
  0x31   :  { %v209_v55 = vadd.f32 %v965_v5, %v138_v47  ;;  %920 = vst [vmem:[%s1378_s3 + $0xb8] sm:$0xff] %v856_v49   ;;  %v270_v58 = vmax.f32 %v206_v50, 0.0  ;;  %v271_v59 = vmax.f32 %v207_v51, 0.0  ;;  %v141_v61 = vmul.f32 %v958_v2, %v70_v48 }
  0x32   :  { %v210_v60 = vadd.f32 %v965_v5, %v139_v52  ;;  %v861_v0 = vpack.c.bf16 %v269_v53, %v268_v45  ;;  %v272_v1 = vmax.f32 %v208_v54, 0.0  ;;  %v211_v4 = vadd.f32 %v965_v5, %v140_v56 }
  0x33   :  { %v273_v3 = vmax.f32 %v209_v55, 0.0  ;;  %v866_v8 = vpack.c.bf16 %v271_v59, %v270_v58  ;;  %v142_v10 = vmul.f32 %v958_v2, %v71_v57  ;;  %v212_v11 = vadd.f32 %v965_v5, %v141_v61 }
  0x34   :  { %v274_v9 = vmax.f32 %v210_v60, 0.0  ;;  %921 = vst [vmem:[%s1378_s3 + $0xc0] sm:$0xff] %v861_v0   ;;  %v275_v14 = vmax.f32 %v211_v4, 0.0  ;;  %v143_v15 = vmul.f32 %v958_v2, %v72_v62  ;;  %v144_v16 = vmul.f32 %v958_v2, %v73_v63 }
  0x35   :  { %v871_v13 = vpack.c.bf16 %v273_v3, %v272_v1  ;;  %922 = vst [vmem:[%s1378_s3 + $0xc8] sm:$0xff] %v866_v8   ;;  %v213_v18 = vadd.f32 %v965_v5, %v142_v10  ;;  %v276_v19 = vmax.f32 %v212_v11, 0.0  ;;  %v145_v20 = vmul.f32 %v958_v2, %v74_v6 }
  0x36   :  { %v146_v21 = vmul.f32 %v958_v2, %v75_v7  ;;  %v876_v22 = vpack.c.bf16 %v275_v14, %v274_v9  ;;  %v214_v23 = vadd.f32 %v965_v5, %v143_v15  ;;  %v215_v24 = vadd.f32 %v965_v5, %v144_v16 }
  0x37   :  { %923 = vst [vmem:[%s1378_s3 + $0xd0] sm:$0xff] %v871_v13   ;;  %v147_v25 = vmul.f32 %v958_v2, %v76_v12  ;;  %v277_v26 = vmax.f32 %v213_v18, 0.0  ;;  %v216_v27 = vadd.f32 %v965_v5, %v145_v20  ;;  %v148_v29 = vmul.f32 %v958_v2, %v77_v17 }
  0x38   :  { %v217_v28 = vadd.f32 %v965_v5, %v146_v21  ;;  %924 = vst [vmem:[%s1378_s3 + $0xd8] sm:$0xff] %v876_v22   ;;  %v278_v30 = vmax.f32 %v214_v23, 0.0  ;;  %v279_v31 = vmax.f32 %v215_v24, 0.0 }
  0x39   :  { %v218_v32 = vadd.f32 %v965_v5, %v147_v25  ;;  %v881_v33 = vpack.c.bf16 %v277_v26, %v276_v19  ;;  %v280_v34 = vmax.f32 %v216_v27, 0.0  ;;  %v219_v36 = vadd.f32 %v965_v5, %v148_v29 }
  0x3a   :  { %v281_v35 = vmax.f32 %v217_v28, 0.0  ;;  %v886_v37 = vpack.c.bf16 %v279_v31, %v278_v30 }
  0x3b   :  { %v282_v38 = vmax.f32 %v218_v32, 0.0  ;;  %925 = vst [vmem:[%s1378_s3 + $0xe0] sm:$0xff] %v881_v33   ;;  %v283_v39 = vmax.f32 %v219_v36, 0.0 }
  0x3c   :  { %v891_v2 = vpack.c.bf16 %v281_v35, %v280_v34  ;;  %926 = vst [vmem:[%s1378_s3 + $0xe8] sm:$0xff] %v886_v37  }
  0x3d   :  { %v896_v40 = vpack.c.bf16 %v283_v39, %v282_v38 }
  0x3e   :  { %927 = vst [vmem:[%s1378_s3 + $0xf0] sm:$0xff] %v891_v2  }
  0x3f   :  { %928 = vst [vmem:[%s1378_s3 + $0xf8] sm:$0xff] %v896_v40  }

// kernel: bottleneck_forward.9
= control target key start
LH: loop header
LB: loop body
LE: loop exit
PB: predicated region body
PF: predicated region fallthrough
CT: control target
= control target key end

     0   :  { %s1511_s0 = inlined_call_operand.vmem [shape: f32[512,128], index: 0, kind: input, shape index: {}]   ;;  %s1512_s1 = inlined_call_operand.vmem [shape: f32[1,128], index: 1, kind: input, shape index: {}]   ;;  %s1513_s2 = inlined_call_operand.vmem [shape: f32[1,128], index: 2, kind: input, shape index: {}]   ;;  %s1514_s3 = inlined_call_operand.vmem [shape: f32[512,128], index: 3, kind: input, shape index: {}]   ;;  %s1515_s4 = inlined_call_operand.vmem [shape: f32[1,128], index: 4, kind: input, shape index: {}]   ;;  %s1516_s5 = inlined_call_operand.vmem [shape: f32[1,128], index: 5, kind: input, shape index: {}]   ;;  %s1517_s6 = inlined_call_operand.vmem [shape: f32[512,128], index: 6, kind: output, shape index: {}]  }
   0x1   :  { %v23_v0 = vld [vmem:[%s1514_s3] sm:$0xff]  ;;  %v24_v8 = vld [vmem:[%s1514_s3 + $0x8] sm:$0xff]  ;;  %v25_v10 = vld [vmem:[%s1514_s3 + $0x10] sm:$0xff] }
   0x2   :  { %v680_v1 = vld [vmem:[%s1515_s4] ss:$0 sm:$0xff]  ;;  %v230_v9 = vld [vmem:[%s1511_s0 + $0x8] sm:$0xff]  ;;  %v231_v15 = vld [vmem:[%s1511_s0 + $0x10] sm:$0xff] }
   0x3   :  { %v685_v2 = vld [vmem:[%s1516_s5] ss:$0 sm:$0xff]  ;;  %v94_v3 = vmul.f32 %v680_v1, %v23_v0  ;;  %v95_v12 = vmul.f32 %v680_v1, %v24_v8  ;;  %v96_v14 = vmul.f32 %v680_v1, %v25_v10  ;;  %v26_v16 = vld [vmem:[%s1514_s3 + $0x18] sm:$0xff]  ;;  %v28_v24 = vld [vmem:[%s1514_s3 + $0x28] sm:$0xff] }
   0x4   :  { %v229_v4 = vld [vmem:[%s1511_s0] sm:$0xff]  ;;  %v232_v17 = vld [vmem:[%s1511_s0 + $0x18] sm:$0xff]  ;;  %v97_v20 = vmul.f32 %v680_v1, %v26_v16  ;;  %v234_v29 = vld [vmem:[%s1511_s0 + $0x28] sm:$0xff]  ;;  %v99_v38 = vmul.f32 %v680_v1, %v28_v24 }
   0x5   :  { %v694_v5 = vld [vmem:[%s1512_s1] ss:$0 sm:$0xff]  ;;  %v165_v11 = vadd.f32 %v685_v2, %v94_v3  ;;  %v166_v25 = vadd.f32 %v685_v2, %v95_v12  ;;  %v167_v27 = vadd.f32 %v685_v2, %v96_v14  ;;  %v29_v34 = vld [vmem:[%s1514_s3 + $0x30] sm:$0xff]  ;;  %v30_v44 = vld [vmem:[%s1514_s3 + $0x38] sm:$0xff] }
   0x6   :  { %v699_v6 = vld [vmem:[%s1513_s2] ss:$0 sm:$0xff]  ;;  %v300_v7 = vmul.f32 %v694_v5, %v229_v4  ;;  %v301_v13 = vmul.f32 %v694_v5, %v230_v9  ;;  %v302_v19 = vmul.f32 %v694_v5, %v231_v15  ;;  %v303_v21 = vmul.f32 %v694_v5, %v232_v17  ;;  %v235_v39 = vld [vmem:[%s1511_s0 + $0x30] sm:$0xff]  ;;  %v236_v45 = vld [vmem:[%s1511_s0 + $0x38] sm:$0xff] }
   0x7   :  { %v27_v22 = vld [vmem:[%s1514_s3 + $0x20] sm:$0xff]  ;;  %v168_v32 = vadd.f32 %v685_v2, %v97_v20  ;;  %v305_v43 = vmul.f32 %v694_v5, %v234_v29  ;;  %v170_v48 = vadd.f32 %v685_v2, %v99_v38  ;;  %v100_v49 = vmul.f32 %v680_v1, %v29_v34  ;;  %v32_v56 = vld [vmem:[%s1514_s3 + $0x48] sm:$0xff]  ;;  %v33_v4 = vld [vmem:[%s1514_s3 + $0x50] sm:$0xff] }
   0x8   :  { %v371_v18 = vadd.f32 %v699_v6, %v300_v7  ;;  %v233_v23 = vld [vmem:[%s1511_s0 + $0x20] sm:$0xff]  ;;  %v372_v26 = vadd.f32 %v699_v6, %v301_v13  ;;  %v98_v28 = vmul.f32 %v680_v1, %v27_v22  ;;  %v373_v31 = vadd.f32 %v699_v6, %v302_v19  ;;  %v238_v3 = vld [vmem:[%s1511_s0 + $0x48] sm:$0xff]  ;;  %v34_v12 = vld [vmem:[%s1514_s3 + $0x58] sm:$0xff] }
   0x9   :  { %v374_v33 = vadd.f32 %v699_v6, %v303_v21  ;;  %v304_v37 = vmul.f32 %v694_v5, %v233_v23  ;;  %v31_v50 = vld [vmem:[%s1514_s3 + $0x40] sm:$0xff]  ;;  %v376_v54 = vadd.f32 %v699_v6, %v305_v43  ;;  %v306_v55 = vmul.f32 %v694_v5, %v235_v39  ;;  %v240_v17 = vld [vmem:[%s1511_s0 + $0x58] sm:$0xff]  ;;  %v37_v34 = vld [vmem:[%s1514_s3 + $0x70] sm:$0xff] }
   0xa   :  { %v435_v30 = vadd.f32 %v371_v18, %v165_v11  ;;  %v436_v35 = vadd.f32 %v372_v26, %v166_v25  ;;  %v169_v36 = vadd.f32 %v685_v2, %v98_v28  ;;  %v437_v41 = vadd.f32 %v373_v31, %v167_v27  ;;  %v237_v51 = vld [vmem:[%s1511_s0 + $0x40] sm:$0xff]  ;;  %v239_v11 = vld [vmem:[%s1511_s0 + $0x50] sm:$0xff]  ;;  %v36_v28 = vld [vmem:[%s1514_s3 + $0x68] sm:$0xff] }
   0xb   :  { %v438_v42 = vadd.f32 %v374_v33, %v168_v32  ;;  %v375_v47 = vadd.f32 %v699_v6, %v304_v37  ;;  %v171_v58 = vadd.f32 %v685_v2, %v100_v49  ;;  %v101_v59 = vmul.f32 %v680_v1, %v30_v44  ;;  %v35_v22 = vld [vmem:[%s1514_s3 + $0x60] sm:$0xff]  ;;  %v242_v33 = vld [vmem:[%s1511_s0 + $0x68] sm:$0xff]  ;;  %v243_v43 = vld [vmem:[%s1511_s0 + $0x70] sm:$0xff] }
   0xc   :  { %v499_v40 = vmax.f32 %v435_v30, 0.0  ;;  %v500_v46 = vmax.f32 %v436_v35, 0.0  ;;  %v501_v52 = vmax.f32 %v437_v41, 0.0  ;;  %v307_v60 = vmul.f32 %v694_v5, %v236_v45  ;;  %v241_v27 = vld [vmem:[%s1511_s0 + $0x60] sm:$0xff]  ;;  %v244_v49 = vld [vmem:[%s1511_s0 + $0x78] sm:$0xff] }
   0xd   :  { %v502_v53 = vmax.f32 %v438_v42, 0.0  ;;  %v439_v57 = vadd.f32 %v375_v47, %v169_v36  ;;  %v440_v61 = vadd.f32 %v376_v54, %v170_v48  ;;  %v377_v62 = vadd.f32 %v699_v6, %v306_v55  ;;  %v38_v48 = vld [vmem:[%s1514_s3 + $0x78] sm:$0xff]  ;;  %v39_v54 = vld [vmem:[%s1514_s3 + $0x80] sm:$0xff] }
   0xe   :  { %563 = vst [vmem:[%s1517_s6] sm:$0xff] %v499_v40  ;;  %564 = vst [vmem:[%s1517_s6 + $0x8] sm:$0xff] %v500_v46  ;;  %v102_v63 = vmul.f32 %v680_v1, %v31_v50  ;;  %v308_v0 = vmul.f32 %v694_v5, %v237_v51  ;;  %v172_v8 = vadd.f32 %v685_v2, %v101_v59  ;;  %v245_v55 = vld [vmem:[%s1511_s0 + $0x80] sm:$0xff] }
   0xf   :  { %565 = vst [vmem:[%s1517_s6 + $0x10] sm:$0xff] %v501_v52  ;;  %566 = vst [vmem:[%s1517_s6 + $0x18] sm:$0xff] %v502_v53  ;;  %v503_v7 = vmax.f32 %v439_v57, 0.0  ;;  %v378_v9 = vadd.f32 %v699_v6, %v307_v60  ;;  %v103_v10 = vmul.f32 %v680_v1, %v32_v56  ;;  %v504_v13 = vmax.f32 %v440_v61, 0.0  ;;  %v40_v60 = vld [vmem:[%s1514_s3 + $0x88] sm:$0xff] }
  0x10   :  { %v441_v14 = vadd.f32 %v377_v62, %v171_v58  ;;  %v173_v15 = vadd.f32 %v685_v2, %v102_v63  ;;  %v379_v16 = vadd.f32 %v699_v6, %v308_v0  ;;  %v309_v20 = vmul.f32 %v694_v5, %v238_v3 }
  0x11   :  { %567 = vst [vmem:[%s1517_s6 + $0x20] sm:$0xff] %v503_v7  ;;  %v442_v18 = vadd.f32 %v378_v9, %v172_v8  ;;  %v174_v19 = vadd.f32 %v685_v2, %v103_v10  ;;  %v104_v21 = vmul.f32 %v680_v1, %v33_v4  ;;  %568 = vst [vmem:[%s1517_s6 + $0x28] sm:$0xff] %v504_v13  ;;  %v246_v9 = vld [vmem:[%s1511_s0 + $0x88] sm:$0xff]  ;;  %v41_v10 = vld [vmem:[%s1514_s3 + $0x90] sm:$0xff] }
  0x12   :  { %v505_v23 = vmax.f32 %v441_v14, 0.0  ;;  %v443_v24 = vadd.f32 %v379_v16, %v173_v15  ;;  %v310_v25 = vmul.f32 %v694_v5, %v239_v11  ;;  %v105_v26 = vmul.f32 %v680_v1, %v34_v12  ;;  %v247_v15 = vld [vmem:[%s1511_s0 + $0x90] sm:$0xff]  ;;  %v42_v16 = vld [vmem:[%s1514_s3 + $0x98] sm:$0xff] }
  0x13   :  { %v506_v29 = vmax.f32 %v442_v18, 0.0  ;;  %v380_v30 = vadd.f32 %v699_v6, %v309_v20  ;;  %v175_v31 = vadd.f32 %v685_v2, %v104_v21  ;;  %v311_v32 = vmul.f32 %v694_v5, %v240_v17  ;;  %v248_v21 = vld [vmem:[%s1511_s0 + $0x98] sm:$0xff] }
  0x14   :  { %569 = vst [vmem:[%s1517_s6 + $0x30] sm:$0xff] %v505_v23  ;;  %v507_v35 = vmax.f32 %v443_v24, 0.0  ;;  %v381_v36 = vadd.f32 %v699_v6, %v310_v25  ;;  %v176_v37 = vadd.f32 %v685_v2, %v105_v26  ;;  %v106_v38 = vmul.f32 %v680_v1, %v35_v22  ;;  %v43_v26 = vld [vmem:[%s1514_s3 + $0xa0] sm:$0xff] }
  0x15   :  { %570 = vst [vmem:[%s1517_s6 + $0x38] sm:$0xff] %v506_v29  ;;  %v444_v39 = vadd.f32 %v380_v30, %v174_v19  ;;  %v382_v40 = vadd.f32 %v699_v6, %v311_v32  ;;  %v312_v41 = vmul.f32 %v694_v5, %v241_v27  ;;  %v107_v42 = vmul.f32 %v680_v1, %v36_v28  ;;  %v44_v32 = vld [vmem:[%s1514_s3 + $0xa8] sm:$0xff] }
  0x16   :  { %571 = vst [vmem:[%s1517_s6 + $0x40] sm:$0xff] %v507_v35  ;;  %v445_v44 = vadd.f32 %v381_v36, %v175_v31  ;;  %v177_v45 = vadd.f32 %v685_v2, %v106_v38  ;;  %v313_v46 = vmul.f32 %v694_v5, %v242_v33  ;;  %v108_v47 = vmul.f32 %v680_v1, %v37_v34  ;;  %v249_v31 = vld [vmem:[%s1511_s0 + $0xa0] sm:$0xff]  ;;  %v45_v38 = vld [vmem:[%s1514_s3 + $0xb0] sm:$0xff] }
  0x17   :  { %v508_v50 = vmax.f32 %v444_v39, 0.0  ;;  %v446_v51 = vadd.f32 %v382_v40, %v176_v37  ;;  %v383_v52 = vadd.f32 %v699_v6, %v312_v41  ;;  %v178_v53 = vadd.f32 %v685_v2, %v107_v42  ;;  %v250_v37 = vld [vmem:[%s1511_s0 + $0xa8] sm:$0xff] }
  0x18   :  { %v509_v56 = vmax.f32 %v445_v44, 0.0  ;;  %v384_v57 = vadd.f32 %v699_v6, %v313_v46  ;;  %v179_v58 = vadd.f32 %v685_v2, %v108_v47  ;;  %v314_v59 = vmul.f32 %v694_v5, %v243_v43  ;;  %v251_v47 = vld [vmem:[%s1511_s0 + $0xb0] sm:$0xff] }
  0x19   :  { %572 = vst [vmem:[%s1517_s6 + $0x48] sm:$0xff] %v508_v50  ;;  %v510_v61 = vmax.f32 %v446_v51, 0.0  ;;  %v447_v62 = vadd.f32 %v383_v52, %v177_v45  ;;  %v109_v63 = vmul.f32 %v680_v1, %v38_v48  ;;  %v315_v0 = vmul.f32 %v694_v5, %v244_v49  ;;  %v46_v52 = vld [vmem:[%s1514_s3 + $0xb8] sm:$0xff] }
  0x1a   :  { %573 = vst [vmem:[%s1517_s6 + $0x50] sm:$0xff] %v509_v56  ;;  %v448_v3 = vadd.f32 %v384_v57, %v178_v53  ;;  %v385_v4 = vadd.f32 %v699_v6, %v314_v59  ;;  %v110_v7 = vmul.f32 %v680_v1, %v39_v54  ;;  %v316_v8 = vmul.f32 %v694_v5, %v245_v55  ;;  %v252_v53 = vld [vmem:[%s1511_s0 + $0xb8] sm:$0xff]  ;;  %v253_v59 = vld [vmem:[%s1511_s0 + $0xc0] sm:$0xff] }
  0x1b   :  { %574 = vst [vmem:[%s1517_s6 + $0x58] sm:$0xff] %v510_v61  ;;  %v511_v11 = vmax.f32 %v447_v62, 0.0  ;;  %v180_v12 = vadd.f32 %v685_v2, %v109_v63  ;;  %v386_v13 = vadd.f32 %v699_v6, %v315_v0  ;;  %v111_v14 = vmul.f32 %v680_v1, %v40_v60  ;;  %v48_v0 = vld [vmem:[%s1514_s3 + $0xc8] sm:$0xff] }
  0x1c   :  { %v512_v17 = vmax.f32 %v448_v3, 0.0  ;;  %v449_v18 = vadd.f32 %v385_v4, %v179_v58  ;;  %v181_v19 = vadd.f32 %v685_v2, %v110_v7  ;;  %v387_v20 = vadd.f32 %v699_v6, %v316_v8  ;;  %v47_v58 = vld [vmem:[%s1514_s3 + $0xc0] sm:$0xff] }
  0x1d   :  { %575 = vst [vmem:[%s1517_s6 + $0x60] sm:$0xff] %v511_v11  ;;  %v450_v22 = vadd.f32 %v386_v13, %v180_v12  ;;  %v182_v23 = vadd.f32 %v685_v2, %v111_v14  ;;  %v317_v24 = vmul.f32 %v694_v5, %v246_v9  ;;  %v112_v25 = vmul.f32 %v680_v1, %v41_v10  ;;  %v254_v13 = vld [vmem:[%s1511_s0 + $0xc8] sm:$0xff]  ;;  %v49_v14 = vld [vmem:[%s1514_s3 + $0xd0] sm:$0xff] }
  0x1e   :  { %576 = vst [vmem:[%s1517_s6 + $0x68] sm:$0xff] %v512_v17  ;;  %v513_v27 = vmax.f32 %v449_v18, 0.0  ;;  %v451_v28 = vadd.f32 %v387_v20, %v181_v19  ;;  %v318_v29 = vmul.f32 %v694_v5, %v247_v15  ;;  %v113_v30 = vmul.f32 %v680_v1, %v42_v16  ;;  %v255_v19 = vld [vmem:[%s1511_s0 + $0xd0] sm:$0xff]  ;;  %v50_v20 = vld [vmem:[%s1514_s3 + $0xd8] sm:$0xff] }
  0x1f   :  { %v514_v33 = vmax.f32 %v450_v22, 0.0  ;;  %v388_v34 = vadd.f32 %v699_v6, %v317_v24  ;;  %v183_v35 = vadd.f32 %v685_v2, %v112_v25  ;;  %v319_v36 = vmul.f32 %v694_v5, %v248_v21  ;;  %v256_v25 = vld [vmem:[%s1511_s0 + $0xd8] sm:$0xff] }
  0x20   :  { %577 = vst [vmem:[%s1517_s6 + $0x70] sm:$0xff] %v513_v27  ;;  %v515_v39 = vmax.f32 %v451_v28, 0.0  ;;  %v389_v40 = vadd.f32 %v699_v6, %v318_v29  ;;  %v184_v41 = vadd.f32 %v685_v2, %v113_v30  ;;  %v114_v42 = vmul.f32 %v680_v1, %v43_v26  ;;  %v51_v30 = vld [vmem:[%s1514_s3 + $0xe0] sm:$0xff] }
  0x21   :  { %578 = vst [vmem:[%s1517_s6 + $0x78] sm:$0xff] %v514_v33  ;;  %v452_v43 = vadd.f32 %v388_v34, %v182_v23  ;;  %v390_v44 = vadd.f32 %v699_v6, %v319_v36  ;;  %v320_v45 = vmul.f32 %v694_v5, %v249_v31  ;;  %v115_v46 = vmul.f32 %v680_v1, %v44_v32  ;;  %v52_v36 = vld [vmem:[%s1514_s3 + $0xe8] sm:$0xff] }
  0x22   :  { %579 = vst [vmem:[%s1517_s6 + $0x80] sm:$0xff] %v515_v39  ;;  %v453_v48 = vadd.f32 %v389_v40, %v183_v35  ;;  %v185_v49 = vadd.f32 %v685_v2, %v114_v42  ;;  %v321_v50 = vmul.f32 %v694_v5, %v250_v37  ;;  %v116_v51 = vmul.f32 %v680_v1, %v45_v38  ;;  %v257_v35 = vld [vmem:[%s1511_s0 + $0xe0] sm:$0xff]  ;;  %v53_v42 = vld [vmem:[%s1514_s3 + $0xf0] sm:$0xff] }
  0x23   :  { %v516_v54 = vmax.f32 %v452_v43, 0.0  ;;  %v454_v55 = vadd.f32 %v390_v44, %v184_v41  ;;  %v391_v56 = vadd.f32 %v699_v6, %v320_v45  ;;  %v186_v57 = vadd.f32 %v685_v2, %v115_v46  ;;  %v258_v41 = vld [vmem:[%s1511_s0 + $0xe8] sm:$0xff] }
  0x24   :  { %v517_v60 = vmax.f32 %v453_v48, 0.0  ;;  %v392_v61 = vadd.f32 %v699_v6, %v321_v50  ;;  %v187_v62 = vadd.f32 %v685_v2, %v116_v51  ;;  %v322_v63 = vmul.f32 %v694_v5, %v251_v47  ;;  %v259_v51 = vld [vmem:[%s1511_s0 + $0xf0] sm:$0xff] }
  0x25   :  { %580 = vst [vmem:[%s1517_s6 + $0x88] sm:$0xff] %v516_v54  ;;  %v518_v3 = vmax.f32 %v454_v55, 0.0  ;;  %v455_v4 = vadd.f32 %v391_v56, %v185_v49  ;;  %v117_v7 = vmul.f32 %v680_v1, %v46_v52  ;;  %v323_v8 = vmul.f32 %v694_v5, %v252_v53  ;;  %v54_v56 = vld [vmem:[%s1514_s3 + $0xf8] sm:$0xff] }
  0x26   :  { %581 = vst [vmem:[%s1517_s6 + $0x90] sm:$0xff] %v517_v60  ;;  %v456_v9 = vadd.f32 %v392_v61, %v186_v57  ;;  %v393_v10 = vadd.f32 %v699_v6, %v322_v63  ;;  %v118_v11 = vmul.f32 %v680_v1, %v47_v58  ;;  %v324_v12 = vmul.f32 %v694_v5, %v253_v59  ;;  %v260_v57 = vld [vmem:[%s1511_s0 + $0xf8] sm:$0xff]  ;;  %v261_v63 = vld [vmem:[%s1511_s0 + $0x100] sm:$0xff] }
  0x27   :  { %582 = vst [vmem:[%s1517_s6 + $0x98] sm:$0xff] %v518_v3  ;;  %v519_v15 = vmax.f32 %v455_v4, 0.0  ;;  %v188_v16 = vadd.f32 %v685_v2, %v117_v7  ;;  %v394_v17 = vadd.f32 %v699_v6, %v323_v8  ;;  %v119_v18 = vmul.f32 %v680_v1, %v48_v0  ;;  %v56_v8 = vld [vmem:[%s1514_s3 + $0x108] sm:$0xff] }
  0x28   :  { %v520_v21 = vmax.f32 %v456_v9, 0.0  ;;  %v457_v22 = vadd.f32 %v393_v10, %v187_v62  ;;  %v189_v23 = vadd.f32 %v685_v2, %v118_v11  ;;  %v395_v24 = vadd.f32 %v699_v6, %v324_v12  ;;  %v55_v62 = vld [vmem:[%s1514_s3 + $0x100] sm:$0xff] }
  0x29   :  { %583 = vst [vmem:[%s1517_s6 + $0xa0] sm:$0xff] %v519_v15  ;;  %v458_v26 = vadd.f32 %v394_v17, %v188_v16  ;;  %v190_v27 = vadd.f32 %v685_v2, %v119_v18  ;;  %v325_v28 = vmul.f32 %v694_v5, %v254_v13  ;;  %v120_v29 = vmul.f32 %v680_v1, %v49_v14  ;;  %v262_v17 = vld [vmem:[%s1511_s0 + $0x108] sm:$0xff]  ;;  %v57_v18 = vld [vmem:[%s1514_s3 + $0x110] sm:$0xff] }
  0x2a   :  { %584 = vst [vmem:[%s1517_s6 + $0xa8] sm:$0xff] %v520_v21  ;;  %v521_v31 = vmax.f32 %v457_v22, 0.0  ;;  %v459_v32 = vadd.f32 %v395_v24, %v189_v23  ;;  %v326_v33 = vmul.f32 %v694_v5, %v255_v19  ;;  %v121_v34 = vmul.f32 %v680_v1, %v50_v20  ;;  %v263_v23 = vld [vmem:[%s1511_s0 + $0x110] sm:$0xff]  ;;  %v58_v24 = vld [vmem:[%s1514_s3 + $0x118] sm:$0xff] }
  0x2b   :  { %v522_v37 = vmax.f32 %v458_v26, 0.0  ;;  %v396_v38 = vadd.f32 %v699_v6, %v325_v28  ;;  %v191_v39 = vadd.f32 %v685_v2, %v120_v29  ;;  %v327_v40 = vmul.f32 %v694_v5, %v256_v25  ;;  %v264_v29 = vld [vmem:[%s1511_s0 + $0x118] sm:$0xff] }
  0x2c   :  { %585 = vst [vmem:[%s1517_s6 + $0xb0] sm:$0xff] %v521_v31  ;;  %v523_v43 = vmax.f32 %v459_v32, 0.0  ;;  %v397_v44 = vadd.f32 %v699_v6, %v326_v33  ;;  %v192_v45 = vadd.f32 %v685_v2, %v121_v34  ;;  %v122_v46 = vmul.f32 %v680_v1, %v51_v30  ;;  %v59_v34 = vld [vmem:[%s1514_s3 + $0x120] sm:$0xff] }
  0x2d   :  { %586 = vst [vmem:[%s1517_s6 + $0xb8] sm:$0xff] %v522_v37  ;;  %v460_v47 = vadd.f32 %v396_v38, %v190_v27  ;;  %v398_v48 = vadd.f32 %v699_v6, %v327_v40  ;;  %v328_v49 = vmul.f32 %v694_v5, %v257_v35  ;;  %v123_v50 = vmul.f32 %v680_v1, %v52_v36  ;;  %v60_v40 = vld [vmem:[%s1514_s3 + $0x128] sm:$0xff] }
  0x2e   :  { %587 = vst [vmem:[%s1517_s6 + $0xc0] sm:$0xff] %v523_v43  ;;  %v461_v52 = vadd.f32 %v397_v44, %v191_v39  ;;  %v193_v53 = vadd.f32 %v685_v2, %v122_v46  ;;  %v329_v54 = vmul.f32 %v694_v5, %v258_v41  ;;  %v124_v55 = vmul.f32 %v680_v1, %v53_v42  ;;  %v265_v39 = vld [vmem:[%s1511_s0 + $0x120] sm:$0xff]  ;;  %v61_v46 = vld [vmem:[%s1514_s3 + $0x130] sm:$0xff] }
  0x2f   :  { %v524_v58 = vmax.f32 %v460_v47, 0.0  ;;  %v462_v59 = vadd.f32 %v398_v48, %v192_v45  ;;  %v399_v60 = vadd.f32 %v699_v6, %v328_v49  ;;  %v194_v61 = vadd.f32 %v685_v2, %v123_v50  ;;  %v266_v45 = vld [vmem:[%s1511_s0 + $0x128] sm:$0xff] }
  0x30   :  { %v525_v0 = vmax.f32 %v461_v52, 0.0  ;;  %v400_v3 = vadd.f32 %v699_v6, %v329_v54  ;;  %v195_v4 = vadd.f32 %v685_v2, %v124_v55  ;;  %v330_v7 = vmul.f32 %v694_v5, %v259_v51  ;;  %v267_v55 = vld [vmem:[%s1511_s0 + $0x130] sm:$0xff] }
  0x31   :  { %588 = vst [vmem:[%s1517_s6 + $0xc8] sm:$0xff] %v524_v58  ;;  %v526_v9 = vmax.f32 %v462_v59, 0.0  ;;  %v463_v10 = vadd.f32 %v399_v60, %v193_v53  ;;  %v125_v11 = vmul.f32 %v680_v1, %v54_v56  ;;  %v331_v12 = vmul.f32 %v694_v5, %v260_v57  ;;  %v62_v60 = vld [vmem:[%s1514_s3 + $0x138] sm:$0xff] }
  0x32   :  { %589 = vst [vmem:[%s1517_s6 + $0xd0] sm:$0xff] %v525_v0  ;;  %v464_v13 = vadd.f32 %v400_v3, %v194_v61  ;;  %v401_v14 = vadd.f32 %v699_v6, %v330_v7  ;;  %v126_v15 = vmul.f32 %v680_v1, %v55_v62  ;;  %v332_v16 = vmul.f32 %v694_v5, %v261_v63  ;;  %v268_v61 = vld [vmem:[%s1511_s0 + $0x138] sm:$0xff]  ;;  %v269_v7 = vld [vmem:[%s1511_s0 + $0x140] sm:$0xff] }
  0x33   :  { %590 = vst [vmem:[%s1517_s6 + $0xd8] sm:$0xff] %v526_v9  ;;  %v527_v19 = vmax.f32 %v463_v10, 0.0  ;;  %v196_v20 = vadd.f32 %v685_v2, %v125_v11  ;;  %v402_v21 = vadd.f32 %v699_v6, %v331_v12  ;;  %v127_v22 = vmul.f32 %v680_v1, %v56_v8  ;;  %v64_v12 = vld [vmem:[%s1514_s3 + $0x148] sm:$0xff] }
  0x34   :  { %v528_v25 = vmax.f32 %v464_v13, 0.0  ;;  %v465_v26 = vadd.f32 %v401_v14, %v195_v4  ;;  %v197_v27 = vadd.f32 %v685_v2, %v126_v15  ;;  %v403_v28 = vadd.f32 %v699_v6, %v332_v16  ;;  %v63_v4 = vld [vmem:[%s1514_s3 + $0x140] sm:$0xff] }
  0x35   :  { %591 = vst [vmem:[%s1517_s6 + $0xe0] sm:$0xff] %v527_v19  ;;  %v466_v30 = vadd.f32 %v402_v21, %v196_v20  ;;  %v198_v31 = vadd.f32 %v685_v2, %v127_v22  ;;  %v333_v32 = vmul.f32 %v694_v5, %v262_v17  ;;  %v128_v33 = vmul.f32 %v680_v1, %v57_v18  ;;  %v270_v21 = vld [vmem:[%s1511_s0 + $0x148] sm:$0xff]  ;;  %v65_v22 = vld [vmem:[%s1514_s3 + $0x150] sm:$0xff] }
  0x36   :  { %592 = vst [vmem:[%s1517_s6 + $0xe8] sm:$0xff] %v528_v25  ;;  %v529_v35 = vmax.f32 %v465_v26, 0.0  ;;  %v467_v36 = vadd.f32 %v403_v28, %v197_v27  ;;  %v334_v37 = vmul.f32 %v694_v5, %v263_v23  ;;  %v129_v38 = vmul.f32 %v680_v1, %v58_v24  ;;  %v271_v27 = vld [vmem:[%s1511_s0 + $0x150] sm:$0xff]  ;;  %v66_v28 = vld [vmem:[%s1514_s3 + $0x158] sm:$0xff] }
  0x37   :  { %v530_v41 = vmax.f32 %v466_v30, 0.0  ;;  %v404_v42 = vadd.f32 %v699_v6, %v333_v32  ;;  %v199_v43 = vadd.f32 %v685_v2, %v128_v33  ;;  %v335_v44 = vmul.f32 %v694_v5, %v264_v29  ;;  %v272_v33 = vld [vmem:[%s1511_s0 + $0x158] sm:$0xff] }
  0x38   :  { %593 = vst [vmem:[%s1517_s6 + $0xf0] sm:$0xff] %v529_v35  ;;  %v531_v47 = vmax.f32 %v467_v36, 0.0  ;;  %v405_v48 = vadd.f32 %v699_v6, %v334_v37  ;;  %v200_v49 = vadd.f32 %v685_v2, %v129_v38  ;;  %v130_v50 = vmul.f32 %v680_v1, %v59_v34  ;;  %v67_v38 = vld [vmem:[%s1514_s3 + $0x160] sm:$0xff] }
  0x39   :  { %594 = vst [vmem:[%s1517_s6 + $0xf8] sm:$0xff] %v530_v41  ;;  %v468_v51 = vadd.f32 %v404_v42, %v198_v31  ;;  %v406_v52 = vadd.f32 %v699_v6, %v335_v44  ;;  %v336_v53 = vmul.f32 %v694_v5, %v265_v39  ;;  %v131_v54 = vmul.f32 %v680_v1, %v60_v40  ;;  %v68_v44 = vld [vmem:[%s1514_s3 + $0x168] sm:$0xff] }
  0x3a   :  { %595 = vst [vmem:[%s1517_s6 + $0x100] sm:$0xff] %v531_v47  ;;  %v469_v56 = vadd.f32 %v405_v48, %v199_v43  ;;  %v201_v57 = vadd.f32 %v685_v2, %v130_v50  ;;  %v337_v58 = vmul.f32 %v694_v5, %v266_v45  ;;  %v132_v59 = vmul.f32 %v680_v1, %v61_v46  ;;  %v273_v43 = vld [vmem:[%s1511_s0 + $0x160] sm:$0xff]  ;;  %v69_v50 = vld [vmem:[%s1514_s3 + $0x170] sm:$0xff] }
  0x3b   :  { %v532_v62 = vmax.f32 %v468_v51, 0.0  ;;  %v470_v63 = vadd.f32 %v406_v52, %v200_v49  ;;  %v407_v0 = vadd.f32 %v699_v6, %v336_v53  ;;  %v202_v3 = vadd.f32 %v685_v2, %v131_v54  ;;  %v274_v49 = vld [vmem:[%s1511_s0 + $0x168] sm:$0xff] }
  0x3c   :  { %v533_v8 = vmax.f32 %v469_v56, 0.0  ;;  %v408_v9 = vadd.f32 %v699_v6, %v337_v58  ;;  %v203_v10 = vadd.f32 %v685_v2, %v132_v59  ;;  %v338_v11 = vmul.f32 %v694_v5, %v267_v55  ;;  %v275_v59 = vld [vmem:[%s1511_s0 + $0x170] sm:$0xff] }
  0x3d   :  { %596 = vst [vmem:[%s1517_s6 + $0x108] sm:$0xff] %v532_v62  ;;  %v534_v13 = vmax.f32 %v470_v63, 0.0  ;;  %v471_v14 = vadd.f32 %v407_v0, %v201_v57  ;;  %v133_v15 = vmul.f32 %v680_v1, %v62_v60  ;;  %v339_v16 = vmul.f32 %v694_v5, %v268_v61  ;;  %v70_v0 = vld [vmem:[%s1514_s3 + $0x178] sm:$0xff] }
  0x3e   :  { %597 = vst [vmem:[%s1517_s6 + $0x110] sm:$0xff] %v533_v8  ;;  %v472_v17 = vadd.f32 %v408_v9, %v202_v3  ;;  %v409_v18 = vadd.f32 %v699_v6, %v338_v11  ;;  %v134_v19 = vmul.f32 %v680_v1, %v63_v4  ;;  %v340_v20 = vmul.f32 %v694_v5, %v269_v7  ;;  %v276_v3 = vld [vmem:[%s1511_s0 + $0x178] sm:$0xff]  ;;  %v277_v11 = vld [vmem:[%s1511_s0 + $0x180] sm:$0xff] }
  0x3f   :  { %598 = vst [vmem:[%s1517_s6 + $0x118] sm:$0xff] %v534_v13  ;;  %v535_v23 = vmax.f32 %v471_v14, 0.0  ;;  %v204_v24 = vadd.f32 %v685_v2, %v133_v15  ;;  %v410_v25 = vadd.f32 %v699_v6, %v339_v16  ;;  %v135_v26 = vmul.f32 %v680_v1, %v64_v12  ;;  %v72_v16 = vld [vmem:[%s1514_s3 + $0x188] sm:$0xff] }
  0x40   :  { %v536_v29 = vmax.f32 %v472_v17, 0.0  ;;  %v473_v30 = vadd.f32 %v409_v18, %v203_v10  ;;  %v205_v31 = vadd.f32 %v685_v2, %v134_v19  ;;  %v411_v32 = vadd.f32 %v699_v6, %v340_v20  ;;  %v71_v10 = vld [vmem:[%s1514_s3 + $0x180] sm:$0xff] }
  0x41   :  { %599 = vst [vmem:[%s1517_s6 + $0x120] sm:$0xff] %v535_v23  ;;  %v474_v34 = vadd.f32 %v410_v25, %v204_v24  ;;  %v206_v35 = vadd.f32 %v685_v2, %v135_v26  ;;  %v341_v36 = vmul.f32 %v694_v5, %v270_v21  ;;  %v136_v37 = vmul.f32 %v680_v1, %v65_v22  ;;  %v278_v25 = vld [vmem:[%s1511_s0 + $0x188] sm:$0xff]  ;;  %v73_v26 = vld [vmem:[%s1514_s3 + $0x190] sm:$0xff] }
  0x42   :  { %600 = vst [vmem:[%s1517_s6 + $0x128] sm:$0xff] %v536_v29  ;;  %v537_v39 = vmax.f32 %v473_v30, 0.0  ;;  %v475_v40 = vadd.f32 %v411_v32, %v205_v31  ;;  %v342_v41 = vmul.f32 %v694_v5, %v271_v27  ;;  %v137_v42 = vmul.f32 %v680_v1, %v66_v28  ;;  %v279_v31 = vld [vmem:[%s1511_s0 + $0x190] sm:$0xff]  ;;  %v74_v32 = vld [vmem:[%s1514_s3 + $0x198] sm:$0xff] }
  0x43   :  { %v538_v45 = vmax.f32 %v474_v34, 0.0  ;;  %v412_v46 = vadd.f32 %v699_v6, %v341_v36  ;;  %v207_v47 = vadd.f32 %v685_v2, %v136_v37  ;;  %v343_v48 = vmul.f32 %v694_v5, %v272_v33  ;;  %v280_v37 = vld [vmem:[%s1511_s0 + $0x198] sm:$0xff] }
  0x44   :  { %601 = vst [vmem:[%s1517_s6 + $0x130] sm:$0xff] %v537_v39  ;;  %v539_v51 = vmax.f32 %v475_v40, 0.0  ;;  %v413_v52 = vadd.f32 %v699_v6, %v342_v41  ;;  %v208_v53 = vadd.f32 %v685_v2, %v137_v42  ;;  %v138_v54 = vmul.f32 %v680_v1, %v67_v38  ;;  %v75_v42 = vld [vmem:[%s1514_s3 + $0x1a0] sm:$0xff] }
  0x45   :  { %602 = vst [vmem:[%s1517_s6 + $0x138] sm:$0xff] %v538_v45  ;;  %v476_v55 = vadd.f32 %v412_v46, %v206_v35  ;;  %v414_v56 = vadd.f32 %v699_v6, %v343_v48  ;;  %v344_v57 = vmul.f32 %v694_v5, %v273_v43  ;;  %v139_v58 = vmul.f32 %v680_v1, %v68_v44  ;;  %v76_v48 = vld [vmem:[%s1514_s3 + $0x1a8] sm:$0xff] }
  0x46   :  { %603 = vst [vmem:[%s1517_s6 + $0x140] sm:$0xff] %v539_v51  ;;  %v477_v60 = vadd.f32 %v413_v52, %v207_v47  ;;  %v209_v61 = vadd.f32 %v685_v2, %v138_v54  ;;  %v345_v62 = vmul.f32 %v694_v5, %v274_v49  ;;  %v140_v63 = vmul.f32 %v680_v1, %v69_v50  ;;  %v281_v47 = vld [vmem:[%s1511_s0 + $0x1a0] sm:$0xff]  ;;  %v77_v54 = vld [vmem:[%s1514_s3 + $0x1b0] sm:$0xff] }
  0x47   :  { %v540_v4 = vmax.f32 %v476_v55, 0.0  ;;  %v478_v7 = vadd.f32 %v414_v56, %v208_v53  ;;  %v415_v8 = vadd.f32 %v699_v6, %v344_v57  ;;  %v210_v9 = vadd.f32 %v685_v2, %v139_v58  ;;  %v282_v53 = vld [vmem:[%s1511_s0 + $0x1a8] sm:$0xff] }
  0x48   :  { %v541_v12 = vmax.f32 %v477_v60, 0.0  ;;  %v416_v13 = vadd.f32 %v699_v6, %v345_v62  ;;  %v211_v14 = vadd.f32 %v685_v2, %v140_v63  ;;  %v346_v15 = vmul.f32 %v694_v5, %v275_v59  ;;  %v283_v63 = vld [vmem:[%s1511_s0 + $0x1b0] sm:$0xff] }
  0x49   :  { %604 = vst [vmem:[%s1517_s6 + $0x148] sm:$0xff] %v540_v4  ;;  %v542_v17 = vmax.f32 %v478_v7, 0.0  ;;  %v479_v18 = vadd.f32 %v415_v8, %v209_v61  ;;  %v141_v19 = vmul.f32 %v680_v1, %v70_v0  ;;  %v347_v20 = vmul.f32 %v694_v5, %v276_v3  ;;  %v78_v8 = vld [vmem:[%s1514_s3 + $0x1b8] sm:$0xff] }
  0x4a   :  { %605 = vst [vmem:[%s1517_s6 + $0x150] sm:$0xff] %v541_v12  ;;  %v480_v21 = vadd.f32 %v416_v13, %v210_v9  ;;  %v417_v22 = vadd.f32 %v699_v6, %v346_v15  ;;  %v142_v23 = vmul.f32 %v680_v1, %v71_v10  ;;  %v348_v24 = vmul.f32 %v694_v5, %v277_v11  ;;  %v284_v9 = vld [vmem:[%s1511_s0 + $0x1b8] sm:$0xff]  ;;  %v285_v15 = vld [vmem:[%s1511_s0 + $0x1c0] sm:$0xff] }
  0x4b   :  { %606 = vst [vmem:[%s1517_s6 + $0x158] sm:$0xff] %v542_v17  ;;  %v543_v27 = vmax.f32 %v479_v18, 0.0  ;;  %v212_v28 = vadd.f32 %v685_v2, %v141_v19  ;;  %v418_v29 = vadd.f32 %v699_v6, %v347_v20  ;;  %v143_v30 = vmul.f32 %v680_v1, %v72_v16  ;;  %v80_v20 = vld [vmem:[%s1514_s3 + $0x1c8] sm:$0xff] }
  0x4c   :  { %v544_v33 = vmax.f32 %v480_v21, 0.0  ;;  %v481_v34 = vadd.f32 %v417_v22, %v211_v14  ;;  %v213_v35 = vadd.f32 %v685_v2, %v142_v23  ;;  %v419_v36 = vadd.f32 %v699_v6, %v348_v24  ;;  %v79_v14 = vld [vmem:[%s1514_s3 + $0x1c0] sm:$0xff] }
  0x4d   :  { %607 = vst [vmem:[%s1517_s6 + $0x160] sm:$0xff] %v543_v27  ;;  %v482_v38 = vadd.f32 %v418_v29, %v212_v28  ;;  %v214_v39 = vadd.f32 %v685_v2, %v143_v30  ;;  %v349_v40 = vmul.f32 %v694_v5, %v278_v25  ;;  %v144_v41 = vmul.f32 %v680_v1, %v73_v26  ;;  %v286_v29 = vld [vmem:[%s1511_s0 + $0x1c8] sm:$0xff]  ;;  %v81_v30 = vld [vmem:[%s1514_s3 + $0x1d0] sm:$0xff] }
  0x4e   :  { %608 = vst [vmem:[%s1517_s6 + $0x168] sm:$0xff] %v544_v33  ;;  %v545_v43 = vmax.f32 %v481_v34, 0.0  ;;  %v483_v44 = vadd.f32 %v419_v36, %v213_v35  ;;  %v350_v45 = vmul.f32 %v694_v5, %v279_v31  ;;  %v145_v46 = vmul.f32 %v680_v1, %v74_v32  ;;  %v82_v35 = vld [vmem:[%s1514_s3 + $0x1d8] sm:$0xff] }
  0x4f   :  { %v546_v49 = vmax.f32 %v482_v38, 0.0  ;;  %v420_v50 = vadd.f32 %v699_v6, %v349_v40  ;;  %v215_v51 = vadd.f32 %v685_v2, %v144_v41  ;;  %v351_v52 = vmul.f32 %v694_v5, %v280_v37  ;;  %v288_v40 = vld [vmem:[%s1511_s0 + $0x1d8] sm:$0xff]  ;;  %v635_v41 = vld [vmem:[%s1516_s5] ss:$0 sm:$0xff] }
  0x50   :  { %609 = vst [vmem:[%s1517_s6 + $0x170] sm:$0xff] %v545_v43  ;;  %v547_v55 = vmax.f32 %v483_v44, 0.0  ;;  %v421_v56 = vadd.f32 %v699_v6, %v350_v45  ;;  %v216_v57 = vadd.f32 %v685_v2, %v145_v46  ;;  %v146_v58 = vmul.f32 %v680_v1, %v75_v42  ;;  %v83_v45 = vld [vmem:[%s1514_s3 + $0x1e0] sm:$0xff] }
  0x51   :  { %610 = vst [vmem:[%s1517_s6 + $0x178] sm:$0xff] %v546_v49  ;;  %v484_v59 = vadd.f32 %v420_v50, %v214_v39  ;;  %v422_v60 = vadd.f32 %v699_v6, %v351_v52  ;;  %v352_v61 = vmul.f32 %v694_v5, %v281_v47  ;;  %v147_v62 = vmul.f32 %v680_v1, %v76_v48  ;;  %v289_v50 = vld [vmem:[%s1511_s0 + $0x1e0] sm:$0xff] }
  0x52   :  { %611 = vst [vmem:[%s1517_s6 + $0x180] sm:$0xff] %v547_v55  ;;  %v485_v0 = vadd.f32 %v421_v56, %v215_v51  ;;  %v217_v3 = vadd.f32 %v685_v2, %v146_v58  ;;  %v353_v4 = vmul.f32 %v694_v5, %v282_v53  ;;  %v148_v7 = vmul.f32 %v680_v1, %v77_v54  ;;  %v84_v51 = vld [vmem:[%s1514_s3 + $0x1e8] sm:$0xff]  ;;  %v638_v53 = vld [vmem:[%s1513_s2] ss:$0 sm:$0xff]  ;;  %v85_v58 = vld [vmem:[%s1514_s3 + $0x1f0] sm:$0xff] }
  0x53   :  { %v548_v10 = vmax.f32 %v484_v59, 0.0  ;;  %v486_v11 = vadd.f32 %v422_v60, %v216_v57  ;;  %v423_v12 = vadd.f32 %v699_v6, %v352_v61  ;;  %v218_v13 = vadd.f32 %v685_v2, %v147_v62  ;;  %v290_v57 = vld [vmem:[%s1511_s0 + $0x1e8] sm:$0xff] }
  0x54   :  { %v549_v16 = vmax.f32 %v485_v0, 0.0  ;;  %v424_v17 = vadd.f32 %v699_v6, %v353_v4  ;;  %v219_v18 = vadd.f32 %v685_v2, %v148_v7  ;;  %v354_v19 = vmul.f32 %v694_v5, %v283_v63  ;;  %v291_v7 = vld [vmem:[%s1511_s0 + $0x1f0] sm:$0xff] }
  0x55   :  { %612 = vst [vmem:[%s1517_s6 + $0x188] sm:$0xff] %v548_v10  ;;  %v550_v21 = vmax.f32 %v486_v11, 0.0  ;;  %v487_v22 = vadd.f32 %v423_v12, %v217_v3  ;;  %v149_v23 = vmul.f32 %v680_v1, %v78_v8  ;;  %v355_v24 = vmul.f32 %v694_v5, %v284_v9  ;;  %v86_v12 = vld [vmem:[%s1514_s3 + $0x1f8] sm:$0xff] }
  0x56   :  { %613 = vst [vmem:[%s1517_s6 + $0x190] sm:$0xff] %v549_v16  ;;  %v488_v25 = vadd.f32 %v424_v17, %v218_v13  ;;  %v425_v26 = vadd.f32 %v699_v6, %v354_v19  ;;  %v150_v27 = vmul.f32 %v680_v1, %v79_v14  ;;  %v356_v28 = vmul.f32 %v694_v5, %v285_v15  ;;  %v287_v5 = vld [vmem:[%s1511_s0 + $0x1d0] sm:$0xff]  ;;  %v292_v13 = vld [vmem:[%s1511_s0 + $0x1f8] sm:$0xff] }
  0x57   :  { %614 = vst [vmem:[%s1517_s6 + $0x198] sm:$0xff] %v550_v21  ;;  %v551_v31 = vmax.f32 %v487_v22, 0.0  ;;  %v220_v32 = vadd.f32 %v685_v2, %v149_v23  ;;  %v426_v33 = vadd.f32 %v699_v6, %v355_v24  ;;  %v151_v34 = vmul.f32 %v680_v1, %v80_v20 }
  0x58   :  { %v552_v36 = vmax.f32 %v488_v25, 0.0  ;;  %v489_v37 = vadd.f32 %v425_v26, %v219_v18  ;;  %v221_v38 = vadd.f32 %v685_v2, %v150_v27  ;;  %v427_v39 = vadd.f32 %v699_v6, %v356_v28  ;;  %v636_v2 = vld [vmem:[%s1512_s1] ss:$0 sm:$0xff] }
  0x59   :  { %615 = vst [vmem:[%s1517_s6 + $0x1a0] sm:$0xff] %v551_v31  ;;  %v490_v1 = vadd.f32 %v426_v33, %v220_v32  ;;  %v222_v42 = vadd.f32 %v635_v41, %v151_v34  ;;  %v357_v43 = vmul.f32 %v636_v2, %v286_v29  ;;  %v637_v6 = vld [vmem:[%s1515_s4] ss:$0 sm:$0xff]  ;;  %v358_v48 = vmul.f32 %v636_v2, %v287_v5 }
  0x5a   :  { %v152_v44 = vmul.f32 %v637_v6, %v81_v30  ;;  %616 = vst [vmem:[%s1517_s6 + $0x1a8] sm:$0xff] %v552_v36  ;;  %v553_v46 = vmax.f32 %v489_v37, 0.0  ;;  %v491_v47 = vadd.f32 %v427_v39, %v221_v38  ;;  %v153_v49 = vmul.f32 %v637_v6, %v82_v35 }
  0x5b   :  { %v554_v52 = vmax.f32 %v490_v1, 0.0  ;;  %v428_v54 = vadd.f32 %v638_v53, %v357_v43  ;;  %v359_v56 = vmul.f32 %v636_v2, %v288_v40  ;;  %v429_v60 = vadd.f32 %v638_v53, %v358_v48 }
  0x5c   :  { %v223_v55 = vadd.f32 %v635_v41, %v152_v44  ;;  %617 = vst [vmem:[%s1517_s6 + $0x1b0] sm:$0xff] %v553_v46  ;;  %v555_v59 = vmax.f32 %v491_v47, 0.0  ;;  %v224_v61 = vadd.f32 %v635_v41, %v153_v49  ;;  %v154_v62 = vmul.f32 %v637_v6, %v83_v45 }
  0x5d   :  { %618 = vst [vmem:[%s1517_s6 + $0x1b8] sm:$0xff] %v554_v52  ;;  %v492_v63 = vadd.f32 %v428_v54, %v222_v42  ;;  %v430_v0 = vadd.f32 %v638_v53, %v359_v56  ;;  %v360_v3 = vmul.f32 %v636_v2, %v289_v50  ;;  %v155_v4 = vmul.f32 %v637_v6, %v84_v51 }
  0x5e   :  { %619 = vst [vmem:[%s1517_s6 + $0x1c0] sm:$0xff] %v555_v59  ;;  %v493_v8 = vadd.f32 %v429_v60, %v223_v55  ;;  %v225_v9 = vadd.f32 %v635_v41, %v154_v62  ;;  %v361_v10 = vmul.f32 %v636_v2, %v290_v57  ;;  %v156_v11 = vmul.f32 %v637_v6, %v85_v58 }
  0x5f   :  { %v556_v14 = vmax.f32 %v492_v63, 0.0  ;;  %v494_v15 = vadd.f32 %v430_v0, %v224_v61  ;;  %v431_v16 = vadd.f32 %v638_v53, %v360_v3  ;;  %v226_v17 = vadd.f32 %v635_v41, %v155_v4 }
  0x60   :  { %v557_v18 = vmax.f32 %v493_v8, 0.0  ;;  %v432_v19 = vadd.f32 %v638_v53, %v361_v10  ;;  %v227_v20 = vadd.f32 %v635_v41, %v156_v11  ;;  %v362_v21 = vmul.f32 %v636_v2, %v291_v7 }
  0x61   :  { %620 = vst [vmem:[%s1517_s6 + $0x1c8] sm:$0xff] %v556_v14  ;;  %v558_v22 = vmax.f32 %v494_v15, 0.0  ;;  %v495_v23 = vadd.f32 %v431_v16, %v225_v9  ;;  %v157_v24 = vmul.f32 %v637_v6, %v86_v12  ;;  %v363_v25 = vmul.f32 %v636_v2, %v292_v13 }
  0x62   :  { %621 = vst [vmem:[%s1517_s6 + $0x1d0] sm:$0xff] %v557_v18  ;;  %v496_v26 = vadd.f32 %v432_v19, %v226_v17  ;;  %v433_v27 = vadd.f32 %v638_v53, %v362_v21 }
  0x63   :  { %622 = vst [vmem:[%s1517_s6 + $0x1d8] sm:$0xff] %v558_v22  ;;  %v559_v28 = vmax.f32 %v495_v23, 0.0  ;;  %v228_v29 = vadd.f32 %v635_v41, %v157_v24  ;;  %v434_v30 = vadd.f32 %v638_v53, %v363_v25 }
  0x64   :  { %v560_v31 = vmax.f32 %v496_v26, 0.0  ;;  %v497_v32 = vadd.f32 %v433_v27, %v227_v20 }
  0x65   :  { %623 = vst [vmem:[%s1517_s6 + $0x1e0] sm:$0xff] %v559_v28  ;;  %v498_v33 = vadd.f32 %v434_v30, %v228_v29 }
  0x66   :  { %624 = vst [vmem:[%s1517_s6 + $0x1e8] sm:$0xff] %v560_v31  ;;  %v561_v34 = vmax.f32 %v497_v32, 0.0 }
  0x67   :  { %v562_v5 = vmax.f32 %v498_v33, 0.0 }
  0x68   :  { %625 = vst [vmem:[%s1517_s6 + $0x1f0] sm:$0xff] %v561_v34 }
  0x69   :  { %626 = vst [vmem:[%s1517_s6 + $0x1f8] sm:$0xff] %v562_v5 }

// kernel: bottleneck_forward.8
= control target key start
LH: loop header
LB: loop body
LE: loop exit
PB: predicated region body
PF: predicated region fallthrough
CT: control target
= control target key end

     0   :  { %vm949_vm0 = vcmask 1040384   ;;  %s3176_s3 = inlined_call_operand.vmem [shape: bf16[128,128], index: 3, kind: input, shape index: {}]   ;;  %s3177_s5 = inlined_call_operand.vmem [shape: bf16[128,128], index: 5, kind: input, shape index: {}]   ;;  %s3178_s0 = inlined_call_operand.vmem [shape: f32[512,128], index: 0, kind: input, shape index: {}]   ;;  %s3179_s1 = inlined_call_operand.vmem [shape: f32[1,128], index: 1, kind: input, shape index: {}]   ;;  %s3180_s2 = inlined_call_operand.vmem [shape: f32[1,128], index: 2, kind: input, shape index: {}]   ;;  %s3181_s4 = inlined_call_operand.vmem [shape: bf16[512,128], index: 4, kind: input, shape index: {}]   ;;  %s3182_s6 = inlined_call_operand.vmem [shape: f32[512,128], index: 6, kind: output, shape index: {0}]   ;;  %s3183_s7 = inlined_call_operand.vmem [shape: f32[512,128], index: 7, kind: output, shape index: {1}]   ;;  %s3184_s8 = inlined_call_operand.vmem [shape: f32[1,2,128], index: 8, kind: output, shape index: {2}]   ;;  %s3185_s9 = inlined_call_operand.vmem [shape: f32[1,2,128], index: 9, kind: output, shape index: {3}]  }
   0x1   :  { %v2135_v0 = vld [vmem:[%s3176_s3] sm:$0xff]   ;;  %v2137_v2 = vld [vmem:[%s3176_s3 + $0x8] sm:$0xff]   ;;  %v2139_v4 = vld [vmem:[%s3176_s3 + $0x10] sm:$0xff]  }
   0x2   :  { %v2136_v1 = vld [vmem:[%s3177_s5] sm:$0xff]   ;;  %1975 = vmatprep.subr.bf16.mxu0 %v2135_v0  ;;  %v2138_v3 = vld [vmem:[%s3177_s5 + $0x8] sm:$0xff]   ;;  %v2140_v5 = vld [vmem:[%s3177_s5 + $0x10] sm:$0xff]  }
   0x3   :  { %2055 = vmatprep.subr.bf16.mxu1 %v2136_v1  ;;  %1976 = vmatpush3.bf16.msra.mxu0 %v2135_v0  ;;  %v2141_v6 = vld [vmem:[%s3176_s3 + $0x18] sm:$0xff]   ;;  %v2143_v8 = vld [vmem:[%s3176_s3 + $0x20] sm:$0xff]   ;;  %v2145_v10 = vld [vmem:[%s3176_s3 + $0x28] sm:$0xff]  }
   0x4   :  { %2056 = vmatpush3.bf16.msra.mxu1 %v2136_v1  ;;  %1977 = vmatprep.subr.bf16.mxu0 %v2137_v2  ;;  %v2142_v7 = vld [vmem:[%s3177_s5 + $0x18] sm:$0xff]   ;;  %v2144_v9 = vld [vmem:[%s3177_s5 + $0x20] sm:$0xff]   ;;  %v2146_v11 = vld [vmem:[%s3177_s5 + $0x28] sm:$0xff]  }
   0x5   :  { %2057 = vmatprep.subr.bf16.mxu1 %v2138_v3  ;;  %v28_v12 = vld [vmem:[%s3178_s0] sm:$0xff]  ;;  %v29_v13 = vld [vmem:[%s3178_s0 + $0x8] sm:$0xff]  ;;  %v30_v19 = vld [vmem:[%s3178_s0 + $0x10] sm:$0xff] }
   0x6   :  { %v2278_v14 = vld [vmem:[%s3179_s1] ss:$0 sm:$0xff]  ;;  %v31_v20 = vld [vmem:[%s3178_s0 + $0x18] sm:$0xff]  ;;  %v2147_v21 = vld [vmem:[%s3176_s3 + $0x30] sm:$0xff]  }
   0x7   :  { %1978 = vmatpush3.bf16.msra.mxu0 %v2137_v2  ;;  %v99_v15 = vmul.f32 %v2278_v14, %v28_v12  ;;  %v100_v16 = vmul.f32 %v2278_v14, %v29_v13  ;;  %v2285_v17 = vld [vmem:[%s3180_s2] ss:$0 sm:$0xff]  ;;  %v101_v24 = vmul.f32 %v2278_v14, %v30_v19  ;;  %v102_v25 = vmul.f32 %v2278_v14, %v31_v20  ;;  %v33_v27 = vld [vmem:[%s3178_s0 + $0x28] sm:$0xff]  ;;  %v2148_v28 = vld [vmem:[%s3177_s5 + $0x30] sm:$0xff]  }
   0x8   :  { %2058 = vmatpush3.bf16.msra.mxu1 %v2138_v3  ;;  %1979 = vmatprep.subr.bf16.mxu0 %v2139_v4  ;;  %v2151_v18 = vld [vmem:[%s3181_s4] sm:$0xff]   ;;  %v34_v33 = vld [vmem:[%s3178_s0 + $0x30] sm:$0xff]  ;;  %v104_v35 = vmul.f32 %v2278_v14, %v33_v27  ;;  %v35_v36 = vld [vmem:[%s3178_s0 + $0x38] sm:$0xff] }
   0x9   :  { %2059 = vmatprep.subr.bf16.mxu1 %v2140_v5  ;;  %v170_v22 = vadd.f32 %v2285_v17, %v99_v15  ;;  %v171_v23 = vadd.f32 %v2285_v17, %v100_v16  ;;  %v32_v26 = vld [vmem:[%s3178_s0 + $0x20] sm:$0xff]  ;;  %2071 = vmatprep.mubr.bf16.mxu1 %v2151_v18  ;;  %v172_v31 = vadd.f32 %v2285_v17, %v101_v24  ;;  %v2149_v38 = vld [vmem:[%s3176_s3 + $0x38] sm:$0xff]   ;;  %v37_v44 = vld [vmem:[%s3178_s0 + $0x48] sm:$0xff] }
   0xa   :  { %v173_v32 = vadd.f32 %v2285_v17, %v102_v25  ;;  %v103_v34 = vmul.f32 %v2278_v14, %v32_v26  ;;  %v105_v37 = vmul.f32 %v2278_v14, %v34_v33  ;;  %v106_v42 = vmul.f32 %v2278_v14, %v35_v36  ;;  %v36_v43 = vld [vmem:[%s3178_s0 + $0x40] sm:$0xff]  ;;  %v2150_v45 = vld [vmem:[%s3177_s5 + $0x38] sm:$0xff]   ;;  %v38_v51 = vld [vmem:[%s3178_s0 + $0x50] sm:$0xff] }
   0xb   :  { %1980 = vmatpush3.bf16.msra.mxu0 %v2139_v4  ;;  %v234_v29 = vmax.f32 %v170_v22, 0.0  ;;  %v235_v30 = vmax.f32 %v171_v23, 0.0  ;;  %v236_v40 = vmax.f32 %v172_v31, 0.0  ;;  %v175_v47 = vadd.f32 %v2285_v17, %v104_v35  ;;  %v39_v52 = vld [vmem:[%s3178_s0 + $0x58] sm:$0xff]  ;;  %v40_v60 = vld [vmem:[%s3178_s0 + $0x60] sm:$0xff]  ;;  %v41_v61 = vld [vmem:[%s3178_s0 + $0x68] sm:$0xff] }
   0xc   :  { %2060 = vmatpush3.bf16.msra.mxu1 %v2140_v5  ;;  %1981 = vmatprep.subr.bf16.mxu0 %v2141_v6  ;;  %v237_v41 = vmax.f32 %v173_v32, 0.0  ;;  %v174_v46 = vadd.f32 %v2285_v17, %v103_v34  ;;  %v176_v48 = vadd.f32 %v2285_v17, %v105_v37  ;;  %v177_v49 = vadd.f32 %v2285_v17, %v106_v42  ;;  %v42_v2 = vld [vmem:[%s3178_s0 + $0x70] sm:$0xff]  ;;  %v44_v13 = vld [vmem:[%s3178_s0 + $0x80] sm:$0xff]  ;;  %v45_v15 = vld [vmem:[%s3178_s0 + $0x88] sm:$0xff] }
   0xd   :  { %2061 = vmatprep.subr.bf16.mxu1 %v2142_v7  ;;  %v298_v39 = vpack.c.bf16 %v235_v30, %v234_v29  ;;  %v107_v50 = vmul.f32 %v2278_v14, %v36_v43  ;;  %v239_v54 = vmax.f32 %v175_v47, 0.0  ;;  %v108_v55 = vmul.f32 %v2278_v14, %v37_v44  ;;  %v46_v25 = vld [vmem:[%s3178_s0 + $0x90] sm:$0xff]  ;;  %v47_v26 = vld [vmem:[%s3178_s0 + $0x98] sm:$0xff]  ;;  %v48_v35 = vld [vmem:[%s3178_s0 + $0xa0] sm:$0xff] }
   0xe   :  { %v238_v53 = vmax.f32 %v174_v46, 0.0  ;;  %v299_v56 = vpack.c.bf16 %v237_v41, %v236_v40  ;;  %v109_v58 = vmul.f32 %v2278_v14, %v38_v51  ;;  %v110_v59 = vmul.f32 %v2278_v14, %v39_v52  ;;  %v49_v36 = vld [vmem:[%s3178_s0 + $0xa8] sm:$0xff]  ;;  %v50_v40 = vld [vmem:[%s3178_s0 + $0xb0] sm:$0xff]  ;;  %v2154_v52 = vld [vmem:[%s3181_s4 + $0x18] sm:$0xff]  }
   0xf   :  { %1982 = vmatpush3.bf16.msra.mxu0 %v2141_v6  ;;  %1991 = vmatprep.mubr.bf16.mxu0 %v298_v39  ;;  %v178_v57 = vadd.f32 %v2285_v17, %v107_v50  ;;  %v240_v62 = vmax.f32 %v176_v48, 0.0  ;;  %v241_v63 = vmax.f32 %v177_v49, 0.0  ;;  %v179_v0 = vadd.f32 %v2285_v17, %v108_v55  ;;  %v52_v50 = vld [vmem:[%s3178_s0 + $0xc0] sm:$0xff]  ;;  %v53_v51 = vld [vmem:[%s3178_s0 + $0xc8] sm:$0xff] }
  0x10   :  { %2062 = vmatpush3.bf16.msra.mxu1 %v2142_v7  ;;  %1983 = vmatprep.subr.bf16.mxu0 %v2143_v8  ;;  %v111_v1 = vmul.f32 %v2278_v14, %v40_v60  ;;  %v300_v3 = vpack.c.bf16 %v239_v54, %v238_v53  ;;  %v180_v5 = vadd.f32 %v2285_v17, %v109_v58  ;;  %v43_v7 = vld [vmem:[%s3178_s0 + $0x78] sm:$0xff] }
  0x11   :  { %2063 = vmatprep.subr.bf16.mxu1 %v2144_v9  ;;  %v242_v4 = vmax.f32 %v178_v57, 0.0  ;;  %v181_v6 = vadd.f32 %v2285_v17, %v110_v59  ;;  %v113_v12 = vmul.f32 %v2278_v14, %v42_v2  ;;  %v114_v19 = vmul.f32 %v2278_v14, %v43_v7  ;;  %v2155_v57 = vld [vmem:[%s3181_s4 + $0x20] sm:$0xff]  }
  0x12   :  { %v244_v16 = vmax.f32 %v180_v5, 0.0  ;;  %v115_v20 = vmul.f32 %v2278_v14, %v44_v13  ;;  %v301_v22 = vpack.c.bf16 %v241_v63, %v240_v62  ;;  %v116_v29 = vmul.f32 %v2278_v14, %v45_v15  ;;  %v54_v62 = vld [vmem:[%s3178_s0 + $0xd0] sm:$0xff]  ;;  %v55_v63 = vld [vmem:[%s3178_s0 + $0xd8] sm:$0xff] }
  0x13   :  { %1984 = vmatpush3.bf16.msra.mxu0 %v2143_v8  ;;  %v2152_v8 = vld [vmem:[%s3181_s4 + $0x8] sm:$0xff]   ;;  %v245_v18 = vmax.f32 %v181_v6, 0.0  ;;  %v184_v24 = vadd.f32 %v2285_v17, %v113_v12  ;;  %v117_v33 = vmul.f32 %v2278_v14, %v46_v25  ;;  %v118_v34 = vmul.f32 %v2278_v14, %v47_v26  ;;  %v58_v15 = vld [vmem:[%s3178_s0 + $0xf0] sm:$0xff]  ;;  %v60_v25 = vld [vmem:[%s3178_s0 + $0x100] sm:$0xff] }
  0x14   :  { %2064 = vmatpush3.bf16.msra.mxu1 %v2144_v9  ;;  %1985 = vmatprep.subr.bf16.mxu0 %v2145_v10  ;;  %v243_v9 = vmax.f32 %v179_v0, 0.0  ;;  %v186_v30 = vadd.f32 %v2285_v17, %v115_v20  ;;  %v119_v39 = vmul.f32 %v2278_v14, %v48_v35  ;;  %v120_v44 = vmul.f32 %v2278_v14, %v49_v36  ;;  %v59_v20 = vld [vmem:[%s3178_s0 + $0xf8] sm:$0xff]  ;;  %v61_v26 = vld [vmem:[%s3178_s0 + $0x108] sm:$0xff]  ;;  %v62_v36 = vld [vmem:[%s3178_s0 + $0x110] sm:$0xff] }
  0x15   :  { %2065 = vmatprep.subr.bf16.mxu1 %v2146_v11  ;;  %v2403_v37 = vpack.c.bf16 %v245_v18, %v244_v16  ;;  %v248_v41 = vmax.f32 %v184_v24, 0.0  ;;  %v188_v42 = vadd.f32 %v2285_v17, %v117_v33  ;;  %v189_v43 = vadd.f32 %v2285_v17, %v118_v34 }
  0x16   :  { %v302_v27 = vpack.c.bf16 %v243_v9, %v242_v4  ;;  %v250_v47 = vmax.f32 %v186_v30, 0.0  ;;  %v190_v48 = vadd.f32 %v2285_v17, %v119_v39  ;;  %v121_v49 = vmul.f32 %v2278_v14, %v50_v40  ;;  %v57_v9 = vld [vmem:[%s3178_s0 + $0xe8] sm:$0xff]  ;;  %v2157_v39 = vld [vmem:[%s3181_s4 + $0x30] sm:$0xff]  }
  0x17   :  { %1986 = vmatpush3.bf16.msra.mxu0 %v2145_v10  ;;  %v112_v10 = vmul.f32 %v2278_v14, %v41_v61  ;;  %v191_v55 = vadd.f32 %v2285_v17, %v120_v44  ;;  %v252_v58 = vmax.f32 %v188_v42, 0.0  ;;  %v253_v59 = vmax.f32 %v189_v43, 0.0 }
  0x18   :  { %2066 = vmatpush3.bf16.msra.mxu1 %v2146_v11  ;;  %1987 = vmatprep.subr.bf16.mxu0 %v2147_v21  ;;  %v182_v11 = vadd.f32 %v2285_v17, %v111_v1  ;;  %v192_v60 = vadd.f32 %v2285_v17, %v121_v49  ;;  %v123_v61 = vmul.f32 %v2278_v14, %v52_v50  ;;  %v254_v0 = vmax.f32 %v190_v48, 0.0  ;;  %v64_v48 = vld [vmem:[%s3178_s0 + $0x120] sm:$0xff]  ;;  %v65_v49 = vld [vmem:[%s3178_s0 + $0x128] sm:$0xff] }
  0x19   :  { %2067 = vmatprep.subr.bf16.mxu1 %v2148_v28  ;;  %v183_v23 = vadd.f32 %v2285_v17, %v112_v10  ;;  %v255_v1 = vmax.f32 %v191_v55, 0.0  ;;  %v125_v6 = vmul.f32 %v2278_v14, %v54_v62  ;;  %v126_v7 = vmul.f32 %v2278_v14, %v55_v63  ;;  %v66_v55 = vld [vmem:[%s3178_s0 + $0x130] sm:$0xff] }
  0x1a   :  { %v246_v31 = vmax.f32 %v182_v11, 0.0  ;;  %v256_v4 = vmax.f32 %v192_v60, 0.0  ;;  %v194_v5 = vadd.f32 %v2285_v17, %v123_v61  ;;  %v129_v24 = vmul.f32 %v2278_v14, %v58_v15  ;;  %v67_v60 = vld [vmem:[%s3178_s0 + $0x138] sm:$0xff] }
  0x1b   :  { %1988 = vmatpush3.bf16.msra.mxu0 %v2147_v21  ;;  %v2153_v21 = vld [vmem:[%s3181_s4 + $0x10] sm:$0xff]   ;;  %v247_v32 = vmax.f32 %v183_v23, 0.0  ;;  %v2461_v16 = vadd.f32 %v2285_v17, %v125_v6  ;;  %v2464_v18 = vadd.f32 %v2285_v17, %v126_v7  ;;  %v2474_v23 = vpack.c.bf16 %v255_v1, %v254_v0  ;;  %v68_v0 = vld [vmem:[%s3178_s0 + $0x140] sm:$0xff]  ;;  %v69_v1 = vld [vmem:[%s3178_s0 + $0x148] sm:$0xff] }
  0x1c   :  { %2068 = vmatpush3.bf16.msra.mxu1 %v2148_v28  ;;  %1989 = vmatprep.subr.bf16.mxu0 %v2149_v38  ;;  %v185_v28 = vadd.f32 %v2285_v17, %v114_v19  ;;  %v128_v19 = vmul.f32 %v2278_v14, %v57_v9  ;;  %v130_v30 = vmul.f32 %v2278_v14, %v59_v20  ;;  %v70_v9 = vld [vmem:[%s3178_s0 + $0x150] sm:$0xff] }
  0x1d   :  { %2069 = vmatprep.subr.bf16.mxu1 %v2150_v45  ;;  %v2427_v53 = vpack.c.bf16 %v247_v32, %v246_v31  ;;  %v2156_v31 = vld [vmem:[%s3181_s4 + $0x28] sm:$0xff]   ;;  %v260_v32 = vmax.f32 %v2461_v16, 0.0  ;;  %v200_v34 = vadd.f32 %v2285_v17, %v129_v24  ;;  %v131_v35 = vmul.f32 %v2278_v14, %v60_v25  ;;  %v2167_v16 = vld [vmem:[%s3181_s4 + $0x80] sm:$0xff]  }
  0x1e   :  { %v249_v46 = vmax.f32 %v185_v28, 0.0  ;;  %v258_v28 = vmax.f32 %v194_v5, 0.0  ;;  %v261_v40 = vmax.f32 %v2464_v18, 0.0  ;;  %v201_v42 = vadd.f32 %v2285_v17, %v130_v30  ;;  %v73_v30 = vld [vmem:[%s3178_s0 + $0x168] sm:$0xff] }
  0x1f   :  { %1990 = vmatpush3.bf16.msra.mxu0 %v2149_v38  ;;  %v187_v38 = vadd.f32 %v2285_v17, %v116_v29  ;;  %v132_v43 = vmul.f32 %v2278_v14, %v61_v26  ;;  %v264_v44 = vmax.f32 %v200_v34, 0.0  ;;  %v140_v20 = vmul.f32 %v2278_v14, %v69_v1  ;;  %v2168_v18 = vld [vmem:[%s3181_s4 + $0x88] sm:$0xff]  }
  0x20   :  { %2070 = vmatpush3.bf16.msra.mxu1 %v2150_v45  ;;  %v51_v45 = vld [vmem:[%s3178_s0 + $0xb8] sm:$0xff]  ;;  %v2453_v10 = vpack.c.bf16 %v249_v46, %v248_v41  ;;  %v2506_v41 = vadd.f32 %v2285_v17, %v128_v19  ;;  %v133_v46 = vmul.f32 %v2278_v14, %v62_v36  ;;  %v141_v26 = vmul.f32 %v2278_v14, %v70_v9  ;;  %v81_v9 = vld [vmem:[%s3178_s0 + $0x1a8] sm:$0xff] }
  0x21   :  { %v251_v54 = vmax.f32 %v187_v38, 0.0  ;;  %v63_v38 = vld [vmem:[%s3178_s0 + $0x118] sm:$0xff]  ;;  %v211_v36 = vadd.f32 %v2285_v17, %v140_v20 }
  0x22   :  { %1992 = vmatmul.mubr.bf16.vlgmr.msra.gmra.mrb[0].mxu0 %v299_v56  ;;  %v122_v56 = vmul.f32 %v2278_v14, %v51_v45  ;;  %v202_v45 = vadd.f32 %v2285_v17, %v131_v35 }
  0x23   :  { %2072 = vmatmul.mubr.bf16.vlgmr.msra.gmra.mrb[0].mxu1 %v2152_v8  ;;  %1995 = vmatprep.mubr.bf16.mxu0 %v300_v3  ;;  %v124_v3 = vmul.f32 %v2278_v14, %v53_v51  ;;  %v56_v8 = vld [vmem:[%s3178_s0 + $0xe0] sm:$0xff]  ;;  %v265_v51 = vmax.f32 %v201_v42, 0.0 }
  0x24   :  { %2075 = vmatprep.mubr.bf16.mxu1 %v2153_v21  ;;  %v193_v2 = vadd.f32 %v2285_v17, %v122_v56  ;;  %v127_v13 = vmul.f32 %v2278_v14, %v56_v8  ;;  %v2470_v21 = vpack.c.bf16 %v251_v54, %v250_v47  ;;  %v134_v47 = vmul.f32 %v2278_v14, %v63_v38 }
  0x25   :  { %v195_v12 = vadd.f32 %v2285_v17, %v124_v3  ;;  %v135_v54 = vmul.f32 %v2278_v14, %v64_v48  ;;  %v266_v56 = vmax.f32 %v202_v45, 0.0  ;;  %v2534_v61 = vpack.c.bf16 %v265_v51, %v264_v44 }
  0x26   :  { %v257_v11 = vmax.f32 %v193_v2, 0.0  ;;  %v2491_v33 = vadd.f32 %v2285_v17, %v127_v13  ;;  %v139_v8 = vmul.f32 %v2278_v14, %v68_v0  ;;  %v144_v45 = vmul.f32 %v2278_v14, %v73_v30  ;;  %v83_v30 = vld [vmem:[%s3178_s0 + $0x1b8] sm:$0xff] }
  0x27   :  { %v259_v29 = vmax.f32 %v195_v12, 0.0  ;;  %v206_v63 = vadd.f32 %v2285_v17, %v135_v54  ;;  %v2158_v12 = vld [vmem:[%s3181_s4 + $0x38] sm:$0xff]   ;;  %v275_v48 = vmax.f32 %v211_v36, 0.0  ;;  %v77_v54 = vld [vmem:[%s3178_s0 + $0x188] sm:$0xff] }
  0x28   :  { %v210_v25 = vadd.f32 %v2285_v17, %v139_v8  ;;  %v80_v8 = vld [vmem:[%s3178_s0 + $0x1a0] sm:$0xff] }
  0x29   :  { %v2519_v50 = vpack.c.bf16 %v259_v29, %v258_v28  ;;  %v270_v6 = vmax.f32 %v206_v63, 0.0  ;;  %v72_v29 = vld [vmem:[%s3178_s0 + $0x160] sm:$0xff]  ;;  %v78_v63 = vld [vmem:[%s3178_s0 + $0x190] sm:$0xff]  ;;  %v151_v20 = vmul.f32 %v2278_v14, %v80_v8 }
  0x2a   :  { %1996 = vmatmul.mubr.bf16.gmra.mrb[4].mxu0 %v301_v22  ;;  %v2472_v22 = vpack.c.bf16 %v253_v59, %v252_v58  ;;  %v205_v58 = vadd.f32 %v2285_v17, %v134_v47  ;;  %v136_v59 = vmul.f32 %v2278_v14, %v65_v49  ;;  %v143_v38 = vmul.f32 %v2278_v14, %v72_v29 }
  0x2b   :  { %2076 = vmatmul.mubr.bf16.gmra.mrb[4].mxu1 %v2154_v52  ;;  %1999 = vmatprep.mubr.bf16.mxu0 %v302_v27  ;;  %v2483_v27 = vpack.c.bf16 %v257_v11, %v256_v4  ;;  %v203_v52 = vadd.f32 %v2285_v17, %v132_v43  ;;  %v138_v4 = vmul.f32 %v2278_v14, %v67_v60  ;;  %v71_v11 = vld [vmem:[%s3178_s0 + $0x158] sm:$0xff]  ;;  %v274_v42 = vmax.f32 %v210_v25, 0.0 }
  0x2c   :  { %2079 = vmatprep.mubr.bf16.mxu1 %v2155_v57  ;;  %v204_v57 = vadd.f32 %v2285_v17, %v133_v46  ;;  %v269_v3 = vmax.f32 %v205_v58, 0.0  ;;  %v142_v28 = vmul.f32 %v2278_v14, %v71_v11  ;;  %v212_v43 = vadd.f32 %v2285_v17, %v141_v26  ;;  %v75_v46 = vld [vmem:[%s3178_s0 + $0x178] sm:$0xff]  ;;  %v2161_v11 = vld [vmem:[%s3181_s4 + $0x50] sm:$0xff]  }
  0x2d   :  { %v267_v62 = vmax.f32 %v203_v52, 0.0  ;;  %v209_v19 = vadd.f32 %v2285_v17, %v138_v4  ;;  %v214_v49 = vadd.f32 %v2285_v17, %v143_v38  ;;  %v76_v52 = vld [vmem:[%s3178_s0 + $0x180] sm:$0xff]  ;;  %v2602_v58 = vpack.c.bf16 %v275_v48, %v274_v42  ;;  %v85_v42 = vld [vmem:[%s3178_s0 + $0x1c8] sm:$0xff] }
  0x2e   :  { %v268_v2 = vmax.f32 %v204_v57, 0.0  ;;  %v213_v44 = vadd.f32 %v2285_v17, %v142_v28  ;;  %v146_v57 = vmul.f32 %v2278_v14, %v75_v46  ;;  %v152_v29 = vmul.f32 %v2278_v14, %v81_v9 }
  0x2f   :  { %v2546_v5 = vpack.c.bf16 %v267_v62, %v266_v56  ;;  %v273_v35 = vmax.f32 %v209_v19, 0.0  ;;  %v215_v56 = vadd.f32 %v2285_v17, %v144_v45  ;;  %v147_v62 = vmul.f32 %v2278_v14, %v76_v52 }
  0x30   :  { %v2559_v13 = vpack.c.bf16 %v269_v3, %v268_v2  ;;  %v217_v2 = vadd.f32 %v2285_v17, %v146_v57  ;;  %v148_v3 = vmul.f32 %v2278_v14, %v77_v54  ;;  %v222_v36 = vadd.f32 %v2285_v17, %v151_v20  ;;  %v87_v54 = vld [vmem:[%s3178_s0 + $0x1d8] sm:$0xff] }
  0x31   :  { %v279_v1 = vmax.f32 %v215_v56, 0.0  ;;  %v218_v4 = vadd.f32 %v2285_v17, %v147_v62  ;;  %v223_v45 = vadd.f32 %v2285_v17, %v152_v29  ;;  %v154_v46 = vmul.f32 %v2278_v14, %v83_v30 }
  0x32   :  { %2000 = vmatmul.mubr.bf16.gmra.mrb[8].mxu0 %v2403_v37  ;;  %v137_v37 = vmul.f32 %v2278_v14, %v66_v55  ;;  %v276_v55 = vmax.f32 %v212_v43, 0.0  ;;  %v219_v19 = vadd.f32 %v2285_v17, %v148_v3  ;;  %v156_v56 = vmul.f32 %v2278_v14, %v85_v42 }
  0x33   :  { %2080 = vmatmul.mubr.bf16.gmra.mrb[8].mxu1 %v2156_v31  ;;  %2003 = vmatprep.mubr.bf16.mxu0 %v2427_v53  ;;  %v207_v53 = vadd.f32 %v2285_v17, %v136_v59  ;;  %v2159_v31 = vld [vmem:[%s3181_s4 + $0x40] sm:$0xff]   ;;  %v278_v59 = vmax.f32 %v214_v49, 0.0  ;;  %v282_v25 = vmax.f32 %v218_v4, 0.0  ;;  %v286_v49 = vmax.f32 %v222_v36, 0.0  ;;  %v90_v4 = vld [vmem:[%s3178_s0 + $0x1f0] sm:$0xff] }
  0x34   :  { %2083 = vmatprep.mubr.bf16.mxu1 %v2157_v39  ;;  %v208_v7 = vadd.f32 %v2285_v17, %v137_v37  ;;  %v74_v39 = vld [vmem:[%s3178_s0 + $0x170] sm:$0xff]  ;;  %v2160_v37 = vld [vmem:[%s3181_s4 + $0x48] sm:$0xff]   ;;  %v158_v62 = vmul.f32 %v2278_v14, %v87_v54  ;;  %v227_v3 = vadd.f32 %v2285_v17, %v156_v56  ;;  %v263_v42 = vmax.f32 %v2506_v41, 0.0 }
  0x35   :  { %v271_v15 = vmax.f32 %v207_v53, 0.0  ;;  %v145_v51 = vmul.f32 %v2278_v14, %v74_v39  ;;  %v84_v39 = vld [vmem:[%s3178_s0 + $0x1c0] sm:$0xff]  ;;  %v2165_v41 = vld [vmem:[%s3181_s4 + $0x70] sm:$0xff]  }
  0x36   :  { %v272_v24 = vmax.f32 %v208_v7, 0.0  ;;  %v155_v52 = vmul.f32 %v2278_v14, %v84_v39  ;;  %v229_v8 = vadd.f32 %v2285_v17, %v158_v62  ;;  %v291_v20 = vmax.f32 %v227_v3, 0.0 }
  0x37   :  { %v2575_v34 = vpack.c.bf16 %v271_v15, %v270_v6  ;;  %v216_v60 = vadd.f32 %v2285_v17, %v145_v51  ;;  %v149_v6 = vmul.f32 %v2278_v14, %v78_v63  ;;  %v281_v15 = vmax.f32 %v217_v2, 0.0  ;;  %v88_v63 = vld [vmem:[%s3178_s0 + $0x1e0] sm:$0xff] }
  0x38   :  { %v2589_v47 = vpack.c.bf16 %v273_v35, %v272_v24  ;;  %v82_v24 = vld [vmem:[%s3178_s0 + $0x1b0] sm:$0xff]  ;;  %v283_v35 = vmax.f32 %v219_v19, 0.0 }
  0x39   :  { %v280_v53 = vmax.f32 %v216_v60, 0.0  ;;  %v220_v26 = vadd.f32 %v2285_v17, %v149_v6  ;;  %v153_v38 = vmul.f32 %v2278_v14, %v82_v24 }
  0x3a   :  { %2004 = vmatmul.mubr.bf16.gmra.mrb[12].mxu0 %v2453_v10  ;;  %v277_v10 = vmax.f32 %v213_v44, 0.0  ;;  %v2658_v48 = vpack.c.bf16 %v283_v35, %v282_v25  ;;  %v161_v25 = vmul.f32 %v2278_v14, %v90_v4  ;;  %v262_v35 = vmax.f32 %v2491_v33, 0.0  ;;  %v2164_v33 = vld [vmem:[%s3181_s4 + $0x68] sm:$0xff]  }
  0x3b   :  { %2084 = vmatmul.mubr.bf16.gmra.mrb[12].mxu1 %v2158_v12  ;;  %2007 = vmatprep.mubr.bf16.mxu0 %v2470_v21  ;;  %v79_v21 = vld [vmem:[%s3178_s0 + $0x198] sm:$0xff]  ;;  %v2631_v12 = vpack.c.bf16 %v279_v1, %v278_v59  ;;  %v284_v43 = vmax.f32 %v220_v26, 0.0  ;;  %v224_v51 = vadd.f32 %v2285_v17, %v153_v38  ;;  %v226_v59 = vadd.f32 %v2285_v17, %v155_v52  ;;  %v2181_v52 = vld [vmem:[%s3181_s4 + $0xf0] sm:$0xff]  }
  0x3c   :  { %2087 = vmatprep.mubr.bf16.mxu1 %v2159_v31  ;;  %v2615_v0 = vpack.c.bf16 %v277_v10, %v276_v55  ;;  %v150_v7 = vmul.f32 %v2278_v14, %v79_v21  ;;  %v2644_v31 = vpack.c.bf16 %v281_v15, %v280_v53  ;;  %v287_v10 = vmax.f32 %v223_v45, 0.0  ;;  %v89_v21 = vld [vmem:[%s3178_s0 + $0x1e8] sm:$0xff]  ;;  %v2163_v15 = vld [vmem:[%s3181_s4 + $0x60] sm:$0xff]  }
  0x3d   :  { %v288_v57 = vmax.f32 %v224_v51, 0.0  ;;  %v159_v53 = vmul.f32 %v2278_v14, %v88_v63  ;;  %v290_v6 = vmax.f32 %v226_v59, 0.0  ;;  %v160_v9 = vmul.f32 %v2278_v14, %v89_v21 }
  0x3e   :  { %v221_v28 = vadd.f32 %v2285_v17, %v150_v7  ;;  %v2684_v1 = vpack.c.bf16 %v287_v10, %v286_v49  ;;  %v232_v39 = vadd.f32 %v2285_v17, %v161_v25 }
  0x3f   :  { %v230_v24 = vadd.f32 %v2285_v17, %v159_v53  ;;  %v231_v29 = vadd.f32 %v2285_v17, %v160_v9  ;;  %v326_v36 = vpack.c.bf16 %v291_v20, %v290_v6 }
  0x40   :  { %v285_v44 = vmax.f32 %v221_v28, 0.0  ;;  %v293_v28 = vmax.f32 %v229_v8, 0.0 }
  0x41   :  { %v294_v38 = vmax.f32 %v230_v24, 0.0 }
  0x42   :  { %2008 = vmatmul.mubr.bf16.gmra.mrb[16].mxu0 %v2472_v22  ;;  %v86_v22 = vld [vmem:[%s3178_s0 + $0x1d0] sm:$0xff]  ;;  %v2668_v55 = vpack.c.bf16 %v285_v44, %v284_v43  ;;  %v295_v44 = vmax.f32 %v231_v29, 0.0 }
  0x43   :  { %2088 = vmatmul.mubr.bf16.gmra.mrb[16].mxu1 %v2160_v37  ;;  %2011 = vmatprep.mubr.bf16.mxu0 %v2474_v23  ;;  %v225_v23 = vadd.f32 %v2285_v17, %v154_v46  ;;  %v157_v60 = vmul.f32 %v2278_v14, %v86_v22  ;;  %v2162_v37 = vld [vmem:[%s3181_s4 + $0x58] sm:$0xff]   ;;  %v296_v46 = vmax.f32 %v232_v39, 0.0 }
  0x44   :  { %2091 = vmatprep.mubr.bf16.mxu1 %v2161_v11  ;;  %v91_v11 = vld [vmem:[%s3178_s0 + $0x1f8] sm:$0xff] }
  0x45   :  { %v289_v2 = vmax.f32 %v225_v23, 0.0  ;;  %v228_v7 = vadd.f32 %v2285_v17, %v157_v60  ;;  %v162_v30 = vmul.f32 %v2278_v14, %v91_v11  ;;  %v328_v14 = vpack.c.bf16 %v295_v44, %v294_v38  ;;  %v2182_v22 = vld [vmem:[%s3181_s4 + $0xf8] sm:$0xff]  }
  0x47   :  { %v2700_v19 = vpack.c.bf16 %v289_v2, %v288_v57  ;;  %v292_v26 = vmax.f32 %v228_v7, 0.0  ;;  %v233_v45 = vadd.f32 %v2285_v17, %v162_v30  ;;  %v2166_v17 = vld [vmem:[%s3181_s4 + $0x78] sm:$0xff]  }
  0x49   :  { %v327_v43 = vpack.c.bf16 %v293_v28, %v292_v26  ;;  %v297_v49 = vmax.f32 %v233_v45, 0.0 }
  0x4a   :  { %2012 = vmatmul.mubr.bf16.gmra.mrb[20].mxu0 %v2483_v27  ;;  %v311_v27 = vpack.c.bf16 %v261_v40, %v260_v32  ;;  %v2169_v32 = vld [vmem:[%s3181_s4 + $0x90] sm:$0xff]   ;;  %v2170_v40 = vld [vmem:[%s3181_s4 + $0x98] sm:$0xff]  }
  0x4b   :  { %2092 = vmatmul.mubr.bf16.gmra.mrb[20].mxu1 %v2162_v37  ;;  %2015 = vmatprep.mubr.bf16.mxu0 %v2519_v50  ;;  %v312_v50 = vpack.c.bf16 %v263_v42, %v262_v35  ;;  %v329_v51 = vpack.c.bf16 %v297_v49, %v296_v46 }
  0x4c   :  { %2095 = vmatprep.mubr.bf16.mxu1 %v2163_v15 }
  0x52   :  { %2016 = vmatmul.mubr.bf16.gmra.mrb[24].mxu0 %v311_v27 }
  0x53   :  { %2096 = vmatmul.mubr.bf16.gmra.mrb[24].mxu1 %v2164_v33  ;;  %2019 = vmatprep.mubr.bf16.mxu0 %v312_v50 }
  0x54   :  { %2099 = vmatprep.mubr.bf16.mxu1 %v2165_v41 }
  0x5a   :  { %2020 = vmatmul.mubr.bf16.gmra.mrb[28].mxu0 %v2534_v61  ;;  %v2171_v61 = vld [vmem:[%s3181_s4 + $0xa0] sm:$0xff]  }
  0x5b   :  { %2100 = vmatmul.mubr.bf16.gmra.mrb[28].mxu1 %v2166_v17  ;;  %2023 = vmatprep.mubr.bf16.mxu0 %v2546_v5  ;;  %v2172_v5 = vld [vmem:[%s3181_s4 + $0xa8] sm:$0xff]  }
  0x5c   :  { %2103 = vmatprep.mubr.bf16.mxu1 %v2167_v16 }
  0x62   :  { %2024 = vmatmul.mubr.bf16.gmra.mrb[32].mxu0 %v2559_v13  ;;  %v2173_v13 = vld [vmem:[%s3181_s4 + $0xb0] sm:$0xff]  }
  0x63   :  { %2104 = vmatmul.mubr.bf16.gmra.mrb[32].mxu1 %v2168_v18  ;;  %2027 = vmatprep.mubr.bf16.mxu0 %v2575_v34  ;;  %v2174_v34 = vld [vmem:[%s3181_s4 + $0xb8] sm:$0xff]  }
  0x64   :  { %2107 = vmatprep.mubr.bf16.mxu1 %v2169_v32 }
  0x6a   :  { %2028 = vmatmul.mubr.bf16.gmra.mrb[36].mxu0 %v2589_v47  ;;  %v2175_v47 = vld [vmem:[%s3181_s4 + $0xc0] sm:$0xff]  }
  0x6b   :  { %2108 = vmatmul.mubr.bf16.gmra.mrb[36].mxu1 %v2170_v40  ;;  %2031 = vmatprep.mubr.bf16.mxu0 %v2602_v58  ;;  %v2176_v58 = vld [vmem:[%s3181_s4 + $0xc8] sm:$0xff]  }
  0x6c   :  { %2111 = vmatprep.mubr.bf16.mxu1 %v2171_v61 }
  0x72   :  { %2032 = vmatmul.mubr.bf16.gmra.mrb[40].mxu0 %v2615_v0  ;;  %v2177_v0 = vld [vmem:[%s3181_s4 + $0xd0] sm:$0xff]  }
  0x73   :  { %2112 = vmatmul.mubr.bf16.gmra.mrb[40].mxu1 %v2172_v5  ;;  %2035 = vmatprep.mubr.bf16.mxu0 %v2631_v12  ;;  %v2178_v12 = vld [vmem:[%s3181_s4 + $0xd8] sm:$0xff]  }
  0x74   :  { %2115 = vmatprep.mubr.bf16.mxu1 %v2173_v13 }
  0x7a   :  { %2036 = vmatmul.mubr.bf16.gmra.mrb[44].mxu0 %v2644_v31  ;;  %v2179_v31 = vld [vmem:[%s3181_s4 + $0xe0] sm:$0xff]  }
  0x7b   :  { %2116 = vmatmul.mubr.bf16.gmra.mrb[44].mxu1 %v2174_v34  ;;  %2039 = vmatprep.mubr.bf16.mxu0 %v2658_v48  ;;  %v2180_v48 = vld [vmem:[%s3181_s4 + $0xe8] sm:$0xff]  }
  0x7c   :  { %2119 = vmatprep.mubr.bf16.mxu1 %v2175_v47 }
  0x82   :  { %2040 = vmatmul.mubr.bf16.gmra.mrb[48].mxu0 %v2668_v55 }
  0x83   :  { %2120 = vmatmul.mubr.bf16.gmra.mrb[48].mxu1 %v2176_v58  ;;  %2043 = vmatprep.mubr.bf16.mxu0 %v2684_v1 }
  0x84   :  { %2123 = vmatprep.mubr.bf16.mxu1 %v2177_v0 }
  0x8a   :  { %2044 = vmatmul.mubr.bf16.gmra.mrb[52].mxu0 %v2700_v19 }
  0x8b   :  { %2124 = vmatmul.mubr.bf16.gmra.mrb[52].mxu1 %v2178_v12  ;;  %2047 = vmatprep.mubr.bf16.mxu0 %v326_v36 }
  0x8c   :  { %2127 = vmatprep.mubr.bf16.mxu1 %v2179_v31 }
  0x92   :  { %2048 = vmatmul.mubr.bf16.gmra.mrb[56].mxu0 %v327_v43 }
  0x93   :  { %2128 = vmatmul.mubr.bf16.gmra.mrb[56].mxu1 %v2180_v48  ;;  %2051 = vmatprep.mubr.bf16.mxu0 %v328_v14 }
  0x94   :  { %2131 = vmatprep.mubr.bf16.mxu1 %v2181_v52 }
  0x9a   :  { %2052 = vmatmul.mubr.bf16.gmra.mrb[60].mxu0 %v329_v51 }
  0x9b   :  { %2132 = vmatmul.mubr.bf16.gmra.mrb[60].mxu1 %v2182_v22 }
  0xf5   :  { %v1993_v54 = vpop.f32.mrb[0].mxu0 }
  0xf6   :  { %685 = vst [vmem:[%s3182_s6 + $0x10] sm:$0xff] %v1993_v54  ;;  %v2073_v55 = vpop.f32.mrb[0].mxu1  ;;  %v428_v10 = vpop.f32.mrb[1].mxu0  ;;  %v818_v3 = vmul.f32 %v1993_v54, %v1993_v54 }
  0xf7   :  { %1563 = vst [vmem:[%s3183_s7 + $0x10] sm:$0xff] %v2073_v55  ;;  %683 = vst [vmem:[%s3182_s6] sm:$0xff] %v428_v10  ;;  %v1306_v23 = vpop.f32.mrb[1].mxu1  ;;  %v1994_v56 = vpop.f32.mrb[2].mxu0  ;;  %v816_v60 = vmul.f32 %v428_v10, %v428_v10  ;;  %v1696_v6 = vmul.f32 %v2073_v55, %v2073_v55 }
  0xf8   :  { %1561 = vst [vmem:[%s3183_s7] sm:$0xff] %v1306_v23  ;;  %686 = vst [vmem:[%s3182_s6 + $0x18] sm:$0xff] %v1994_v56  ;;  %v2074_v57 = vpop.f32.mrb[2].mxu1  ;;  %v431_v59 = vpop.f32.mrb[3].mxu0  ;;  %v1694_v37 = vmul.f32 %v1306_v23, %v1306_v23  ;;  %v819_v9 = vmul.f32 %v1994_v56, %v1994_v56 }
  0xf9   :  { %1564 = vst [vmem:[%s3183_s7 + $0x18] sm:$0xff] %v2074_v57  ;;  %684 = vst [vmem:[%s3182_s6 + $0x8] sm:$0xff] %v431_v59  ;;  %v747_v62 = vadd.f32 %v431_v59, %v428_v10  ;;  %v817_v63 = vmul.f32 %v431_v59, %v431_v59  ;;  %v1309_v21 = vpop.f32.mrb[3].mxu1  ;;  %v1697_v20 = vmul.f32 %v2074_v57, %v2074_v57 }
  0xfa   :  { %1562 = vst [vmem:[%s3183_s7 + $0x8] sm:$0xff] %v1309_v21  ;;  %v1625_v1 = vadd.f32 %v1309_v21, %v1306_v23  ;;  %v1695_v2 = vmul.f32 %v1309_v21, %v1309_v21 }
  0xfb   :  { %v748_v53 = vadd.f32 %v1993_v54, %v747_v62  ;;  %v880_v4 = vadd.f32 %v817_v63, %v816_v60 }
  0xfc   :  { %v1626_v7 = vadd.f32 %v2073_v55, %v1625_v1  ;;  %v1758_v8 = vadd.f32 %v1695_v2, %v1694_v37 }
  0xfd   :  { %v881_v11 = vadd.f32 %v880_v4, %v818_v3  ;;  %v1997_v15 = vpop.f32.mrb[4].mxu0  ;;  %v749_v19 = vadd.f32 %v1994_v56, %v748_v53 }
  0xfe   :  { %v1759_v24 = vadd.f32 %v1758_v8, %v1696_v6  ;;  %689 = vst [vmem:[%s3182_s6 + $0x30] sm:$0xff] %v1997_v15  ;;  %v2077_v25 = vpop.f32.mrb[4].mxu1  ;;  %v444_v26 = vpop.f32.mrb[5].mxu0  ;;  %v1627_v28 = vadd.f32 %v2074_v57, %v1626_v7  ;;  %v822_v41 = vmul.f32 %v1997_v15, %v1997_v15 }
  0xff   :  { %1567 = vst [vmem:[%s3183_s7 + $0x30] sm:$0xff] %v2077_v25  ;;  %687 = vst [vmem:[%s3182_s6 + $0x20] sm:$0xff] %v444_v26  ;;  %v750_v29 = vadd.f32 %v749_v19, %v444_v26  ;;  %v820_v30 = vmul.f32 %v444_v26, %v444_v26  ;;  %v882_v35 = vadd.f32 %v881_v11, %v819_v9  ;;  %v1322_v36 = vpop.f32.mrb[5].mxu1  ;;  %v1998_v38 = vpop.f32.mrb[6].mxu0 }
 0x100   :  { %1565 = vst [vmem:[%s3183_s7 + $0x20] sm:$0xff] %v1322_v36  ;;  %v1628_v39 = vadd.f32 %v1627_v28, %v1322_v36  ;;  %v1698_v42 = vmul.f32 %v1322_v36, %v1322_v36  ;;  %v1760_v43 = vadd.f32 %v1759_v24, %v1697_v20  ;;  %690 = vst [vmem:[%s3182_s6 + $0x38] sm:$0xff] %v1998_v38  ;;  %v2078_v44 = vpop.f32.mrb[6].mxu1  ;;  %v447_v45 = vpop.f32.mrb[7].mxu0 }
 0x101   :  { %v883_v46 = vadd.f32 %v882_v35, %v820_v30  ;;  %1568 = vst [vmem:[%s3183_s7 + $0x38] sm:$0xff] %v2078_v44  ;;  %688 = vst [vmem:[%s3182_s6 + $0x28] sm:$0xff] %v447_v45  ;;  %v751_v14 = vadd.f32 %v750_v29, %v447_v45  ;;  %v821_v49 = vmul.f32 %v447_v45, %v447_v45  ;;  %v1325_v27 = vpop.f32.mrb[7].mxu1 }
 0x102   :  { %v1761_v33 = vadd.f32 %v1760_v43, %v1698_v42  ;;  %1566 = vst [vmem:[%s3183_s7 + $0x28] sm:$0xff] %v1325_v27  ;;  %v1629_v50 = vadd.f32 %v1628_v39, %v1325_v27  ;;  %v1699_v51 = vmul.f32 %v1325_v27, %v1325_v27  ;;  %v1700_v18 = vmul.f32 %v2077_v25, %v2077_v25 }
 0x103   :  { %v752_v17 = vadd.f32 %v1997_v15, %v751_v14  ;;  %v884_v16 = vadd.f32 %v883_v46, %v821_v49  ;;  %v823_v61 = vmul.f32 %v1998_v38, %v1998_v38  ;;  %v1701_v47 = vmul.f32 %v2078_v44, %v2078_v44 }
 0x104   :  { %v1630_v32 = vadd.f32 %v2077_v25, %v1629_v50  ;;  %v1762_v40 = vadd.f32 %v1761_v33, %v1699_v51 }
 0x105   :  { %v885_v5 = vadd.f32 %v884_v16, %v822_v41  ;;  %v2001_v13 = vpop.f32.mrb[8].mxu0  ;;  %v753_v34 = vadd.f32 %v1998_v38, %v752_v17 }
 0x106   :  { %v1763_v58 = vadd.f32 %v1762_v40, %v1700_v18  ;;  %693 = vst [vmem:[%s3182_s6 + $0x50] sm:$0xff] %v2001_v13  ;;  %v2081_v0 = vpop.f32.mrb[8].mxu1  ;;  %v460_v12 = vpop.f32.mrb[9].mxu0  ;;  %v1631_v31 = vadd.f32 %v2078_v44, %v1630_v32  ;;  %v826_v3 = vmul.f32 %v2001_v13, %v2001_v13 }
 0x107   :  { %1571 = vst [vmem:[%s3183_s7 + $0x50] sm:$0xff] %v2081_v0  ;;  %691 = vst [vmem:[%s3182_s6 + $0x40] sm:$0xff] %v460_v12  ;;  %v754_v48 = vadd.f32 %v753_v34, %v460_v12  ;;  %v824_v52 = vmul.f32 %v460_v12, %v460_v12  ;;  %v886_v22 = vadd.f32 %v885_v5, %v823_v61  ;;  %v1338_v54 = vpop.f32.mrb[9].mxu1  ;;  %v2002_v55 = vpop.f32.mrb[10].mxu0 }
 0x108   :  { %1569 = vst [vmem:[%s3183_s7 + $0x40] sm:$0xff] %v1338_v54  ;;  %v1632_v10 = vadd.f32 %v1631_v31, %v1338_v54  ;;  %v1702_v23 = vmul.f32 %v1338_v54, %v1338_v54  ;;  %v1764_v56 = vadd.f32 %v1763_v58, %v1701_v47  ;;  %694 = vst [vmem:[%s3182_s6 + $0x58] sm:$0xff] %v2002_v55  ;;  %v2082_v57 = vpop.f32.mrb[10].mxu1  ;;  %v463_v59 = vpop.f32.mrb[11].mxu0 }
 0x109   :  { %v887_v60 = vadd.f32 %v886_v22, %v824_v52  ;;  %1572 = vst [vmem:[%s3183_s7 + $0x58] sm:$0xff] %v2082_v57  ;;  %692 = vst [vmem:[%s3182_s6 + $0x48] sm:$0xff] %v463_v59  ;;  %v755_v62 = vadd.f32 %v754_v48, %v463_v59  ;;  %v825_v63 = vmul.f32 %v463_v59, %v463_v59  ;;  %v1341_v21 = vpop.f32.mrb[11].mxu1 }
 0x10a   :  { %v1765_v37 = vadd.f32 %v1764_v56, %v1702_v23  ;;  %1570 = vst [vmem:[%s3183_s7 + $0x48] sm:$0xff] %v1341_v21  ;;  %v1633_v1 = vadd.f32 %v1632_v10, %v1341_v21  ;;  %v1703_v2 = vmul.f32 %v1341_v21, %v1341_v21  ;;  %v1704_v6 = vmul.f32 %v2081_v0, %v2081_v0 }
 0x10b   :  { %v756_v53 = vadd.f32 %v2001_v13, %v755_v62  ;;  %v888_v4 = vadd.f32 %v887_v60, %v825_v63  ;;  %v827_v9 = vmul.f32 %v2002_v55, %v2002_v55  ;;  %v1705_v20 = vmul.f32 %v2082_v57, %v2082_v57 }
 0x10c   :  { %v1634_v7 = vadd.f32 %v2081_v0, %v1633_v1  ;;  %v1766_v8 = vadd.f32 %v1765_v37, %v1703_v2 }
 0x10d   :  { %v889_v11 = vadd.f32 %v888_v4, %v826_v3  ;;  %v2005_v15 = vpop.f32.mrb[12].mxu0  ;;  %v757_v19 = vadd.f32 %v2002_v55, %v756_v53 }
 0x10e   :  { %v1767_v24 = vadd.f32 %v1766_v8, %v1704_v6  ;;  %697 = vst [vmem:[%s3182_s6 + $0x70] sm:$0xff] %v2005_v15  ;;  %v2085_v25 = vpop.f32.mrb[12].mxu1  ;;  %v476_v26 = vpop.f32.mrb[13].mxu0  ;;  %v1635_v28 = vadd.f32 %v2082_v57, %v1634_v7  ;;  %v830_v41 = vmul.f32 %v2005_v15, %v2005_v15 }
 0x10f   :  { %1575 = vst [vmem:[%s3183_s7 + $0x70] sm:$0xff] %v2085_v25  ;;  %695 = vst [vmem:[%s3182_s6 + $0x60] sm:$0xff] %v476_v26  ;;  %v758_v29 = vadd.f32 %v757_v19, %v476_v26  ;;  %v828_v30 = vmul.f32 %v476_v26, %v476_v26  ;;  %v890_v35 = vadd.f32 %v889_v11, %v827_v9  ;;  %v1354_v36 = vpop.f32.mrb[13].mxu1  ;;  %v2006_v38 = vpop.f32.mrb[14].mxu0 }
 0x110   :  { %1573 = vst [vmem:[%s3183_s7 + $0x60] sm:$0xff] %v1354_v36  ;;  %v1636_v39 = vadd.f32 %v1635_v28, %v1354_v36  ;;  %v1706_v42 = vmul.f32 %v1354_v36, %v1354_v36  ;;  %v1768_v43 = vadd.f32 %v1767_v24, %v1705_v20  ;;  %698 = vst [vmem:[%s3182_s6 + $0x78] sm:$0xff] %v2006_v38  ;;  %v2086_v44 = vpop.f32.mrb[14].mxu1  ;;  %v479_v45 = vpop.f32.mrb[15].mxu0 }
 0x111   :  { %v891_v46 = vadd.f32 %v890_v35, %v828_v30  ;;  %1576 = vst [vmem:[%s3183_s7 + $0x78] sm:$0xff] %v2086_v44  ;;  %696 = vst [vmem:[%s3182_s6 + $0x68] sm:$0xff] %v479_v45  ;;  %v759_v14 = vadd.f32 %v758_v29, %v479_v45  ;;  %v829_v49 = vmul.f32 %v479_v45, %v479_v45  ;;  %v1357_v27 = vpop.f32.mrb[15].mxu1 }
 0x112   :  { %v1769_v33 = vadd.f32 %v1768_v43, %v1706_v42  ;;  %1574 = vst [vmem:[%s3183_s7 + $0x68] sm:$0xff] %v1357_v27  ;;  %v1637_v50 = vadd.f32 %v1636_v39, %v1357_v27  ;;  %v1707_v51 = vmul.f32 %v1357_v27, %v1357_v27  ;;  %v1708_v18 = vmul.f32 %v2085_v25, %v2085_v25 }
 0x113   :  { %v760_v17 = vadd.f32 %v2005_v15, %v759_v14  ;;  %v892_v16 = vadd.f32 %v891_v46, %v829_v49  ;;  %v831_v61 = vmul.f32 %v2006_v38, %v2006_v38  ;;  %v1709_v47 = vmul.f32 %v2086_v44, %v2086_v44 }
 0x114   :  { %v1638_v32 = vadd.f32 %v2085_v25, %v1637_v50  ;;  %v1770_v40 = vadd.f32 %v1769_v33, %v1707_v51 }
 0x115   :  { %v893_v5 = vadd.f32 %v892_v16, %v830_v41  ;;  %v2009_v13 = vpop.f32.mrb[16].mxu0  ;;  %v761_v34 = vadd.f32 %v2006_v38, %v760_v17 }
 0x116   :  { %v1771_v58 = vadd.f32 %v1770_v40, %v1708_v18  ;;  %701 = vst [vmem:[%s3182_s6 + $0x90] sm:$0xff] %v2009_v13  ;;  %v2089_v0 = vpop.f32.mrb[16].mxu1  ;;  %v492_v12 = vpop.f32.mrb[17].mxu0  ;;  %v1639_v31 = vadd.f32 %v2086_v44, %v1638_v32  ;;  %v834_v3 = vmul.f32 %v2009_v13, %v2009_v13 }
 0x117   :  { %1579 = vst [vmem:[%s3183_s7 + $0x90] sm:$0xff] %v2089_v0  ;;  %699 = vst [vmem:[%s3182_s6 + $0x80] sm:$0xff] %v492_v12  ;;  %v762_v48 = vadd.f32 %v761_v34, %v492_v12  ;;  %v832_v52 = vmul.f32 %v492_v12, %v492_v12  ;;  %v894_v22 = vadd.f32 %v893_v5, %v831_v61  ;;  %v1370_v54 = vpop.f32.mrb[17].mxu1  ;;  %v2010_v55 = vpop.f32.mrb[18].mxu0 }
 0x118   :  { %1577 = vst [vmem:[%s3183_s7 + $0x80] sm:$0xff] %v1370_v54  ;;  %v1640_v10 = vadd.f32 %v1639_v31, %v1370_v54  ;;  %v1710_v23 = vmul.f32 %v1370_v54, %v1370_v54  ;;  %v1772_v56 = vadd.f32 %v1771_v58, %v1709_v47  ;;  %702 = vst [vmem:[%s3182_s6 + $0x98] sm:$0xff] %v2010_v55  ;;  %v2090_v57 = vpop.f32.mrb[18].mxu1  ;;  %v495_v59 = vpop.f32.mrb[19].mxu0 }
 0x119   :  { %v895_v60 = vadd.f32 %v894_v22, %v832_v52  ;;  %1580 = vst [vmem:[%s3183_s7 + $0x98] sm:$0xff] %v2090_v57  ;;  %700 = vst [vmem:[%s3182_s6 + $0x88] sm:$0xff] %v495_v59  ;;  %v763_v62 = vadd.f32 %v762_v48, %v495_v59  ;;  %v833_v63 = vmul.f32 %v495_v59, %v495_v59  ;;  %v1373_v21 = vpop.f32.mrb[19].mxu1 }
 0x11a   :  { %v1773_v37 = vadd.f32 %v1772_v56, %v1710_v23  ;;  %1578 = vst [vmem:[%s3183_s7 + $0x88] sm:$0xff] %v1373_v21  ;;  %v1641_v1 = vadd.f32 %v1640_v10, %v1373_v21  ;;  %v1711_v2 = vmul.f32 %v1373_v21, %v1373_v21  ;;  %v1712_v6 = vmul.f32 %v2089_v0, %v2089_v0 }
 0x11b   :  { %v764_v53 = vadd.f32 %v2009_v13, %v763_v62  ;;  %v896_v4 = vadd.f32 %v895_v60, %v833_v63  ;;  %v835_v9 = vmul.f32 %v2010_v55, %v2010_v55  ;;  %v1713_v20 = vmul.f32 %v2090_v57, %v2090_v57 }
 0x11c   :  { %v1642_v7 = vadd.f32 %v2089_v0, %v1641_v1  ;;  %v1774_v8 = vadd.f32 %v1773_v37, %v1711_v2 }
 0x11d   :  { %v897_v11 = vadd.f32 %v896_v4, %v834_v3  ;;  %v2013_v15 = vpop.f32.mrb[20].mxu0  ;;  %v765_v19 = vadd.f32 %v2010_v55, %v764_v53 }
 0x11e   :  { %v1775_v24 = vadd.f32 %v1774_v8, %v1712_v6  ;;  %705 = vst [vmem:[%s3182_s6 + $0xb0] sm:$0xff] %v2013_v15  ;;  %v2093_v25 = vpop.f32.mrb[20].mxu1  ;;  %v508_v26 = vpop.f32.mrb[21].mxu0  ;;  %v1643_v28 = vadd.f32 %v2090_v57, %v1642_v7  ;;  %v838_v41 = vmul.f32 %v2013_v15, %v2013_v15 }
 0x11f   :  { %1583 = vst [vmem:[%s3183_s7 + $0xb0] sm:$0xff] %v2093_v25  ;;  %703 = vst [vmem:[%s3182_s6 + $0xa0] sm:$0xff] %v508_v26  ;;  %v766_v29 = vadd.f32 %v765_v19, %v508_v26  ;;  %v836_v30 = vmul.f32 %v508_v26, %v508_v26  ;;  %v898_v35 = vadd.f32 %v897_v11, %v835_v9  ;;  %v1386_v36 = vpop.f32.mrb[21].mxu1  ;;  %v2014_v38 = vpop.f32.mrb[22].mxu0 }
 0x120   :  { %1581 = vst [vmem:[%s3183_s7 + $0xa0] sm:$0xff] %v1386_v36  ;;  %v1644_v39 = vadd.f32 %v1643_v28, %v1386_v36  ;;  %v1714_v42 = vmul.f32 %v1386_v36, %v1386_v36  ;;  %v1776_v43 = vadd.f32 %v1775_v24, %v1713_v20  ;;  %706 = vst [vmem:[%s3182_s6 + $0xb8] sm:$0xff] %v2014_v38  ;;  %v2094_v44 = vpop.f32.mrb[22].mxu1  ;;  %v511_v45 = vpop.f32.mrb[23].mxu0 }
 0x121   :  { %v899_v46 = vadd.f32 %v898_v35, %v836_v30  ;;  %1584 = vst [vmem:[%s3183_s7 + $0xb8] sm:$0xff] %v2094_v44  ;;  %704 = vst [vmem:[%s3182_s6 + $0xa8] sm:$0xff] %v511_v45  ;;  %v767_v14 = vadd.f32 %v766_v29, %v511_v45  ;;  %v837_v49 = vmul.f32 %v511_v45, %v511_v45  ;;  %v1389_v27 = vpop.f32.mrb[23].mxu1 }
 0x122   :  { %v1777_v33 = vadd.f32 %v1776_v43, %v1714_v42  ;;  %1582 = vst [vmem:[%s3183_s7 + $0xa8] sm:$0xff] %v1389_v27  ;;  %v1645_v50 = vadd.f32 %v1644_v39, %v1389_v27  ;;  %v1715_v51 = vmul.f32 %v1389_v27, %v1389_v27  ;;  %v1716_v18 = vmul.f32 %v2093_v25, %v2093_v25 }
 0x123   :  { %v768_v17 = vadd.f32 %v2013_v15, %v767_v14  ;;  %v900_v16 = vadd.f32 %v899_v46, %v837_v49  ;;  %v839_v61 = vmul.f32 %v2014_v38, %v2014_v38  ;;  %v1717_v47 = vmul.f32 %v2094_v44, %v2094_v44 }
 0x124   :  { %v1646_v32 = vadd.f32 %v2093_v25, %v1645_v50  ;;  %v1778_v40 = vadd.f32 %v1777_v33, %v1715_v51 }
 0x125   :  { %v901_v5 = vadd.f32 %v900_v16, %v838_v41  ;;  %v2017_v13 = vpop.f32.mrb[24].mxu0  ;;  %v769_v34 = vadd.f32 %v2014_v38, %v768_v17 }
 0x126   :  { %v1779_v58 = vadd.f32 %v1778_v40, %v1716_v18  ;;  %709 = vst [vmem:[%s3182_s6 + $0xd0] sm:$0xff] %v2017_v13  ;;  %v2097_v0 = vpop.f32.mrb[24].mxu1  ;;  %v524_v12 = vpop.f32.mrb[25].mxu0  ;;  %v1647_v31 = vadd.f32 %v2094_v44, %v1646_v32  ;;  %v842_v3 = vmul.f32 %v2017_v13, %v2017_v13 }
 0x127   :  { %1587 = vst [vmem:[%s3183_s7 + $0xd0] sm:$0xff] %v2097_v0  ;;  %707 = vst [vmem:[%s3182_s6 + $0xc0] sm:$0xff] %v524_v12  ;;  %v770_v48 = vadd.f32 %v769_v34, %v524_v12  ;;  %v840_v52 = vmul.f32 %v524_v12, %v524_v12  ;;  %v902_v22 = vadd.f32 %v901_v5, %v839_v61  ;;  %v1402_v54 = vpop.f32.mrb[25].mxu1  ;;  %v2018_v55 = vpop.f32.mrb[26].mxu0 }
 0x128   :  { %1585 = vst [vmem:[%s3183_s7 + $0xc0] sm:$0xff] %v1402_v54  ;;  %v1648_v10 = vadd.f32 %v1647_v31, %v1402_v54  ;;  %v1718_v23 = vmul.f32 %v1402_v54, %v1402_v54  ;;  %v1780_v56 = vadd.f32 %v1779_v58, %v1717_v47  ;;  %710 = vst [vmem:[%s3182_s6 + $0xd8] sm:$0xff] %v2018_v55  ;;  %v2098_v57 = vpop.f32.mrb[26].mxu1  ;;  %v527_v59 = vpop.f32.mrb[27].mxu0 }
 0x129   :  { %v903_v60 = vadd.f32 %v902_v22, %v840_v52  ;;  %1588 = vst [vmem:[%s3183_s7 + $0xd8] sm:$0xff] %v2098_v57  ;;  %708 = vst [vmem:[%s3182_s6 + $0xc8] sm:$0xff] %v527_v59  ;;  %v771_v62 = vadd.f32 %v770_v48, %v527_v59  ;;  %v841_v63 = vmul.f32 %v527_v59, %v527_v59  ;;  %v1405_v21 = vpop.f32.mrb[27].mxu1 }
 0x12a   :  { %v1781_v37 = vadd.f32 %v1780_v56, %v1718_v23  ;;  %1586 = vst [vmem:[%s3183_s7 + $0xc8] sm:$0xff] %v1405_v21  ;;  %v1649_v1 = vadd.f32 %v1648_v10, %v1405_v21  ;;  %v1719_v2 = vmul.f32 %v1405_v21, %v1405_v21  ;;  %v1720_v6 = vmul.f32 %v2097_v0, %v2097_v0 }
 0x12b   :  { %v772_v53 = vadd.f32 %v2017_v13, %v771_v62  ;;  %v904_v4 = vadd.f32 %v903_v60, %v841_v63  ;;  %v843_v9 = vmul.f32 %v2018_v55, %v2018_v55  ;;  %v1721_v20 = vmul.f32 %v2098_v57, %v2098_v57 }
 0x12c   :  { %v1650_v7 = vadd.f32 %v2097_v0, %v1649_v1  ;;  %v1782_v8 = vadd.f32 %v1781_v37, %v1719_v2 }
 0x12d   :  { %v905_v11 = vadd.f32 %v904_v4, %v842_v3  ;;  %v2021_v15 = vpop.f32.mrb[28].mxu0  ;;  %v773_v19 = vadd.f32 %v2018_v55, %v772_v53 }
 0x12e   :  { %v1783_v24 = vadd.f32 %v1782_v8, %v1720_v6  ;;  %713 = vst [vmem:[%s3182_s6 + $0xf0] sm:$0xff] %v2021_v15  ;;  %v2101_v25 = vpop.f32.mrb[28].mxu1  ;;  %v540_v26 = vpop.f32.mrb[29].mxu0  ;;  %v1651_v28 = vadd.f32 %v2098_v57, %v1650_v7  ;;  %v846_v41 = vmul.f32 %v2021_v15, %v2021_v15 }
 0x12f   :  { %1591 = vst [vmem:[%s3183_s7 + $0xf0] sm:$0xff] %v2101_v25  ;;  %711 = vst [vmem:[%s3182_s6 + $0xe0] sm:$0xff] %v540_v26  ;;  %v774_v29 = vadd.f32 %v773_v19, %v540_v26  ;;  %v844_v30 = vmul.f32 %v540_v26, %v540_v26  ;;  %v906_v35 = vadd.f32 %v905_v11, %v843_v9  ;;  %v1418_v36 = vpop.f32.mrb[29].mxu1  ;;  %v2022_v38 = vpop.f32.mrb[30].mxu0 }
 0x130   :  { %1589 = vst [vmem:[%s3183_s7 + $0xe0] sm:$0xff] %v1418_v36  ;;  %v1652_v39 = vadd.f32 %v1651_v28, %v1418_v36  ;;  %v1722_v42 = vmul.f32 %v1418_v36, %v1418_v36  ;;  %v1784_v43 = vadd.f32 %v1783_v24, %v1721_v20  ;;  %714 = vst [vmem:[%s3182_s6 + $0xf8] sm:$0xff] %v2022_v38  ;;  %v2102_v44 = vpop.f32.mrb[30].mxu1  ;;  %v543_v45 = vpop.f32.mrb[31].mxu0 }
 0x131   :  { %v907_v46 = vadd.f32 %v906_v35, %v844_v30  ;;  %1592 = vst [vmem:[%s3183_s7 + $0xf8] sm:$0xff] %v2102_v44  ;;  %712 = vst [vmem:[%s3182_s6 + $0xe8] sm:$0xff] %v543_v45  ;;  %v775_v14 = vadd.f32 %v774_v29, %v543_v45  ;;  %v845_v49 = vmul.f32 %v543_v45, %v543_v45  ;;  %v1421_v27 = vpop.f32.mrb[31].mxu1 }
 0x132   :  { %v1785_v33 = vadd.f32 %v1784_v43, %v1722_v42  ;;  %1590 = vst [vmem:[%s3183_s7 + $0xe8] sm:$0xff] %v1421_v27  ;;  %v1653_v50 = vadd.f32 %v1652_v39, %v1421_v27  ;;  %v1723_v51 = vmul.f32 %v1421_v27, %v1421_v27  ;;  %v1724_v18 = vmul.f32 %v2101_v25, %v2101_v25 }
 0x133   :  { %v776_v17 = vadd.f32 %v2021_v15, %v775_v14  ;;  %v908_v16 = vadd.f32 %v907_v46, %v845_v49  ;;  %v847_v61 = vmul.f32 %v2022_v38, %v2022_v38  ;;  %v1725_v47 = vmul.f32 %v2102_v44, %v2102_v44 }
 0x134   :  { %v1654_v32 = vadd.f32 %v2101_v25, %v1653_v50  ;;  %v1786_v40 = vadd.f32 %v1785_v33, %v1723_v51 }
 0x135   :  { %v909_v5 = vadd.f32 %v908_v16, %v846_v41  ;;  %v2025_v13 = vpop.f32.mrb[32].mxu0  ;;  %v777_v34 = vadd.f32 %v2022_v38, %v776_v17 }
 0x136   :  { %v1787_v58 = vadd.f32 %v1786_v40, %v1724_v18  ;;  %717 = vst [vmem:[%s3182_s6 + $0x110] sm:$0xff] %v2025_v13  ;;  %v2105_v0 = vpop.f32.mrb[32].mxu1  ;;  %v556_v12 = vpop.f32.mrb[33].mxu0  ;;  %v1655_v31 = vadd.f32 %v2102_v44, %v1654_v32  ;;  %v850_v3 = vmul.f32 %v2025_v13, %v2025_v13 }
 0x137   :  { %1595 = vst [vmem:[%s3183_s7 + $0x110] sm:$0xff] %v2105_v0  ;;  %715 = vst [vmem:[%s3182_s6 + $0x100] sm:$0xff] %v556_v12  ;;  %v778_v48 = vadd.f32 %v777_v34, %v556_v12  ;;  %v848_v52 = vmul.f32 %v556_v12, %v556_v12  ;;  %v910_v22 = vadd.f32 %v909_v5, %v847_v61  ;;  %v1434_v54 = vpop.f32.mrb[33].mxu1  ;;  %v2026_v55 = vpop.f32.mrb[34].mxu0 }
 0x138   :  { %1593 = vst [vmem:[%s3183_s7 + $0x100] sm:$0xff] %v1434_v54  ;;  %v1656_v10 = vadd.f32 %v1655_v31, %v1434_v54  ;;  %v1726_v23 = vmul.f32 %v1434_v54, %v1434_v54  ;;  %v1788_v56 = vadd.f32 %v1787_v58, %v1725_v47  ;;  %718 = vst [vmem:[%s3182_s6 + $0x118] sm:$0xff] %v2026_v55  ;;  %v2106_v57 = vpop.f32.mrb[34].mxu1  ;;  %v559_v59 = vpop.f32.mrb[35].mxu0 }
 0x139   :  { %v911_v60 = vadd.f32 %v910_v22, %v848_v52  ;;  %1596 = vst [vmem:[%s3183_s7 + $0x118] sm:$0xff] %v2106_v57  ;;  %716 = vst [vmem:[%s3182_s6 + $0x108] sm:$0xff] %v559_v59  ;;  %v779_v62 = vadd.f32 %v778_v48, %v559_v59  ;;  %v849_v63 = vmul.f32 %v559_v59, %v559_v59  ;;  %v1437_v21 = vpop.f32.mrb[35].mxu1 }
 0x13a   :  { %v1789_v37 = vadd.f32 %v1788_v56, %v1726_v23  ;;  %1594 = vst [vmem:[%s3183_s7 + $0x108] sm:$0xff] %v1437_v21  ;;  %v1657_v1 = vadd.f32 %v1656_v10, %v1437_v21  ;;  %v1727_v2 = vmul.f32 %v1437_v21, %v1437_v21  ;;  %v1728_v6 = vmul.f32 %v2105_v0, %v2105_v0 }
 0x13b   :  { %v780_v53 = vadd.f32 %v2025_v13, %v779_v62  ;;  %v912_v4 = vadd.f32 %v911_v60, %v849_v63  ;;  %v851_v9 = vmul.f32 %v2026_v55, %v2026_v55  ;;  %v1729_v20 = vmul.f32 %v2106_v57, %v2106_v57 }
 0x13c   :  { %v1658_v7 = vadd.f32 %v2105_v0, %v1657_v1  ;;  %v1790_v8 = vadd.f32 %v1789_v37, %v1727_v2 }
 0x13d   :  { %v913_v11 = vadd.f32 %v912_v4, %v850_v3  ;;  %v2029_v15 = vpop.f32.mrb[36].mxu0  ;;  %v781_v19 = vadd.f32 %v2026_v55, %v780_v53 }
 0x13e   :  { %v1791_v24 = vadd.f32 %v1790_v8, %v1728_v6  ;;  %721 = vst [vmem:[%s3182_s6 + $0x130] sm:$0xff] %v2029_v15  ;;  %v2109_v25 = vpop.f32.mrb[36].mxu1  ;;  %v572_v26 = vpop.f32.mrb[37].mxu0  ;;  %v1659_v28 = vadd.f32 %v2106_v57, %v1658_v7  ;;  %v854_v41 = vmul.f32 %v2029_v15, %v2029_v15 }
 0x13f   :  { %1599 = vst [vmem:[%s3183_s7 + $0x130] sm:$0xff] %v2109_v25  ;;  %719 = vst [vmem:[%s3182_s6 + $0x120] sm:$0xff] %v572_v26  ;;  %v782_v29 = vadd.f32 %v781_v19, %v572_v26  ;;  %v852_v30 = vmul.f32 %v572_v26, %v572_v26  ;;  %v914_v35 = vadd.f32 %v913_v11, %v851_v9  ;;  %v1450_v36 = vpop.f32.mrb[37].mxu1  ;;  %v2030_v38 = vpop.f32.mrb[38].mxu0 }
 0x140   :  { %1597 = vst [vmem:[%s3183_s7 + $0x120] sm:$0xff] %v1450_v36  ;;  %v1660_v39 = vadd.f32 %v1659_v28, %v1450_v36  ;;  %v1730_v42 = vmul.f32 %v1450_v36, %v1450_v36  ;;  %v1792_v43 = vadd.f32 %v1791_v24, %v1729_v20  ;;  %722 = vst [vmem:[%s3182_s6 + $0x138] sm:$0xff] %v2030_v38  ;;  %v2110_v44 = vpop.f32.mrb[38].mxu1  ;;  %v575_v45 = vpop.f32.mrb[39].mxu0 }
 0x141   :  { %v915_v46 = vadd.f32 %v914_v35, %v852_v30  ;;  %1600 = vst [vmem:[%s3183_s7 + $0x138] sm:$0xff] %v2110_v44  ;;  %720 = vst [vmem:[%s3182_s6 + $0x128] sm:$0xff] %v575_v45  ;;  %v783_v14 = vadd.f32 %v782_v29, %v575_v45  ;;  %v853_v49 = vmul.f32 %v575_v45, %v575_v45  ;;  %v1453_v27 = vpop.f32.mrb[39].mxu1 }
 0x142   :  { %v1793_v33 = vadd.f32 %v1792_v43, %v1730_v42  ;;  %1598 = vst [vmem:[%s3183_s7 + $0x128] sm:$0xff] %v1453_v27  ;;  %v1661_v50 = vadd.f32 %v1660_v39, %v1453_v27  ;;  %v1731_v51 = vmul.f32 %v1453_v27, %v1453_v27  ;;  %v1732_v18 = vmul.f32 %v2109_v25, %v2109_v25 }
 0x143   :  { %v784_v17 = vadd.f32 %v2029_v15, %v783_v14  ;;  %v916_v16 = vadd.f32 %v915_v46, %v853_v49  ;;  %v855_v61 = vmul.f32 %v2030_v38, %v2030_v38  ;;  %v1733_v47 = vmul.f32 %v2110_v44, %v2110_v44 }
 0x144   :  { %v1662_v32 = vadd.f32 %v2109_v25, %v1661_v50  ;;  %v1794_v40 = vadd.f32 %v1793_v33, %v1731_v51 }
 0x145   :  { %v917_v5 = vadd.f32 %v916_v16, %v854_v41  ;;  %v2033_v13 = vpop.f32.mrb[40].mxu0  ;;  %v785_v34 = vadd.f32 %v2030_v38, %v784_v17 }
 0x146   :  { %v1795_v58 = vadd.f32 %v1794_v40, %v1732_v18  ;;  %725 = vst [vmem:[%s3182_s6 + $0x150] sm:$0xff] %v2033_v13  ;;  %v2113_v0 = vpop.f32.mrb[40].mxu1  ;;  %v588_v12 = vpop.f32.mrb[41].mxu0  ;;  %v1663_v31 = vadd.f32 %v2110_v44, %v1662_v32  ;;  %v858_v3 = vmul.f32 %v2033_v13, %v2033_v13 }
 0x147   :  { %1603 = vst [vmem:[%s3183_s7 + $0x150] sm:$0xff] %v2113_v0  ;;  %723 = vst [vmem:[%s3182_s6 + $0x140] sm:$0xff] %v588_v12  ;;  %v786_v48 = vadd.f32 %v785_v34, %v588_v12  ;;  %v856_v52 = vmul.f32 %v588_v12, %v588_v12  ;;  %v918_v22 = vadd.f32 %v917_v5, %v855_v61  ;;  %v1466_v54 = vpop.f32.mrb[41].mxu1  ;;  %v2034_v55 = vpop.f32.mrb[42].mxu0 }
 0x148   :  { %1601 = vst [vmem:[%s3183_s7 + $0x140] sm:$0xff] %v1466_v54  ;;  %v1664_v10 = vadd.f32 %v1663_v31, %v1466_v54  ;;  %v1734_v23 = vmul.f32 %v1466_v54, %v1466_v54  ;;  %v1796_v56 = vadd.f32 %v1795_v58, %v1733_v47  ;;  %726 = vst [vmem:[%s3182_s6 + $0x158] sm:$0xff] %v2034_v55  ;;  %v2114_v57 = vpop.f32.mrb[42].mxu1  ;;  %v591_v59 = vpop.f32.mrb[43].mxu0 }
 0x149   :  { %v919_v60 = vadd.f32 %v918_v22, %v856_v52  ;;  %1604 = vst [vmem:[%s3183_s7 + $0x158] sm:$0xff] %v2114_v57  ;;  %724 = vst [vmem:[%s3182_s6 + $0x148] sm:$0xff] %v591_v59  ;;  %v787_v62 = vadd.f32 %v786_v48, %v591_v59  ;;  %v857_v63 = vmul.f32 %v591_v59, %v591_v59  ;;  %v1469_v21 = vpop.f32.mrb[43].mxu1 }
 0x14a   :  { %v1797_v37 = vadd.f32 %v1796_v56, %v1734_v23  ;;  %1602 = vst [vmem:[%s3183_s7 + $0x148] sm:$0xff] %v1469_v21  ;;  %v1665_v1 = vadd.f32 %v1664_v10, %v1469_v21  ;;  %v1735_v2 = vmul.f32 %v1469_v21, %v1469_v21  ;;  %v1736_v6 = vmul.f32 %v2113_v0, %v2113_v0 }
 0x14b   :  { %v788_v53 = vadd.f32 %v2033_v13, %v787_v62  ;;  %v920_v4 = vadd.f32 %v919_v60, %v857_v63  ;;  %v859_v9 = vmul.f32 %v2034_v55, %v2034_v55  ;;  %v1737_v20 = vmul.f32 %v2114_v57, %v2114_v57 }
 0x14c   :  { %v1666_v7 = vadd.f32 %v2113_v0, %v1665_v1  ;;  %v1798_v8 = vadd.f32 %v1797_v37, %v1735_v2 }
 0x14d   :  { %v921_v11 = vadd.f32 %v920_v4, %v858_v3  ;;  %v2037_v15 = vpop.f32.mrb[44].mxu0  ;;  %v789_v19 = vadd.f32 %v2034_v55, %v788_v53 }
 0x14e   :  { %v1799_v24 = vadd.f32 %v1798_v8, %v1736_v6  ;;  %729 = vst [vmem:[%s3182_s6 + $0x170] sm:$0xff] %v2037_v15  ;;  %v2117_v25 = vpop.f32.mrb[44].mxu1  ;;  %v604_v26 = vpop.f32.mrb[45].mxu0  ;;  %v1667_v28 = vadd.f32 %v2114_v57, %v1666_v7  ;;  %v862_v41 = vmul.f32 %v2037_v15, %v2037_v15 }
 0x14f   :  { %1607 = vst [vmem:[%s3183_s7 + $0x170] sm:$0xff] %v2117_v25  ;;  %727 = vst [vmem:[%s3182_s6 + $0x160] sm:$0xff] %v604_v26  ;;  %v790_v29 = vadd.f32 %v789_v19, %v604_v26  ;;  %v860_v30 = vmul.f32 %v604_v26, %v604_v26  ;;  %v922_v35 = vadd.f32 %v921_v11, %v859_v9  ;;  %v1482_v36 = vpop.f32.mrb[45].mxu1  ;;  %v2038_v38 = vpop.f32.mrb[46].mxu0 }
 0x150   :  { %1605 = vst [vmem:[%s3183_s7 + $0x160] sm:$0xff] %v1482_v36  ;;  %v1668_v39 = vadd.f32 %v1667_v28, %v1482_v36  ;;  %v1738_v42 = vmul.f32 %v1482_v36, %v1482_v36  ;;  %v1800_v43 = vadd.f32 %v1799_v24, %v1737_v20  ;;  %730 = vst [vmem:[%s3182_s6 + $0x178] sm:$0xff] %v2038_v38  ;;  %v2118_v44 = vpop.f32.mrb[46].mxu1  ;;  %v607_v45 = vpop.f32.mrb[47].mxu0 }
 0x151   :  { %v923_v46 = vadd.f32 %v922_v35, %v860_v30  ;;  %1608 = vst [vmem:[%s3183_s7 + $0x178] sm:$0xff] %v2118_v44  ;;  %728 = vst [vmem:[%s3182_s6 + $0x168] sm:$0xff] %v607_v45  ;;  %v791_v14 = vadd.f32 %v790_v29, %v607_v45  ;;  %v861_v49 = vmul.f32 %v607_v45, %v607_v45  ;;  %v1485_v27 = vpop.f32.mrb[47].mxu1 }
 0x152   :  { %v1801_v33 = vadd.f32 %v1800_v43, %v1738_v42  ;;  %1606 = vst [vmem:[%s3183_s7 + $0x168] sm:$0xff] %v1485_v27  ;;  %v1669_v50 = vadd.f32 %v1668_v39, %v1485_v27  ;;  %v1739_v51 = vmul.f32 %v1485_v27, %v1485_v27  ;;  %v1740_v18 = vmul.f32 %v2117_v25, %v2117_v25 }
 0x153   :  { %v792_v17 = vadd.f32 %v2037_v15, %v791_v14  ;;  %v924_v16 = vadd.f32 %v923_v46, %v861_v49  ;;  %v863_v61 = vmul.f32 %v2038_v38, %v2038_v38  ;;  %v1741_v47 = vmul.f32 %v2118_v44, %v2118_v44 }
 0x154   :  { %v1670_v32 = vadd.f32 %v2117_v25, %v1669_v50  ;;  %v1802_v40 = vadd.f32 %v1801_v33, %v1739_v51 }
 0x155   :  { %v925_v5 = vadd.f32 %v924_v16, %v862_v41  ;;  %v2041_v13 = vpop.f32.mrb[48].mxu0  ;;  %v793_v34 = vadd.f32 %v2038_v38, %v792_v17 }
 0x156   :  { %v1803_v58 = vadd.f32 %v1802_v40, %v1740_v18  ;;  %733 = vst [vmem:[%s3182_s6 + $0x190] sm:$0xff] %v2041_v13  ;;  %v2121_v0 = vpop.f32.mrb[48].mxu1  ;;  %v620_v12 = vpop.f32.mrb[49].mxu0  ;;  %v1671_v31 = vadd.f32 %v2118_v44, %v1670_v32  ;;  %v866_v3 = vmul.f32 %v2041_v13, %v2041_v13 }
 0x157   :  { %1611 = vst [vmem:[%s3183_s7 + $0x190] sm:$0xff] %v2121_v0  ;;  %731 = vst [vmem:[%s3182_s6 + $0x180] sm:$0xff] %v620_v12  ;;  %v794_v48 = vadd.f32 %v793_v34, %v620_v12  ;;  %v864_v52 = vmul.f32 %v620_v12, %v620_v12  ;;  %v926_v22 = vadd.f32 %v925_v5, %v863_v61  ;;  %v1498_v54 = vpop.f32.mrb[49].mxu1  ;;  %v2042_v55 = vpop.f32.mrb[50].mxu0 }
 0x158   :  { %1609 = vst [vmem:[%s3183_s7 + $0x180] sm:$0xff] %v1498_v54  ;;  %v1672_v10 = vadd.f32 %v1671_v31, %v1498_v54  ;;  %v1742_v23 = vmul.f32 %v1498_v54, %v1498_v54  ;;  %v1804_v56 = vadd.f32 %v1803_v58, %v1741_v47  ;;  %734 = vst [vmem:[%s3182_s6 + $0x198] sm:$0xff] %v2042_v55  ;;  %v2122_v57 = vpop.f32.mrb[50].mxu1  ;;  %v623_v59 = vpop.f32.mrb[51].mxu0 }
 0x159   :  { %v927_v60 = vadd.f32 %v926_v22, %v864_v52  ;;  %1612 = vst [vmem:[%s3183_s7 + $0x198] sm:$0xff] %v2122_v57  ;;  %732 = vst [vmem:[%s3182_s6 + $0x188] sm:$0xff] %v623_v59  ;;  %v795_v62 = vadd.f32 %v794_v48, %v623_v59  ;;  %v865_v63 = vmul.f32 %v623_v59, %v623_v59  ;;  %v1501_v21 = vpop.f32.mrb[51].mxu1 }
 0x15a   :  { %v1805_v37 = vadd.f32 %v1804_v56, %v1742_v23  ;;  %1610 = vst [vmem:[%s3183_s7 + $0x188] sm:$0xff] %v1501_v21  ;;  %v1673_v1 = vadd.f32 %v1672_v10, %v1501_v21  ;;  %v1743_v2 = vmul.f32 %v1501_v21, %v1501_v21  ;;  %v1744_v6 = vmul.f32 %v2121_v0, %v2121_v0 }
 0x15b   :  { %v796_v53 = vadd.f32 %v2041_v13, %v795_v62  ;;  %v928_v4 = vadd.f32 %v927_v60, %v865_v63  ;;  %v867_v9 = vmul.f32 %v2042_v55, %v2042_v55  ;;  %v1745_v20 = vmul.f32 %v2122_v57, %v2122_v57 }
 0x15c   :  { %v1674_v7 = vadd.f32 %v2121_v0, %v1673_v1  ;;  %v1806_v8 = vadd.f32 %v1805_v37, %v1743_v2 }
 0x15d   :  { %v929_v11 = vadd.f32 %v928_v4, %v866_v3  ;;  %v2045_v15 = vpop.f32.mrb[52].mxu0  ;;  %v797_v19 = vadd.f32 %v2042_v55, %v796_v53 }
 0x15e   :  { %v1807_v24 = vadd.f32 %v1806_v8, %v1744_v6  ;;  %737 = vst [vmem:[%s3182_s6 + $0x1b0] sm:$0xff] %v2045_v15  ;;  %v2125_v25 = vpop.f32.mrb[52].mxu1  ;;  %v636_v26 = vpop.f32.mrb[53].mxu0  ;;  %v1675_v28 = vadd.f32 %v2122_v57, %v1674_v7  ;;  %v870_v41 = vmul.f32 %v2045_v15, %v2045_v15 }
 0x15f   :  { %1615 = vst [vmem:[%s3183_s7 + $0x1b0] sm:$0xff] %v2125_v25  ;;  %735 = vst [vmem:[%s3182_s6 + $0x1a0] sm:$0xff] %v636_v26  ;;  %v798_v29 = vadd.f32 %v797_v19, %v636_v26  ;;  %v868_v30 = vmul.f32 %v636_v26, %v636_v26  ;;  %v930_v35 = vadd.f32 %v929_v11, %v867_v9  ;;  %v1514_v36 = vpop.f32.mrb[53].mxu1  ;;  %v2046_v38 = vpop.f32.mrb[54].mxu0 }
 0x160   :  { %1613 = vst [vmem:[%s3183_s7 + $0x1a0] sm:$0xff] %v1514_v36  ;;  %v1676_v39 = vadd.f32 %v1675_v28, %v1514_v36  ;;  %v1746_v42 = vmul.f32 %v1514_v36, %v1514_v36  ;;  %v1808_v43 = vadd.f32 %v1807_v24, %v1745_v20  ;;  %738 = vst [vmem:[%s3182_s6 + $0x1b8] sm:$0xff] %v2046_v38  ;;  %v2126_v44 = vpop.f32.mrb[54].mxu1  ;;  %v639_v45 = vpop.f32.mrb[55].mxu0 }
 0x161   :  { %v931_v46 = vadd.f32 %v930_v35, %v868_v30  ;;  %1616 = vst [vmem:[%s3183_s7 + $0x1b8] sm:$0xff] %v2126_v44  ;;  %736 = vst [vmem:[%s3182_s6 + $0x1a8] sm:$0xff] %v639_v45  ;;  %v799_v14 = vadd.f32 %v798_v29, %v639_v45  ;;  %v869_v49 = vmul.f32 %v639_v45, %v639_v45  ;;  %v1517_v27 = vpop.f32.mrb[55].mxu1 }
 0x162   :  { %v1809_v33 = vadd.f32 %v1808_v43, %v1746_v42  ;;  %1614 = vst [vmem:[%s3183_s7 + $0x1a8] sm:$0xff] %v1517_v27  ;;  %v1677_v50 = vadd.f32 %v1676_v39, %v1517_v27  ;;  %v1747_v51 = vmul.f32 %v1517_v27, %v1517_v27  ;;  %v1748_v18 = vmul.f32 %v2125_v25, %v2125_v25 }
 0x163   :  { %v800_v17 = vadd.f32 %v2045_v15, %v799_v14  ;;  %v932_v16 = vadd.f32 %v931_v46, %v869_v49  ;;  %v871_v61 = vmul.f32 %v2046_v38, %v2046_v38  ;;  %v1749_v47 = vmul.f32 %v2126_v44, %v2126_v44 }
 0x164   :  { %v1678_v32 = vadd.f32 %v2125_v25, %v1677_v50  ;;  %v1810_v40 = vadd.f32 %v1809_v33, %v1747_v51 }
 0x165   :  { %v933_v5 = vadd.f32 %v932_v16, %v870_v41  ;;  %v2049_v13 = vpop.f32.mrb[56].mxu0  ;;  %v801_v34 = vadd.f32 %v2046_v38, %v800_v17 }
 0x166   :  { %v1811_v58 = vadd.f32 %v1810_v40, %v1748_v18  ;;  %741 = vst [vmem:[%s3182_s6 + $0x1d0] sm:$0xff] %v2049_v13  ;;  %v2129_v0 = vpop.f32.mrb[56].mxu1  ;;  %v652_v12 = vpop.f32.mrb[57].mxu0  ;;  %v1679_v31 = vadd.f32 %v2126_v44, %v1678_v32  ;;  %v874_v3 = vmul.f32 %v2049_v13, %v2049_v13 }
 0x167   :  { %1619 = vst [vmem:[%s3183_s7 + $0x1d0] sm:$0xff] %v2129_v0  ;;  %739 = vst [vmem:[%s3182_s6 + $0x1c0] sm:$0xff] %v652_v12  ;;  %v802_v48 = vadd.f32 %v801_v34, %v652_v12  ;;  %v872_v52 = vmul.f32 %v652_v12, %v652_v12  ;;  %v934_v22 = vadd.f32 %v933_v5, %v871_v61  ;;  %v1530_v54 = vpop.f32.mrb[57].mxu1  ;;  %v2050_v55 = vpop.f32.mrb[58].mxu0 }
 0x168   :  { %1617 = vst [vmem:[%s3183_s7 + $0x1c0] sm:$0xff] %v1530_v54  ;;  %v1680_v10 = vadd.f32 %v1679_v31, %v1530_v54  ;;  %v1750_v23 = vmul.f32 %v1530_v54, %v1530_v54  ;;  %v1812_v56 = vadd.f32 %v1811_v58, %v1749_v47  ;;  %742 = vst [vmem:[%s3182_s6 + $0x1d8] sm:$0xff] %v2050_v55  ;;  %v2130_v57 = vpop.f32.mrb[58].mxu1  ;;  %v655_v59 = vpop.f32.mrb[59].mxu0 }
 0x169   :  { %v935_v60 = vadd.f32 %v934_v22, %v872_v52  ;;  %1620 = vst [vmem:[%s3183_s7 + $0x1d8] sm:$0xff] %v2130_v57  ;;  %740 = vst [vmem:[%s3182_s6 + $0x1c8] sm:$0xff] %v655_v59  ;;  %v803_v62 = vadd.f32 %v802_v48, %v655_v59  ;;  %v873_v63 = vmul.f32 %v655_v59, %v655_v59  ;;  %v1533_v21 = vpop.f32.mrb[59].mxu1 }
 0x16a   :  { %v1813_v37 = vadd.f32 %v1812_v56, %v1750_v23  ;;  %1618 = vst [vmem:[%s3183_s7 + $0x1c8] sm:$0xff] %v1533_v21  ;;  %v1681_v1 = vadd.f32 %v1680_v10, %v1533_v21  ;;  %v1751_v2 = vmul.f32 %v1533_v21, %v1533_v21  ;;  %v1752_v6 = vmul.f32 %v2129_v0, %v2129_v0 }
 0x16b   :  { %v804_v53 = vadd.f32 %v2049_v13, %v803_v62  ;;  %v936_v4 = vadd.f32 %v935_v60, %v873_v63  ;;  %v875_v9 = vmul.f32 %v2050_v55, %v2050_v55  ;;  %v1753_v20 = vmul.f32 %v2130_v57, %v2130_v57 }
 0x16c   :  { %v1682_v7 = vadd.f32 %v2129_v0, %v1681_v1  ;;  %v1814_v8 = vadd.f32 %v1813_v37, %v1751_v2 }
 0x16d   :  { %v937_v11 = vadd.f32 %v936_v4, %v874_v3  ;;  %v2053_v15 = vpop.f32.mrb[60].mxu0  ;;  %v805_v19 = vadd.f32 %v2050_v55, %v804_v53 }
 0x16e   :  { %v1815_v24 = vadd.f32 %v1814_v8, %v1752_v6  ;;  %745 = vst [vmem:[%s3182_s6 + $0x1f0] sm:$0xff] %v2053_v15  ;;  %v2133_v25 = vpop.f32.mrb[60].mxu1  ;;  %v668_v26 = vpop.f32.mrb[61].mxu0  ;;  %v1683_v28 = vadd.f32 %v2130_v57, %v1682_v7  ;;  %v878_v41 = vmul.f32 %v2053_v15, %v2053_v15 }
 0x16f   :  { %1623 = vst [vmem:[%s3183_s7 + $0x1f0] sm:$0xff] %v2133_v25  ;;  %743 = vst [vmem:[%s3182_s6 + $0x1e0] sm:$0xff] %v668_v26  ;;  %v806_v29 = vadd.f32 %v805_v19, %v668_v26  ;;  %v876_v30 = vmul.f32 %v668_v26, %v668_v26  ;;  %v938_v35 = vadd.f32 %v937_v11, %v875_v9  ;;  %v1546_v36 = vpop.f32.mrb[61].mxu1  ;;  %v2054_v38 = vpop.f32.mrb[62].mxu0 }
 0x170   :  { %1621 = vst [vmem:[%s3183_s7 + $0x1e0] sm:$0xff] %v1546_v36  ;;  %v1684_v39 = vadd.f32 %v1683_v28, %v1546_v36  ;;  %v1754_v42 = vmul.f32 %v1546_v36, %v1546_v36  ;;  %v1816_v43 = vadd.f32 %v1815_v24, %v1753_v20  ;;  %746 = vst [vmem:[%s3182_s6 + $0x1f8] sm:$0xff] %v2054_v38  ;;  %v2134_v44 = vpop.f32.mrb[62].mxu1  ;;  %v671_v45 = vpop.f32.mrb[63].mxu0 }
 0x171   :  { %v939_v46 = vadd.f32 %v938_v35, %v876_v30  ;;  %1624 = vst [vmem:[%s3183_s7 + $0x1f8] sm:$0xff] %v2134_v44  ;;  %744 = vst [vmem:[%s3182_s6 + $0x1e8] sm:$0xff] %v671_v45  ;;  %v807_v14 = vadd.f32 %v806_v29, %v671_v45  ;;  %v877_v49 = vmul.f32 %v671_v45, %v671_v45  ;;  %v1549_v27 = vpop.f32.mrb[63].mxu1 }
 0x172   :  { %v1817_v33 = vadd.f32 %v1816_v43, %v1754_v42  ;;  %1622 = vst [vmem:[%s3183_s7 + $0x1e8] sm:$0xff] %v1549_v27  ;;  %v1685_v50 = vadd.f32 %v1684_v39, %v1549_v27  ;;  %v1755_v51 = vmul.f32 %v1549_v27, %v1549_v27  ;;  %v1756_v18 = vmul.f32 %v2133_v25, %v2133_v25 }
 0x173   :  { %v808_v17 = vadd.f32 %v2053_v15, %v807_v14  ;;  %v940_v16 = vadd.f32 %v939_v46, %v877_v49  ;;  %v879_v61 = vmul.f32 %v2054_v38, %v2054_v38  ;;  %v1757_v34 = vmul.f32 %v2134_v44, %v2134_v44 }
 0x174   :  { %v1686_v32 = vadd.f32 %v2133_v25, %v1685_v50  ;;  %v1818_v40 = vadd.f32 %v1817_v33, %v1755_v51 }
 0x175   :  { %v809_v5 = vadd.f32 %v2054_v38, %v808_v17  ;;  %v941_v13 = vadd.f32 %v940_v16, %v878_v41 }
 0x176   :  { %v1687_v47 = vadd.f32 %v2134_v44, %v1686_v32  ;;  %v1819_v58 = vadd.f32 %v1818_v40, %v1756_v18 }
 0x177   :  { %v810_v0 = vrot.slane %v809_v5, 4  ;;  %v942_v12 = vadd.f32 %v941_v13, %v879_v61 }
 0x178   :  { %v1688_v31 = vrot.slane %v1687_v47, 4  ;;  %v1820_v48 = vadd.f32 %v1819_v58, %v1757_v34 }
 0x179   :  { %v811_v52 = vadd.f32 %v810_v0, %v809_v5  ;;  %v943_v22 = vrot.slane %v942_v12, 4 }
 0x17a   :  { %v1689_v54 = vadd.f32 %v1688_v31, %v1687_v47  ;;  %v1821_v55 = vrot.slane %v1820_v48, 4 }
 0x17b   :  { %v812_v10 = vrot.slane %v811_v52, 2  ;;  %v944_v23 = vadd.f32 %v943_v22, %v942_v12 }
 0x17c   :  { %v1690_v56 = vrot.slane %v1689_v54, 2  ;;  %v1822_v57 = vadd.f32 %v1821_v55, %v1820_v48 }
 0x17d   :  { %v813_v59 = vadd.f32 %v812_v10, %v811_v52  ;;  %v945_v60 = vrot.slane %v944_v23, 2 }
 0x17e   :  { %v1691_v62 = vadd.f32 %v1690_v56, %v1689_v54  ;;  %v1823_v63 = vrot.slane %v1822_v57, 2 }
 0x17f   :  { %v814_v21 = vrot.slane %v813_v59, 1  ;;  %v946_v37 = vadd.f32 %v945_v60, %v944_v23 }
 0x180   :  { %v1692_v1 = vrot.slane %v1691_v62, 1  ;;  %v1824_v2 = vadd.f32 %v1823_v63, %v1822_v57 }
 0x181   :  { %v947_v3 = vrot.slane %v946_v37, 1  ;;  %v815_v4 = vadd.f32 %v814_v21, %v813_v59 }
 0x182   :  { %v1825_v53 = vrot.slane %v1824_v2, 1  ;;  %v1693_v7 = vadd.f32 %v1692_v1, %v1691_v62 }
 0x183   :  { %v948_v6 = vadd.f32 %v947_v3, %v946_v37 }
 0x184   :  { %v1826_v8 = vadd.f32 %v1825_v53, %v1824_v2 }
 0x185   :  { %v950_v9 = vsel %vm949_vm0, %v815_v4, %v948_v6 }
 0x186   :  { %951 = vst [vmem:[%s3184_s8] sm:$0x3] %v950_v9  ;;  %v1827_v11 = vsel %vm949_vm0, %v1693_v7, %v1826_v8 }
 0x187   :  { %1828 = vst [vmem:[%s3185_s9] sm:$0x3] %v1827_v11 }

// kernel: bottleneck_forward.7
= control target key start
LH: loop header
LB: loop body
LE: loop exit
PB: predicated region body
PF: predicated region fallthrough
CT: control target
= control target key end

     0   :  { %s7812_s12 = smov 0   ;;  %s8961_s0 = inlined_call_operand.vmem [shape: bf16[2,18,18,128], index: 0, kind: input, shape index: {}]   ;;  %s8962_s1 = inlined_call_operand.vmem [shape: bf16[3,3,128,128], index: 1, kind: input, shape index: {}]   ;;  %s8963_s2 = inlined_call_operand.vmem [shape: f32[2,16,16,128], index: 2, kind: output, shape index: {0}]   ;;  %s8964_s3 = inlined_call_operand.vmem [shape: f32[2,2,128], index: 3, kind: output, shape index: {1}]  }
   0x1 LB: > { %s6067_s13 = sadd.s32 4294967295, %s7790_s12   ;;  %p6071_p0 = scmp.ge.s32.totalorder %s7790_s12, 1  ;;  %s7790_s12 = sphi %s7812_s12, %s14_s12  }
   0x2   : > { %p140_p1 = scmp.lt.s32.totalorder %s7790_s12, 3 }
   0x4   : > { %p141_p2 = pnand %p6071_p0, %p140_p1 }
   0x5   : > { %v7656_v0 = vld [vmem:[%s8962_s1] sm:$0xff] (!%p141_p2)   ;;  %v7658_v2 = vld [vmem:[%s8962_s1 + $0x8] sm:$0xff] (!%p141_p2)   ;;  %p168_p3 = scmp.lt.s32.totalorder (!%p141_p2), %s6067_s13, 1  ;;  %v7660_v4 = vld [vmem:[%s8962_s1 + $0x10] sm:$0xff] (!%p141_p2)   ;;  %vm744_vm0 = vsmask.f32 (!%p141_p2), 3328 }
   0x6   : > { %144 = sbr.rel (%p141_p2) target bundleno = 572 (0x23c), region = 28  ;;  %v7657_v1 = vld [vmem:[%s8962_s1 + $0x100] sm:$0xff] (!%p141_p2)   ;;  %6943 = vmatprep.subr.bf16.mxu1 (!%p141_p2), %v7656_v0  ;;  %v7659_v3 = vld [vmem:[%s8962_s1 + $0x108] sm:$0xff] (!%p141_p2)   ;;  %v7661_v5 = vld [vmem:[%s8962_s1 + $0x110] sm:$0xff] (!%p141_p2)   ;;  %vm745_vm1 = vsmask.f32 (!%p141_p2), 7440 }
   0x7   : > { %7135 = vmatprep.subr.bf16.mxu0 (!%p141_p2), %v7657_v1  ;;  %6944 = vmatpush3.bf16.msra.mxu1 (!%p141_p2), %v7656_v0  ;;  %v7662_v6 = vld [vmem:[%s8962_s1 + $0x18] sm:$0xff] (!%p141_p2)   ;;  %v7664_v8 = vld [vmem:[%s8962_s1 + $0x20] sm:$0xff] (!%p141_p2)   ;;  %v7666_v10 = vld [vmem:[%s8962_s1 + $0x28] sm:$0xff] (!%p141_p2)   ;;  %vm1613_vm3 = vcmask (!%p141_p2), 1042432   ;;  %vm1614_vm4 = vcmask (!%p141_p2), 1046532   ;;  %vm5978_vm6 = vcmask (!%p141_p2), 1040384  }
   0x8   : > { %7136 = vmatpush3.bf16.msra.mxu0 (!%p141_p2), %v7657_v1  ;;  %6945 = vmatprep.subr.bf16.mxu1 (!%p141_p2), %v7658_v2  ;;  %v7663_v7 = vld [vmem:[%s8962_s1 + $0x118] sm:$0xff] (!%p141_p2)   ;;  %v7665_v9 = vld [vmem:[%s8962_s1 + $0x120] sm:$0xff] (!%p141_p2)   ;;  %v7667_v11 = vld [vmem:[%s8962_s1 + $0x128] sm:$0xff] (!%p141_p2)  }
   0x9   : > { %7137 = vmatprep.subr.bf16.mxu0 (!%p141_p2), %v7659_v3  ;;  %v7668_v18 = vld [vmem:[%s8962_s1 + $0x30] sm:$0xff] (!%p141_p2)   ;;  %v7670_v32 = vld [vmem:[%s8962_s1 + $0x38] sm:$0xff] (!%p141_p2)   ;;  %vm7882_vm2 = vmor (!%p141_p2), %vm744_vm0, %vm745_vm1 }
   0xa   : > { %v7669_v24 = vld [vmem:[%s8962_s1 + $0x130] sm:$0xff] (!%p141_p2)   ;;  %v7671_v38 = vld [vmem:[%s8962_s1 + $0x138] sm:$0xff] (!%p141_p2)   ;;  %v7674_v47 = vld [vmem:[%s8962_s1 + $0x40] sm:$0xff] (!%p141_p2)  }
   0xb   : > { %6946 = vmatpush3.bf16.msra.mxu1 (!%p141_p2), %v7658_v2  ;;  %v7675_v52 = vld [vmem:[%s8962_s1 + $0x140] sm:$0xff] (!%p141_p2)   ;;  %vm7982_vm5 = vmor (!%p141_p2), %vm1613_vm3, %vm1614_vm4 }
   0xc   : > { %7138 = vmatpush3.bf16.msra.mxu0 (!%p141_p2), %v7659_v3  ;;  %6947 = vmatprep.subr.bf16.mxu1 (!%p141_p2), %v7660_v4 }
   0xd   : > { %s8970_s13 = smov (!%p168_p3, %s6067_s13), 1  ;;  %7139 = vmatprep.subr.bf16.mxu0 %v7661_v5 }
   0xe   : > { %s7647_s30 = smul.u32 216, %s8970_s13  ;;  %s6075_s9 = sshll.u32 %s8970_s13, 1 }
   0xf   : > { %6948 = vmatpush3.bf16.msra.mxu1 %v7660_v4  ;;  %s181_s15 = scalar_lea.vmem %s8964_s3, %s6075_s9 }
  0x10   : > { %7140 = vmatpush3.bf16.msra.mxu0 %v7661_v5  ;;  %6949 = vmatprep.subr.bf16.mxu1 %v7662_v6  ;;  %s7859_s14 = scalar_lea.vmem %s8961_s0, %s7647_s30 }
  0x11   : > { %7141 = vmatprep.subr.bf16.mxu0 %v7663_v7  ;;  %v7672_v12 = vld [vmem:[%s7859_s14] sm:$0xff]   ;;  %v6268_v13 = vld [vmem:[%s7859_s14 + $0xc] sm:$0xf]  ;;  %v6269_v14 = vld [vmem:[%s7859_s14 + $0x10] sm:$0xf] }
  0x12   : > { %6959 = vmatprep.mubr.bf16.mxu1 %v7672_v12  ;;  %v6270_v15 = vld [vmem:[%s7859_s14 + $0x14] sm:$0x1]  ;;  %v2614_v16 = vshrl.u32 %v6268_v13, 16  ;;  %v2617_v17 = vshll.u32 %v6268_v13, 16  ;;  %v2623_v19 = vshll.u32 %v6269_v14, 16  ;;  %v2627_v20 = vshrl.u32 %v6269_v14, 16 }
  0x13   : > { %6950 = vmatpush3.bf16.msra.mxu1 %v7662_v6  ;;  %v2633_v21 = vshll.u32 %v6270_v15, 16  ;;  %v6271_v29 = vld [vmem:[%s7859_s14 + $0x18] sm:$0xf]  ;;  %v6272_v30 = vld [vmem:[%s7859_s14 + $0x1c] sm:$0xf]  ;;  %v7673_v55 = vld [vmem:[%s7859_s14 + $0xc] sm:$0xff]  }
  0x14   : > { %7142 = vmatpush3.bf16.msra.mxu0 %v7663_v7  ;;  %6951 = vmatprep.subr.bf16.mxu1 %v7664_v8  ;;  %v2616_v22 = vrot.slane %v2614_v16, 4  ;;  %v2619_v23 = vrot.slane %v2617_v17, 5  ;;  %v2625_v25 = vrot.slane %v2623_v19, 5  ;;  %v2629_v26 = vrot.slane %v2627_v20, 4  ;;  %v6273_v31 = vld [vmem:[%s7859_s14 + $0x20] sm:$0x1] }
  0x15   : > { %7143 = vmatprep.subr.bf16.mxu0 %v7665_v9  ;;  %v2635_v27 = vrot.slane %v2633_v21, 5  ;;  %v2638_v35 = vshrl.u32 %v6271_v29, 16  ;;  %v2641_v36 = vshll.u32 %v6271_v29, 16  ;;  %v2647_v37 = vshll.u32 %v6272_v30, 16  ;;  %v6274_v53 = vld [vmem:[%s7859_s14 + $0x24] sm:$0xf] }
  0x16   : > { %v2620_v28 = vor.u32 %v2619_v23, %v2616_v22  ;;  %v2630_v34 = vor.u32 %v2629_v26, %v2625_v25  ;;  %v2651_v40 = vshrl.u32 %v6272_v30, 16  ;;  %v2657_v41 = vshll.u32 %v6273_v31, 16  ;;  %v6275_v57 = vld [vmem:[%s7859_s14 + $0x28] sm:$0xf]  ;;  %v6276_v58 = vld [vmem:[%s7859_s14 + $0x2c] sm:$0x1] }
  0x17   : > { %6952 = vmatpush3.bf16.msra.mxu1 %v7664_v8  ;;  %v2640_v43 = vrot.slane %v2638_v35, 4  ;;  %v2643_v44 = vrot.slane %v2641_v36, 5  ;;  %v2649_v45 = vrot.slane %v2647_v37, 5  ;;  %v2662_v59 = vshrl.u32 %v6274_v53, 16  ;;  %v7677_v2 = vld [vmem:[%s7859_s14 + $0x18] sm:$0xff]   ;;  %v7676_v6 = vld [vmem:[%s8962_s1 + $0x148] sm:$0xff]  }
  0x18   : > { %7144 = vmatpush3.bf16.msra.mxu0 %v7665_v9  ;;  %6953 = vmatprep.subr.bf16.mxu1 %v7666_v10  ;;  %v2621_v39 = vrot.slane %v2620_v28, 4  ;;  %v2631_v42 = vrot.slane %v2630_v34, 4  ;;  %v2653_v48 = vrot.slane %v2651_v40, 4  ;;  %v2659_v51 = vrot.slane %v2657_v41, 5  ;;  %v6277_v13 = vld [vmem:[%s7859_s14 + $0x30] sm:$0xf] }
  0x19   : > { %7145 = vmatprep.subr.bf16.mxu0 %v7667_v11  ;;  %v2644_v50 = vor.u32 %v2643_v44, %v2640_v43  ;;  %v2665_v60 = vshll.u32 %v6274_v53, 16  ;;  %v2671_v62 = vshll.u32 %v6275_v57, 16  ;;  %v2675_v63 = vshrl.u32 %v6275_v57, 16  ;;  %v6278_v14 = vld [vmem:[%s7859_s14 + $0x34] sm:$0xf]  ;;  %v7678_v28 = vld [vmem:[%s7859_s14 + $0x24] sm:$0xff]  }
  0x1a   : > { %v2626_v46 = vsel %vm7882_vm2, %v2621_v39, %v2625_v25  ;;  %v2636_v49 = vsel %vm7882_vm2, %v2631_v42, %v2635_v27  ;;  %v2654_v56 = vor.u32 %v2653_v48, %v2649_v45  ;;  %v2681_v0 = vshll.u32 %v6276_v58, 16  ;;  %v6279_v17 = vld [vmem:[%s7859_s14 + $0x38] sm:$0x1]  ;;  %v7680_v31 = vld [vmem:[%s8962_s1 + $0x150] sm:$0xff]   ;;  %v6280_v39 = vld [vmem:[%s7859_s14 + $0x3c] sm:$0xf] }
  0x1b   : > { %6954 = vmatpush3.bf16.msra.mxu1 %v7666_v10  ;;  %v6332_v54 = vcombine.low %v2626_v46, %v2636_v49  ;;  %v2645_v61 = vrot.slane %v2644_v50, 4  ;;  %v2664_v3 = vrot.slane %v2662_v59, 4  ;;  %v2667_v4 = vrot.slane %v2665_v60, 5  ;;  %v7679_v10 = vld [vmem:[%s8962_s1 + $0x48] sm:$0xff]   ;;  %v7682_v36 = vld [vmem:[%s7859_s14 + $0x30] sm:$0xff]  }
  0x1c   : > { %7146 = vmatpush3.bf16.msra.mxu0 %v7667_v11  ;;  %6955 = vmatprep.subr.bf16.mxu1 %v7668_v18  ;;  %v2655_v1 = vrot.slane %v2654_v56, 4  ;;  %v2673_v7 = vrot.slane %v2671_v62, 5  ;;  %v2677_v8 = vrot.slane %v2675_v63, 4  ;;  %v2683_v9 = vrot.slane %v2681_v0, 5  ;;  %v6281_v40 = vld [vmem:[%s7859_s14 + $0x40] sm:$0xf] }
  0x1d   : > { %7147 = vmatprep.subr.bf16.mxu0 %v7669_v24  ;;  %7151 = vmatprep.mubr.bf16.mxu0 %v6332_v54  ;;  %v2650_v5 = vsel %vm7882_vm2, %v2645_v61, %v2649_v45  ;;  %v2668_v12 = vor.u32 %v2667_v4, %v2664_v3  ;;  %v2689_v19 = vshll.u32 %v6277_v13, 16  ;;  %v2695_v21 = vshll.u32 %v6278_v14, 16  ;;  %v6282_v41 = vld [vmem:[%s7859_s14 + $0x44] sm:$0x1]  ;;  %v7684_v54 = vld [vmem:[%s8962_s1 + $0x50] sm:$0xff]  }
  0x1e   : > { %v2660_v11 = vsel %vm7882_vm2, %v2655_v1, %v2659_v51  ;;  %v2678_v16 = vor.u32 %v2677_v8, %v2673_v7  ;;  %v2699_v22 = vshrl.u32 %v6278_v14, 16  ;;  %v2705_v23 = vshll.u32 %v6279_v17, 16  ;;  %v6283_v58 = vld [vmem:[%s7859_s14 + $0x48] sm:$0xf]  ;;  %v6284_v61 = vld [vmem:[%s7859_s14 + $0x4c] sm:$0xf] }
  0x1f   : > { %6956 = vmatpush3.bf16.msra.mxu1 %v7668_v18  ;;  %v6333_v15 = vcombine.low %v2650_v5, %v2660_v11  ;;  %v2686_v18 = vshrl.u32 %v6277_v13, 16  ;;  %v2669_v20 = vrot.slane %v2668_v12, 4  ;;  %v2691_v26 = vrot.slane %v2689_v19, 5  ;;  %v6285_v62 = vld [vmem:[%s7859_s14 + $0x50] sm:$0x1]  ;;  %v7685_v8 = vld [vmem:[%s8962_s1 + $0x160] sm:$0xff]  }
  0x20   : > { %7148 = vmatpush3.bf16.msra.mxu0 %v7669_v24  ;;  %6957 = vmatprep.subr.bf16.mxu1 %v7670_v32  ;;  %v2679_v24 = vrot.slane %v2678_v16, 4  ;;  %v2697_v29 = vrot.slane %v2695_v21, 5  ;;  %v2701_v30 = vrot.slane %v2699_v22, 4  ;;  %v2707_v35 = vrot.slane %v2705_v23, 5  ;;  %v6286_v19 = vld [vmem:[%s7859_s14 + $0x54] sm:$0xf] }
  0x21   : > { %7149 = vmatprep.subr.bf16.mxu0 %v7671_v38  ;;  %v2688_v25 = vrot.slane %v2686_v18, 4  ;;  %v2674_v27 = vsel %vm7882_vm2, %v2669_v20, %v2673_v7  ;;  %v2710_v43 = vshrl.u32 %v6280_v39, 16  ;;  %v2713_v44 = vshll.u32 %v6280_v39, 16  ;;  %v7687_v18 = vld [vmem:[%s7859_s14 + $0x48] sm:$0xff]   ;;  %v6287_v20 = vld [vmem:[%s7859_s14 + $0x58] sm:$0xf] }
  0x22   : > { %v2719_v45 = vshll.u32 %v6281_v40, 16  ;;  %v2723_v48 = vshrl.u32 %v6281_v40, 16  ;;  %v2729_v49 = vshll.u32 %v6282_v41, 16  ;;  %v2734_v63 = vshrl.u32 %v6283_v58, 16  ;;  %v7686_v23 = vld [vmem:[%s8962_s1 + $0x168] sm:$0xff]   ;;  %v7688_v39 = vld [vmem:[%s7859_s14 + $0x54] sm:$0xff]  }
  0x23   : > { %6958 = vmatpush3.bf16.msra.mxu1 %v7670_v32  ;;  %v2684_v32 = vsel %vm7882_vm2, %v2679_v24, %v2683_v9  ;;  %v2692_v34 = vor.u32 %v2691_v26, %v2688_v25  ;;  %v2712_v51 = vrot.slane %v2710_v43, 4  ;;  %v2737_v0 = vshll.u32 %v6283_v58, 16  ;;  %v6288_v24 = vld [vmem:[%s7859_s14 + $0x5c] sm:$0x1]  ;;  %v6289_v43 = vld [vmem:[%s7859_s14 + $0x60] sm:$0xf] }
  0x24   : > { %7150 = vmatpush3.bf16.msra.mxu0 %v7671_v38  ;;  %6991 = vmatprep.subr.bf16.mxu1 %v7674_v47  ;;  %v6334_v37 = vcombine.low %v2674_v27, %v2684_v32  ;;  %v2702_v38 = vor.u32 %v2701_v30, %v2697_v29  ;;  %v2721_v53 = vrot.slane %v2719_v45, 5  ;;  %v2725_v56 = vrot.slane %v2723_v48, 4  ;;  %v7689_v40 = vld [vmem:[%s8962_s1 + $0x58] sm:$0xff]   ;;  %v6291_v45 = vld [vmem:[%s7859_s14 + $0x68] sm:$0x1] }
  0x25   : > { %7183 = vmatprep.subr.bf16.mxu0 %v7675_v52  ;;  %v2693_v42 = vrot.slane %v2692_v34, 4  ;;  %v2731_v57 = vrot.slane %v2729_v49, 5  ;;  %v2747_v3 = vshrl.u32 %v6284_v61, 16  ;;  %v2753_v4 = vshll.u32 %v6285_v62, 16 }
  0x26   : > { %6960 = vmatmul.mubr.bf16.vlgmr.msra.gmra.mrb[0].mxu1 %v7673_v55  ;;  %v2703_v46 = vrot.slane %v2702_v38, 4  ;;  %v2726_v1 = vor.u32 %v2725_v56, %v2721_v53  ;;  %v2739_v7 = vrot.slane %v2737_v0, 5  ;;  %v2758_v25 = vshrl.u32 %v6286_v19, 16  ;;  %v6356_v0 = vld [vmem:[%s7859_s14 + $0xc] sm:$0xe] }
  0x27   : > { %7152 = vmatmul.mubr.bf16.vlgmr.msra.gmra.mrb[0].mxu0 %v6333_v15  ;;  %6992 = vmatpush3.bf16.msra.mxu1 %v7674_v47  ;;  %v7681_v47 = vld [vmem:[%s8962_s1 + $0x158] sm:$0xff]   ;;  %v2698_v50 = vsel %vm7882_vm2, %v2693_v42, %v2697_v29  ;;  %v2749_v12 = vrot.slane %v2747_v3, 4  ;;  %v2755_v17 = vrot.slane %v2753_v4, 5  ;;  %v2761_v26 = vshll.u32 %v6286_v19, 16 }
  0x28   : > { %7184 = vmatpush3.bf16.msra.mxu0 %v7675_v52  ;;  %6963 = vmatprep.mubr.bf16.mxu1 %v7677_v2  ;;  %v2715_v52 = vrot.slane %v2713_v44, 5  ;;  %v2708_v55 = vsel %vm7882_vm2, %v2703_v46, %v2707_v35  ;;  %v2743_v2 = vshll.u32 %v6284_v61, 16  ;;  %v2727_v9 = vrot.slane %v2726_v1, 4  ;;  %v6290_v44 = vld [vmem:[%s7859_s14 + $0x64] sm:$0xf] }
  0x29   : > { %7185 = vmatprep.subr.bf16.mxu0 %v7676_v6  ;;  %6993 = vmatprep.subr.bf16.mxu1 %v7679_v10  ;;  %v6335_v59 = vcombine.low %v2698_v50, %v2708_v55  ;;  %v2771_v29 = vshrl.u32 %v6287_v20, 16  ;;  %v2777_v30 = vshll.u32 %v6288_v24, 16  ;;  %v2760_v32 = vrot.slane %v2758_v25, 4  ;;  %v7690_v50 = vld [vmem:[%s8962_s1 + $0x170] sm:$0xff]  }
  0x2a   : > { %7155 = vmatprep.mubr.bf16.mxu0 %v6334_v37  ;;  %v2716_v60 = vor.u32 %v2715_v52, %v2712_v51  ;;  %v2745_v11 = vrot.slane %v2743_v2, 5  ;;  %v2732_v15 = vsel %vm7882_vm2, %v2727_v9, %v2731_v57  ;;  %v2763_v34 = vrot.slane %v2761_v26, 5 }
  0x2b   : > { %6994 = vmatpush3.bf16.msra.mxu1 %v7679_v10  ;;  %v7683_v10 = vld [vmem:[%s7859_s14 + $0x3c] sm:$0xff]   ;;  %v2773_v37 = vrot.slane %v2771_v29, 4  ;;  %v2779_v38 = vrot.slane %v2777_v30, 5  ;;  %v2785_v48 = vshll.u32 %v6289_v43, 16  ;;  %v2791_v49 = vshll.u32 %v6290_v44, 16 }
  0x2c   : > { %7186 = vmatpush3.bf16.msra.mxu0 %v7676_v6  ;;  %6995 = vmatprep.subr.bf16.mxu1 %v7684_v54  ;;  %v2717_v5 = vrot.slane %v2716_v60, 4  ;;  %v2736_v6 = vrot.slane %v2734_v63, 4  ;;  %v2750_v16 = vor.u32 %v2749_v12, %v2745_v11  ;;  %v2764_v42 = vor.u32 %v2763_v34, %v2760_v32  ;;  %v7691_v60 = vld [vmem:[%s8962_s1 + $0x178] sm:$0xff]   ;;  %v7692_v63 = vld [vmem:[%s7859_s14 + $0x60] sm:$0xff]   ;;  %v6364_v32 = vld [vmem:[%s7859_s14 + $0x2c] sm:$0x1] }
  0x2d   : > { %7187 = vmatprep.subr.bf16.mxu0 %v7680_v31  ;;  %v2795_v52 = vshrl.u32 %v6290_v44, 16  ;;  %v2787_v56 = vrot.slane %v2785_v48, 5  ;;  %v2793_v57 = vrot.slane %v2791_v49, 5  ;;  %v6362_v29 = vld [vmem:[%s7859_s14 + $0x24] sm:$0xe]  ;;  %v7699_v48 = vld [vmem:[%s8962_s1 + $0x188] sm:$0xff]  }
  0x2e   : > { %6964 = vmatmul.mubr.bf16.gmra.mrb[4].mxu1 %v7678_v28  ;;  %v2722_v13 = vsel %vm7882_vm2, %v2717_v5, %v2721_v53  ;;  %v2740_v14 = vor.u32 %v2739_v7, %v2736_v6  ;;  %v2751_v27 = vrot.slane %v2750_v16, 4  ;;  %v2767_v28 = vshll.u32 %v6287_v20, 16  ;;  %v6357_v5 = vld [vmem:[%s7859_s14 + $0x10] sm:$0xf]  ;;  %v6358_v6 = vld [vmem:[%s7859_s14 + $0x14] sm:$0x1] }
  0x2f   : > { %6967 = vmatprep.mubr.bf16.mxu1 %v7682_v36  ;;  %6996 = vmatpush3.bf16.msra.mxu1 %v7684_v54  ;;  %v6336_v21 = vcombine.low %v2722_v13, %v2732_v15  ;;  %v2765_v51 = vrot.slane %v2764_v42, 4  ;;  %v2801_v53 = vshll.u32 %v6291_v45, 16  ;;  %v6404_v7 = vrot.slane %v6356_v0, 9  ;;  %v7695_v13 = vld [vmem:[%s8962_s1 + $0x180] sm:$0xff]   ;;  %v6360_v20 = vld [vmem:[%s7859_s14 + $0x1c] sm:$0xf] }
  0x30   : > { %7188 = vmatpush3.bf16.msra.mxu0 %v7680_v31  ;;  %v2741_v22 = vrot.slane %v2740_v14, 4  ;;  %v2756_v35 = vsel %vm7882_vm2, %v2751_v27, %v2755_v17  ;;  %v2769_v36 = vrot.slane %v2767_v28, 5  ;;  %6997 = vmatprep.subr.bf16.mxu1 %v7689_v40  ;;  %v3481_v9 = vrot.slane %v6357_v5, 5  ;;  %v7693_v17 = vld [vmem:[%s7859_s14 + $0x6c] sm:$0xff]   ;;  %v7697_v42 = vld [vmem:[%s7859_s14 + $0x84] sm:$0xff]  }
  0x31   : > { %7156 = vmatmul.mubr.bf16.gmra.mrb[4].mxu0 %v6335_v59  ;;  %7189 = vmatprep.subr.bf16.mxu0 %v7681_v47  ;;  %v2797_v59 = vrot.slane %v2795_v52, 4  ;;  %v2803_v3 = vrot.slane %v2801_v53, 5  ;;  %v3488_v26 = vrot.slane %v6360_v20, 5  ;;  %v6406_v34 = vrot.slane %v6362_v29, 9  ;;  %v6366_v44 = vld [vmem:[%s7859_s14 + $0x34] sm:$0xf] }
  0x32   : > { %7159 = vmatprep.mubr.bf16.mxu0 %v6336_v21  ;;  %v2746_v31 = vsel %vm7882_vm2, %v2741_v22, %v2745_v11  ;;  %v2774_v46 = vor.u32 %v2773_v37, %v2769_v36  ;;  %v2770_v58 = vsel %vm7882_vm2, %v2765_v51, %v2769_v36  ;;  %v7694_v11 = vld [vmem:[%s8962_s1 + $0x60] sm:$0xff]   ;;  %v3482_v15 = vsel %vm7982_vm5, %v6404_v7, %v3481_v9  ;;  %v6371_v0 = vld [vmem:[%s7859_s14 + $0x48] sm:$0xe]  ;;  %v6372_v5 = vld [vmem:[%s7859_s14 + $0x4c] sm:$0xf] }
  0x33   : > { %v6337_v41 = vcombine.low %v2746_v31, %v2756_v35  ;;  %6998 = vmatpush3.bf16.msra.mxu1 %v7689_v40  ;;  %v2798_v2 = vor.u32 %v2797_v59, %v2793_v57  ;;  %v3483_v16 = vrot.slane %v3481_v9, 4  ;;  %v6361_v21 = vld [vmem:[%s7859_s14 + $0x20] sm:$0x1]  ;;  %v3490_v30 = vrot.slane %v3488_v26, 4  ;;  %v6363_v31 = vld [vmem:[%s7859_s14 + $0x28] sm:$0xf] }
  0x34   : > { %7190 = vmatpush3.bf16.msra.mxu0 %v7681_v47  ;;  %v2782_v47 = vshrl.u32 %v6289_v43, 16  ;;  %v2775_v54 = vrot.slane %v2774_v46, 4  ;;  %6999 = vmatprep.subr.bf16.mxu1 %v7694_v11  ;;  %v3491_v27 = vrot.slane %v6361_v21, 5  ;;  %v3495_v36 = vrot.slane %v6363_v31, 5  ;;  %v6365_v43 = vld [vmem:[%s7859_s14 + $0x30] sm:$0xe] }
  0x35   : > { %7191 = vmatprep.subr.bf16.mxu0 %v7685_v8  ;;  %v2799_v12 = vrot.slane %v2798_v2, 4  ;;  %v3498_v37 = vrot.slane %v6364_v32, 5  ;;  %v6367_v46 = vld [vmem:[%s7859_s14 + $0x38] sm:$0x1]  ;;  %v7702_v59 = vld [vmem:[%s8962_s1 + $0x70] sm:$0xff]   ;;  %v6409_v7 = vrot.slane %v6371_v0, 9 }
  0x36   : > { %6968 = vmatmul.mubr.bf16.gmra.mrb[8].mxu1 %v7683_v10  ;;  %v2784_v55 = vrot.slane %v2782_v47, 4  ;;  %v2780_v61 = vsel %vm7882_vm2, %v2775_v54, %v2779_v38  ;;  %v3484_v10 = vrot.slane %v6358_v6, 5  ;;  %v3492_v38 = vsel %vm7982_vm5, %v3490_v30, %v3491_v27  ;;  %v7700_v54 = vld [vmem:[%s7859_s14 + $0x90] sm:$0xff]   ;;  %v6377_v27 = vld [vmem:[%s7859_s14 + $0x60] sm:$0xe]  ;;  %v7707_v31 = vld [vmem:[%s8962_s1 + $0x198] sm:$0xff]  }
  0x37   : > { %6971 = vmatprep.mubr.bf16.mxu1 %v7687_v18  ;;  %v6338_v1 = vcombine.low %v2770_v58, %v2780_v61  ;;  %v6359_v18 = vld [vmem:[%s7859_s14 + $0x18] sm:$0xe]  ;;  %v2804_v19 = vsel %vm7882_vm2, %v2799_v12, %v2803_v3  ;;  %7000 = vmatpush3.bf16.msra.mxu1 %v7694_v11  ;;  %v3496_v40 = vsel %vm7982_vm5, %v6406_v34, %v3495_v36  ;;  %v3502_v47 = vrot.slane %v6366_v44, 5  ;;  %v7701_v3 = vld [vmem:[%s7859_s14 + $0x9c] sm:$0xff]   ;;  %v6373_v6 = vld [vmem:[%s7859_s14 + $0x50] sm:$0x1] }
  0x38   : > { %7192 = vmatpush3.bf16.msra.mxu0 %v7685_v8  ;;  %v2788_v62 = vor.u32 %v2787_v56, %v2784_v55  ;;  %v6405_v22 = vrot.slane %v6359_v18, 9  ;;  %v3485_v25 = vsel %vm7982_vm5, %v3483_v16, %v3484_v10  ;;  %v3505_v51 = vrot.slane %v6367_v46, 5  ;;  %v6368_v55 = vld [vmem:[%s7859_s14 + $0x3c] sm:$0xe]  ;;  %v6369_v56 = vld [vmem:[%s7859_s14 + $0x40] sm:$0xf] }
  0x39   : > { %7193 = vmatprep.subr.bf16.mxu0 %v7686_v23  ;;  %7160 = vmatmul.mubr.bf16.gmra.mrb[8].mxu0 %v6337_v41  ;;  %v6436_v28 = vcombine.low %v3482_v15, %v3485_v25  ;;  %v3497_v41 = vrot.slane %v3495_v36, 4  ;;  %v3504_v53 = vrot.slane %v3502_v47, 4  ;;  %v6408_v58 = vrot.slane %v6368_v55, 9  ;;  %v7703_v12 = vld [vmem:[%s8962_s1 + $0x190] sm:$0xff]   ;;  %v7704_v15 = vld [vmem:[%s7859_s14 + $0xa8] sm:$0xff]  }
  0x3a   : > { %v2789_v8 = vrot.slane %v2788_v62, 4  ;;  %7163 = vmatprep.mubr.bf16.mxu0 %v6338_v1  ;;  %v3489_v35 = vsel %vm7982_vm5, %v6405_v22, %v3488_v26  ;;  %v3519_v11 = vrot.slane %v6373_v6, 5  ;;  %v6374_v16 = vld [vmem:[%s7859_s14 + $0x54] sm:$0xe]  ;;  %v6376_v18 = vld [vmem:[%s7859_s14 + $0x5c] sm:$0x1] }
  0x3b   : > { %v6437_v45 = vcombine.low %v3489_v35, %v3492_v38  ;;  %v3499_v49 = vsel %vm7982_vm5, %v3497_v41, %v3498_v37  ;;  %v3526_v21 = vrot.slane %v6376_v18, 5  ;;  %v7706_v26 = vld [vmem:[%s8962_s1 + $0x78] sm:$0xff]   ;;  %v6379_v29 = vld [vmem:[%s7859_s14 + $0x68] sm:$0x1]  ;;  %v6411_v30 = vrot.slane %v6377_v27, 9 }
  0x3c   : > { %7194 = vmatpush3.bf16.msra.mxu0 %v7686_v23  ;;  %v2794_v14 = vsel %vm7882_vm2, %v2789_v8, %v2793_v57  ;;  %v7696_v23 = vld [vmem:[%s7859_s14 + $0x78] sm:$0xff]   ;;  %v6438_v52 = vcombine.low %v3496_v40, %v3499_v49  ;;  %v6370_v57 = vld [vmem:[%s7859_s14 + $0x44] sm:$0x1]  ;;  %v3516_v8 = vrot.slane %v6372_v5, 5  ;;  %v3533_v36 = vrot.slane %v6379_v29, 5 }
  0x3d   : > { %7195 = vmatprep.subr.bf16.mxu0 %v7690_v50  ;;  %v6339_v24 = vcombine.low %v2794_v14, %v2804_v19  ;;  %v3512_v61 = vrot.slane %v6370_v57, 5  ;;  %v6410_v19 = vrot.slane %v6374_v16, 9  ;;  %v7705_v34 = vld [vmem:[%s7859_s14 + $0xb4] sm:$0xff]   ;;  %v665_v40 = vld [vmem:[%s7859_s14 + $0x4] sm:$0xf] }
  0x3e   : > { %6972 = vmatmul.mubr.bf16.gmra.mrb[12].mxu1 %v7688_v39  ;;  %v7698_v39 = vld [vmem:[%s8962_s1 + $0x68] sm:$0xff]   ;;  %v3518_v14 = vrot.slane %v3516_v8, 4  ;;  %v3517_v22 = vsel %vm7982_vm5, %v6409_v7, %v3516_v8  ;;  %v761_v49 = vshrl.u32 %v665_v40, 16  ;;  %v668_v5 = vld [vmem:[%s7859_s14 + $0x10] sm:$0xf] }
  0x3f   : > { %6975 = vmatprep.mubr.bf16.mxu1 %v7692_v63  ;;  %7001 = vmatprep.subr.bf16.mxu1 %v7698_v39  ;;  %v3506_v63 = vsel %vm7982_vm5, %v3504_v53, %v3505_v51  ;;  %v666_v41 = vld [vmem:[%s7859_s14 + $0x8] sm:$0x1]  ;;  %v6380_v46 = vld [vmem:[%s7859_s14 + $0x6c] sm:$0xe]  ;;  %v6381_v51 = vld [vmem:[%s7859_s14 + $0x70] sm:$0xf] }
  0x40   : > { %7196 = vmatpush3.bf16.msra.mxu0 %v7690_v50  ;;  %v6407_v50 = vrot.slane %v6365_v43, 9  ;;  %7002 = vmatpush3.bf16.msra.mxu1 %v7698_v39  ;;  %v664_v39 = vld [vmem:[%s7859_s14] sm:$0xf]  ;;  %v3537_v57 = vrot.slane %v6381_v51, 5  ;;  %v669_v6 = vld [vmem:[%s7859_s14 + $0x14] sm:$0x1] }
  0x41   : > { %7197 = vmatprep.subr.bf16.mxu0 %v7691_v60  ;;  %7164 = vmatmul.mubr.bf16.gmra.mrb[12].mxu0 %v6339_v24  ;;  %v748_v44 = vshrl.u32 %v664_v39, 16  ;;  %v6385_v29 = vld [vmem:[%s7859_s14 + $0x80] sm:$0x1] }
  0x42   : > { %7199 = vmatprep.mubr.bf16.mxu0 %v6436_v28  ;;  %v3503_v62 = vsel %vm7982_vm5, %v6407_v50, %v3502_v47  ;;  %7003 = vmatprep.subr.bf16.mxu1 %v7702_v59  ;;  %v6378_v28 = vld [vmem:[%s7859_s14 + $0x64] sm:$0xf]  ;;  %v767_v50 = vshll.u32 %v666_v41, 16  ;;  %v671_v41 = vld [vmem:[%s7859_s14 + $0x1c] sm:$0xf] }
  0x43   : > { %v6439_v9 = vcombine.low %v3503_v62, %v3506_v63  ;;  %v3530_v35 = vrot.slane %v6378_v28, 5  ;;  %v8083_v47 = vld [vmem:[%s8962_s1 + $0x80] sm:$0xff]   ;;  %v667_v63 = vld [vmem:[%s7859_s14 + $0xc] sm:$0xf]  ;;  %v809_v51 = vshrl.u32 %v671_v41, 16 }
  0x44   : > { %7198 = vmatpush3.bf16.msra.mxu0 %v7691_v60  ;;  %v3509_v60 = vrot.slane %v6369_v56, 5  ;;  %7004 = vmatpush3.bf16.msra.mxu1 %v7702_v59  ;;  %v6382_v56 = vld [vmem:[%s7859_s14 + $0x74] sm:$0x1]  ;;  %v769_v62 = vrot.slane %v767_v50, 5  ;;  %v772_v8 = vshrl.u32 %v667_v63, 16 }
  0x45   : > { %7231 = vmatprep.subr.bf16.mxu0 %v7695_v13  ;;  %7005 = vmatprep.subr.bf16.mxu1 %v7706_v26  ;;  %v3532_v43 = vrot.slane %v3530_v35, 4 }
  0x46   : > { %6976 = vmatmul.mubr.bf16.gmra.mrb[16].mxu1 %v7693_v17  ;;  %v3510_v1 = vsel %vm7982_vm5, %v6408_v58, %v3509_v60  ;;  %v3511_v2 = vrot.slane %v3509_v60, 4  ;;  %v6375_v17 = vld [vmem:[%s7859_s14 + $0x58] sm:$0xf]  ;;  %v7709_v58 = vld [vmem:[%s8962_s1 + $0x1a0] sm:$0xff]   ;;  %v774_v18 = vrot.slane %v772_v8, 4 }
  0x47   : > { %6979 = vmatprep.mubr.bf16.mxu1 %v7696_v23  ;;  %v3523_v20 = vrot.slane %v6375_v17, 5  ;;  %v3520_v23 = vsel %vm7982_vm5, %v3518_v14, %v3519_v11  ;;  %v3534_v53 = vsel %vm7982_vm5, %v3532_v43, %v3533_v36  ;;  %v7711_v11 = vld [vmem:[%s8962_s1 + $0x1a8] sm:$0xff]   ;;  %v785_v14 = vshrl.u32 %v668_v5, 16  ;;  %v670_v36 = vld [vmem:[%s7859_s14 + $0x18] sm:$0xf] }
  0x48   : > { %v3513_v10 = vsel %vm7982_vm5, %v3511_v2, %v3512_v61  ;;  %v6441_v37 = vcombine.low %v3517_v22, %v3520_v23  ;;  %7006 = vmatpush3.bf16.msra.mxu1 %v7706_v26  ;;  %v763_v61 = vrot.slane %v761_v49, 4  ;;  %v3539_v2 = vrot.slane %v3537_v57, 4  ;;  %v6384_v26 = vld [vmem:[%s7859_s14 + $0x7c] sm:$0xf] }
  0x49   : > { %7200 = vmatmul.mubr.bf16.vlgmr.msra.gmra.mrb[0].mxu0 %v6437_v45  ;;  %v3524_v24 = vsel %vm7982_vm5, %v6410_v19, %v3523_v20  ;;  %v3525_v25 = vrot.slane %v3523_v20, 4  ;;  %v751_v45 = vshll.u32 %v664_v39, 16  ;;  %7039 = vmatprep.subr.bf16.mxu1 %v8083_v47  ;;  %v6383_v20 = vld [vmem:[%s7859_s14 + $0x78] sm:$0xe] }
  0x4a   : > { %7232 = vmatpush3.bf16.msra.mxu0 %v7695_v13  ;;  %7203 = vmatprep.mubr.bf16.mxu0 %v6438_v52  ;;  %v6440_v13 = vcombine.low %v3510_v1, %v3513_v10  ;;  %v6412_v52 = vrot.slane %v6380_v46, 9  ;;  %v781_v10 = vshll.u32 %v668_v5, 16  ;;  %v805_v46 = vshll.u32 %v671_v41, 16 }
  0x4b   : > { %7233 = vmatprep.subr.bf16.mxu0 %v7699_v48  ;;  %v3527_v32 = vsel %vm7982_vm5, %v3525_v25, %v3526_v21  ;;  %v753_v55 = vrot.slane %v751_v45, 5  ;;  %v7713_v21 = vld [vmem:[%s8962_s1 + $0x1b0] sm:$0xff]   ;;  %v799_v45 = vshll.u32 %v670_v36, 16 }
  0x4c   : > { %v6442_v38 = vcombine.low %v3524_v24, %v3527_v32  ;;  %v3538_v1 = vsel %vm7982_vm5, %v6412_v52, %v3537_v57  ;;  %v783_v23 = vrot.slane %v781_v10, 5  ;;  %v787_v24 = vrot.slane %v785_v14, 4 }
  0x4e   : > { %6980 = vmatmul.mubr.bf16.gmra.mrb[20].mxu1 %v7697_v42  ;;  %7234 = vmatpush3.bf16.msra.mxu0 %v7699_v48  ;;  %v8077_v42 = vsel %vm7982_vm5, %v6411_v30, %v3530_v35  ;;  %v757_v48 = vshll.u32 %v665_v40, 16  ;;  %v6413_v30 = vrot.slane %v6383_v20, 9  ;;  %v3547_v35 = vrot.slane %v6385_v29, 5 }
  0x4f   : > { %6983 = vmatprep.mubr.bf16.mxu1 %v7700_v54  ;;  %7235 = vmatprep.subr.bf16.mxu0 %v7703_v12  ;;  %v750_v54 = vrot.slane %v748_v44, 4  ;;  %v6443_v59 = vcombine.low %v8077_v42, %v3534_v53  ;;  %v672_v42 = vld [vmem:[%s7859_s14 + $0x20] sm:$0x1]  ;;  %v796_v44 = vshrl.u32 %v670_v36, 16  ;;  %v6387_v53 = vld [vmem:[%s7859_s14 + $0x88] sm:$0xf] }
  0x50   : > { %v759_v60 = vrot.slane %v757_v48, 5  ;;  %v6386_v48 = vld [vmem:[%s7859_s14 + $0x84] sm:$0xe]  ;;  %v815_v52 = vshll.u32 %v672_v42, 16 }
  0x51   : > { %7204 = vmatmul.mubr.bf16.gmra.mrb[4].mxu0 %v6439_v9  ;;  %v754_v0 = vor.u32 %v753_v55, %v750_v54  ;;  %v775_v9 = vshll.u32 %v667_v63, 16  ;;  %v6388_v54 = vld [vmem:[%s7859_s14 + $0x8c] sm:$0x1]  ;;  %v798_v57 = vrot.slane %v796_v44, 4  ;;  %v811_v63 = vrot.slane %v809_v51, 4 }
  0x52   : > { %7207 = vmatprep.mubr.bf16.mxu0 %v6440_v13  ;;  %7236 = vmatpush3.bf16.msra.mxu0 %v7703_v12  ;;  %v764_v7 = vor.u32 %v763_v61, %v759_v60  ;;  %v6414_v5 = vrot.slane %v6386_v48, 9  ;;  %v6393_v51 = vld [vmem:[%s7859_s14 + $0xa0] sm:$0xf] }
  0x53   : > { %7237 = vmatprep.subr.bf16.mxu0 %v7707_v31  ;;  %v755_v12 = vrot.slane %v754_v0, 4  ;;  %v777_v19 = vrot.slane %v775_v9, 5  ;;  %v817_v0 = vrot.slane %v815_v52, 5 }
  0x54   : > { %v765_v16 = vrot.slane %v764_v7, 4  ;;  %v3554_v7 = vrot.slane %v6388_v54, 5 }
  0x55   : > { %v760_v22 = vsel %vm7882_vm2, %v755_v12, %v759_v60  ;;  %v778_v28 = vor.u32 %v777_v19, %v774_v18  ;;  %v674_v60 = vld [vmem:[%s7859_s14 + $0x28] sm:$0xf]  ;;  %v7712_v12 = vld [vmem:[%s8962_s1 + $0x90] sm:$0xff]   ;;  %v8147_v18 = vld [vmem:[%s8962_s1 + $0x1c0] sm:$0xff]  }
  0x56   : > { %6984 = vmatmul.mubr.bf16.gmra.mrb[24].mxu1 %v7701_v3  ;;  %7238 = vmatpush3.bf16.msra.mxu0 %v7707_v31  ;;  %v3540_v3 = vrot.slane %v6382_v56, 5  ;;  %v770_v27 = vsel %vm7882_vm2, %v765_v16, %v769_v62  ;;  %v3544_v31 = vrot.slane %v6384_v26, 5  ;;  %v807_v62 = vrot.slane %v805_v46, 5 }
  0x57   : > { %6987 = vmatprep.mubr.bf16.mxu1 %v7704_v15  ;;  %7239 = vmatprep.subr.bf16.mxu0 %v7709_v58  ;;  %v791_v15 = vshll.u32 %v669_v6, 16  ;;  %v6116_v32 = vcombine.low %v760_v22, %v770_v27  ;;  %v3551_v6 = vrot.slane %v6387_v53, 5  ;;  %v833_v16 = vshrl.u32 %v674_v60, 16  ;;  %v6391_v27 = vld [vmem:[%s7859_s14 + $0x98] sm:$0x1] }
  0x58   : > { %v3541_v13 = vsel %vm7982_vm5, %v3539_v2, %v3540_v3  ;;  %v3545_v39 = vsel %vm7982_vm5, %v6413_v30, %v3544_v31  ;;  %v3546_v40 = vrot.slane %v3544_v31, 4  ;;  %v7710_v2 = vld [vmem:[%s8962_s1 + $0x88] sm:$0xff]   ;;  %v812_v8 = vor.u32 %v811_v63, %v807_v62 }
  0x59   : > { %7208 = vmatmul.mubr.bf16.gmra.mrb[8].mxu0 %v6441_v37  ;;  %v6444_v17 = vcombine.low %v3538_v1, %v3541_v13  ;;  %v793_v25 = vrot.slane %v791_v15, 5  ;;  %v7715_v37 = vld [vmem:[%s8962_s1 + $0x1b8] sm:$0xff]   ;;  %v675_v1 = vld [vmem:[%s7859_s14 + $0x2c] sm:$0x1]  ;;  %v3552_v14 = vsel %vm7982_vm5, %v6414_v5, %v3551_v6  ;;  %v3553_v15 = vrot.slane %v3551_v6, 4  ;;  %v7717_v5 = vld [vmem:[%s8962_s1 + $0xa0] sm:$0xff]  }
  0x5a   : > { %7211 = vmatprep.mubr.bf16.mxu0 %v6442_v38  ;;  %7240 = vmatpush3.bf16.msra.mxu0 %v7709_v58  ;;  %v779_v38 = vrot.slane %v778_v28, 4  ;;  %v3548_v50 = vsel %vm7982_vm5, %v3546_v40, %v3547_v35  ;;  %v801_v58 = vrot.slane %v799_v45, 5  ;;  %v813_v19 = vrot.slane %v812_v8, 4  ;;  %v678_v40 = vld [vmem:[%s7859_s14 + $0x38] sm:$0x1] }
  0x5b   : > { %7241 = vmatprep.subr.bf16.mxu0 %v7711_v11  ;;  %v6445_v56 = vcombine.low %v3545_v39, %v3548_v50  ;;  %v839_v26 = vshll.u32 %v675_v1, 16  ;;  %v677_v39 = vld [vmem:[%s7859_s14 + $0x34] sm:$0xf]  ;;  %v3561_v42 = vrot.slane %v6391_v27, 5  ;;  %v6392_v45 = vld [vmem:[%s7859_s14 + $0x9c] sm:$0xe] }
  0x5c   : > { %v784_v49 = vsel %vm7882_vm2, %v779_v38, %v783_v23  ;;  %v802_v3 = vor.u32 %v801_v58, %v798_v57  ;;  %v818_v28 = vsel %vm7882_vm2, %v813_v19, %v817_v0  ;;  %v853_v50 = vshll.u32 %v677_v39, 16 }
  0x5d   : > { %v3565_v8 = vrot.slane %v6393_v51, 5 }
  0x5e   : > { %6988 = vmatmul.mubr.bf16.gmra.mrb[28].mxu1 %v7705_v34  ;;  %v788_v34 = vor.u32 %v787_v24, %v783_v23  ;;  %7242 = vmatpush3.bf16.msra.mxu0 %v7711_v11  ;;  %v829_v11 = vshll.u32 %v674_v60, 16  ;;  %v803_v13 = vrot.slane %v802_v3, 4  ;;  %v3555_v24 = vsel %vm7982_vm5, %v3553_v15, %v3554_v7  ;;  %v681_v3 = vld [vmem:[%s7859_s14 + $0x44] sm:$0x1] }
  0x5f   : > { %7243 = vmatprep.subr.bf16.mxu0 %v7713_v21  ;;  %7007 = vmatprep.mubr.bf16.mxu1 %v6116_v32  ;;  %v6446_v29 = vcombine.low %v3552_v14, %v3555_v24  ;;  %v676_v32 = vld [vmem:[%s7859_s14 + $0x30] sm:$0xf]  ;;  %v863_v60 = vshll.u32 %v678_v40, 16  ;;  %v6416_v7 = vrot.slane %v6392_v45, 9  ;;  %v6395_v14 = vld [vmem:[%s7859_s14 + $0xa8] sm:$0xe] }
  0x60   : > { %v789_v43 = vrot.slane %v788_v34, 4  ;;  %v831_v22 = vrot.slane %v829_v11, 5  ;;  %v808_v23 = vsel %vm7882_vm2, %v803_v13, %v807_v62  ;;  %v7714_v34 = vld [vmem:[%s8962_s1 + $0x98] sm:$0xff]   ;;  %v847_v44 = vshll.u32 %v676_v32, 16  ;;  %v680_v62 = vld [vmem:[%s7859_s14 + $0x40] sm:$0xf] }
  0x61   : > { %7212 = vmatmul.mubr.bf16.gmra.mrb[12].mxu0 %v6443_v59  ;;  %v673_v59 = vld [vmem:[%s7859_s14 + $0x24] sm:$0xf]  ;;  %v6118_v35 = vcombine.low %v808_v23, %v818_v28  ;;  %v865_v6 = vrot.slane %v863_v60, 5  ;;  %v3566_v15 = vsel %vm7982_vm5, %v6416_v7, %v3565_v8  ;;  %v881_v19 = vshrl.u32 %v680_v62, 16  ;;  %v6397_v24 = vld [vmem:[%s7859_s14 + $0xb0] sm:$0x1] }
  0x62   : > { %7215 = vmatprep.mubr.bf16.mxu0 %v6444_v17  ;;  %v794_v55 = vsel %vm7882_vm2, %v789_v43, %v793_v25  ;;  %7244 = vmatpush3.bf16.msra.mxu0 %v7713_v21  ;;  %v820_v9 = vshrl.u32 %v673_v59, 16  ;;  %v823_v10 = vshll.u32 %v673_v59, 16  ;;  %v6389_v17 = vld [vmem:[%s7859_s14 + $0x90] sm:$0xe]  ;;  %v835_v25 = vrot.slane %v833_v16, 4  ;;  %v7729_v7 = vld [vmem:[%s8962_s1 + $0xb8] sm:$0xff]  }
  0x63   : > { %v6117_v61 = vcombine.low %v784_v49, %v794_v55  ;;  %7245 = vmatprep.subr.bf16.mxu0 %v7715_v37  ;;  %v6415_v31 = vrot.slane %v6389_v17, 9  ;;  %v844_v43 = vshrl.u32 %v676_v32, 16  ;;  %v849_v54 = vrot.slane %v847_v44, 5 }
  0x64   : > { %v822_v20 = vrot.slane %v820_v9, 4  ;;  %v825_v21 = vrot.slane %v823_v10, 5  ;;  %v836_v36 = vor.u32 %v835_v25, %v831_v22  ;;  %v857_v55 = vshrl.u32 %v677_v39, 16  ;;  %v7721_v25 = vld [vmem:[%s8962_s1 + $0xa8] sm:$0xff]  }
  0x65   : > { %v846_v53 = vrot.slane %v844_v43, 4  ;;  %v855_v59 = vrot.slane %v853_v50, 5  ;;  %v3567_v16 = vrot.slane %v3565_v8, 4  ;;  %v877_v17 = vshll.u32 %v680_v62, 16 }
  0x66   : > { %7008 = vmatmul.mubr.bf16.vlgmr.msra.gmra.mrb[0].mxu1 %v6117_v61  ;;  %7246 = vmatpush3.bf16.msra.mxu0 %v7715_v37  ;;  %v826_v30 = vor.u32 %v825_v21, %v822_v20  ;;  %v841_v37 = vrot.slane %v839_v26, 5  ;;  %v837_v46 = vrot.slane %v836_v36, 4  ;;  %v679_v61 = vld [vmem:[%s7859_s14 + $0x3c] sm:$0xf]  ;;  %v6396_v20 = vld [vmem:[%s7859_s14 + $0xac] sm:$0xf] }
  0x67   : > { %7040 = vmatpush3.bf16.msra.mxu1 %v8083_v47  ;;  %v6390_v47 = vld [vmem:[%s7859_s14 + $0x94] sm:$0xf]  ;;  %7279 = vmatprep.subr.bf16.mxu0 %v8147_v18  ;;  %v850_v1 = vor.u32 %v849_v54, %v846_v53  ;;  %v871_v13 = vshll.u32 %v679_v61, 16  ;;  %v879_v27 = vrot.slane %v877_v17, 5  ;;  %v883_v28 = vrot.slane %v881_v19, 4 }
  0x68   : > { %7041 = vmatprep.subr.bf16.mxu1 %v7710_v2  ;;  %v3558_v38 = vrot.slane %v6390_v47, 5  ;;  %v827_v41 = vrot.slane %v826_v30, 4  ;;  %7011 = vmatprep.mubr.bf16.mxu1 %v6118_v35  ;;  %v842_v57 = vsel %vm7882_vm2, %v837_v46, %v841_v37  ;;  %v682_v35 = vld [vmem:[%s7859_s14 + $0x48] sm:$0xf]  ;;  %v7725_v36 = vld [vmem:[%s8962_s1 + $0xb0] sm:$0xff]   ;;  %v3572_v40 = vrot.slane %v6396_v20, 5 }
  0x69   : > { %7216 = vmatmul.mubr.bf16.gmra.mrb[16].mxu0 %v6445_v56  ;;  %v6394_v56 = vld [vmem:[%s7859_s14 + $0xa4] sm:$0x1]  ;;  %v851_v10 = vrot.slane %v850_v1, 4  ;;  %v873_v23 = vrot.slane %v871_v13, 5  ;;  %v3575_v44 = vrot.slane %v6397_v24, 5  ;;  %v892_v45 = vshrl.u32 %v682_v35, 16 }
  0x6a   : > { %7219 = vmatprep.mubr.bf16.mxu0 %v6446_v29  ;;  %v3559_v48 = vsel %vm7982_vm5, %v6415_v31, %v3558_v38  ;;  %v3560_v49 = vrot.slane %v3558_v38, 4  ;;  %v832_v52 = vsel %vm7882_vm2, %v827_v41, %v831_v22  ;;  %v3568_v9 = vrot.slane %v6394_v56, 5  ;;  %v683_v41 = vld [vmem:[%s7859_s14 + $0x4c] sm:$0xf]  ;;  %v6399_v53 = vld [vmem:[%s7859_s14 + $0xb8] sm:$0xf] }
  0x6b   : > { %7042 = vmatpush3.bf16.msra.mxu1 %v7710_v2  ;;  %v6119_v63 = vcombine.low %v832_v52, %v842_v57  ;;  %v859_v2 = vrot.slane %v857_v55, 4  ;;  %v856_v21 = vsel %vm7882_vm2, %v851_v10, %v855_v59  ;;  %v887_v29 = vshll.u32 %v681_v3, 16 }
  0x6c   : > { %7043 = vmatprep.subr.bf16.mxu1 %v7712_v12  ;;  %v3562_v58 = vsel %vm7982_vm5, %v3560_v49, %v3561_v42  ;;  %v3569_v26 = vsel %vm7982_vm5, %v3567_v16, %v3568_v9  ;;  %v884_v38 = vor.u32 %v883_v28, %v879_v27  ;;  %v684_v42 = vld [vmem:[%s7859_s14 + $0x50] sm:$0x1]  ;;  %v895_v46 = vshll.u32 %v682_v35, 16  ;;  %v6401_v16 = vld [vmem:[%s7859_s14 + $0xc0] sm:$0xe] }
  0x6d   : > { %v6447_v0 = vcombine.low %v3559_v48, %v3562_v58  ;;  %v860_v11 = vor.u32 %v859_v2, %v855_v59  ;;  %v6448_v31 = vcombine.low %v3566_v15, %v3569_v26  ;;  %v889_v39 = vrot.slane %v887_v29, 5  ;;  %v6398_v48 = vld [vmem:[%s7859_s14 + $0xb4] sm:$0xe]  ;;  %v6400_v58 = vld [vmem:[%s7859_s14 + $0xbc] sm:$0x1] }
  0x6e   : > { %7012 = vmatmul.mubr.bf16.gmra.mrb[4].mxu1 %v6119_v63  ;;  %v885_v49 = vrot.slane %v884_v38, 4  ;;  %v3574_v51 = vrot.slane %v3572_v40, 4  ;;  %v901_v52 = vshll.u32 %v683_v41, 16  ;;  %v894_v55 = vrot.slane %v892_v45, 4  ;;  %v685_v63 = vld [vmem:[%s7859_s14 + $0x54] sm:$0xf] }
  0x6f   : > { %7044 = vmatpush3.bf16.msra.mxu1 %v7712_v12  ;;  %v868_v12 = vshrl.u32 %v679_v61, 16  ;;  %v861_v22 = vrot.slane %v860_v11, 4  ;;  %v897_v56 = vrot.slane %v895_v46, 5  ;;  %v905_v57 = vshrl.u32 %v683_v41, 16  ;;  %v6403_v26 = vld [vmem:[%s7859_s14 + $0xc8] sm:$0x1] }
  0x70   : > { %7045 = vmatprep.subr.bf16.mxu1 %v7714_v34  ;;  %v890_v59 = vsel %vm7882_vm2, %v885_v49, %v889_v39  ;;  %v3576_v60 = vsel %vm7982_vm5, %v3574_v51, %v3575_v44  ;;  %v903_v61 = vrot.slane %v901_v52, 5  ;;  %v911_v62 = vshll.u32 %v684_v42, 16  ;;  %v689_v42 = vld [vmem:[%s7859_s14 + $0x64] sm:$0xf] }
  0x71   : > { %7220 = vmatmul.mubr.bf16.gmra.mrb[20].mxu0 %v6447_v0  ;;  %v870_v47 = vrot.slane %v868_v12, 4  ;;  %v866_v30 = vsel %vm7882_vm2, %v861_v22, %v865_v6  ;;  %v686_v0 = vld [vmem:[%s7859_s14 + $0x58] sm:$0xf]  ;;  %v898_v3 = vor.u32 %v897_v56, %v894_v55  ;;  %v687_v6 = vld [vmem:[%s7859_s14 + $0x5c] sm:$0x1]  ;;  %v6418_v9 = vrot.slane %v6398_v48, 9 }
  0x72   : > { %v6120_v37 = vcombine.low %v856_v21, %v866_v30  ;;  %7223 = vmatprep.mubr.bf16.mxu0 %v6448_v31  ;;  %v913_v8 = vrot.slane %v911_v62, 5  ;;  %v3579_v10 = vrot.slane %v6399_v53, 5  ;;  %v3582_v11 = vrot.slane %v6400_v58, 5  ;;  %v6402_v22 = vld [vmem:[%s7859_s14 + $0xc4] sm:$0xf] }
  0x73   : > { %7046 = vmatpush3.bf16.msra.mxu1 %v7714_v34  ;;  %v874_v32 = vor.u32 %v873_v23, %v870_v47  ;;  %v6417_v34 = vrot.slane %v6395_v14, 9  ;;  %v899_v12 = vrot.slane %v898_v3, 4  ;;  %v916_v14 = vshrl.u32 %v685_v63, 16  ;;  %v691_v58 = vld [vmem:[%s7859_s14 + $0x6c] sm:$0xf] }
  0x74   : > { %7047 = vmatprep.subr.bf16.mxu1 %v7717_v5  ;;  %7015 = vmatprep.mubr.bf16.mxu1 %v6120_v37  ;;  %v919_v15 = vshll.u32 %v685_v63, 16  ;;  %v3580_v17 = vsel %vm7982_vm5, %v6418_v9, %v3579_v10  ;;  %v3581_v19 = vrot.slane %v3579_v10, 4  ;;  %v925_v20 = vshll.u32 %v686_v0, 16  ;;  %v688_v37 = vld [vmem:[%s7859_s14 + $0x60] sm:$0xf] }
  0x75   : > { %v875_v43 = vrot.slane %v874_v32, 4  ;;  %v3573_v50 = vsel %vm7982_vm5, %v6417_v34, %v3572_v40  ;;  %v929_v21 = vshrl.u32 %v686_v0, 16  ;;  %v904_v47 = vsel %vm7882_vm2, %v899_v12, %v903_v61  ;;  %v692_v63 = vld [vmem:[%s7859_s14 + $0x70] sm:$0xf]  ;;  %v693_v0 = vld [vmem:[%s7859_s14 + $0x74] sm:$0x1] }
  0x76   : > { %v6449_v2 = vcombine.low %v3573_v50, %v3576_v60  ;;  %v918_v24 = vrot.slane %v916_v14, 4  ;;  %v3583_v28 = vsel %vm7982_vm5, %v3581_v19, %v3582_v11  ;;  %v927_v29 = vrot.slane %v925_v20, 5 }
  0x77   : > { %7048 = vmatpush3.bf16.msra.mxu1 %v7717_v5  ;;  %v880_v54 = vsel %vm7882_vm2, %v875_v43, %v879_v27  ;;  %v907_v5 = vrot.slane %v905_v57, 4  ;;  %v8228_v27 = vld [vmem:[%s8962_s1 + $0xc0] sm:$0xff]   ;;  %v931_v30 = vrot.slane %v929_v21, 4  ;;  %v935_v31 = vshll.u32 %v687_v6, 16  ;;  %v690_v43 = vld [vmem:[%s7859_s14 + $0x68] sm:$0x1] }
  0x78   : > { %7049 = vmatprep.subr.bf16.mxu1 %v7721_v25  ;;  %v6121_v1 = vcombine.low %v880_v54, %v890_v59  ;;  %v6450_v34 = vcombine.low %v3580_v17, %v3583_v28  ;;  %v3586_v41 = vrot.slane %v6402_v22, 5  ;;  %v3589_v45 = vrot.slane %v6403_v26, 5  ;;  %v7716_v57 = vld [vmem:[%s7859_s14 + $0x18] sm:$0xff]   ;;  %v7718_v22 = vld [vmem:[%s7859_s14 + $0x24] sm:$0xff]   ;;  %v7720_v26 = vld [vmem:[%s7859_s14 + $0x30] sm:$0xff]  }
  0x79   : > { %7224 = vmatmul.mubr.bf16.gmra.mrb[24].mxu0 %v6449_v2  ;;  %v908_v13 = vor.u32 %v907_v5, %v903_v61  ;;  %v932_v39 = vor.u32 %v931_v30, %v927_v29  ;;  %v937_v40 = vrot.slane %v935_v31, 5  ;;  %v940_v46 = vshrl.u32 %v688_v37, 16 }
  0x7a   : > { %7016 = vmatmul.mubr.bf16.gmra.mrb[8].mxu1 %v6121_v1  ;;  %7227 = vmatprep.mubr.bf16.mxu0 %v6450_v34  ;;  %v943_v48 = vshll.u32 %v688_v37, 16  ;;  %v3588_v51 = vrot.slane %v3586_v41, 4  ;;  %v949_v52 = vshll.u32 %v689_v42, 16  ;;  %v953_v56 = vshrl.u32 %v689_v42, 16  ;;  %v697_v37 = vld [vmem:[%s7859_s14 + $0x84] sm:$0xf] }
  0x7b   : > { %7050 = vmatpush3.bf16.msra.mxu1 %v7721_v25  ;;  %v909_v23 = vrot.slane %v908_v13, 4  ;;  %v921_v25 = vrot.slane %v919_v15, 5  ;;  %v933_v49 = vrot.slane %v932_v39, 4  ;;  %v942_v54 = vrot.slane %v940_v46, 4 }
  0x7c   : > { %7051 = vmatprep.subr.bf16.mxu1 %v7725_v36  ;;  %v945_v55 = vrot.slane %v943_v48, 5  ;;  %v3590_v60 = vsel %vm7982_vm5, %v3588_v51, %v3589_v45  ;;  %v951_v61 = vrot.slane %v949_v52, 5  ;;  %v959_v62 = vshll.u32 %v690_v43, 16  ;;  %v698_v43 = vld [vmem:[%s7859_s14 + $0x88] sm:$0xf] }
  0x7d   : > { %v914_v32 = vsel %vm7882_vm2, %v909_v23, %v913_v8  ;;  %v922_v35 = vor.u32 %v921_v25, %v918_v24  ;;  %v938_v59 = vsel %vm7882_vm2, %v933_v49, %v937_v40  ;;  %v955_v5 = vrot.slane %v953_v56, 4  ;;  %v694_v23 = vld [vmem:[%s7859_s14 + $0x78] sm:$0xf]  ;;  %v695_v24 = vld [vmem:[%s7859_s14 + $0x7c] sm:$0xf] }
  0x7e   : > { %v6122_v38 = vcombine.low %v904_v47, %v914_v32  ;;  %v946_v3 = vor.u32 %v945_v55, %v942_v54  ;;  %v961_v6 = vrot.slane %v959_v62, 5  ;;  %v967_v8 = vshll.u32 %v691_v58, 16  ;;  %v696_v25 = vld [vmem:[%s7859_s14 + $0x80] sm:$0x1]  ;;  %v699_v48 = vld [vmem:[%s7859_s14 + $0x8c] sm:$0x1] }
  0x7f   : > { %7052 = vmatpush3.bf16.msra.mxu1 %v7725_v36  ;;  %v6419_v36 = vrot.slane %v6401_v16, 9  ;;  %v923_v44 = vrot.slane %v922_v35, 4  ;;  %v973_v9 = vshll.u32 %v692_v63, 16  ;;  %v956_v11 = vor.u32 %v955_v5, %v951_v61  ;;  %v7727_v54 = vld [vmem:[%s8962_s1 + $0x1d0] sm:$0xff]  }
  0x80   : > { %7053 = vmatprep.subr.bf16.mxu1 %v7729_v7  ;;  %7019 = vmatprep.mubr.bf16.mxu1 %v6122_v38  ;;  %v947_v10 = vrot.slane %v946_v3, 4  ;;  %v977_v12 = vshrl.u32 %v692_v63, 16  ;;  %v983_v13 = vshll.u32 %v693_v0, 16  ;;  %v969_v15 = vrot.slane %v967_v8, 5  ;;  %v7723_v38 = vld [vmem:[%s8962_s1 + $0x1c8] sm:$0xff]   ;;  %v7722_v63 = vld [vmem:[%s7859_s14 + $0x3c] sm:$0xff]  }
  0x81   : > { %v3587_v50 = vsel %vm7982_vm5, %v6419_v36, %v3586_v41  ;;  %v928_v53 = vsel %vm7882_vm2, %v923_v44, %v927_v29  ;;  %v975_v16 = vrot.slane %v973_v9, 5  ;;  %v957_v19 = vrot.slane %v956_v11, 4  ;;  %v7724_v3 = vld [vmem:[%s7859_s14 + $0x48] sm:$0xff]   ;;  %v701_v8 = vld [vmem:[%s7859_s14 + $0x94] sm:$0xf] }
  0x82   : > { %v6123_v1 = vcombine.low %v928_v53, %v938_v59  ;;  %v6451_v2 = vcombine.low %v3587_v50, %v3590_v60  ;;  %v952_v17 = vsel %vm7882_vm2, %v947_v10, %v951_v61  ;;  %v979_v20 = vrot.slane %v977_v12, 4  ;;  %v702_v9 = vld [vmem:[%s7859_s14 + $0x98] sm:$0x1] }
  0x83   : > { %7054 = vmatpush3.bf16.msra.mxu1 %v7729_v7  ;;  %v964_v7 = vshrl.u32 %v691_v58, 16  ;;  %v985_v21 = vrot.slane %v983_v13, 5  ;;  %v962_v28 = vsel %vm7882_vm2, %v957_v19, %v961_v6  ;;  %v988_v30 = vshrl.u32 %v694_v23, 16 }
  0x84   : > { %7087 = vmatprep.subr.bf16.mxu1 %v8228_v27  ;;  %7020 = vmatmul.mubr.bf16.gmra.mrb[12].mxu1 %v6123_v1  ;;  %v980_v29 = vor.u32 %v979_v20, %v975_v16  ;;  %v991_v31 = vshll.u32 %v694_v23, 16  ;;  %v6124_v32 = vcombine.low %v952_v17, %v962_v28  ;;  %v997_v35 = vshll.u32 %v695_v24, 16  ;;  %v703_v20 = vld [vmem:[%s7859_s14 + $0x9c] sm:$0xf] }
  0x85   : > { %7228 = vmatmul.mubr.bf16.gmra.mrb[28].mxu0 %v6451_v2  ;;  %v966_v14 = vrot.slane %v964_v7, 4  ;;  %v1001_v36 = vshrl.u32 %v695_v24, 16  ;;  %v990_v40 = vrot.slane %v988_v30, 4  ;;  %v1007_v42 = vshll.u32 %v696_v25, 16  ;;  %v700_v2 = vld [vmem:[%s7859_s14 + $0x90] sm:$0xf] }
  0x86   : > { %7247 = vmatprep.mubr.bf16.mxu0 %v7716_v57  ;;  %v981_v39 = vrot.slane %v980_v29, 4  ;;  %v993_v41 = vrot.slane %v991_v31, 5  ;;  %7023 = vmatprep.mubr.bf16.mxu1 %v6124_v32  ;;  %v999_v45 = vrot.slane %v997_v35, 5  ;;  %v1012_v49 = vshrl.u32 %v697_v37, 16  ;;  %v704_v24 = vld [vmem:[%s7859_s14 + $0xa0] sm:$0xf] }
  0x87   : > { %v970_v47 = vor.u32 %v969_v15, %v966_v14  ;;  %v1003_v46 = vrot.slane %v1001_v36, 4  ;;  %v1009_v52 = vrot.slane %v1007_v42, 5  ;;  %v1015_v53 = vshll.u32 %v697_v37, 16  ;;  %v7731_v14 = vld [vmem:[%s8962_s1 + $0x1d8] sm:$0xff]   ;;  %v705_v29 = vld [vmem:[%s7859_s14 + $0xa4] sm:$0x1] }
  0x88   : > { %v986_v50 = vsel %vm7882_vm2, %v981_v39, %v985_v21  ;;  %v994_v51 = vor.u32 %v993_v41, %v990_v40  ;;  %v1014_v57 = vrot.slane %v1012_v49, 4  ;;  %v1021_v58 = vshll.u32 %v698_v43, 16  ;;  %v7735_v36 = vld [vmem:[%s8962_s1 + $0x1e0] sm:$0xff]  }
  0x89   : > { %v971_v34 = vrot.slane %v970_v47, 4  ;;  %v1004_v56 = vor.u32 %v1003_v46, %v999_v45  ;;  %v1017_v60 = vrot.slane %v1015_v53, 5  ;;  %v1025_v61 = vshrl.u32 %v698_v43, 16  ;;  %v706_v53 = vld [vmem:[%s7859_s14 + $0xa8] sm:$0xf] }
  0x8a   : > { %v995_v59 = vrot.slane %v994_v51, 4  ;;  %v1031_v62 = vshll.u32 %v699_v48, 16  ;;  %v1023_v1 = vrot.slane %v1021_v58, 5  ;;  %v1036_v11 = vshrl.u32 %v700_v2, 16  ;;  %v708_v58 = vld [vmem:[%s7859_s14 + $0xb0] sm:$0x1] }
  0x8b   : > { %v976_v44 = vsel %vm7882_vm2, %v971_v34, %v975_v16  ;;  %v1005_v0 = vrot.slane %v1004_v56, 4  ;;  %v1018_v5 = vor.u32 %v1017_v60, %v1014_v57  ;;  %v1027_v6 = vrot.slane %v1025_v61, 4 }
  0x8c   : > { %v6125_v55 = vcombine.low %v976_v44, %v986_v50  ;;  %v1033_v7 = vrot.slane %v1031_v62, 5  ;;  %v1039_v12 = vshll.u32 %v700_v2, 16  ;;  %v1045_v13 = vshll.u32 %v701_v8, 16  ;;  %v7728_v50 = vld [vmem:[%s7859_s14 + $0x60] sm:$0xff]  }
  0x8d   : > { %7248 = vmatmul.mubr.bf16.vlgmr.msra.gmra.mrb[0].mxu0 %v7718_v22  ;;  %v1010_v10 = vsel %vm7882_vm2, %v1005_v0, %v1009_v52  ;;  %v1019_v16 = vrot.slane %v1018_v5, 4  ;;  %v1028_v17 = vor.u32 %v1027_v6, %v1023_v1  ;;  %v1049_v19 = vshrl.u32 %v701_v8, 16  ;;  %v7739_v0 = vld [vmem:[%s8962_s1 + $0x1e8] sm:$0xff]   ;;  %v709_v5 = vld [vmem:[%s7859_s14 + $0xb4] sm:$0xf] }
  0x8e   : > { %7280 = vmatpush3.bf16.msra.mxu0 %v8147_v18  ;;  %7251 = vmatprep.mubr.bf16.mxu0 %v7720_v26  ;;  %v1000_v18 = vsel %vm7882_vm2, %v995_v59, %v999_v45  ;;  %v1038_v21 = vrot.slane %v1036_v11, 4  ;;  %v1041_v22 = vrot.slane %v1039_v12, 5  ;;  %v1047_v47 = vrot.slane %v1045_v13, 5  ;;  %v7726_v45 = vld [vmem:[%s7859_s14 + $0x54] sm:$0xff]  }
  0x8f   : > { %7281 = vmatprep.subr.bf16.mxu0 %v7723_v38  ;;  %7024 = vmatmul.mubr.bf16.gmra.mrb[16].mxu1 %v6125_v55  ;;  %v6126_v15 = vcombine.low %v1000_v18, %v1010_v10  ;;  %v1055_v23 = vshll.u32 %v702_v9, 16  ;;  %v1024_v25 = vsel %vm7882_vm2, %v1019_v16, %v1023_v1  ;;  %v1029_v26 = vrot.slane %v1028_v17, 4  ;;  %v710_v9 = vld [vmem:[%s7859_s14 + $0xb8] sm:$0xf]  ;;  %v711_v10 = vld [vmem:[%s7859_s14 + $0xbc] sm:$0x1] }
  0x90   : > { %v1051_v28 = vrot.slane %v1049_v19, 4  ;;  %v1060_v30 = vshrl.u32 %v703_v20, 16  ;;  %v1042_v31 = vor.u32 %v1041_v22, %v1038_v21  ;;  %v1063_v34 = vshll.u32 %v703_v20, 16 }
  0x91   : > { %7027 = vmatprep.mubr.bf16.mxu1 %v6126_v15  ;;  %v1057_v32 = vrot.slane %v1055_v23, 5  ;;  %v1069_v35 = vshll.u32 %v704_v24, 16  ;;  %v1034_v37 = vsel %vm7882_vm2, %v1029_v26, %v1033_v7  ;;  %v1073_v40 = vshrl.u32 %v704_v24, 16  ;;  %v7743_v15 = vld [vmem:[%s8962_s1 + $0x1f0] sm:$0xff]  }
  0x92   : > { %7282 = vmatpush3.bf16.msra.mxu0 %v7723_v38  ;;  %v1052_v38 = vor.u32 %v1051_v28, %v1047_v47  ;;  %v1062_v39 = vrot.slane %v1060_v30, 4  ;;  %v6127_v41 = vcombine.low %v1024_v25, %v1034_v37  ;;  %v1043_v42 = vrot.slane %v1042_v31, 4  ;;  %v7730_v24 = vld [vmem:[%s7859_s14 + $0x6c] sm:$0xff]   ;;  %v1485_v37 = vld [vmem:[%s7859_s14] sm:$0xe] }
  0x93   : > { %7283 = vmatprep.subr.bf16.mxu0 %v7727_v54  ;;  %v1065_v43 = vrot.slane %v1063_v34, 5  ;;  %v1071_v44 = vrot.slane %v1069_v35, 5  ;;  %v1075_v48 = vrot.slane %v1073_v40, 4  ;;  %v1079_v49 = vshll.u32 %v705_v29, 16  ;;  %v7732_v29 = vld [vmem:[%s7859_s14 + $0x78] sm:$0xff]  }
  0x94   : > { %v1053_v46 = vrot.slane %v1052_v38, 4  ;;  %v1048_v51 = vsel %vm7882_vm2, %v1043_v42, %v1047_v47  ;;  %v1084_v59 = vshrl.u32 %v706_v53, 16  ;;  %v1087_v62 = vshll.u32 %v706_v53, 16  ;;  %v7747_v34 = vld [vmem:[%s8962_s1 + $0x1f8] sm:$0xff]   ;;  %v1486_v38 = vld [vmem:[%s7859_s14 + $0x4] sm:$0xf] }
  0x95   : > { %7252 = vmatmul.mubr.bf16.gmra.mrb[4].mxu0 %v7722_v63  ;;  %v1066_v52 = vor.u32 %v1065_v43, %v1062_v39  ;;  %v1076_v56 = vor.u32 %v1075_v48, %v1071_v44  ;;  %v1081_v57 = vrot.slane %v1079_v49, 5  ;;  %v1103_v18 = vshll.u32 %v708_v58, 16  ;;  %v1487_v39 = vld [vmem:[%s7859_s14 + $0x8] sm:$0x1]  ;;  %v1488_v48 = vld [vmem:[%s7859_s14 + $0xc] sm:$0xe] }
  0x96   : > { %7255 = vmatprep.mubr.bf16.mxu0 %v7724_v3  ;;  %7284 = vmatpush3.bf16.msra.mxu0 %v7727_v54  ;;  %v707_v54 = vld [vmem:[%s7859_s14 + $0xac] sm:$0xf]  ;;  %v1058_v55 = vsel %vm7882_vm2, %v1053_v46, %v1057_v32  ;;  %v1086_v2 = vrot.slane %v1084_v59, 4  ;;  %v1089_v7 = vrot.slane %v1087_v62, 5  ;;  %v1111_v19 = vshll.u32 %v709_v5, 16 }
  0x97   : > { %7285 = vmatprep.subr.bf16.mxu0 %v7731_v14  ;;  %7028 = vmatmul.mubr.bf16.gmra.mrb[20].mxu1 %v6127_v41  ;;  %v6128_v60 = vcombine.low %v1048_v51, %v1058_v55  ;;  %v1067_v61 = vrot.slane %v1066_v52, 4  ;;  %v1093_v63 = vshll.u32 %v707_v54, 16  ;;  %v1077_v1 = vrot.slane %v1076_v56, 4  ;;  %v1489_v49 = vld [vmem:[%s7859_s14 + $0x10] sm:$0xf]  ;;  %v7734_v55 = vld [vmem:[%s7859_s14 + $0x84] sm:$0xff]  }
  0x98   : > { %v1097_v3 = vshrl.u32 %v707_v54, 16  ;;  %v1105_v13 = vrot.slane %v1103_v18, 5  ;;  %v1090_v17 = vor.u32 %v1089_v7, %v1086_v2  ;;  %v1117_v20 = vshll.u32 %v710_v9, 16  ;;  %v1490_v53 = vld [vmem:[%s7859_s14 + $0x14] sm:$0x1]  ;;  %v8338_v56 = vld [vmem:[%s8962_s1 + $0x200] sm:$0xff]  }
  0x99   : > { %7031 = vmatprep.mubr.bf16.mxu1 %v6128_v60  ;;  %v1072_v6 = vsel %vm7882_vm2, %v1067_v61, %v1071_v44  ;;  %v1095_v8 = vrot.slane %v1093_v63, 5  ;;  %v1082_v11 = vsel %vm7882_vm2, %v1077_v1, %v1081_v57  ;;  %v1121_v47 = vshrl.u32 %v710_v9, 16  ;;  %v1491_v1 = vld [vmem:[%s7859_s14 + $0x18] sm:$0xe]  ;;  %v7736_v2 = vld [vmem:[%s7859_s14 + $0x90] sm:$0xff]  }
  0x9a   : > { %7286 = vmatpush3.bf16.msra.mxu0 %v7731_v14  ;;  %v1099_v12 = vrot.slane %v1097_v3, 4  ;;  %v1108_v14 = vshrl.u32 %v709_v5, 16  ;;  %v6129_v16 = vcombine.low %v1072_v6, %v1082_v11  ;;  %v1127_v23 = vshll.u32 %v711_v10, 16  ;;  %v1492_v3 = vld [vmem:[%s7859_s14 + $0x1c] sm:$0xf] }
  0x9b   : > { %7287 = vmatprep.subr.bf16.mxu0 %v7735_v36  ;;  %v1091_v25 = vrot.slane %v1090_v17, 4  ;;  %v1113_v26 = vrot.slane %v1111_v19, 5  ;;  %v1119_v28 = vrot.slane %v1117_v20, 5  ;;  %v1123_v31 = vrot.slane %v1121_v47, 4  ;;  %v1493_v18 = vld [vmem:[%s7859_s14 + $0x20] sm:$0x1] }
  0x9c   : > { %v1100_v21 = vor.u32 %v1099_v12, %v1095_v8  ;;  %v1110_v22 = vrot.slane %v1108_v14, 4  ;;  %v1129_v32 = vrot.slane %v1127_v23, 5  ;;  %v6140_v42 = vrot.slane %v1485_v37, 9  ;;  %v1494_v10 = vld [vmem:[%s7859_s14 + $0x24] sm:$0xe]  ;;  %v7738_v47 = vld [vmem:[%s7859_s14 + $0x9c] sm:$0xff]  }
  0x9d   : > { %7256 = vmatmul.mubr.bf16.gmra.mrb[8].mxu0 %v7726_v45  ;;  %v1096_v35 = vsel %vm7882_vm2, %v1091_v25, %v1095_v8  ;;  %v1124_v41 = vor.u32 %v1123_v31, %v1119_v28  ;;  %v1618_v43 = vrot.slane %v1486_v38, 5  ;;  %v1621_v46 = vrot.slane %v1487_v39, 5  ;;  %v1495_v11 = vld [vmem:[%s7859_s14 + $0x28] sm:$0xf]  ;;  %v1496_v12 = vld [vmem:[%s7859_s14 + $0x2c] sm:$0x1] }
  0x9e   : > { %7259 = vmatprep.mubr.bf16.mxu0 %v7728_v50  ;;  %7288 = vmatpush3.bf16.msra.mxu0 %v7735_v36  ;;  %v1101_v30 = vrot.slane %v1100_v21, 4  ;;  %v1114_v36 = vor.u32 %v1113_v26, %v1110_v22  ;;  %v6141_v54 = vrot.slane %v1488_v48, 9  ;;  %v1625_v58 = vrot.slane %v1489_v49, 5  ;;  %v7737_v22 = vld [vmem:[%s8962_s1 + $0xc8] sm:$0xff]   ;;  %v1498_v25 = vld [vmem:[%s7859_s14 + $0x34] sm:$0xf] }
  0x9f   : > { %7289 = vmatprep.subr.bf16.mxu0 %v7739_v0  ;;  %7032 = vmatmul.mubr.bf16.gmra.mrb[24].mxu1 %v6129_v16  ;;  %v1125_v50 = vrot.slane %v1124_v41, 4  ;;  %v1619_v51 = vsel %vm7982_vm5, %v6140_v42, %v1618_v43  ;;  %v1620_v52 = vrot.slane %v1618_v43, 4  ;;  %v1628_v59 = vrot.slane %v1490_v53, 5  ;;  %v1499_v26 = vld [vmem:[%s7859_s14 + $0x38] sm:$0x1]  ;;  %v7740_v31 = vld [vmem:[%s7859_s14 + $0xa8] sm:$0xff]  }
  0xa0   : > { %v1106_v40 = vsel %vm7882_vm2, %v1101_v30, %v1105_v13  ;;  %v1115_v45 = vrot.slane %v1114_v36, 4  ;;  %v6142_v5 = vrot.slane %v1491_v1, 9  ;;  %v1632_v6 = vrot.slane %v1492_v3, 5  ;;  %v1502_v36 = vld [vmem:[%s7859_s14 + $0x44] sm:$0x1]  ;;  %v7742_v48 = vld [vmem:[%s7859_s14 + $0xb4] sm:$0xff]  }
  0xa1   : > { %v6130_v44 = vcombine.low %v1096_v35, %v1106_v40  ;;  %v1130_v60 = vsel %vm7882_vm2, %v1125_v50, %v1129_v32  ;;  %v1622_v61 = vsel %vm7982_vm5, %v1620_v52, %v1621_v46  ;;  %v1635_v7 = vrot.slane %v1493_v18, 5  ;;  %v1500_v32 = vld [vmem:[%s7859_s14 + $0x3c] sm:$0xe]  ;;  %v1501_v35 = vld [vmem:[%s7859_s14 + $0x40] sm:$0xf]  ;;  %v7741_v40 = vld [vmem:[%s8962_s1 + $0xd0] sm:$0xff]  }
  0xa2   : > { %7290 = vmatpush3.bf16.msra.mxu0 %v7739_v0  ;;  %v1120_v57 = vsel %vm7882_vm2, %v1115_v45, %v1119_v28  ;;  %v6172_v63 = vcombine.low %v1619_v51, %v1622_v61  ;;  %v1627_v0 = vrot.slane %v1625_v58, 4  ;;  %v1626_v8 = vsel %vm7982_vm5, %v6141_v54, %v1625_v58  ;;  %v1504_v49 = vld [vmem:[%s7859_s14 + $0x4c] sm:$0xf]  ;;  %v1505_v50 = vld [vmem:[%s7859_s14 + $0x50] sm:$0x1]  ;;  %v7745_v52 = vld [vmem:[%s8962_s1 + $0xd8] sm:$0xff]  }
  0xa3   : > { %7291 = vmatprep.subr.bf16.mxu0 %v7743_v15  ;;  %7035 = vmatprep.mubr.bf16.mxu1 %v6130_v44  ;;  %v6131_v62 = vcombine.low %v1120_v57, %v1130_v60  ;;  %v1633_v13 = vsel %vm7982_vm5, %v6142_v5, %v1632_v6  ;;  %v1634_v14 = vrot.slane %v1632_v6, 4  ;;  %v6143_v16 = vrot.slane %v1494_v10, 9  ;;  %v1503_v44 = vld [vmem:[%s7859_s14 + $0x48] sm:$0xe]  ;;  %v1506_v57 = vld [vmem:[%s7859_s14 + $0x54] sm:$0xe] }
  0xa4   : > { %v1629_v9 = vsel %vm7982_vm5, %v1627_v0, %v1628_v59  ;;  %v1642_v21 = vrot.slane %v1496_v12, 5  ;;  %v1649_v30 = vrot.slane %v1499_v26, 5  ;;  %v1653_v39 = vrot.slane %v1501_v35, 5  ;;  %v1507_v58 = vld [vmem:[%s7859_s14 + $0x58] sm:$0xf]  ;;  %v7744_v61 = vld [vmem:[%s7859_s14 + $0xc0] sm:$0xff]  }
  0xa5   : > { %7260 = vmatmul.mubr.bf16.gmra.mrb[12].mxu0 %v7730_v24  ;;  %v6173_v17 = vcombine.low %v1626_v8, %v1629_v9  ;;  %v1636_v19 = vsel %vm7982_vm5, %v1634_v14, %v1635_v7  ;;  %v1497_v24 = vld [vmem:[%s7859_s14 + $0x30] sm:$0xe]  ;;  %v6145_v42 = vrot.slane %v1500_v32, 9  ;;  %v1656_v43 = vrot.slane %v1502_v36, 5  ;;  %v1508_v59 = vld [vmem:[%s7859_s14 + $0x5c] sm:$0x1] }
  0xa6   : > { %7263 = vmatprep.mubr.bf16.mxu0 %v7732_v29  ;;  %7292 = vmatpush3.bf16.msra.mxu0 %v7743_v15  ;;  %v1639_v15 = vrot.slane %v1495_v11, 5  ;;  %v6174_v23 = vcombine.low %v1633_v13, %v1636_v19  ;;  %v6144_v28 = vrot.slane %v1497_v24, 9  ;;  %v1646_v29 = vrot.slane %v1498_v25, 5  ;;  %v7748_v6 = vld [vmem:[%s8962_s1 + $0xe0] sm:$0xff]   ;;  %v1511_v11 = vld [vmem:[%s7859_s14 + $0x68] sm:$0x1] }
  0xa7   : > { %7293 = vmatprep.subr.bf16.mxu0 %v7747_v34  ;;  %7036 = vmatmul.mubr.bf16.gmra.mrb[28].mxu1 %v6131_v62  ;;  %v1655_v46 = vrot.slane %v1653_v39, 4  ;;  %v6146_v51 = vrot.slane %v1503_v44, 9  ;;  %v1660_v54 = vrot.slane %v1504_v49, 5  ;;  %v6147_v62 = vrot.slane %v1506_v57, 9  ;;  %v1509_v7 = vld [vmem:[%s7859_s14 + $0x60] sm:$0xe] }
  0xa8   : > { %7055 = vmatprep.mubr.bf16.mxu1 %v6172_v63  ;;  %v1641_v20 = vrot.slane %v1639_v15, 4  ;;  %v1640_v37 = vsel %vm7982_vm5, %v6143_v16, %v1639_v15  ;;  %v1667_v63 = vrot.slane %v1507_v58, 5  ;;  %v1654_v0 = vsel %vm7982_vm5, %v6145_v42, %v1653_v39  ;;  %v1510_v8 = vld [vmem:[%s7859_s14 + $0x64] sm:$0xf]  ;;  %v6532_v13 = vld [vmem:[%s7859_s14 + $0x18] sm:$0xf] }
  0xa9   : > { %v1662_v60 = vrot.slane %v1660_v54, 4  ;;  %v1657_v1 = vsel %vm7982_vm5, %v1655_v46, %v1656_v43  ;;  %v1661_v3 = vsel %vm7982_vm5, %v6146_v51, %v1660_v54  ;;  %v1674_v12 = vrot.slane %v1510_v8, 5  ;;  %v7746_v16 = vld [vmem:[%s7859_s14 + $0xcc] sm:$0xff]   ;;  %v6533_v19 = vld [vmem:[%s7859_s14 + $0x1c] sm:$0xf] }
  0xaa   : > { %7294 = vmatpush3.bf16.msra.mxu0 %v7747_v34  ;;  %v1648_v34 = vrot.slane %v1646_v29, 4  ;;  %v1643_v38 = vsel %vm7982_vm5, %v1641_v20, %v1642_v21  ;;  %v1669_v5 = vrot.slane %v1667_v63, 4  ;;  %v6177_v9 = vcombine.low %v1654_v0, %v1657_v1  ;;  %v6534_v20 = vld [vmem:[%s7859_s14 + $0x20] sm:$0x1]  ;;  %v1512_v26 = vld [vmem:[%s7859_s14 + $0x6c] sm:$0xe] }
  0xab   : > { %7327 = vmatprep.subr.bf16.mxu0 %v8338_v56  ;;  %v6175_v45 = vcombine.low %v1640_v37, %v1643_v38  ;;  %v8411_v10 = vsel %vm7982_vm5, %v6147_v62, %v1667_v63  ;;  %v4477_v21 = vshrl.u32 %v6532_v13, 16  ;;  %v4480_v24 = vshll.u32 %v6532_v13, 16  ;;  %v1514_v36 = vld [vmem:[%s7859_s14 + $0x74] sm:$0x1]  ;;  %v6535_v46 = vld [vmem:[%s7859_s14 + $0x24] sm:$0xf] }
  0xac   : > { %v1650_v41 = vsel %vm7982_vm5, %v1648_v34, %v1649_v30  ;;  %v4486_v25 = vshll.u32 %v6533_v19, 16  ;;  %v4496_v30 = vshll.u32 %v6534_v20, 16  ;;  %v6149_v32 = vrot.slane %v1512_v26, 9  ;;  %v6537_v51 = vld [vmem:[%s7859_s14 + $0x2c] sm:$0x1] }
  0xad   : > { %7264 = vmatmul.mubr.bf16.gmra.mrb[16].mxu0 %v7734_v55  ;;  %v1663_v55 = vrot.slane %v1505_v50, 5  ;;  %v4482_v34 = vrot.slane %v4480_v24, 5  ;;  %v6536_v50 = vld [vmem:[%s7859_s14 + $0x28] sm:$0xf]  ;;  %v1517_v8 = vld [vmem:[%s7859_s14 + $0x80] sm:$0x1] }
  0xae   : > { %7267 = vmatprep.mubr.bf16.mxu0 %v7736_v2  ;;  %v1670_v2 = vrot.slane %v1508_v59, 5  ;;  %v4488_v35 = vrot.slane %v4486_v25, 5  ;;  %v4498_v44 = vrot.slane %v4496_v30, 5  ;;  %v4510_v57 = vshll.u32 %v6536_v50, 16  ;;  %v6540_v20 = vld [vmem:[%s7859_s14 + $0x38] sm:$0x1] }
  0xaf   : > { %7056 = vmatmul.mubr.bf16.vlgmr.msra.gmra.mrb[0].mxu1 %v6173_v17  ;;  %v1664_v18 = vsel %vm7982_vm5, %v1662_v60, %v1663_v55  ;;  %v6148_v17 = vrot.slane %v1509_v7, 9  ;;  %v4514_v58 = vshrl.u32 %v6536_v50, 16  ;;  %v1516_v7 = vld [vmem:[%s7859_s14 + $0x7c] sm:$0xf]  ;;  %v1518_v26 = vld [vmem:[%s7859_s14 + $0x84] sm:$0xe] }
  0xb0   : > { %7088 = vmatpush3.bf16.msra.mxu1 %v8228_v27  ;;  %7059 = vmatprep.mubr.bf16.mxu1 %v6174_v23  ;;  %v1647_v27 = vsel %vm7982_vm5, %v6144_v28, %v1646_v29  ;;  %v6178_v14 = vcombine.low %v1661_v3, %v1664_v18  ;;  %v8417_v15 = vsel %vm7982_vm5, %v1669_v5, %v1670_v2  ;;  %v1677_v23 = vrot.slane %v1511_v11, 5  ;;  %v1515_v3 = vld [vmem:[%s7859_s14 + $0x78] sm:$0xe] }
  0xb1   : > { %7089 = vmatprep.subr.bf16.mxu1 %v7737_v22  ;;  %v6176_v53 = vcombine.low %v1647_v27, %v1650_v41  ;;  %v4479_v28 = vrot.slane %v4477_v21, 4  ;;  %v4490_v29 = vshrl.u32 %v6533_v19, 16  ;;  %v6179_v38 = vcombine.low %v8411_v10, %v8417_v15  ;;  %v7752_v41 = vld [vmem:[%s8962_s1 + $0xf0] sm:$0xff]   ;;  %v7754_v10 = vld [vmem:[%s8962_s1 + $0xf8] sm:$0xff]  }
  0xb2   : > { %v1675_v39 = vsel %vm7982_vm5, %v6148_v17, %v1674_v12  ;;  %v1684_v27 = vrot.slane %v1514_v36, 5  ;;  %v4512_v0 = vrot.slane %v4510_v57, 5  ;;  %v4516_v1 = vrot.slane %v4514_v58, 4  ;;  %v6538_v15 = vld [vmem:[%s7859_s14 + $0x30] sm:$0xf] }
  0xb3   : > { %v4483_v43 = vor.u32 %v4482_v34, %v4479_v28  ;;  %v4520_v2 = vshll.u32 %v6537_v51, 16  ;;  %v1691_v19 = vrot.slane %v1517_v8, 5  ;;  %v4525_v21 = vshrl.u32 %v6538_v15, 16 }
  0xb4   : > { %7090 = vmatpush3.bf16.msra.mxu1 %v7737_v22  ;;  %v7750_v22 = vld [vmem:[%s8962_s1 + $0xe8] sm:$0xff]  }
  0xb5   : > { %7268 = vmatmul.mubr.bf16.gmra.mrb[20].mxu0 %v7738_v47  ;;  %7091 = vmatprep.subr.bf16.mxu1 %v7741_v40  ;;  %v1676_v47 = vrot.slane %v1674_v12, 4  ;;  %v4484_v54 = vrot.slane %v4483_v43, 4  ;;  %v4517_v12 = vor.u32 %v4516_v1, %v4512_v0  ;;  %v4522_v13 = vrot.slane %v4520_v2, 5  ;;  %v6541_v43 = vld [vmem:[%s7859_s14 + $0x3c] sm:$0xf] }
  0xb6   : > { %7271 = vmatprep.mubr.bf16.mxu0 %v7740_v31  ;;  %v1513_v31 = vld [vmem:[%s7859_s14 + $0x70] sm:$0xf] }
  0xb7   : > { %7060 = vmatmul.mubr.bf16.gmra.mrb[4].mxu1 %v6175_v45  ;;  %v1681_v37 = vrot.slane %v1513_v31, 5  ;;  %v1678_v42 = vsel %vm7982_vm5, %v1676_v47, %v1677_v23  ;;  %v4489_v63 = vsel %vm7882_vm2, %v4484_v54, %v4488_v35  ;;  %v4518_v47 = vrot.slane %v4517_v12, 4  ;;  %v7755_v12 = vld [vmem:[%s8962_s1 + $0x218] sm:$0xff]  }
  0xb8   : > { %7063 = vmatprep.mubr.bf16.mxu1 %v6176_v53  ;;  %7092 = vmatpush3.bf16.msra.mxu1 %v7741_v40  ;;  %v4492_v40 = vrot.slane %v4490_v29, 4  ;;  %v4504_v53 = vshll.u32 %v6535_v46, 16  ;;  %v6180_v59 = vcombine.low %v1675_v39, %v1678_v42  ;;  %v4527_v29 = vrot.slane %v4525_v21, 4 }
  0xb9   : > { %7093 = vmatprep.subr.bf16.mxu1 %v7745_v52  ;;  %v1683_v45 = vrot.slane %v1681_v37, 4  ;;  %v8440_v49 = vsel %vm7982_vm5, %v6149_v32, %v1681_v37  ;;  %v1519_v32 = vld [vmem:[%s7859_s14 + $0x88] sm:$0xf]  ;;  %v4523_v34 = vsel %vm7882_vm2, %v4518_v47, %v4522_v13  ;;  %v4544_v37 = vshll.u32 %v6540_v20, 16 }
  0xba   : > { %v4506_v62 = vrot.slane %v4504_v53, 5  ;;  %v4549_v53 = vshrl.u32 %v6541_v43, 16  ;;  %v4552_v54 = vshll.u32 %v6541_v43, 16 }
  0xbb   : > { %v8446_v55 = vsel %vm7982_vm5, %v1683_v45, %v1684_v27  ;;  %v6151_v45 = vrot.slane %v1518_v26, 9 }
  0xbc   : > { %7094 = vmatpush3.bf16.msra.mxu1 %v7745_v52  ;;  %v4501_v52 = vshrl.u32 %v6535_v46, 16  ;;  %v6181_v5 = vcombine.low %v8440_v49, %v8446_v55  ;;  %v1695_v46 = vrot.slane %v1519_v32, 5  ;;  %v6542_v49 = vld [vmem:[%s7859_s14 + $0x40] sm:$0xf] }
  0xbd   : > { %7272 = vmatmul.mubr.bf16.gmra.mrb[24].mxu0 %v7742_v48  ;;  %7095 = vmatprep.subr.bf16.mxu1 %v7748_v6  ;;  %v4493_v48 = vor.u32 %v4492_v40, %v4488_v35  ;;  %v4558_v58 = vshll.u32 %v6542_v49, 16 }
  0xbe   : > { %7275 = vmatprep.mubr.bf16.mxu0 %v7744_v61  ;;  %v4503_v61 = vrot.slane %v4501_v52, 4  ;;  %v6543_v52 = vld [vmem:[%s7859_s14 + $0x44] sm:$0x1]  ;;  %v1696_v55 = vsel %vm7982_vm5, %v6151_v45, %v1695_v46  ;;  %v1697_v57 = vrot.slane %v1695_v46, 4 }
  0xbf   : > { %7064 = vmatmul.mubr.bf16.gmra.mrb[8].mxu1 %v6177_v9  ;;  %v4494_v60 = vrot.slane %v4493_v48, 4  ;;  %v6150_v9 = vrot.slane %v1515_v3, 9  ;;  %v4560_v2 = vrot.slane %v4558_v58, 5  ;;  %v7758_v45 = vld [vmem:[%s8962_s1 + $0x220] sm:$0xff]  }
  0xc0   : > { %7067 = vmatprep.mubr.bf16.mxu1 %v6178_v14  ;;  %7096 = vmatpush3.bf16.msra.mxu1 %v7748_v6  ;;  %v4507_v6 = vor.u32 %v4506_v62, %v4503_v61  ;;  %v1688_v14 = vrot.slane %v1516_v7, 5  ;;  %v4551_v62 = vrot.slane %v4549_v53, 4 }
  0xc1   : > { %7097 = vmatprep.subr.bf16.mxu1 %v7750_v22  ;;  %v4499_v18 = vsel %vm7882_vm2, %v4494_v60, %v4498_v44  ;;  %v4546_v44 = vrot.slane %v4544_v37, 5  ;;  %v8486_v60 = vld [vmem:[%s8962_s1 + $0x100] sm:$0xff]  }
  0xc2   : > { %v6596_v11 = vcombine.low %v4489_v63, %v4499_v18  ;;  %v4508_v17 = vrot.slane %v4507_v6, 4  ;;  %v1689_v23 = vsel %vm7982_vm5, %v6150_v9, %v1688_v14  ;;  %v1690_v24 = vrot.slane %v1688_v14, 4  ;;  %v1522_v9 = vld [vmem:[%s7859_s14 + $0x94] sm:$0xf] }
  0xc3   : > { %v4554_v63 = vrot.slane %v4552_v54, 5  ;;  %v4568_v18 = vshll.u32 %v6543_v52, 16  ;;  %v6549_v54 = vld [vmem:[%s7859_s14 + $0x5c] sm:$0x1] }
  0xc4   : > { %7098 = vmatpush3.bf16.msra.mxu1 %v7750_v22  ;;  %v4528_v22 = vshll.u32 %v6538_v15, 16  ;;  %v4513_v28 = vsel %vm7882_vm2, %v4508_v17, %v4512_v0  ;;  %v1692_v35 = vsel %vm7982_vm5, %v1690_v24, %v1691_v19  ;;  %v7753_v0 = vld [vmem:[%s8962_s1 + $0x210] sm:$0xff]   ;;  %v6544_v17 = vld [vmem:[%s7859_s14 + $0x48] sm:$0xf]  ;;  %v6545_v19 = vld [vmem:[%s7859_s14 + $0x4c] sm:$0xf] }
  0xc5   : > { %7276 = vmatmul.mubr.bf16.gmra.mrb[28].mxu0 %v7746_v16  ;;  %7099 = vmatprep.subr.bf16.mxu1 %v7752_v41  ;;  %v6539_v16 = vld [vmem:[%s7859_s14 + $0x34] sm:$0xf]  ;;  %v6597_v39 = vcombine.low %v4513_v28, %v4523_v34  ;;  %v6182_v40 = vcombine.low %v1689_v23, %v1692_v35  ;;  %v4555_v8 = vor.u32 %v4554_v63, %v4551_v62  ;;  %v4570_v15 = vrot.slane %v4568_v18, 5  ;;  %v1525_v35 = vld [vmem:[%s7859_s14 + $0xa0] sm:$0xf] }
  0xc6   : > { %7295 = vmatprep.mubr.bf16.mxu0 %v6596_v11  ;;  %v4534_v25 = vshll.u32 %v6539_v16, 16  ;;  %v4530_v30 = vrot.slane %v4528_v22, 5  ;;  %v4538_v31 = vshrl.u32 %v6539_v16, 16  ;;  %v1702_v16 = vrot.slane %v1522_v9, 5  ;;  %v6546_v22 = vld [vmem:[%s7859_s14 + $0x50] sm:$0x1] }
  0xc7   : > { %7068 = vmatmul.mubr.bf16.gmra.mrb[12].mxu1 %v6179_v38  ;;  %v1520_v38 = vld [vmem:[%s7859_s14 + $0x8c] sm:$0x1]  ;;  %v4556_v20 = vrot.slane %v4555_v8, 4  ;;  %v4573_v47 = vshrl.u32 %v6544_v17, 16  ;;  %v4576_v23 = vshll.u32 %v6544_v17, 16  ;;  %v4582_v28 = vshll.u32 %v6545_v19, 16 }
  0xc8   : > { %7071 = vmatprep.mubr.bf16.mxu1 %v6180_v59  ;;  %7100 = vmatpush3.bf16.msra.mxu1 %v7752_v41  ;;  %v4536_v36 = vrot.slane %v4534_v25, 5  ;;  %v4531_v27 = vor.u32 %v4530_v30, %v4527_v29  ;;  %v4540_v42 = vrot.slane %v4538_v31, 4  ;;  %v7751_v41 = vld [vmem:[%s8962_s1 + $0x208] sm:$0xff]   ;;  %v1698_v48 = vrot.slane %v1520_v38, 5  ;;  %v1524_v29 = vld [vmem:[%s7859_s14 + $0x9c] sm:$0xe] }
  0xc9   : > { %7101 = vmatprep.subr.bf16.mxu1 %v7754_v10  ;;  %v4562_v59 = vshrl.u32 %v6542_v49, 16  ;;  %v1704_v26 = vrot.slane %v1702_v16, 4  ;;  %v4561_v30 = vsel %vm7882_vm2, %v4556_v20, %v4560_v2  ;;  %v4575_v31 = vrot.slane %v4573_v47, 4  ;;  %v6550_v20 = vld [vmem:[%s7859_s14 + $0x60] sm:$0xf] }
  0xca   : > { %v4532_v50 = vrot.slane %v4531_v27, 4  ;;  %v4541_v51 = vor.u32 %v4540_v42, %v4536_v36  ;;  %v1699_v1 = vsel %vm7982_vm5, %v1697_v57, %v1698_v48  ;;  %v4578_v32 = vrot.slane %v4576_v23, 5  ;;  %v6552_v23 = vld [vmem:[%s7859_s14 + $0x68] sm:$0x1] }
  0xcb   : > { %v4564_v3 = vrot.slane %v4562_v59, 4  ;;  %v6183_v7 = vcombine.low %v1696_v55, %v1699_v1  ;;  %v4586_v34 = vshrl.u32 %v6545_v19, 16  ;;  %v4584_v38 = vrot.slane %v4582_v28, 5 }
  0xcc   : > { %7102 = vmatpush3.bf16.msra.mxu1 %v7754_v10  ;;  %v4537_v61 = vsel %vm7882_vm2, %v4532_v50, %v4536_v36  ;;  %v1523_v10 = vld [vmem:[%s7859_s14 + $0x98] sm:$0x1]  ;;  %v4579_v43 = vor.u32 %v4578_v32, %v4575_v31  ;;  %v6153_v48 = vrot.slane %v1524_v29, 9  ;;  %v1709_v49 = vrot.slane %v1525_v35, 5  ;;  %v1530_v31 = vld [vmem:[%s7859_s14 + $0xb4] sm:$0xe] }
  0xcd   : > { %7296 = vmatmul.mubr.bf16.vlgmr.msra.gmra.mrb[0].mxu0 %v6597_v39  ;;  %7375 = vmatprep.subr.bf16.mxu1 %v8486_v60  ;;  %v4565_v14 = vor.u32 %v4564_v3, %v4560_v2  ;;  %v1705_v21 = vrot.slane %v1523_v10, 5  ;;  %v4592_v39 = vshll.u32 %v6546_v22, 16  ;;  %v7761_v2 = vld [vmem:[%s8962_s1 + $0x228] sm:$0xff]  }
  0xce   : > { %7328 = vmatpush3.bf16.msra.mxu0 %v8338_v56  ;;  %v4542_v56 = vrot.slane %v4541_v51, 4  ;;  %v6548_v51 = vld [vmem:[%s7859_s14 + $0x58] sm:$0xf]  ;;  %v4580_v52 = vrot.slane %v4579_v43, 4  ;;  %v1710_v58 = vsel %vm7982_vm5, %v6153_v48, %v1709_v49  ;;  %v1711_v59 = vrot.slane %v1709_v49, 4 }
  0xcf   : > { %7072 = vmatmul.mubr.bf16.gmra.mrb[16].mxu1 %v6181_v5  ;;  %7329 = vmatprep.subr.bf16.mxu0 %v7751_v41  ;;  %v1521_v5 = vld [vmem:[%s7859_s14 + $0x90] sm:$0xe]  ;;  %v4566_v24 = vrot.slane %v4565_v14, 4  ;;  %v1706_v37 = vsel %vm7982_vm5, %v1704_v26, %v1705_v21  ;;  %v4594_v46 = vrot.slane %v4592_v39, 5  ;;  %v6551_v21 = vld [vmem:[%s7859_s14 + $0x64] sm:$0xf] }
  0xd0   : > { %7075 = vmatprep.mubr.bf16.mxu1 %v6182_v40  ;;  %v4547_v6 = vsel %vm7882_vm2, %v4542_v56, %v4546_v44  ;;  %v6152_v11 = vrot.slane %v1521_v5, 9  ;;  %v1526_v40 = vld [vmem:[%s7859_s14 + $0xa4] sm:$0x1]  ;;  %v6547_v44 = vld [vmem:[%s7859_s14 + $0x54] sm:$0xf]  ;;  %v4610_v56 = vshrl.u32 %v6548_v51, 16  ;;  %v4585_v62 = vsel %vm7882_vm2, %v4580_v52, %v4584_v38 }
  0xd1   : > { %v6598_v13 = vcombine.low %v4537_v61, %v4547_v6  ;;  %v4571_v36 = vsel %vm7882_vm2, %v4566_v24, %v4570_v15  ;;  %v1712_v50 = vrot.slane %v1526_v40, 5  ;;  %v4597_v55 = vshrl.u32 %v6547_v44, 16  ;;  %v7764_v14 = vld [vmem:[%s8962_s1 + $0x230] sm:$0xff]   ;;  %v7767_v48 = vld [vmem:[%s8962_s1 + $0x238] sm:$0xff]  }
  0xd2   : > { %7330 = vmatpush3.bf16.msra.mxu0 %v7751_v41  ;;  %v1703_v25 = vsel %vm7982_vm5, %v6152_v11, %v1702_v16  ;;  %v6599_v27 = vcombine.low %v4561_v30, %v4571_v36  ;;  %v4588_v41 = vrot.slane %v4586_v34, 4  ;;  %v4600_v57 = vshll.u32 %v6547_v44, 16  ;;  %v1528_v11 = vld [vmem:[%s7859_s14 + $0xac] sm:$0xf] }
  0xd3   : > { %7331 = vmatprep.subr.bf16.mxu0 %v7753_v0  ;;  %7299 = vmatprep.mubr.bf16.mxu0 %v6598_v13  ;;  %v6184_v42 = vcombine.low %v1703_v25, %v1706_v37  ;;  %v4606_v61 = vshll.u32 %v6548_v51, 16  ;;  %v1713_v3 = vsel %vm7982_vm5, %v1711_v59, %v1712_v50  ;;  %v4612_v5 = vrot.slane %v4610_v56, 4  ;;  %v1531_v37 = vld [vmem:[%s7859_s14 + $0xb8] sm:$0xf] }
  0xd4   : > { %v4589_v53 = vor.u32 %v4588_v41, %v4584_v38  ;;  %v4602_v1 = vrot.slane %v4600_v57, 5  ;;  %v4616_v6 = vshll.u32 %v6549_v54, 16  ;;  %v6185_v9 = vcombine.low %v1710_v58, %v1713_v3  ;;  %v6555_v57 = vld [vmem:[%s7859_s14 + $0x74] sm:$0x1] }
  0xd5   : > { %7300 = vmatmul.mubr.bf16.gmra.mrb[4].mxu0 %v6599_v27  ;;  %v4608_v18 = vrot.slane %v4606_v61, 5  ;;  %v1716_v19 = vrot.slane %v1528_v11, 5  ;;  %v4621_v24 = vshrl.u32 %v6550_v20, 16  ;;  %v4624_v25 = vshll.u32 %v6550_v20, 16 }
  0xd6   : > { %7332 = vmatpush3.bf16.msra.mxu0 %v7753_v0  ;;  %v4590_v63 = vrot.slane %v4589_v53, 4  ;;  %v4599_v0 = vrot.slane %v4597_v55, 4  ;;  %v4618_v17 = vrot.slane %v4616_v6, 5  ;;  %v4630_v30 = vshll.u32 %v6551_v21, 16  ;;  %v6554_v53 = vld [vmem:[%s7859_s14 + $0x70] sm:$0xf] }
  0xd7   : > { %7076 = vmatmul.mubr.bf16.gmra.mrb[20].mxu1 %v6183_v7  ;;  %7333 = vmatprep.subr.bf16.mxu0 %v7755_v12  ;;  %v1527_v7 = vld [vmem:[%s7859_s14 + $0xa8] sm:$0xe]  ;;  %v4613_v16 = vor.u32 %v4612_v5, %v4608_v18  ;;  %v1718_v29 = vrot.slane %v1716_v19, 4  ;;  %v4623_v34 = vrot.slane %v4621_v24, 4  ;;  %v4626_v35 = vrot.slane %v4624_v25, 5 }
  0xd8   : > { %7079 = vmatprep.mubr.bf16.mxu1 %v6184_v42  ;;  %v4595_v8 = vsel %vm7882_vm2, %v4590_v63, %v4594_v46  ;;  %v4603_v10 = vor.u32 %v4602_v1, %v4599_v0  ;;  %v6154_v13 = vrot.slane %v1527_v7, 9  ;;  %v4634_v36 = vshrl.u32 %v6551_v21, 16  ;;  %v1532_v42 = vld [vmem:[%s7859_s14 + $0xbc] sm:$0x1]  ;;  %v6553_v46 = vld [vmem:[%s7859_s14 + $0x6c] sm:$0xf] }
  0xd9   : > { %v6600_v15 = vcombine.low %v4585_v62, %v4595_v8  ;;  %v4614_v26 = vrot.slane %v4613_v16, 4  ;;  %v4632_v40 = vrot.slane %v4630_v30, 5  ;;  %v4640_v27 = vshll.u32 %v6552_v23, 16  ;;  %v7756_v8 = vld [vmem:[%s7859_s14 + $0xc] sm:$0xff]  }
  0xda   : > { %7334 = vmatpush3.bf16.msra.mxu0 %v7755_v12  ;;  %v1529_v12 = vld [vmem:[%s7859_s14 + $0xb0] sm:$0x1]  ;;  %v4604_v22 = vrot.slane %v4603_v10, 4  ;;  %v1717_v28 = vsel %vm7982_vm5, %v6154_v13, %v1716_v19  ;;  %v4627_v44 = vor.u32 %v4626_v35, %v4623_v34  ;;  %v6155_v50 = vrot.slane %v1530_v31, 9  ;;  %v6557_v13 = vld [vmem:[%s7859_s14 + $0x7c] sm:$0xf] }
  0xdb   : > { %7335 = vmatprep.subr.bf16.mxu0 %v7758_v45  ;;  %v1719_v47 = vrot.slane %v1529_v12, 5  ;;  %7303 = vmatprep.mubr.bf16.mxu0 %v6600_v15  ;;  %v4619_v38 = vsel %vm7882_vm2, %v4614_v26, %v4618_v17  ;;  %v4642_v49 = vrot.slane %v4640_v27, 5  ;;  %v1723_v51 = vrot.slane %v1531_v37, 5  ;;  %v6556_v12 = vld [vmem:[%s7859_s14 + $0x78] sm:$0xf] }
  0xdc   : > { %v4609_v32 = vsel %vm7882_vm2, %v4604_v22, %v4608_v18  ;;  %v1726_v52 = vrot.slane %v1532_v42, 5  ;;  %v4628_v54 = vrot.slane %v4627_v44, 4  ;;  %v4645_v58 = vshrl.u32 %v6553_v46, 16  ;;  %v6558_v17 = vld [vmem:[%s7859_s14 + $0x80] sm:$0x1] }
  0xdd   : > { %v1720_v39 = vsel %vm7982_vm5, %v1718_v29, %v1719_v47  ;;  %v6601_v43 = vcombine.low %v4609_v32, %v4619_v38  ;;  %v4648_v59 = vshll.u32 %v6553_v46, 16  ;;  %v1724_v61 = vsel %vm7982_vm5, %v6155_v50, %v1723_v51  ;;  %v6559_v26 = vld [vmem:[%s7859_s14 + $0x84] sm:$0xf]  ;;  %v6560_v32 = vld [vmem:[%s7859_s14 + $0x88] sm:$0xf] }
  0xde   : > { %7336 = vmatpush3.bf16.msra.mxu0 %v7758_v45  ;;  %v6186_v41 = vcombine.low %v1717_v28, %v1720_v39  ;;  %v4636_v45 = vrot.slane %v4634_v36, 4  ;;  %v1725_v56 = vrot.slane %v1723_v51, 4  ;;  %v4654_v62 = vshll.u32 %v6554_v53, 16  ;;  %v7757_v36 = vld [vmem:[%s7859_s14 + $0x18] sm:$0xff]   ;;  %v6561_v37 = vld [vmem:[%s7859_s14 + $0x8c] sm:$0x1] }
  0xdf   : > { %7080 = vmatmul.mubr.bf16.gmra.mrb[24].mxu1 %v6185_v9  ;;  %7337 = vmatprep.subr.bf16.mxu0 %v7761_v2  ;;  %v4658_v63 = vshrl.u32 %v6554_v53, 16  ;;  %v4633_v0 = vsel %vm7882_vm2, %v4628_v54, %v4632_v40  ;;  %v4650_v3 = vrot.slane %v4648_v59, 5  ;;  %v4664_v7 = vshll.u32 %v6555_v57, 16  ;;  %v6563_v57 = vld [vmem:[%s7859_s14 + $0x94] sm:$0xf] }
  0xe0   : > { %7304 = vmatmul.mubr.bf16.gmra.mrb[8].mxu0 %v6601_v43  ;;  %7083 = vmatprep.mubr.bf16.mxu1 %v6186_v41  ;;  %v4637_v55 = vor.u32 %v4636_v45, %v4632_v40  ;;  %v1727_v18 = vsel %vm7982_vm5, %v1725_v56, %v1726_v52  ;;  %v4656_v5 = vrot.slane %v4654_v62, 5  ;;  %v4669_v19 = vshrl.u32 %v6556_v12, 16  ;;  %v7759_v41 = vld [vmem:[%s7859_s14 + $0x24] sm:$0xff]  }
  0xe1   : > { %v4660_v6 = vrot.slane %v4658_v63, 4  ;;  %v6187_v10 = vcombine.low %v1724_v61, %v1727_v18  ;;  %v4666_v16 = vrot.slane %v4664_v7, 5  ;;  %v4672_v21 = vshll.u32 %v6556_v12, 16  ;;  %v6564_v61 = vld [vmem:[%s7859_s14 + $0x98] sm:$0x1] }
  0xe2   : > { %7338 = vmatpush3.bf16.msra.mxu0 %v7761_v2  ;;  %v4638_v1 = vrot.slane %v4637_v55, 4  ;;  %v4647_v2 = vrot.slane %v4645_v58, 4  ;;  %v4678_v22 = vshll.u32 %v6557_v13, 16  ;;  %v4682_v47 = vshrl.u32 %v6557_v13, 16  ;;  %v6562_v55 = vld [vmem:[%s7859_s14 + $0x90] sm:$0xf] }
  0xe3   : > { %7339 = vmatprep.subr.bf16.mxu0 %v7764_v14  ;;  %v4661_v15 = vor.u32 %v4660_v6, %v4656_v5  ;;  %v4671_v24 = vrot.slane %v4669_v19, 4  ;;  %v4688_v25 = vshll.u32 %v6558_v17, 16  ;;  %v4674_v29 = vrot.slane %v4672_v21, 5  ;;  %v6567_v12 = vld [vmem:[%s7859_s14 + $0xa4] sm:$0x1]  ;;  %v7760_v17 = vld [vmem:[%s7859_s14 + $0x30] sm:$0xff]  }
  0xe4   : > { %v4643_v9 = vsel %vm7882_vm2, %v4638_v1, %v4642_v49  ;;  %v4651_v11 = vor.u32 %v4650_v3, %v4647_v2  ;;  %v4680_v30 = vrot.slane %v4678_v22, 5  ;;  %v4684_v31 = vrot.slane %v4682_v47, 4  ;;  %v6565_v3 = vld [vmem:[%s7859_s14 + $0x9c] sm:$0xf] }
  0xe5   : > { %v4662_v23 = vrot.slane %v4661_v15, 4  ;;  %v4690_v35 = vrot.slane %v4688_v25, 5  ;;  %v4693_v38 = vshrl.u32 %v6559_v26, 16  ;;  %v4696_v39 = vshll.u32 %v6559_v26, 16 }
  0xe6   : > { %7340 = vmatpush3.bf16.msra.mxu0 %v7764_v14  ;;  %v6602_v14 = vcombine.low %v4633_v0, %v4643_v9  ;;  %v4652_v20 = vrot.slane %v4651_v11, 4  ;;  %v4675_v27 = vor.u32 %v4674_v29, %v4671_v24  ;;  %v4685_v42 = vor.u32 %v4684_v31, %v4680_v30  ;;  %v6566_v9 = vld [vmem:[%s7859_s14 + $0xa0] sm:$0xf]  ;;  %v7778_v29 = vld [vmem:[%s8962_s1 + $0x110] sm:$0xff]  }
  0xe7   : > { %7341 = vmatprep.subr.bf16.mxu0 %v7767_v48  ;;  %7084 = vmatmul.mubr.bf16.gmra.mrb[28].mxu1 %v6187_v10  ;;  %v4667_v34 = vsel %vm7882_vm2, %v4662_v23, %v4666_v16  ;;  %v4702_v43 = vshll.u32 %v6560_v32, 16  ;;  %v4695_v44 = vrot.slane %v4693_v38, 4  ;;  %v4698_v45 = vrot.slane %v4696_v39, 5  ;;  %v7762_v23 = vld [vmem:[%s7859_s14 + $0x3c] sm:$0xff]   ;;  %v6569_v38 = vld [vmem:[%s7859_s14 + $0xac] sm:$0xf] }
  0xe8   : > { %7307 = vmatprep.mubr.bf16.mxu0 %v6602_v14  ;;  %7103 = vmatprep.mubr.bf16.mxu1 %v7756_v8  ;;  %v4657_v28 = vsel %vm7882_vm2, %v4652_v20, %v4656_v5  ;;  %v4706_v46 = vshrl.u32 %v6560_v32, 16  ;;  %v4676_v49 = vrot.slane %v4675_v27, 4  ;;  %v4686_v50 = vrot.slane %v4685_v42, 4  ;;  %v7777_v8 = vld [vmem:[%s8962_s1 + $0x108] sm:$0xff]   ;;  %v6570_v39 = vld [vmem:[%s7859_s14 + $0xb0] sm:$0x1] }
  0xe9   : > { %v6603_v40 = vcombine.low %v4657_v28, %v4667_v34  ;;  %v4704_v51 = vrot.slane %v4702_v43, 5  ;;  %v4699_v52 = vor.u32 %v4698_v45, %v4695_v44  ;;  %v4717_v56 = vshrl.u32 %v6562_v55, 16  ;;  %v6568_v34 = vld [vmem:[%s7859_s14 + $0xa8] sm:$0xf] }
  0xea   : > { %7342 = vmatpush3.bf16.msra.mxu0 %v7767_v48  ;;  %v4712_v48 = vshll.u32 %v6561_v37, 16  ;;  %v4708_v53 = vrot.slane %v4706_v46, 4  ;;  %v4681_v58 = vsel %vm7882_vm2, %v4676_v49, %v4680_v30  ;;  %v4691_v59 = vsel %vm7882_vm2, %v4686_v50, %v4690_v35  ;;  %v7763_v49 = vld [vmem:[%s7859_s14 + $0x48] sm:$0xff]   ;;  %v7779_v50 = vld [vmem:[%s8962_s1 + $0x118] sm:$0xff]  }
  0xeb   : > { %7308 = vmatmul.mubr.bf16.gmra.mrb[12].mxu0 %v6603_v40  ;;  %v4720_v62 = vshll.u32 %v6562_v55, 16  ;;  %v6604_v63 = vcombine.low %v4681_v58, %v4691_v59  ;;  %v4700_v0 = vrot.slane %v4699_v52, 4  ;;  %v4726_v2 = vshll.u32 %v6563_v57, 16  ;;  %v6571_v55 = vld [vmem:[%s7859_s14 + $0xb4] sm:$0xf] }
  0xec   : > { %v4714_v54 = vrot.slane %v4712_v48, 5  ;;  %v4709_v1 = vor.u32 %v4708_v53, %v4704_v51  ;;  %v4719_v18 = vrot.slane %v4717_v56, 4  ;;  %v4730_v6 = vshrl.u32 %v6563_v57, 16  ;;  %v7765_v57 = vld [vmem:[%s7859_s14 + $0x54] sm:$0xff]  }
  0xed   : > { %v4722_v5 = vrot.slane %v4720_v62, 5  ;;  %v4736_v7 = vshll.u32 %v6564_v61, 16  ;;  %7311 = vmatprep.mubr.bf16.mxu0 %v6604_v63  ;;  %v4705_v10 = vsel %vm7882_vm2, %v4700_v0, %v4704_v51  ;;  %v4728_v11 = vrot.slane %v4726_v2, 5  ;;  %v6572_v56 = vld [vmem:[%s7859_s14 + $0xb8] sm:$0xf] }
  0xee   : > { %v4741_v13 = vshrl.u32 %v6565_v3, 16  ;;  %v4732_v15 = vrot.slane %v4730_v6, 4  ;;  %v4744_v19 = vshll.u32 %v6565_v3, 16  ;;  %v4750_v22 = vshll.u32 %v6566_v9, 16  ;;  %v6573_v62 = vld [vmem:[%s7859_s14 + $0xbc] sm:$0x1] }
  0xef   : > { %7104 = vmatmul.mubr.bf16.vlgmr.msra.gmra.mrb[0].mxu1 %v7757_v36  ;;  %v4723_v14 = vor.u32 %v4722_v5, %v4719_v18  ;;  %v4738_v16 = vrot.slane %v4736_v7, 5  ;;  %v4754_v47 = vshrl.u32 %v6566_v9, 16  ;;  %v4760_v32 = vshll.u32 %v6567_v12, 16  ;;  %v7780_v7 = vld [vmem:[%s8962_s1 + $0x120] sm:$0xff]  }
  0xf0   : > { %7383 = vmatpush3.bf16.msra.mxu1 %v8486_v60  ;;  %7107 = vmatprep.mubr.bf16.mxu1 %v7759_v41  ;;  %v4710_v60 = vrot.slane %v4709_v1, 4  ;;  %v4743_v21 = vrot.slane %v4741_v13, 4  ;;  %v4733_v26 = vor.u32 %v4732_v15, %v4728_v11  ;;  %v4746_v28 = vrot.slane %v4744_v19, 5  ;;  %v6575_v15 = vld [vmem:[%s7859_s14 + $0xc4] sm:$0xf] }
  0xf1   : > { %7376 = vmatprep.subr.bf16.mxu1 %v7777_v8  ;;  %v4724_v25 = vrot.slane %v4723_v14, 4  ;;  %v4752_v30 = vrot.slane %v4750_v22, 5  ;;  %v4756_v31 = vrot.slane %v4754_v47, 4  ;;  %v4765_v40 = vshrl.u32 %v6568_v34, 16 }
  0xf2   : > { %v4715_v20 = vsel %vm7882_vm2, %v4710_v60, %v4714_v54  ;;  %v4734_v36 = vrot.slane %v4733_v26, 4  ;;  %v4747_v37 = vor.u32 %v4746_v28, %v4743_v21  ;;  %v4762_v42 = vrot.slane %v4760_v32, 5  ;;  %v6576_v21 = vld [vmem:[%s7859_s14 + $0xc8] sm:$0x1]  ;;  %v7766_v26 = vld [vmem:[%s7859_s14 + $0x60] sm:$0xff]  }
  0xf3   : > { %v6605_v24 = vcombine.low %v4705_v10, %v4715_v20  ;;  %v4729_v35 = vsel %vm7882_vm2, %v4724_v25, %v4728_v11  ;;  %v4757_v27 = vor.u32 %v4756_v31, %v4752_v30  ;;  %v4768_v43 = vshll.u32 %v6568_v34, 16  ;;  %v6574_v11 = vld [vmem:[%s7859_s14 + $0xc0] sm:$0xf]  ;;  %v7781_v28 = vld [vmem:[%s8962_s1 + $0x128] sm:$0xff]  }
  0xf4   : > { %7384 = vmatpush3.bf16.msra.mxu1 %v7777_v8  ;;  %v4774_v41 = vshll.u32 %v6569_v38, 16  ;;  %v4739_v44 = vsel %vm7882_vm2, %v4734_v36, %v4738_v16  ;;  %v4748_v45 = vrot.slane %v4747_v37, 4  ;;  %v4767_v46 = vrot.slane %v4765_v40, 4  ;;  %v6577_v34 = vld [vmem:[%s7859_s14 + $0xcc] sm:$0xf] }
  0xf5   : > { %7377 = vmatprep.subr.bf16.mxu1 %v7778_v29  ;;  %7312 = vmatmul.mubr.bf16.gmra.mrb[16].mxu0 %v6605_v24  ;;  %v4778_v48 = vshrl.u32 %v6569_v38, 16  ;;  %v6606_v51 = vcombine.low %v4729_v35, %v4739_v44  ;;  %v4758_v52 = vrot.slane %v4757_v27, 4  ;;  %v4770_v53 = vrot.slane %v4768_v43, 5  ;;  %v6578_v35 = vld [vmem:[%s7859_s14 + $0xd0] sm:$0xf] }
  0xf6   : > { %v4776_v54 = vrot.slane %v4774_v41, 5  ;;  %v4753_v58 = vsel %vm7882_vm2, %v4748_v45, %v4752_v30  ;;  %v4784_v61 = vshll.u32 %v6570_v39, 16  ;;  %v4789_v1 = vshrl.u32 %v6571_v55, 16  ;;  %v7768_v36 = vld [vmem:[%s7859_s14 + $0x6c] sm:$0xff]   ;;  %v6579_v40 = vld [vmem:[%s7859_s14 + $0xd4] sm:$0x1] }
  0xf7   : > { %7108 = vmatmul.mubr.bf16.gmra.mrb[4].mxu1 %v7760_v17  ;;  %v4780_v59 = vrot.slane %v4778_v48, 4  ;;  %7315 = vmatprep.mubr.bf16.mxu0 %v6606_v51  ;;  %v4763_v63 = vsel %vm7882_vm2, %v4758_v52, %v4762_v42  ;;  %v4771_v0 = vor.u32 %v4770_v53, %v4767_v46  ;;  %v4792_v2 = vshll.u32 %v6571_v55, 16 }
  0xf8   : > { %7111 = vmatprep.mubr.bf16.mxu1 %v7762_v23  ;;  %7385 = vmatpush3.bf16.msra.mxu1 %v7778_v29  ;;  %v6607_v3 = vcombine.low %v4753_v58, %v4763_v63  ;;  %v4786_v5 = vrot.slane %v4784_v61, 5  ;;  %v4798_v6 = vshll.u32 %v6572_v56, 16  ;;  %v4791_v9 = vrot.slane %v4789_v1, 4  ;;  %v6620_v61 = vld [vmem:[%s7859_s14 + $0x18] sm:$0xe] }
  0xf9   : > { %7378 = vmatprep.subr.bf16.mxu1 %v7779_v50  ;;  %v4781_v18 = vor.u32 %v4780_v59, %v4776_v54  ;;  %v4772_v8 = vrot.slane %v4771_v0, 4  ;;  %v4794_v10 = vrot.slane %v4792_v2, 5  ;;  %v4802_v60 = vshrl.u32 %v6572_v56, 16  ;;  %v6621_v56 = vld [vmem:[%s7859_s14 + $0x1c] sm:$0xf] }
  0xfa   : > { %v4800_v13 = vrot.slane %v4798_v6, 5  ;;  %v4808_v14 = vshll.u32 %v6573_v62, 16  ;;  %v4813_v16 = vshrl.u32 %v6574_v11, 16  ;;  %v4816_v22 = vshll.u32 %v6574_v11, 16  ;;  %v6622_v0 = vld [vmem:[%s7859_s14 + $0x20] sm:$0x1] }
  0xfb   : > { %v4782_v12 = vrot.slane %v4781_v18, 4  ;;  %v4777_v17 = vsel %vm7882_vm2, %v4772_v8, %v4776_v54  ;;  %v4795_v19 = vor.u32 %v4794_v10, %v4791_v9  ;;  %v4804_v20 = vrot.slane %v4802_v60, 4  ;;  %v7769_v6 = vld [vmem:[%s7859_s14 + $0x78] sm:$0xff]   ;;  %v6623_v60 = vld [vmem:[%s7859_s14 + $0x24] sm:$0xe] }
  0xfc   : > { %7386 = vmatpush3.bf16.msra.mxu1 %v7779_v50  ;;  %v4810_v23 = vrot.slane %v4808_v14, 5  ;;  %v4815_v24 = vrot.slane %v4813_v16, 4  ;;  %v4822_v25 = vshll.u32 %v6575_v15, 16  ;;  %v4818_v32 = vrot.slane %v4816_v22, 5  ;;  %v7782_v50 = vld [vmem:[%s8962_s1 + $0x130] sm:$0xff]   ;;  %v7770_v16 = vld [vmem:[%s7859_s14 + $0x84] sm:$0xff]  }
  0xfd   : > { %7379 = vmatprep.subr.bf16.mxu1 %v7780_v7  ;;  %7316 = vmatmul.mubr.bf16.gmra.mrb[20].mxu0 %v6607_v3  ;;  %v4787_v47 = vsel %vm7882_vm2, %v4782_v12, %v4786_v5  ;;  %v4796_v30 = vrot.slane %v4795_v19, 4  ;;  %v4805_v31 = vor.u32 %v4804_v20, %v4800_v13  ;;  %v4826_v38 = vshrl.u32 %v6575_v15, 16  ;;  %v6624_v11 = vld [vmem:[%s7859_s14 + $0x28] sm:$0xf]  ;;  %v6625_v15 = vld [vmem:[%s7859_s14 + $0x2c] sm:$0x1] }
  0xfe   : > { %v6608_v29 = vcombine.low %v4777_v17, %v4787_v47  ;;  %v4824_v37 = vrot.slane %v4822_v25, 5  ;;  %v4832_v39 = vshll.u32 %v6576_v21, 16  ;;  %v4837_v27 = vshrl.u32 %v6577_v34, 16  ;;  %v6626_v22 = vld [vmem:[%s7859_s14 + $0x30] sm:$0xe] }
  0xff   : > { %7112 = vmatmul.mubr.bf16.gmra.mrb[8].mxu1 %v7763_v49  ;;  %v4801_v42 = vsel %vm7882_vm2, %v4796_v30, %v4800_v13  ;;  %v4806_v43 = vrot.slane %v4805_v31, 4  ;;  %v4819_v41 = vor.u32 %v4818_v32, %v4815_v24  ;;  %v4840_v44 = vshll.u32 %v6577_v34, 16  ;;  %v6627_v25 = vld [vmem:[%s7859_s14 + $0x34] sm:$0xf] }
 0x100   : > { %7115 = vmatprep.mubr.bf16.mxu1 %v7765_v57  ;;  %7387 = vmatpush3.bf16.msra.mxu1 %v7780_v7  ;;  %v4828_v45 = vrot.slane %v4826_v38, 4  ;;  %v4834_v46 = vrot.slane %v4832_v39, 5  ;;  %v4839_v48 = vrot.slane %v4837_v27, 4  ;;  %v4846_v49 = vshll.u32 %v6578_v35, 16  ;;  %v7783_v7 = vld [vmem:[%s8962_s1 + $0x138] sm:$0xff]  }
 0x101   : > { %7380 = vmatprep.subr.bf16.mxu1 %v7781_v28  ;;  %7319 = vmatprep.mubr.bf16.mxu0 %v6608_v29  ;;  %v4811_v51 = vsel %vm7882_vm2, %v4806_v43, %v4810_v23  ;;  %v4820_v52 = vrot.slane %v4819_v41, 4  ;;  %v4842_v53 = vrot.slane %v4840_v44, 5  ;;  %v4850_v54 = vshrl.u32 %v6578_v35, 16  ;;  %v6631_v38 = vld [vmem:[%s7859_s14 + $0x44] sm:$0x1] }
 0x102   : > { %v6609_v55 = vcombine.low %v4801_v42, %v4811_v51  ;;  %v4829_v57 = vor.u32 %v4828_v45, %v4824_v37  ;;  %v4848_v58 = vrot.slane %v4846_v49, 5  ;;  %v4856_v59 = vshll.u32 %v6579_v40, 16  ;;  %v7771_v42 = vld [vmem:[%s7859_s14 + $0x90] sm:$0xff]   ;;  %v6632_v41 = vld [vmem:[%s7859_s14 + $0x48] sm:$0xe] }
 0x103   : > { %v4843_v62 = vor.u32 %v4842_v53, %v4839_v48  ;;  %v4852_v63 = vrot.slane %v4850_v54, 4  ;;  %v6668_v1 = vrot.slane %v6620_v61, 9  ;;  %v4825_v2 = vsel %vm7882_vm2, %v4820_v52, %v4824_v37  ;;  %v6630_v37 = vld [vmem:[%s7859_s14 + $0x40] sm:$0xf]  ;;  %v6633_v49 = vld [vmem:[%s7859_s14 + $0x4c] sm:$0xf] }
 0x104   : > { %7388 = vmatpush3.bf16.msra.mxu1 %v7781_v28  ;;  %v4830_v3 = vrot.slane %v4829_v57, 4  ;;  %v5344_v18 = vrot.slane %v6621_v56, 5  ;;  %v5347_v5 = vrot.slane %v6622_v0, 5  ;;  %v4858_v10 = vrot.slane %v4856_v59, 5  ;;  %v7772_v48 = vld [vmem:[%s7859_s14 + $0x9c] sm:$0xff]  }
 0x105   : > { %7381 = vmatprep.subr.bf16.mxu1 %v7782_v50  ;;  %7320 = vmatmul.mubr.bf16.gmra.mrb[24].mxu0 %v6609_v55  ;;  %v4844_v8 = vrot.slane %v4843_v62, 4  ;;  %v4853_v9 = vor.u32 %v4852_v63, %v4848_v58  ;;  %v5351_v21 = vrot.slane %v6624_v11, 5  ;;  %v6669_v23 = vrot.slane %v6623_v60, 9  ;;  %v6635_v57 = vld [vmem:[%s7859_s14 + $0x54] sm:$0xe] }
 0x106   : > { %v4835_v12 = vsel %vm7882_vm2, %v4830_v3, %v4834_v46  ;;  %v5345_v13 = vsel %vm7982_vm5, %v6668_v1, %v5344_v18  ;;  %v5346_v14 = vrot.slane %v5344_v18, 4  ;;  %v5354_v24 = vrot.slane %v6625_v15, 5  ;;  %v6637_v59 = vld [vmem:[%s7859_s14 + $0x5c] sm:$0x1]  ;;  %v6638_v18 = vld [vmem:[%s7859_s14 + $0x60] sm:$0xe] }
 0x107   : > { %7116 = vmatmul.mubr.bf16.gmra.mrb[12].mxu1 %v7766_v26  ;;  %v6610_v17 = vcombine.low %v4825_v2, %v4835_v12  ;;  %v4849_v19 = vsel %vm7882_vm2, %v4844_v8, %v4848_v58  ;;  %v4854_v20 = vrot.slane %v4853_v9, 4  ;;  %v6628_v26 = vld [vmem:[%s7859_s14 + $0x38] sm:$0x1]  ;;  %v5353_v30 = vrot.slane %v5351_v21, 4  ;;  %v6640_v8 = vld [vmem:[%s7859_s14 + $0x68] sm:$0x1] }
 0x108   : > { %7119 = vmatprep.mubr.bf16.mxu1 %v7768_v36  ;;  %7389 = vmatpush3.bf16.msra.mxu1 %v7782_v50  ;;  %v5348_v47 = vsel %vm7982_vm5, %v5346_v14, %v5347_v5  ;;  %v6670_v31 = vrot.slane %v6626_v22, 9  ;;  %v5358_v34 = vrot.slane %v6627_v25, 5  ;;  %v5361_v35 = vrot.slane %v6628_v26, 5  ;;  %v6629_v36 = vld [vmem:[%s7859_s14 + $0x3c] sm:$0xe]  ;;  %v7773_v15 = vld [vmem:[%s7859_s14 + $0xa8] sm:$0xff]  }
 0x109   : > { %7382 = vmatprep.subr.bf16.mxu1 %v7783_v7  ;;  %7323 = vmatprep.mubr.bf16.mxu0 %v6610_v17  ;;  %v4859_v28 = vsel %vm7882_vm2, %v4854_v20, %v4858_v10  ;;  %v6700_v29 = vcombine.low %v5345_v13, %v5348_v47  ;;  %v6671_v39 = vrot.slane %v6629_v36, 9  ;;  %v5365_v40 = vrot.slane %v6630_v37, 5  ;;  %v6634_v50 = vld [vmem:[%s7859_s14 + $0x50] sm:$0x1]  ;;  %v6636_v58 = vld [vmem:[%s7859_s14 + $0x58] sm:$0xf] }
 0x10a   : > { %v6611_v32 = vcombine.low %v4849_v19, %v4859_v28  ;;  %v5360_v27 = vrot.slane %v5358_v34, 4  ;;  %v5368_v43 = vrot.slane %v6631_v38, 5  ;;  %v5352_v44 = vsel %vm7982_vm5, %v6669_v23, %v5351_v21  ;;  %v6639_v5 = vld [vmem:[%s7859_s14 + $0x64] sm:$0xf]  ;;  %v6641_v13 = vld [vmem:[%s7859_s14 + $0x6c] sm:$0xe] }
 0x10b   : > { %v5355_v45 = vsel %vm7982_vm5, %v5353_v30, %v5354_v24  ;;  %v5367_v46 = vrot.slane %v5365_v40, 4  ;;  %v6672_v51 = vrot.slane %v6632_v41, 9  ;;  %v5359_v52 = vsel %vm7982_vm5, %v6670_v31, %v5358_v34  ;;  %v6642_v19 = vld [vmem:[%s7859_s14 + $0x70] sm:$0xf]  ;;  %v6643_v20 = vld [vmem:[%s7859_s14 + $0x74] sm:$0x1] }
 0x10c   : > { %7390 = vmatpush3.bf16.msra.mxu1 %v7783_v7  ;;  %v5362_v53 = vsel %vm7982_vm5, %v5360_v27, %v5361_v35  ;;  %v5372_v54 = vrot.slane %v6633_v49, 5  ;;  %v5375_v55 = vrot.slane %v6634_v50, 5  ;;  %v6701_v61 = vcombine.low %v5352_v44, %v5355_v45  ;;  %v7774_v23 = vld [vmem:[%s7859_s14 + $0xb4] sm:$0xff]   ;;  %v6292_v26 = vld [vmem:[%s7859_s14 + $0x6c] sm:$0xf] }
 0x10d   : > { %7324 = vmatmul.mubr.bf16.gmra.mrb[28].mxu0 %v6611_v32  ;;  %v8696_v56 = vsel %vm7982_vm5, %v6671_v39, %v5365_v40  ;;  %v6673_v63 = vrot.slane %v6635_v57, 9  ;;  %v6702_v0 = vcombine.low %v5359_v52, %v5362_v53  ;;  %v8700_v1 = vsel %vm7982_vm5, %v5367_v46, %v5368_v43  ;;  %v6293_v28 = vld [vmem:[%s7859_s14 + $0x70] sm:$0xf]  ;;  %v6294_v31 = vld [vmem:[%s7859_s14 + $0x74] sm:$0x1] }
 0x10e   : > { %7343 = vmatprep.mubr.bf16.mxu0 %v6700_v29  ;;  %v5374_v62 = vrot.slane %v5372_v54, 4  ;;  %v5379_v2 = vrot.slane %v6636_v58, 5  ;;  %v5382_v3 = vrot.slane %v6637_v59, 5  ;;  %v6674_v9 = vrot.slane %v6638_v18, 9  ;;  %v6644_v35 = vld [vmem:[%s7859_s14 + $0x78] sm:$0xe] }
 0x10f   : > { %7120 = vmatmul.mubr.bf16.gmra.mrb[16].mxu1 %v7769_v6  ;;  %v8706_v6 = vsel %vm7982_vm5, %v6672_v51, %v5372_v54  ;;  %v5386_v10 = vrot.slane %v6639_v5, 5  ;;  %v5389_v12 = vrot.slane %v6640_v8, 5  ;;  %v6703_v14 = vcombine.low %v8696_v56, %v8700_v1  ;;  %v6645_v40 = vld [vmem:[%s7859_s14 + $0x7c] sm:$0xf]  ;;  %v6646_v27 = vld [vmem:[%s7859_s14 + $0x80] sm:$0x1] }
 0x110   : > { %7123 = vmatprep.mubr.bf16.mxu1 %v7770_v16  ;;  %v8710_v7 = vsel %vm7982_vm5, %v5374_v62, %v5375_v55  ;;  %v8715_v60 = vsel %vm7982_vm5, %v6673_v63, %v5379_v2  ;;  %v5381_v11 = vrot.slane %v5379_v2, 4  ;;  %v6675_v21 = vrot.slane %v6641_v13, 9  ;;  %v6295_v45 = vld [vmem:[%s7859_s14 + $0x78] sm:$0xf]  ;;  %v6296_v51 = vld [vmem:[%s7859_s14 + $0x7c] sm:$0xf] }
 0x111   : > { %v8723_v16 = vsel %vm7982_vm5, %v6674_v9, %v5386_v10  ;;  %v5388_v17 = vrot.slane %v5386_v10, 4  ;;  %v6704_v22 = vcombine.low %v8706_v6, %v8710_v7  ;;  %v5393_v24 = vrot.slane %v6642_v19, 5  ;;  %v6297_v57 = vld [vmem:[%s7859_s14 + $0x80] sm:$0x1]  ;;  %v6647_v62 = vld [vmem:[%s7859_s14 + $0x84] sm:$0xe] }
 0x112   : > { %v8731_v47 = vsel %vm7982_vm5, %v5381_v11, %v5382_v3  ;;  %v5396_v25 = vrot.slane %v6643_v20, 5  ;;  %v2806_v32 = vshrl.u32 %v6292_v26, 16  ;;  %v2809_v34 = vshll.u32 %v6292_v26, 16  ;;  %v6648_v3 = vld [vmem:[%s7859_s14 + $0x88] sm:$0xf]  ;;  %v7775_v9 = vld [vmem:[%s7859_s14 + $0xc0] sm:$0xff]  }
 0x113   : > { %v6705_v29 = vcombine.low %v8715_v60, %v8731_v47  ;;  %v8740_v30 = vsel %vm7982_vm5, %v5388_v17, %v5389_v12  ;;  %v8748_v37 = vsel %vm7982_vm5, %v6675_v21, %v5393_v24  ;;  %v5395_v38 = vrot.slane %v5393_v24, 4  ;;  %v6649_v8 = vld [vmem:[%s7859_s14 + $0x8c] sm:$0x1]  ;;  %v6299_v21 = vld [vmem:[%s7859_s14 + $0x88] sm:$0xf] }
 0x114   : > { %v6706_v36 = vcombine.low %v8723_v16, %v8740_v30  ;;  %v2815_v39 = vshll.u32 %v6293_v28, 16  ;;  %v2811_v43 = vrot.slane %v2809_v34, 5  ;;  %v2819_v41 = vshrl.u32 %v6293_v28, 16 }
 0x115   : > { %7344 = vmatmul.mubr.bf16.vlgmr.msra.gmra.mrb[0].mxu0 %v6701_v61  ;;  %v2825_v44 = vshll.u32 %v6294_v31, 16  ;;  %v8755_v46 = vsel %vm7982_vm5, %v5395_v38, %v5396_v25  ;;  %v6676_v49 = vrot.slane %v6644_v35, 9  ;;  %v5400_v50 = vrot.slane %v6645_v40, 5  ;;  %v6300_v31 = vld [vmem:[%s7859_s14 + $0x8c] sm:$0x1] }
 0x116   : > { %7347 = vmatprep.mubr.bf16.mxu0 %v6702_v0  ;;  %v6707_v52 = vcombine.low %v8748_v37, %v8755_v46  ;;  %v2821_v54 = vrot.slane %v2819_v41, 4  ;;  %v5403_v61 = vrot.slane %v6646_v27, 5  ;;  %v2830_v56 = vshrl.u32 %v6295_v45, 16  ;;  %v6650_v27 = vld [vmem:[%s7859_s14 + $0x90] sm:$0xe] }
 0x117   : > { %7124 = vmatmul.mubr.bf16.gmra.mrb[20].mxu1 %v7771_v42  ;;  %v2808_v42 = vrot.slane %v2806_v32, 4  ;;  %v2827_v55 = vrot.slane %v2825_v44, 5  ;;  %v8763_v58 = vsel %vm7982_vm5, %v6676_v49, %v5400_v50  ;;  %v5402_v59 = vrot.slane %v5400_v50, 4 }
 0x118   : > { %7127 = vmatprep.mubr.bf16.mxu1 %v7772_v48  ;;  %v2817_v48 = vrot.slane %v2815_v39, 5  ;;  %v2833_v1 = vshll.u32 %v6295_v45, 16  ;;  %v2839_v2 = vshll.u32 %v6296_v51, 16  ;;  %v2832_v5 = vrot.slane %v2830_v56, 4  ;;  %v6651_v45 = vld [vmem:[%s7859_s14 + $0x94] sm:$0xf] }
 0x119   : > { %v2812_v53 = vor.u32 %v2811_v43, %v2808_v42  ;;  %v8769_v18 = vsel %vm7982_vm5, %v5402_v59, %v5403_v61  ;;  %v2843_v6 = vshrl.u32 %v6296_v51, 16  ;;  %v2849_v7 = vshll.u32 %v6297_v57, 16  ;;  %v6302_v57 = vld [vmem:[%s7859_s14 + $0x94] sm:$0xf] }
 0x11a   : > { %v2822_v0 = vor.u32 %v2821_v54, %v2817_v48  ;;  %v6708_v12 = vcombine.low %v8763_v58, %v8769_v18  ;;  %v2835_v13 = vrot.slane %v2833_v1, 5  ;;  %v6677_v20 = vrot.slane %v6647_v62, 9  ;;  %v6301_v54 = vld [vmem:[%s7859_s14 + $0x90] sm:$0xf]  ;;  %v6653_v1 = vld [vmem:[%s7859_s14 + $0x9c] sm:$0xe] }
 0x11b   : > { %v2813_v63 = vrot.slane %v2812_v53, 4  ;;  %v2845_v17 = vrot.slane %v2843_v6, 4  ;;  %v2851_v19 = vrot.slane %v2849_v7, 5  ;;  %v5407_v24 = vrot.slane %v6648_v3, 5  ;;  %v6652_v53 = vld [vmem:[%s7859_s14 + $0x98] sm:$0x1] }
 0x11c   : > { %v2823_v11 = vrot.slane %v2822_v0, 4  ;;  %v5410_v25 = vrot.slane %v6649_v8, 5  ;;  %v2863_v40 = vshll.u32 %v6299_v21, 16  ;;  %v2867_v44 = vshrl.u32 %v6299_v21, 16  ;;  %v6654_v7 = vld [vmem:[%s7859_s14 + $0xa0] sm:$0xf] }
 0x11d   : > { %7348 = vmatmul.mubr.bf16.gmra.mrb[4].mxu0 %v6703_v14  ;;  %v2818_v10 = vsel %vm7882_vm2, %v2813_v63, %v2817_v48  ;;  %v6298_v14 = vld [vmem:[%s7859_s14 + $0x84] sm:$0xf]  ;;  %v8784_v38 = vsel %vm7982_vm5, %v6677_v20, %v5407_v24  ;;  %v5409_v39 = vrot.slane %v5407_v24, 4  ;;  %v2873_v51 = vshll.u32 %v6300_v31, 16  ;;  %v6303_v63 = vld [vmem:[%s7859_s14 + $0x98] sm:$0x1] }
 0x11e   : > { %7351 = vmatprep.mubr.bf16.mxu0 %v6704_v22  ;;  %v2828_v22 = vsel %vm7882_vm2, %v2823_v11, %v2827_v55  ;;  %v2854_v32 = vshrl.u32 %v6298_v14, 16  ;;  %v2857_v34 = vshll.u32 %v6298_v14, 16  ;;  %v2865_v50 = vrot.slane %v2863_v40, 5  ;;  %v6304_v20 = vld [vmem:[%s7859_s14 + $0x9c] sm:$0xf] }
 0x11f   : > { %7128 = vmatmul.mubr.bf16.gmra.mrb[24].mxu1 %v7773_v15  ;;  %v2841_v15 = vrot.slane %v2839_v2, 5  ;;  %v6340_v26 = vcombine.low %v2818_v10, %v2828_v22  ;;  %v8795_v49 = vsel %vm7982_vm5, %v5409_v39, %v5410_v25  ;;  %v2869_v55 = vrot.slane %v2867_v44, 4  ;;  %v6305_v25 = vld [vmem:[%s7859_s14 + $0xa0] sm:$0xf]  ;;  %v6306_v39 = vld [vmem:[%s7859_s14 + $0xa4] sm:$0x1] }
 0x120   : > { %7131 = vmatprep.mubr.bf16.mxu1 %v7774_v23  ;;  %v2836_v23 = vor.u32 %v2835_v13, %v2832_v5  ;;  %v2856_v43 = vrot.slane %v2854_v32, 4  ;;  %v2859_v41 = vrot.slane %v2857_v34, 5  ;;  %v6709_v47 = vcombine.low %v8784_v38, %v8795_v49  ;;  %v6655_v13 = vld [vmem:[%s7859_s14 + $0xa4] sm:$0x1]  ;;  %v6657_v44 = vld [vmem:[%s7859_s14 + $0xac] sm:$0xf] }
 0x121   : > { %v2846_v28 = vor.u32 %v2845_v17, %v2841_v15  ;;  %v2875_v61 = vrot.slane %v2873_v51, 5  ;;  %v6678_v56 = vrot.slane %v6650_v27, 9  ;;  %v5414_v62 = vrot.slane %v6651_v45, 5 }
 0x122   : > { %v2837_v35 = vrot.slane %v2836_v23, 4  ;;  %v2870_v16 = vor.u32 %v2869_v55, %v2865_v50  ;;  %v5417_v30 = vrot.slane %v6652_v53, 5  ;;  %v2881_v5 = vshll.u32 %v6301_v54, 16  ;;  %v6658_v53 = vld [vmem:[%s7859_s14 + $0xb0] sm:$0x1] }
 0x123   : > { %v2847_v42 = vrot.slane %v2846_v28, 4  ;;  %v8811_v2 = vsel %vm7982_vm5, %v6678_v56, %v5414_v62  ;;  %v5416_v3 = vrot.slane %v5414_v62, 4  ;;  %v2887_v6 = vshll.u32 %v6302_v57, 16 }
 0x124   : > { %v2842_v48 = vsel %vm7882_vm2, %v2837_v35, %v2841_v15  ;;  %v2891_v11 = vshrl.u32 %v6302_v57, 16  ;;  %v2883_v15 = vrot.slane %v2881_v5, 5  ;;  %v6679_v24 = vrot.slane %v6653_v1, 9 }
 0x125   : > { %7352 = vmatmul.mubr.bf16.gmra.mrb[8].mxu0 %v6705_v29  ;;  %v2852_v60 = vsel %vm7882_vm2, %v2847_v42, %v2851_v19  ;;  %v2860_v29 = vor.u32 %v2859_v41, %v2856_v43  ;;  %v5418_v14 = vsel %vm7982_vm5, %v5416_v3, %v5417_v30  ;;  %v2889_v17 = vrot.slane %v2887_v6, 5  ;;  %v6656_v43 = vld [vmem:[%s7859_s14 + $0xa8] sm:$0xe] }
 0x126   : > { %7355 = vmatprep.mubr.bf16.mxu0 %v6706_v36  ;;  %v6341_v59 = vcombine.low %v2842_v48, %v2852_v60  ;;  %v2878_v36 = vshrl.u32 %v6301_v54, 16  ;;  %v2897_v19 = vshll.u32 %v6303_v63, 16  ;;  %v6710_v22 = vcombine.low %v8811_v2, %v5418_v14  ;;  %v6307_v54 = vld [vmem:[%s7859_s14 + $0xa8] sm:$0xf]  ;;  %v6659_v2 = vld [vmem:[%s7859_s14 + $0xb4] sm:$0xe] }
 0x127   : > { %7132 = vmatmul.mubr.bf16.gmra.mrb[28].mxu1 %v7775_v9  ;;  %v2861_v0 = vrot.slane %v2860_v29, 4  ;;  %v2871_v9 = vrot.slane %v2870_v16, 4  ;;  %v2893_v23 = vrot.slane %v2891_v11, 4  ;;  %v5421_v32 = vrot.slane %v6654_v7, 5  ;;  %v6661_v14 = vld [vmem:[%s7859_s14 + $0xbc] sm:$0x1] }
 0x128   : > { %7167 = vmatprep.mubr.bf16.mxu1 %v6340_v26  ;;  %v2880_v10 = vrot.slane %v2878_v36, 4  ;;  %v2899_v31 = vrot.slane %v2897_v19, 5  ;;  %v5424_v35 = vrot.slane %v6655_v13, 5  ;;  %v2902_v40 = vshrl.u32 %v6304_v20, 16 }
 0x129   : > { %v2866_v8 = vsel %vm7882_vm2, %v2861_v0, %v2865_v50  ;;  %v2876_v21 = vsel %vm7882_vm2, %v2871_v9, %v2875_v61  ;;  %v2894_v34 = vor.u32 %v2893_v23, %v2889_v17  ;;  %v2905_v27 = vshll.u32 %v6304_v20, 16  ;;  %v6309_v0 = vld [vmem:[%s7859_s14 + $0xb0] sm:$0x1]  ;;  %v6311_v23 = vld [vmem:[%s7859_s14 + $0xb8] sm:$0xf] }
 0x12a   : > { %v6342_v26 = vcombine.low %v2866_v8, %v2876_v21  ;;  %v2884_v28 = vor.u32 %v2883_v15, %v2880_v10  ;;  %v8833_v46 = vsel %vm7982_vm5, %v6679_v24, %v5421_v32  ;;  %v2911_v42 = vshll.u32 %v6305_v25, 16  ;;  %v6660_v8 = vld [vmem:[%s7859_s14 + $0xb8] sm:$0xf] }
 0x12b   : > { %v2895_v58 = vrot.slane %v2894_v34, 4  ;;  %v2904_v18 = vrot.slane %v2902_v40, 4  ;;  %v2915_v41 = vshrl.u32 %v6305_v25, 16  ;;  %v2921_v51 = vshll.u32 %v6306_v39, 16  ;;  %v6312_v34 = vld [vmem:[%s7859_s14 + $0xbc] sm:$0x1] }
 0x12c   : > { %v2885_v37 = vrot.slane %v2884_v28, 4  ;;  %v2913_v50 = vrot.slane %v2911_v42, 5  ;;  %v6680_v62 = vrot.slane %v6656_v43, 9  ;;  %v5428_v63 = vrot.slane %v6657_v44, 5 }
 0x12d   : > { %7356 = vmatmul.mubr.bf16.gmra.mrb[12].mxu0 %v6707_v52  ;;  %v5423_v52 = vrot.slane %v5421_v32, 4  ;;  %v2900_v60 = vsel %vm7882_vm2, %v2895_v58, %v2899_v31  ;;  %v2917_v57 = vrot.slane %v2915_v41, 4  ;;  %v2923_v56 = vrot.slane %v2921_v51, 5  ;;  %v6313_v51 = vld [vmem:[%s7859_s14 + $0xc0] sm:$0xf] }
 0x12e   : > { %7359 = vmatprep.mubr.bf16.mxu0 %v6708_v12  ;;  %v2907_v12 = vrot.slane %v2905_v27, 5  ;;  %v2890_v45 = vsel %vm7882_vm2, %v2885_v37, %v2889_v17  ;;  %v5431_v36 = vrot.slane %v6658_v53, 5  ;;  %v2926_v1 = vshrl.u32 %v6307_v54, 16  ;;  %v6310_v17 = vld [vmem:[%s7859_s14 + $0xb4] sm:$0xf] }
 0x12f   : > { %7168 = vmatmul.mubr.bf16.vlgmr.msra.gmra.mrb[16].mxu1 %v6341_v59  ;;  %v8841_v48 = vsel %vm7982_vm5, %v5423_v52, %v5424_v35  ;;  %v6308_v59 = vld [vmem:[%s7859_s14 + $0xac] sm:$0xf]  ;;  %v6343_v61 = vcombine.low %v2890_v45, %v2900_v60  ;;  %v2918_v30 = vor.u32 %v2917_v57, %v2913_v50  ;;  %v5429_v3 = vsel %vm7982_vm5, %v6680_v62, %v5428_v63  ;;  %v6662_v52 = vld [vmem:[%s7859_s14 + $0xc0] sm:$0xe] }
 0x130   : > { %7171 = vmatprep.mubr.bf16.mxu1 %v6342_v26  ;;  %v6711_v29 = vcombine.low %v8833_v46, %v8841_v48  ;;  %v2908_v55 = vor.u32 %v2907_v12, %v2904_v18  ;;  %v5430_v5 = vrot.slane %v5428_v63, 4  ;;  %v2929_v6 = vshll.u32 %v6307_v54, 16  ;;  %v6663_v12 = vld [vmem:[%s7859_s14 + $0xc4] sm:$0xf] }
 0x131   : > { %v2935_v7 = vshll.u32 %v6308_v59, 16  ;;  %v2919_v10 = vrot.slane %v2918_v30, 4  ;;  %v2928_v11 = vrot.slane %v2926_v1, 4  ;;  %v2939_v13 = vshrl.u32 %v6308_v59, 16 }
 0x132   : > { %v2909_v16 = vrot.slane %v2908_v55, 4  ;;  %v5432_v38 = vsel %vm7982_vm5, %v5430_v5, %v5431_v36  ;;  %v2931_v49 = vrot.slane %v2929_v6, 5  ;;  %v2945_v15 = vshll.u32 %v6309_v0, 16  ;;  %v6665_v5 = vld [vmem:[%s7859_s14 + $0xcc] sm:$0xe] }
 0x133   : > { %v2924_v19 = vsel %vm7882_vm2, %v2919_v10, %v2923_v56  ;;  %v6712_v20 = vcombine.low %v5429_v3, %v5432_v38  ;;  %v2941_v21 = vrot.slane %v2939_v13, 4  ;;  %v5435_v28 = vrot.slane %v6660_v8, 5  ;;  %v6666_v10 = vld [vmem:[%s7859_s14 + $0xd0] sm:$0xf] }
 0x134   : > { %v2914_v9 = vsel %vm7882_vm2, %v2909_v16, %v2913_v50  ;;  %v2932_v25 = vor.u32 %v2931_v49, %v2928_v11  ;;  %v2947_v26 = vrot.slane %v2945_v15, 5  ;;  %v5438_v32 = vrot.slane %v6661_v14, 5  ;;  %v6664_v50 = vld [vmem:[%s7859_s14 + $0xc8] sm:$0x1]  ;;  %v6667_v49 = vld [vmem:[%s7859_s14 + $0xd4] sm:$0x1] }
 0x135   : > { %7360 = vmatmul.mubr.bf16.gmra.mrb[16].mxu0 %v6709_v47  ;;  %v2937_v47 = vrot.slane %v2935_v7, 5  ;;  %v6344_v24 = vcombine.low %v2914_v9, %v2924_v19  ;;  %v2950_v35 = vshrl.u32 %v6310_v17, 16  ;;  %v2953_v39 = vshll.u32 %v6310_v17, 16  ;;  %v6315_v16 = vld [vmem:[%s7859_s14 + $0xc8] sm:$0x1] }
 0x136   : > { %7363 = vmatprep.mubr.bf16.mxu0 %v6710_v22  ;;  %v6681_v22 = vrot.slane %v6659_v2, 9  ;;  %v2933_v40 = vrot.slane %v2932_v25, 4  ;;  %v5437_v37 = vrot.slane %v5435_v28, 4  ;;  %v2959_v46 = vshll.u32 %v6311_v23, 16 }
 0x137   : > { %7172 = vmatmul.mubr.bf16.gmra.mrb[20].mxu1 %v6343_v61  ;;  %v2942_v31 = vor.u32 %v2941_v21, %v2937_v47  ;;  %v2952_v43 = vrot.slane %v2950_v35, 4  ;;  %v2955_v58 = vrot.slane %v2953_v39, 5  ;;  %v2963_v18 = vshrl.u32 %v6311_v23, 16 }
 0x138   : > { %7175 = vmatprep.mubr.bf16.mxu1 %v6344_v24  ;;  %v5436_v27 = vsel %vm7982_vm5, %v6681_v22, %v5435_v28  ;;  %v2938_v41 = vsel %vm7882_vm2, %v2933_v40, %v2937_v47  ;;  %v5439_v44 = vsel %vm7982_vm5, %v5437_v37, %v5438_v32  ;;  %v2961_v45 = vrot.slane %v2959_v46, 5 }
 0x139   : > { %v2943_v42 = vrot.slane %v2942_v31, 4  ;;  %v2969_v48 = vshll.u32 %v6312_v34, 16  ;;  %v6713_v54 = vcombine.low %v5436_v27, %v5439_v44  ;;  %v2956_v60 = vor.u32 %v2955_v58, %v2952_v43 }
 0x13a   : > { %v2965_v55 = vrot.slane %v2963_v18, 4  ;;  %v6682_v61 = vrot.slane %v6662_v52, 9  ;;  %v5442_v56 = vrot.slane %v6663_v12, 5  ;;  %v5445_v0 = vrot.slane %v6664_v50, 5 }
 0x13b   : > { %v2948_v53 = vsel %vm7882_vm2, %v2943_v42, %v2947_v26  ;;  %v2971_v59 = vrot.slane %v2969_v48, 5  ;;  %v2957_v62 = vrot.slane %v2956_v60, 4  ;;  %v2974_v30 = vshrl.u32 %v6313_v51, 16 }
 0x13c   : > { %v6345_v57 = vcombine.low %v2938_v41, %v2948_v53  ;;  %v2966_v63 = vor.u32 %v2965_v55, %v2961_v45  ;;  %v5443_v36 = vsel %vm7982_vm5, %v6682_v61, %v5442_v56  ;;  %v5444_v1 = vrot.slane %v5442_v56, 4 }
 0x13d   : > { %7364 = vmatmul.mubr.bf16.gmra.mrb[20].mxu0 %v6711_v29  ;;  %v6314_v29 = vld [vmem:[%s7859_s14 + $0xc4] sm:$0xf]  ;;  %v2977_v2 = vshll.u32 %v6313_v51, 16  ;;  %v2962_v6 = vsel %vm7882_vm2, %v2957_v62, %v2961_v45  ;;  %v2976_v8 = vrot.slane %v2974_v30, 4  ;;  %v2993_v38 = vshll.u32 %v6315_v16, 16  ;;  %s6726_s14 = sshll.u32 %s8970_s13, 8 }
 0x13e   : > { %7367 = vmatprep.mubr.bf16.mxu0 %v6712_v20  ;;  %v2983_v3 = vshll.u32 %v6314_v29, 16  ;;  %v2967_v7 = vrot.slane %v2966_v63, 4  ;;  %v2987_v9 = vshrl.u32 %v6314_v29, 16  ;;  %v5446_v11 = vsel %vm7982_vm5, %v5444_v1, %v5445_v0  ;;  %s8915_s8 = scalar_lea.vmem %s8963_s2, %s6726_s14 }
 0x13f   : > { %7176 = vmatmul.mubr.bf16.gmra.mrb[24].mxu1 %v6345_v57  ;;  %v2979_v13 = vrot.slane %v2977_v2, 5  ;;  %v6714_v15 = vcombine.low %v5443_v36, %v5446_v11  ;;  %v6683_v19 = vrot.slane %v6665_v5, 9  ;;  %v5449_v22 = vrot.slane %v6666_v10, 5 }
 0x140   : > { %v2985_v14 = vrot.slane %v2983_v3, 5  ;;  %v2972_v47 = vsel %vm7882_vm2, %v2967_v7, %v2971_v59  ;;  %v2989_v17 = vrot.slane %v2987_v9, 4  ;;  %v2995_v24 = vrot.slane %v2993_v38, 5 }
 0x141   : > { %v6346_v20 = vcombine.low %v2962_v6, %v2972_v47  ;;  %v2980_v21 = vor.u32 %v2979_v13, %v2976_v8  ;;  %v5452_v25 = vrot.slane %v6667_v49, 5  ;;  %v5450_v28 = vsel %vm7982_vm5, %v6683_v19, %v5449_v22 }
 0x142   : > { %v2990_v23 = vor.u32 %v2989_v17, %v2985_v14  ;;  %v5451_v31 = vrot.slane %v5449_v22, 4 }
 0x143   : > { %7179 = vmatprep.mubr.bf16.mxu1 %v6346_v20  ;;  %v2981_v26 = vrot.slane %v2980_v21, 4 }
 0x144   : > { %v2991_v32 = vrot.slane %v2990_v23, 4  ;;  %v5453_v35 = vsel %vm7982_vm5, %v5451_v31, %v5452_v25 }
 0x145   : > { %7368 = vmatmul.mubr.bf16.gmra.mrb[24].mxu0 %v6713_v54  ;;  %v2986_v34 = vsel %vm7882_vm2, %v2981_v26, %v2985_v14  ;;  %v6715_v40 = vcombine.low %v5450_v28, %v5453_v35 }
 0x146   : > { %7371 = vmatprep.mubr.bf16.mxu0 %v6714_v15  ;;  %v2996_v39 = vsel %vm7882_vm2, %v2991_v32, %v2995_v24 }
 0x147   : > { %v6347_v27 = vcombine.low %v2986_v34, %v2996_v39 }
 0x149   : > { %7180 = vmatmul.mubr.bf16.gmra.mrb[28].mxu1 %v6347_v27 }
 0x14d   : > { %7372 = vmatmul.mubr.bf16.gmra.mrb[28].mxu0 %v6715_v40 }
 0x1c2   : > { %v7105_v37 = vpop.f32.mrb[0].mxu1 }
 0x1c3   : > { %v2342_v46 = vpop.f32.mrb[1].mxu1 }
 0x1c4   : > { %v7106_v52 = vpop.f32.mrb[2].mxu1 }
 0x1c5   : > { %v2345_v42 = vpop.f32.mrb[3].mxu1 }
 0x1ca   : > { %v7109_v43 = vpop.f32.mrb[4].mxu1 }
 0x1cb   : > { %v2358_v58 = vpop.f32.mrb[5].mxu1 }
 0x1cc   : > { %v7110_v18 = vpop.f32.mrb[6].mxu1 }
 0x1cd   : > { %v2361_v12 = vpop.f32.mrb[7].mxu1 }
 0x1d2   : > { %v7113_v41 = vpop.f32.mrb[8].mxu1 }
 0x1d3   : > { %v2374_v44 = vpop.f32.mrb[9].mxu1 }
 0x1d4   : > { %v7114_v4 = vpop.f32.mrb[10].mxu1 }
 0x1d5   : > { %v8901_v45 = vpop.f32.mrb[11].mxu1 }
 0x1da   : > { %v8903_v33 = vpop.f32.mrb[12].mxu1 }
 0x1db   : > { %v8905_v48 = vpop.f32.mrb[13].mxu1 }
 0x1dc   : > { %v8907_v50 = vpop.f32.mrb[14].mxu1 }
 0x1dd   : > { %v8909_v51 = vpop.f32.mrb[15].mxu1 }
 0x1e8   : > { %v7345_v53 = vpop.f32.mrb[0].mxu0 }
 0x1e9   : > { %v7391_v54 = vadd.f32 %v7345_v53, %v7105_v37  ;;  %v5617_v60 = vpop.f32.mrb[1].mxu0 }
 0x1ea   : > { %v7392_v55 = vadd.f32 %v5617_v60, %v2342_v46  ;;  %v7346_v29 = vpop.f32.mrb[2].mxu0 }
 0x1eb   : > { %5842 = vst [vmem:[%s8915_s8 + $0x10] sm:$0xff] %v7391_v54  ;;  %v7393_v57 = vadd.f32 %v7346_v29, %v7106_v52  ;;  %v5620_v59 = vpop.f32.mrb[3].mxu0  ;;  %v5911_v0 = vmul.f32 %v7391_v54, %v7391_v54 }
 0x1ec   : > { %5840 = vst [vmem:[%s8915_s8] sm:$0xff] %v7392_v55  ;;  %v7394_v61 = vadd.f32 %v5620_v59, %v2345_v42  ;;  %v5909_v56 = vmul.f32 %v7392_v55, %v7392_v55 }
 0x1ed   : > { %5843 = vst [vmem:[%s8915_s8 + $0x18] sm:$0xff] %v7393_v57  ;;  %v5912_v3 = vmul.f32 %v7393_v57, %v7393_v57 }
 0x1ee   : > { %5841 = vst [vmem:[%s8915_s8 + $0x8] sm:$0xff] %v7394_v61  ;;  %v5872_v62 = vadd.f32 %v7394_v61, %v7392_v55  ;;  %v5910_v63 = vmul.f32 %v7394_v61, %v7394_v61 }
 0x1f0   : > { %v5873_v16 = vadd.f32 %v7391_v54, %v5872_v62  ;;  %v5941_v30 = vadd.f32 %v5910_v63, %v5909_v56  ;;  %v7349_v36 = vpop.f32.mrb[4].mxu0 }
 0x1f1   : > { %v7395_v1 = vadd.f32 %v7349_v36, %v7109_v43  ;;  %v5633_v2 = vpop.f32.mrb[5].mxu0 }
 0x1f2   : > { %v5942_v5 = vadd.f32 %v5941_v30, %v5911_v0  ;;  %v7396_v6 = vadd.f32 %v5633_v2, %v2358_v58  ;;  %v5874_v7 = vadd.f32 %v7393_v57, %v5873_v16  ;;  %v7350_v8 = vpop.f32.mrb[6].mxu0 }
 0x1f3   : > { %5846 = vst [vmem:[%s8915_s8 + $0x30] sm:$0xff] %v7395_v1  ;;  %v7397_v9 = vadd.f32 %v7350_v8, %v7110_v18  ;;  %v5636_v10 = vpop.f32.mrb[7].mxu0  ;;  %v5915_v17 = vmul.f32 %v7395_v1, %v7395_v1 }
 0x1f4   : > { %5844 = vst [vmem:[%s8915_s8 + $0x20] sm:$0xff] %v7396_v6  ;;  %v5875_v11 = vadd.f32 %v7396_v6, %v5874_v7  ;;  %v5913_v13 = vmul.f32 %v7396_v6, %v7396_v6  ;;  %v5943_v14 = vadd.f32 %v5942_v5, %v5912_v3  ;;  %v7398_v38 = vadd.f32 %v5636_v10, %v2361_v12 }
 0x1f5   : > { %5847 = vst [vmem:[%s8915_s8 + $0x38] sm:$0xff] %v7397_v9  ;;  %v5916_v24 = vmul.f32 %v7397_v9, %v7397_v9 }
 0x1f6   : > { %v5944_v49 = vadd.f32 %v5943_v14, %v5913_v13  ;;  %5845 = vst [vmem:[%s8915_s8 + $0x28] sm:$0xff] %v7398_v38  ;;  %v5876_v47 = vadd.f32 %v7398_v38, %v5875_v11  ;;  %v5914_v15 = vmul.f32 %v7398_v38, %v7398_v38 }
 0x1f8   : > { %v5877_v19 = vadd.f32 %v7395_v1, %v5876_v47  ;;  %v5945_v20 = vadd.f32 %v5944_v49, %v5914_v15  ;;  %v7353_v21 = vpop.f32.mrb[8].mxu0 }
 0x1f9   : > { %v7399_v22 = vadd.f32 %v7353_v21, %v7113_v41  ;;  %v5649_v23 = vpop.f32.mrb[9].mxu0 }
 0x1fa   : > { %v5946_v25 = vadd.f32 %v5945_v20, %v5915_v17  ;;  %v7400_v26 = vadd.f32 %v5649_v23, %v2374_v44  ;;  %v5878_v28 = vadd.f32 %v7397_v9, %v5877_v19  ;;  %v7354_v31 = vpop.f32.mrb[10].mxu0 }
 0x1fb   : > { %5850 = vst [vmem:[%s8915_s8 + $0x50] sm:$0xff] %v7399_v22  ;;  %v7401_v32 = vadd.f32 %v7354_v31, %v7114_v4  ;;  %v5652_v34 = vpop.f32.mrb[11].mxu0  ;;  %v5919_v58 = vmul.f32 %v7399_v22, %v7399_v22 }
 0x1fc   : > { %5848 = vst [vmem:[%s8915_s8 + $0x40] sm:$0xff] %v7400_v26  ;;  %v5879_v35 = vadd.f32 %v7400_v26, %v5878_v28  ;;  %v5917_v39 = vmul.f32 %v7400_v26, %v7400_v26  ;;  %v5947_v40 = vadd.f32 %v5946_v25, %v5916_v24  ;;  %v7402_v27 = vadd.f32 %v5652_v34, %v8901_v45 }
 0x1fd   : > { %5851 = vst [vmem:[%s8915_s8 + $0x58] sm:$0xff] %v7401_v32  ;;  %v5920_v45 = vmul.f32 %v7401_v32, %v7401_v32 }
 0x1fe   : > { %v5948_v37 = vadd.f32 %v5947_v40, %v5917_v39  ;;  %5849 = vst [vmem:[%s8915_s8 + $0x48] sm:$0xff] %v7402_v27  ;;  %v5880_v46 = vadd.f32 %v7402_v27, %v5879_v35  ;;  %v5918_v52 = vmul.f32 %v7402_v27, %v7402_v27 }
 0x200   : > { %v5881_v18 = vadd.f32 %v7399_v22, %v5880_v46  ;;  %v5949_v12 = vadd.f32 %v5948_v37, %v5918_v52  ;;  %v7357_v41 = vpop.f32.mrb[12].mxu0 }
 0x201   : > { %v7403_v4 = vadd.f32 %v7357_v41, %v8903_v33  ;;  %v5665_v53 = vpop.f32.mrb[13].mxu0 }
 0x202   : > { %v7169_v42 = vpop.f32.mrb[16].mxu1  ;;  %v5950_v60 = vadd.f32 %v5949_v12, %v5919_v58  ;;  %v7404_v55 = vadd.f32 %v5665_v53, %v8905_v48  ;;  %v5882_v29 = vadd.f32 %v7401_v32, %v5881_v18  ;;  %v7358_v57 = vpop.f32.mrb[14].mxu0 }
 0x203   : > { %v3224_v43 = vpop.f32.mrb[17].mxu1  ;;  %5854 = vst [vmem:[%s8915_s8 + $0x70] sm:$0xff] %v7403_v4  ;;  %v7405_v59 = vadd.f32 %v7358_v57, %v8907_v50  ;;  %v5668_v61 = vpop.f32.mrb[15].mxu0  ;;  %v5923_v36 = vmul.f32 %v7403_v4, %v7403_v4 }
 0x204   : > { %v7170_v44 = vpop.f32.mrb[18].mxu1  ;;  %5852 = vst [vmem:[%s8915_s8 + $0x60] sm:$0xff] %v7404_v55  ;;  %v5883_v56 = vadd.f32 %v7404_v55, %v5882_v29  ;;  %v5921_v62 = vmul.f32 %v7404_v55, %v7404_v55  ;;  %v5951_v63 = vadd.f32 %v5950_v60, %v5920_v45  ;;  %v7406_v33 = vadd.f32 %v5668_v61, %v8909_v51 }
 0x205   : > { %v3227_v54 = vpop.f32.mrb[19].mxu1  ;;  %5855 = vst [vmem:[%s8915_s8 + $0x78] sm:$0xff] %v7405_v59  ;;  %v5924_v7 = vmul.f32 %v7405_v59, %v7405_v59 }
 0x206   : > { %v5952_v0 = vadd.f32 %v5951_v63, %v5921_v62  ;;  %5853 = vst [vmem:[%s8915_s8 + $0x68] sm:$0xff] %v7406_v33  ;;  %v5884_v16 = vadd.f32 %v7406_v33, %v5883_v56  ;;  %v5922_v30 = vmul.f32 %v7406_v33, %v7406_v33 }
 0x208   : > { %v5885_v48 = vadd.f32 %v7403_v4, %v5884_v16  ;;  %v5953_v1 = vadd.f32 %v5952_v0, %v5922_v30  ;;  %v7361_v2 = vpop.f32.mrb[16].mxu0 }
 0x209   : > { %v7407_v50 = vadd.f32 %v7361_v2, %v7169_v42  ;;  %v5681_v5 = vpop.f32.mrb[17].mxu0 }
 0x20a   : > { %v7173_v3 = vpop.f32.mrb[20].mxu1  ;;  %v5954_v8 = vadd.f32 %v5953_v1, %v5923_v36  ;;  %v7408_v51 = vadd.f32 %v5681_v5, %v3224_v43  ;;  %v5886_v9 = vadd.f32 %v7405_v59, %v5885_v48  ;;  %v7362_v10 = vpop.f32.mrb[18].mxu0 }
 0x20b   : > { %v3240_v6 = vpop.f32.mrb[21].mxu1  ;;  %5858 = vst [vmem:[%s8915_s8 + $0x90] sm:$0xff] %v7407_v50  ;;  %v7409_v13 = vadd.f32 %v7362_v10, %v7170_v44  ;;  %v5684_v14 = vpop.f32.mrb[19].mxu0  ;;  %v5927_v22 = vmul.f32 %v7407_v50, %v7407_v50 }
 0x20c   : > { %v7174_v11 = vpop.f32.mrb[22].mxu1  ;;  %5856 = vst [vmem:[%s8915_s8 + $0x80] sm:$0xff] %v7408_v51  ;;  %v5887_v49 = vadd.f32 %v7408_v51, %v5886_v9  ;;  %v5925_v47 = vmul.f32 %v7408_v51, %v7408_v51  ;;  %v5955_v15 = vadd.f32 %v5954_v8, %v5924_v7  ;;  %v7410_v17 = vadd.f32 %v5684_v14, %v3227_v54 }
 0x20d   : > { %v3243_v38 = vpop.f32.mrb[23].mxu1  ;;  %5859 = vst [vmem:[%s8915_s8 + $0x98] sm:$0xff] %v7409_v13  ;;  %v5928_v31 = vmul.f32 %v7409_v13, %v7409_v13 }
 0x20e   : > { %v5956_v19 = vadd.f32 %v5955_v15, %v5925_v47  ;;  %5857 = vst [vmem:[%s8915_s8 + $0x88] sm:$0xff] %v7410_v17  ;;  %v5888_v20 = vadd.f32 %v7410_v17, %v5887_v49  ;;  %v5926_v21 = vmul.f32 %v7410_v17, %v7410_v17 }
 0x210   : > { %v5889_v23 = vadd.f32 %v7407_v50, %v5888_v20  ;;  %v5957_v24 = vadd.f32 %v5956_v19, %v5926_v21  ;;  %v7365_v25 = vpop.f32.mrb[20].mxu0 }
 0x211   : > { %v7411_v26 = vadd.f32 %v7365_v25, %v7173_v3  ;;  %v5697_v28 = vpop.f32.mrb[21].mxu0 }
 0x212   : > { %v5958_v32 = vadd.f32 %v5957_v24, %v5927_v22  ;;  %v7412_v34 = vadd.f32 %v5697_v28, %v3240_v6  ;;  %v5890_v35 = vadd.f32 %v7409_v13, %v5889_v23  ;;  %v7366_v39 = vpop.f32.mrb[22].mxu0  ;;  %v7177_v43 = vpop.f32.mrb[24].mxu1 }
 0x213   : > { %5862 = vst [vmem:[%s8915_s8 + $0xb0] sm:$0xff] %v7411_v26  ;;  %v7413_v40 = vadd.f32 %v7366_v39, %v7174_v11  ;;  %v5700_v27 = vpop.f32.mrb[23].mxu0  ;;  %v3256_v58 = vpop.f32.mrb[25].mxu1  ;;  %v5931_v53 = vmul.f32 %v7411_v26, %v7411_v26 }
 0x214   : > { %5860 = vst [vmem:[%s8915_s8 + $0xa0] sm:$0xff] %v7412_v34  ;;  %v5891_v37 = vadd.f32 %v7412_v34, %v5890_v35  ;;  %v5929_v46 = vmul.f32 %v7412_v34, %v7412_v34  ;;  %v5959_v52 = vadd.f32 %v5958_v32, %v5928_v31  ;;  %v7414_v42 = vadd.f32 %v5700_v27, %v3243_v38  ;;  %v7178_v44 = vpop.f32.mrb[26].mxu1 }
 0x215   : > { %5863 = vst [vmem:[%s8915_s8 + $0xb8] sm:$0xff] %v7413_v40  ;;  %v3259_v4 = vpop.f32.mrb[27].mxu1  ;;  %v5932_v57 = vmul.f32 %v7413_v40, %v7413_v40 }
 0x216   : > { %v5960_v18 = vadd.f32 %v5959_v52, %v5929_v46  ;;  %5861 = vst [vmem:[%s8915_s8 + $0xa8] sm:$0xff] %v7414_v42  ;;  %v5892_v12 = vadd.f32 %v7414_v42, %v5891_v37  ;;  %v5930_v41 = vmul.f32 %v7414_v42, %v7414_v42 }
 0x218   : > { %v5893_v54 = vadd.f32 %v7411_v26, %v5892_v12  ;;  %v5961_v45 = vadd.f32 %v5960_v18, %v5930_v41  ;;  %v7369_v60 = vpop.f32.mrb[24].mxu0 }
 0x219   : > { %v7415_v55 = vadd.f32 %v7369_v60, %v7177_v43  ;;  %v5713_v29 = vpop.f32.mrb[25].mxu0 }
 0x21a   : > { %v5962_v59 = vadd.f32 %v5961_v45, %v5931_v53  ;;  %v7416_v61 = vadd.f32 %v5713_v29, %v3256_v58  ;;  %v5894_v56 = vadd.f32 %v7413_v40, %v5893_v54  ;;  %v7370_v62 = vpop.f32.mrb[26].mxu0 }
 0x21b   : > { %5866 = vst [vmem:[%s8915_s8 + $0xd0] sm:$0xff] %v7415_v55  ;;  %v7417_v63 = vadd.f32 %v7370_v62, %v7178_v44  ;;  %v5716_v33 = vpop.f32.mrb[27].mxu0  ;;  %v5935_v3 = vmul.f32 %v7415_v55, %v7415_v55 }
 0x21c   : > { %5864 = vst [vmem:[%s8915_s8 + $0xc0] sm:$0xff] %v7416_v61  ;;  %v5895_v0 = vadd.f32 %v7416_v61, %v5894_v56  ;;  %v5933_v16 = vmul.f32 %v7416_v61, %v7416_v61  ;;  %v5963_v30 = vadd.f32 %v5962_v59, %v5932_v57  ;;  %v7418_v36 = vadd.f32 %v5716_v33, %v3259_v4  ;;  %v7181_v6 = vpop.f32.mrb[28].mxu1 }
 0x21d   : > { %5867 = vst [vmem:[%s8915_s8 + $0xd8] sm:$0xff] %v7417_v63  ;;  %v3272_v51 = vpop.f32.mrb[29].mxu1  ;;  %v5936_v10 = vmul.f32 %v7417_v63, %v7417_v63 }
 0x21e   : > { %v5964_v48 = vadd.f32 %v5963_v30, %v5933_v16  ;;  %5865 = vst [vmem:[%s8915_s8 + $0xc8] sm:$0xff] %v7418_v36  ;;  %v5896_v1 = vadd.f32 %v7418_v36, %v5895_v0  ;;  %v5934_v2 = vmul.f32 %v7418_v36, %v7418_v36  ;;  %v7182_v38 = vpop.f32.mrb[30].mxu1 }
 0x21f   : > { %v3275_v15 = vpop.f32.mrb[31].mxu1 }
 0x220   : > { %v5897_v50 = vadd.f32 %v7415_v55, %v5896_v1  ;;  %v5965_v5 = vadd.f32 %v5964_v48, %v5934_v2  ;;  %v7373_v7 = vpop.f32.mrb[28].mxu0 }
 0x221   : > { %v7419_v8 = vadd.f32 %v7373_v7, %v7181_v6  ;;  %v5729_v9 = vpop.f32.mrb[29].mxu0 }
 0x222   : > { %v5966_v11 = vadd.f32 %v5965_v5, %v5935_v3  ;;  %v7420_v13 = vadd.f32 %v5729_v9, %v3272_v51  ;;  %v5898_v14 = vadd.f32 %v7417_v63, %v5897_v50  ;;  %v7374_v49 = vpop.f32.mrb[30].mxu0 }
 0x223   : > { %5870 = vst [vmem:[%s8915_s8 + $0xf0] sm:$0xff] %v7419_v8  ;;  %v7421_v47 = vadd.f32 %v7374_v49, %v7182_v38  ;;  %v5732_v17 = vpop.f32.mrb[31].mxu0  ;;  %v5939_v26 = vmul.f32 %v7419_v8, %v7419_v8 }
 0x224   : > { %5868 = vst [vmem:[%s8915_s8 + $0xe0] sm:$0xff] %v7420_v13  ;;  %v5899_v19 = vadd.f32 %v7420_v13, %v5898_v14  ;;  %v5937_v20 = vmul.f32 %v7420_v13, %v7420_v13  ;;  %v5967_v21 = vadd.f32 %v5966_v11, %v5936_v10  ;;  %v7422_v22 = vadd.f32 %v5732_v17, %v3275_v15 }
 0x225   : > { %5871 = vst [vmem:[%s8915_s8 + $0xf8] sm:$0xff] %v7421_v47  ;;  %v5940_v32 = vmul.f32 %v7421_v47, %v7421_v47 }
 0x226   : > { %v5968_v23 = vadd.f32 %v5967_v21, %v5937_v20  ;;  %5869 = vst [vmem:[%s8915_s8 + $0xe8] sm:$0xff] %v7422_v22  ;;  %v5900_v24 = vadd.f32 %v7422_v22, %v5899_v19  ;;  %v5938_v25 = vmul.f32 %v7422_v22, %v7422_v22 }
 0x228   : > { %v5901_v28 = vadd.f32 %v7419_v8, %v5900_v24  ;;  %v5969_v31 = vadd.f32 %v5968_v23, %v5938_v25 }
 0x22a   : > { %v5902_v34 = vadd.f32 %v7421_v47, %v5901_v28  ;;  %v5970_v35 = vadd.f32 %v5969_v31, %v5939_v26 }
 0x22c   : > { %v5903_v39 = vrot.slane %v5902_v34, 4  ;;  %v5971_v40 = vadd.f32 %v5970_v35, %v5940_v32 }
 0x22e   : > { %v5904_v27 = vadd.f32 %v5903_v39, %v5902_v34  ;;  %v5972_v37 = vrot.slane %v5971_v40, 4 }
 0x230   : > { %v5905_v46 = vrot.slane %v5904_v27, 2  ;;  %v5973_v52 = vadd.f32 %v5972_v37, %v5971_v40 }
 0x232   : > { %v5906_v42 = vadd.f32 %v5905_v46, %v5904_v27  ;;  %v5974_v43 = vrot.slane %v5973_v52, 2 }
 0x234   : > { %v5907_v58 = vrot.slane %v5906_v42, 1  ;;  %v5975_v18 = vadd.f32 %v5974_v43, %v5973_v52 }
 0x236   : > { %v5976_v12 = vrot.slane %v5975_v18, 1  ;;  %v5908_v41 = vadd.f32 %v5907_v58, %v5906_v42 }
 0x238   : > { %v5977_v44 = vadd.f32 %v5976_v12, %v5975_v18 }
 0x23a   : > { %v5979_v4 = vsel %vm5978_vm6, %v5908_v41, %v5977_v44 }
 0x23b   : > { %5980 = vst [vmem:[%s181_s15] sm:$0x3] %v5979_v4 }
 0x23c PF: > { %s14_s12 = sadd.s32 1, %s7790_s12  }
 0x23d   : > { %p11_p4 = scmp.ge.s32.totalorder %s14_s12, 4  }
 0x23f   :  { %13 = sbr.rel (!%p11_p4) target bundleno = 1 (0x1), region = 80 }

</bundles_post_ra>
